<compile_context>
chip_gen: v7x
topology: tpu7x:2x2x1
jax: 0.10.0
libtpu: 0.0.40
codegen_flags: <defaults>
</compile_context>

<pallas_src>
import jax
import jax.numpy as jnp
from jax import lax
from jax.experimental import pallas as pl
from jax.experimental.pallas import tpu as pltpu


_MIN_PALLAS_ROWS = 512             # below this, XLA's fused gather beats kernel launch cost
_ONEHOT_MAX_NODES = 2048           # one-hot/MXU path only while K = num_nodes is small
_RESIDENT_TABLE_BYTES = 8 * 2**20  # and the single-buffered table comfortably fits VMEM
_STREAM_DMA_DEPTH = 8              # row DMAs in flight in the manual-gather fallback


def _round_up(x, m):
    return (x + m - 1) // m * m


def _row_block():
    """Rows gathered per grid step: 256 matches the 256-wide MXU M dim on
    v6e/v7x; v5e's MXU is 4x128x128 so 128 already saturates it."""
    try:
        kind = jax.devices()[0].device_kind.lower()
    except Exception:
        kind = ""
    if "v5 lite" in kind or "v5e" in kind or "v5litepod" in kind:
        return 128
    return 256


# ---------------------------------------------------------------------------
# Resident fast path: whole table single-buffered in VMEM (untiled
# memory_space=VMEM operand -> one DMA, no per-step refetch, no double buffer).
# Gather = onehot(ids) @ table on the MXU; output tiles are (ROWS, width):
# full-sublane, full-lane stores.
# ---------------------------------------------------------------------------
def _onehot_gather_kernel(ids_ref, table_ref, out_ref):
    ids = ids_ref[...]                                        # (ROWS, 1) int32
    rows = ids.shape[0]
    num_nodes = table_ref.shape[0]
    cols = lax.broadcasted_iota(jnp.int32, (rows, num_nodes), 1)
    onehot_f32 = (ids == cols).astype(jnp.float32)            # exact 0.0 / 1.0
    table = table_ref[...]
    if table.dtype == jnp.bfloat16:
        # native-rate bf16 MXU matmul; 1.0 * bf16 row is an exact copy
        gathered = jnp.dot(onehot_f32.astype(jnp.bfloat16), table,
                           preferred_element_type=jnp.float32)
    else:
        # pin fp32 contract precision so gathered rows are exact f32 copies
        gathered = jnp.dot(onehot_f32, table.astype(jnp.float32),
                           preferred_element_type=jnp.float32,
                           precision=lax.Precision.HIGHEST)
    out_ref[...] = gathered.astype(out_ref.dtype)


def _gather_rows_resident(table, ids, row_block):
    n = int(ids.shape[0])
    width = int(table.shape[1])
    n_pad = _round_up(max(n, 1), row_block)
    ids_pad = jnp.zeros((n_pad, 1), jnp.int32).at[:n, 0].set(ids.astype(jnp.int32))

    out = pl.pallas_call(
        _onehot_gather_kernel,
        out_shape=jax.ShapeDtypeStruct((n_pad, width), table.dtype),
        grid=(n_pad // row_block,),
        in_specs=[
            # per-step chunk of ids (sublane-dense, 1-lane column)
            pl.BlockSpec((row_block, 1), lambda i: (i, 0)),
            # whole table, untiled, resident in VMEM -> single copy, no
            # grid-pipeline double-buffering of the invariant block
            pl.BlockSpec(memory_space=pltpu.MemorySpace.VMEM),
        ],
        out_specs=pl.BlockSpec((row_block, width), lambda i: (i, 0)),
        compiler_params=pltpu.CompilerParams(
            dimension_semantics=("parallel",),   # megacore split of row blocks
            vmem_limit_bytes=32 * 2**20,
        ),
    )(ids_pad, table)
    return out[:n]


# ---------------------------------------------------------------------------
# Streaming fallback: batched manual-DMA gather.  ids live in SMEM (scalar
# prefetch), the table stays in HBM (pl.ANY); _STREAM_DMA_DEPTH row-DMAs are
# kept in flight into a (ROWS, width) VMEM scratch, then one dense store.
# ---------------------------------------------------------------------------
def _make_dma_gather_kernel(row_block):
    def kernel(ids_smem, table_hbm, out_ref, row_buf, sems):
        base = pl.program_id(0) * row_block

        def start_row(r):
            nid = ids_smem[base + r]
            pltpu.make_async_copy(table_hbm.at[nid], row_buf.at[r],
                                  sems.at[r % _STREAM_DMA_DEPTH]).start()

        # prime the pipeline
        @pl.loop(0, _STREAM_DMA_DEPTH)
        def _(r):
            start_row(r)

        @pl.loop(0, row_block)
        def _(r):
            # wait for row r (same shapes as the started copy -> same byte count)
            pltpu.make_async_copy(table_hbm.at[0], row_buf.at[r],
                                  sems.at[r % _STREAM_DMA_DEPTH]).wait()

            @pl.when(r + _STREAM_DMA_DEPTH < row_block)
            def _():
                start_row(r + _STREAM_DMA_DEPTH)

        # one dense, lane/sublane-aligned store per grid step
        out_ref[...] = row_buf[...]

    return kernel


def _gather_rows_streaming(table, ids, row_block):
    n = int(ids.shape[0])
    width = int(table.shape[1])
    n_pad = _round_up(max(n, 1), row_block)
    ids_pad = jnp.zeros((n_pad,), jnp.int32).at[:n].set(ids.astype(jnp.int32))

    out = pl.pallas_call(
        _make_dma_gather_kernel(row_block),
        out_shape=jax.ShapeDtypeStruct((n_pad, width), table.dtype),
        grid_spec=pltpu.PrefetchScalarGridSpec(
            num_scalar_prefetch=1,                       # ids -> SMEM
            grid=(n_pad // row_block,),
            in_specs=[pl.BlockSpec(memory_space=pl.ANY)],  # table stays in HBM
            out_specs=pl.BlockSpec((row_block, width),
                                   lambda i, ids_smem: (i, 0)),
            scratch_shapes=[
                pltpu.VMEM((row_block, width), table.dtype),
                pltpu.SemaphoreType.DMA((_STREAM_DMA_DEPTH,)),
            ],
        ),
        compiler_params=pltpu.CompilerParams(
            dimension_semantics=("parallel",)),
    )(ids_pad, table)
    return out[:n]


def gather_rows(table, ids, *, force_path=None):
    """Row gather: out[i, :] = table[ids[i], :]."""
    n = int(ids.shape[0])
    num_nodes, width = int(table.shape[0]), int(table.shape[1])

    if force_path is None and n < _MIN_PALLAS_ROWS:
        # tiny gathers: kernel launch + table DMA dwarf the useful work
        return table[ids]

    row_block = _row_block()
    # lane-align the feature dim so stores are full unmasked (8,128) tiles
    width_pad = _round_up(width, 128)
    tbl = table if width_pad == width else jnp.pad(
        table, ((0, 0), (0, width_pad - width)))
    table_bytes = num_nodes * width_pad * tbl.dtype.itemsize

    use_resident = force_path == "resident" or (
        force_path is None
        and jnp.issubdtype(tbl.dtype, jnp.floating)
        and num_nodes <= _ONEHOT_MAX_NODES
        and table_bytes <= _RESIDENT_TABLE_BYTES)

    if use_resident:
        out = _gather_rows_resident(tbl, ids, row_block)
    else:
        out = _gather_rows_streaming(tbl, ids, row_block)
    return out if width_pad == width else out[:, :width]


def to_hierarchical_list(src_nodeids, adjacency_list, input_features,
                         expansion_rates, key):
    """JAX/Pallas equivalent of ToHierarchicalList.forward."""
    batch_size = int(src_nodeids.shape[0])
    adj_size = int(adjacency_list.shape[1])
    feat_size = int(input_features.shape[1])

    hierarchical_nodeids = [src_nodeids.reshape(batch_size, 1).astype(jnp.int32)]

    # Neighbor expansion: KiB-scale int32 index plumbing -> plain JAX (poor
    # MXU / vector fit; XLA keeps it on-chip).
    # TODO(synk): torch.randperm parity -- jax.random.permutation is a
    # different RNG stream (same uniform column-sampling semantics).
    for r in expansion_rates:
        key, sub = jax.random.split(key)
        sampled_cols = jax.random.permutation(sub, adj_size)[:r]
        prev_ids = hierarchical_nodeids[-1]                    # (B, K)
        neigh = adjacency_list[prev_ids]                       # (B, K, adj_size)
        neigh = neigh[..., sampled_cols]                       # (B, K, r)
        hierarchical_nodeids.append(
            neigh.reshape(batch_size, -1).astype(jnp.int32))   # (B, K*r)

    # Feature lookup: ONE fused gather over all hierarchy levels.
    level_sizes = [int(ids.shape[0]) * int(ids.shape[1])
                   for ids in hierarchical_nodeids]
    all_ids = jnp.concatenate([ids.reshape(-1) for ids in hierarchical_nodeids])
    all_feats = gather_rows(input_features, all_ids)           # (sum(sizes), F)

    hierarchical_input_features = []
    off = 0
    for ids, sz in zip(hierarchical_nodeids, level_sizes):
        hierarchical_input_features.append(
            all_feats[off:off + sz].reshape(ids.shape + (feat_size,)))
        off += sz
    return hierarchical_nodeids, hierarchical_input_features


if __name__ == "__main__":
    key = jax.random.PRNGKey(0)
    k_adj, k_feat, k_src, k_fwd, k_tbl, k_ids1, k_ids2 = jax.random.split(key, 7)

    # ---- full module forward at demo shapes ----
    num_nodes = 32
    num_neighbors = 8          # adjacency_list width
    feature_size = 128
    batch_size = 4
    expansion_rates = [2, 3]   # max(expansion_rates) <= num_neighbors

    adjacency_list = jax.random.randint(
        k_adj, (num_nodes, num_neighbors), 0, num_nodes, dtype=jnp.int32)
    input_features = jax.random.normal(
        k_feat, (num_nodes, feature_size), dtype=jnp.float32)
    src_nodeids = jax.random.randint(
        k_src, (batch_size,), 0, num_nodes, dtype=jnp.int32)

    hier_ids, hier_feats = to_hierarchical_list(
        src_nodeids, adjacency_list, input_features, expansion_rates, k_fwd)
    jax.block_until_ready((hier_ids, hier_feats))

    assert hier_ids[0].shape == (batch_size, 1)
    assert hier_ids[1].shape == (batch_size, 2)
    assert hier_ids[2].shape == (batch_size, 6)
    for ids, feats in zip(hier_ids, hier_feats):
        assert feats.shape == ids.shape + (feature_size,)
        assert jnp.allclose(feats, input_features[ids]), "hierarchy gather mismatch"

    # ---- exercise both Pallas gather paths directly (forced, multi-block) ----
    big_nodes, big_width = 512, 128
    table_f32 = jax.random.normal(k_tbl, (big_nodes, big_width), dtype=jnp.float32)
    table_bf16 = table_f32.astype(jnp.bfloat16)
    ids_a = jax.random.randint(k_ids1, (600,), 0, big_nodes, dtype=jnp.int32)
    ids_b = jax.random.randint(k_ids2, (300,), 0, big_nodes, dtype=jnp.int32)

    # resident path, f32 table (pinned fp32 contract precision)
    out_res = gather_rows(table_f32, ids_a, force_path="resident")
    jax.block_until_ready(out_res)
    assert jnp.allclose(out_res, table_f32[ids_a], rtol=1e-4, atol=1e-6), \
        "resident f32 gather mismatch"

    # resident path, native-bf16 MXU matmul (exact row copy)
    out_bf16 = gather_rows(table_bf16, ids_a, force_path="resident")
    jax.block_until_ready(out_bf16)
    assert jnp.allclose(out_bf16.astype(jnp.float32),
                        table_bf16[ids_a].astype(jnp.float32)), \
        "resident bf16 gather mismatch"

    # streaming manual-DMA gather fallback (exact row copy)
    out_stream = gather_rows(table_f32, ids_b, force_path="stream")
    jax.block_until_ready(out_stream)
    assert jnp.allclose(out_stream, table_f32[ids_b]), "streaming gather mismatch"

    print("KERNEL_OK")
</pallas_src>

<mosaic_0001>
module attributes {stable_mosaic.version = 11 : i64} {
  func.func @_onehot_gather_kernel(%arg0: i32, %arg1: memref<256x1xi32, #tpu.memory_space<vmem>>, %arg2: memref<512x128xf32, #tpu.memory_space<vmem>>, %arg3: memref<256x128xf32, #tpu.memory_space<vmem>>) attributes {dimension_semantics = [#tpu.dimension_semantics<parallel>], iteration_bounds = array<i64: 3>, scalar_prefetch = 0 : i64, scratch_operands = 0 : i64, tpu.core_type = #tpu.core_type<tc>, window_params = [{transform_indices = @transform_0, window_bounds = array<i64: 256, 1>}, {pipeline_mode = #tpu.pipeline_mode<synchronous>, transform_indices = @transform_1, window_bounds = array<i64: 512, 128>}, {transform_indices = @transform_2, window_bounds = array<i64: 256, 128>}]} {
    %c0 = arith.constant 0 : index
    %c0_0 = arith.constant 0 : index
    %0 = vector.load %arg1[%c0, %c0_0] : memref<256x1xi32, #tpu.memory_space<vmem>>, vector<256x1xi32>
    %1 = tpu.iota {dimensions = array<i32: 1>} : vector<256x512xi32>
    %2 = vector.broadcast %0 : vector<256x1xi32> to vector<256x512xi32>
    %3 = arith.cmpi eq, %2, %1 : vector<256x512xi32>
    %4 = arith.extui %3 : vector<256x512xi1> to vector<256x512xi32>
    %5 = arith.sitofp %4 : vector<256x512xi32> to vector<256x512xf32>
    %c0_1 = arith.constant 0 : index
    %c0_2 = arith.constant 0 : index
    %6 = vector.load %arg2[%c0_1, %c0_2] : memref<512x128xf32, #tpu.memory_space<vmem>>, vector<512x128xf32>
    %cst = arith.constant dense<0.000000e+00> : vector<256x128xf32>
    %7 = tpu.matmul %5, %6, %cst {dimension_numbers = #tpu.dot_dimension_numbers<[1], [0], [0], [1], [0, 0, 1, 1], [], []>, precision = #tpu.contract_precision<fp32>} : vector<256x512xf32>, vector<512x128xf32>, vector<256x128xf32> -> vector<256x128xf32>
    %c0_3 = arith.constant 0 : index
    %c0_4 = arith.constant 0 : index
    %8 = vector.load %arg3[%c0_3, %c0_4] : memref<256x128xf32, #tpu.memory_space<vmem>>, vector<256x128xf32>
    tpu.vector_store %arg3[%c0_3, %c0_4], %7 {strides = array<i32>} : memref<256x128xf32, #tpu.memory_space<vmem>>, vector<256x128xf32>,
    return
  }
  func.func @transform_0(%arg0: i32) -> (i32, i32) {
    %c0_i32 = arith.constant 0 : i32
    %c0_i32_0 = arith.constant 0 : i32
    return %arg0, %c0_i32 : i32, i32
  }
  func.func @transform_1(%arg0: i32) -> (i32, i32) {
    %c0_i32 = arith.constant 0 : i32
    %c0_i32_0 = arith.constant 0 : i32
    %c0_i32_1 = arith.constant 0 : i32
    return %c0_i32, %c0_i32_0 : i32, i32
  }
  func.func @transform_2(%arg0: i32) -> (i32, i32) {
    %c0_i32 = arith.constant 0 : i32
    %c0_i32_0 = arith.constant 0 : i32
    return %arg0, %c0_i32 : i32, i32
  }
}

</mosaic_0001>

<bundles_post_ra>
// kernel: tpu_custom_call.1
= control target key start
LH: loop header
LB: loop body
LE: loop exit
PB: predicated region body
PF: predicated region fallthrough
CT: control target
= control target key end

     0   :  { %7 = vsyncpa [#allocation3], 0  ;;  %s13044_s0 = inlined_call_operand.vmem [shape: s32[768,1], index: 0, kind: input, shape index: {}]   ;;  %s13045_s1 = inlined_call_operand.vmem [shape: f32[512,128], index: 1, kind: input, shape index: {}]   ;;  %s13046_s2 = inlined_call_operand.hbm [shape: f32[768,128], index: 2, kind: output, shape index: {}]  }
   0x1   :  { %9 = vsyncpa [#allocation3 + $0x1], 0  ;;  %s7936_s9 = smov 0   ;;  %s7938_s10 = smov 0  }
   0x2   :  { %s7940_s11 = smov 0   ;;  %s7942_s12 = smov 0  }
   0x3 LB: > { %s7957_s13 = sadd.s32 4294967295, %s7912_s12   ;;  %s6030_s14 = sadd.s32 4294967294, %s7912_s12   ;;  %s7912_s12 = sphi %s7942_s12, %s15178_s12   ;;  %s7908_s11 = sphi %s7940_s11, %s15177_s11   ;;  %s7904_s10 = sphi %s7938_s10, %s15176_s10   ;;  %s7900_s9 = sphi %s7936_s9, %s15175_s9  }
   0x4   : > { %s7961_s15 = sadd.s32 1, %s7912_s12   ;;  %s69_s16 = sadd.s32 1, %s7908_s11 }
   0x5   : > { %s66_s17 = ssub.s32 %s7912_s12, %s7961_s15  ;;  %p79_p0 = scmp.ne.s32.totalorder %s7908_s11, %s7904_s10 }
   0x6   : > { %p67_p1 = scmp.eq.s32.totalorder %s66_s17, 0  ;;  %p80_p2 = scmp.eq.s32.totalorder %s7957_s13, 2 }
   0x7   : > { %p85_p3 = scmp.ne.s32.totalorder %s7904_s10, %s7900_s9  ;;  %p86_p4 = scmp.eq.s32.totalorder %s6030_s14, 2 }
   0x8   : > { %s7972_s18 = scalar_select %p67_p1, %s7908_s11, %s69_s16  }
   0x9   : > { %p7974_p5 = por %p80_p2, %p79_p0  ;;  %p7978_p6 = por %p86_p4, %p85_p3 }
   0xa   : > { %p6033_p7 = scmp.ge.s32.totalorder %s7912_s12, 1  ;;  %p116_p8 = scmp.lt.s32.totalorder %s7912_s12, 4 }
   0xc   : > { %p117_p9 = pnand %p6033_p7, %p116_p8 }
   0xe   : > { %120 = sbr.rel (%p117_p9) target bundleno = 1258 (0x4ea), region = 28 }
  0x15   : > { %s6035_s21 = sshll.u32 %s7957_s13, 5  ;;  %v662_v0 = vld [vmem:[%s13045_s1] sm:$0xff]  ;;  %v663_v1 = vld [vmem:[%s13045_s1 + $0x8] sm:$0xff]  ;;  %v7914_v3 = vmov 0   ;;  %v664_v8 = vld [vmem:[%s13045_s1 + $0x10] sm:$0xff]  ;;  %v13047_v9 = vmov 0.0|0.0  }
  0x16   : > { %v694_v2 = vld [vmem:[%s13045_s1 + $0x100] sm:$0xff]  ;;  %7849 = vset.pattern.permute.xlu1 %v7914_v3  ;;  %7848 = vset.pattern.permute.xlu0 %v7914_v3  ;;  %p7994_p10 = scmp.lt.s32.totalorder %s6035_s21, 95  ;;  %v727_v4 = vand.u32 4294901760, %v662_v0  ;;  %v730_v5 = vand.u32 4294901760, %v663_v1  ;;  %v695_v6 = vld [vmem:[%s13045_s1 + $0x108] sm:$0xff]  ;;  %v665_v11 = vld [vmem:[%s13045_s1 + $0x18] sm:$0xff] }
  0x17   : > { %v3325_v7 = vand.u32 4294901760, %v694_v2  ;;  %6555 = vmatprep.subr.bf16.mxu1 %v13047_v9  ;;  %6843 = vmatprep.subr.bf16.mxu0 %v13047_v9  ;;  %v3328_v10 = vand.u32 4294901760, %v695_v6  ;;  %v733_v12 = vand.u32 4294901760, %v664_v8  ;;  %v696_v13 = vld [vmem:[%s13045_s1 + $0x110] sm:$0xff]  ;;  %v697_v14 = vld [vmem:[%s13045_s1 + $0x118] sm:$0xff]  ;;  %v666_v19 = vld [vmem:[%s13045_s1 + $0x20] sm:$0xff] }
  0x18   : > { %s15180_s21 = smov (!%p7994_p10, %s6035_s21), 95  ;;  %v8017_v15 = vpack.c.bf16 %v730_v5, %v727_v4  ;;  %v8019_v16 = vsub.f32 %v662_v0, %v727_v4  ;;  %v8021_v17 = vsub.f32 %v663_v1, %v730_v5  ;;  %v667_v20 = vld [vmem:[%s13045_s1 + $0x28] sm:$0xff]  ;;  %v698_v21 = vld [vmem:[%s13045_s1 + $0x120] sm:$0xff]  ;;  %v736_v24 = vand.u32 4294901760, %v665_v11  ;;  %v668_v31 = vld [vmem:[%s13045_s1 + $0x30] sm:$0xff]  ;;  %s6554_s30 = sshll.u32 %s7957_s13, 12 }
  0x19   : > { %v8023_v18 = vsub.f32 %v694_v2, %v3325_v7  ;;  %v8034_v22 = vpack.c.bf16 %v3328_v10, %v3325_v7  ;;  %v8036_v23 = vsub.f32 %v695_v6, %v3328_v10  ;;  %v8038_v25 = vsub.f32 %v664_v8, %v733_v12  ;;  %v699_v26 = vld [vmem:[%s13045_s1 + $0x128] sm:$0xff]  ;;  %s6036_s29 = sshll.u32 %s15180_s21, 3  ;;  %v669_v36 = vld [vmem:[%s13045_s1 + $0x38] sm:$0xff]  ;;  %v700_v37 = vld [vmem:[%s13045_s1 + $0x130] sm:$0xff]  ;;  %s12996_s21 = scalar_lea.hbm %s13046_s2, %s6554_s30 }
  0x1a   : > { %13838 = vst [vmem:[#allocation5_spill] sm:$0xff] %v8017_v15  ;;  %6557 = vmatpush1.bf16.msra.mxu1 %v8017_v15  ;;  %v3331_v27 = vand.u32 4294901760, %v696_v13  ;;  %v3334_v28 = vand.u32 4294901760, %v697_v14  ;;  %v739_v29 = vand.u32 4294901760, %v666_v19  ;;  %v742_v30 = vand.u32 4294901760, %v667_v20  ;;  %s8050_s6 = scalar_lea.vmem %s13044_s0, %s6036_s29  ;;  %v701_v43 = vld [vmem:[%s13045_s1 + $0x138] sm:$0xff] }
  0x1b   : > { %13839 = vst [vmem:[#allocation6_spill] sm:$0xff] %v8034_v22  ;;  %6845 = vmatpush1.bf16.msra.mxu0 %v8034_v22  ;;  %6558 = vmatprep.subr.bf16.mxu1 %v13047_v9  ;;  %v8054_v32 = vpack.c.bf16 %v736_v24, %v733_v12  ;;  %v8056_v33 = vsub.f32 %v665_v11, %v736_v24  ;;  %v3337_v34 = vand.u32 4294901760, %v698_v21  ;;  %v3340_v35 = vand.u32 4294901760, %v699_v26  ;;  %v147_v38 = vld [vmem:[%s8050_s6 + $0x10] sm:$0xff]  ;;  %v145_v39 = vld [vmem:[%s8050_s6] sm:$0xff]  ;;  %v671_v49 = vld [vmem:[%s13045_s1 + $0x48] sm:$0xff] }
  0x1c   : > { %6846 = vmatprep.subr.bf16.mxu0 %v13047_v9  ;;  %v8067_v40 = vpack.c.bf16 %v3334_v28, %v3331_v27  ;;  %v8069_v41 = vsub.f32 %v696_v13, %v3331_v27  ;;  %v8071_v42 = vsub.f32 %v697_v14, %v3334_v28  ;;  %189 = vperm.xlu1 %7849, %v147_v38   ;;  %v745_v47 = vand.u32 4294901760, %v668_v31  ;;  %v670_v48 = vld [vmem:[%s13045_s1 + $0x40] sm:$0xff]  ;;  %v148_v50 = vld [vmem:[%s8050_s6 + $0x18] sm:$0xff]  ;;  %v146_v51 = vld [vmem:[%s8050_s6 + $0x8] sm:$0xff]  ;;  %s7918_s8 = smov [#allocation2]  }
  0x1d   : > { %13840 = vst [vmem:[#allocation7_spill] sm:$0xff] %v8054_v32  ;;  %13841 = vst [vmem:[#allocation8_spill] sm:$0xff] %v8056_v33  ;;  %183 = vperm.xlu0 %7848, %v145_v39   ;;  %v8076_v44 = vpack.c.bf16 %v742_v30, %v739_v29  ;;  %v8078_v45 = vsub.f32 %v666_v19, %v739_v29  ;;  %v8080_v46 = vsub.f32 %v667_v20, %v742_v30  ;;  %v150_v0 = vld [vmem:[%s8050_s6 + $0x28] sm:$0xff]  ;;  %v149_v1 = vld [vmem:[%s8050_s6 + $0x20] sm:$0xff]  ;;  %s7854_s14 = sshll.u32 %s7918_s8, 4  ;;  %s7855_s14 = int_to_ptr.vmem [resolvable:$false] %s7854_s14 }
  0x1e   : > { %13842 = vst [vmem:[#allocation9_spill] sm:$0xff] %v8067_v40  ;;  %13843 = vst [vmem:[#allocation10_spill] sm:$0xff] %v8069_v41  ;;  %6560 = vmatpush1.bf16.msra.mxu1 %v8054_v32  ;;  %v8091_v52 = vsub.f32 %v698_v21, %v3337_v34  ;;  %v8093_v53 = vsub.f32 %v699_v26, %v3340_v35  ;;  %v748_v54 = vand.u32 4294901760, %v669_v36  ;;  %v3343_v55 = vand.u32 4294901760, %v700_v37  ;;  %v152_v6 = vld [vmem:[%s8050_s6 + $0x38] sm:$0xff]  ;;  %v151_v7 = vld [vmem:[%s8050_s6 + $0x30] sm:$0xff] }
  0x1f   : > { %13844 = vst [vmem:[#allocation11_spill] sm:$0xff] %v8071_v42  ;;  %13845 = vst [vmem:[#allocation12_spill] sm:$0xff] %v8076_v44  ;;  %6848 = vmatpush1.bf16.msra.mxu0 %v8067_v40  ;;  %6561 = vmatprep.subr.bf16.mxu1 %v13047_v9  ;;  %v8097_v56 = vpack.c.bf16 %v3340_v35, %v3337_v34  ;;  %v8099_v57 = vsub.f32 %v668_v31, %v745_v47  ;;  %v3346_v58 = vand.u32 4294901760, %v701_v43  ;;  %v702_v10 = vld [vmem:[%s13045_s1 + $0x140] sm:$0xff]  ;;  %v703_v11 = vld [vmem:[%s13045_s1 + $0x148] sm:$0xff]  ;;  %s7856_s16 = scalar_lea.vmem %s7855_s14, 8192 }
  0x20   : > { %13846 = vst [vmem:[#allocation13_spill] sm:$0xff] %v8078_v45  ;;  %13847 = vst [vmem:[#allocation14_spill] sm:$0xff] %v8080_v46  ;;  %6849 = vmatprep.subr.bf16.mxu0 %v13047_v9  ;;  %v8102_v59 = vsub.f32 %v669_v36, %v748_v54  ;;  %v8104_v60 = vsub.f32 %v700_v37, %v3343_v55  ;;  %v751_v61 = vand.u32 4294901760, %v670_v48  ;;  %v754_v62 = vand.u32 4294901760, %v671_v49  ;;  %v672_v13 = vld [vmem:[%s13045_s1 + $0x50] sm:$0xff]  ;;  %v673_v14 = vld [vmem:[%s13045_s1 + $0x58] sm:$0xff] }
  0x21   : > { %13848 = vst [vmem:[#allocation15_spill] sm:$0xff] %v8091_v52  ;;  %13849 = vst [vmem:[#allocation16_spill] sm:$0xff] %v8093_v53  ;;  %192 = vperm.xlu1 %7849, %v148_v50   ;;  %186 = vperm.xlu0 %7848, %v146_v51   ;;  %v8106_v63 = vsub.f32 %v701_v43, %v3346_v58  ;;  %v8111_v2 = vpack.c.bf16 %v748_v54, %v745_v47  ;;  %v3349_v12 = vand.u32 4294901760, %v702_v10  ;;  %v154_v19 = vld [vmem:[%s8050_s6 + $0x48] sm:$0xff]  ;;  %v704_v26 = vld [vmem:[%s13045_s1 + $0x150] sm:$0xff] }
  0x22   : > { %13850 = vst [vmem:[#allocation17_spill] sm:$0xff] %v8097_v56  ;;  %13851 = vst [vmem:[#allocation18_spill] sm:$0xff] %v8099_v57  ;;  %6563 = vmatpush1.bf16.msra.mxu1 %v8076_v44  ;;  %v8113_v3 = vsub.f32 %v670_v48, %v751_v61  ;;  %v8115_v4 = vsub.f32 %v671_v49, %v754_v62  ;;  %v8119_v5 = vpack.c.bf16 %v3346_v58, %v3343_v55  ;;  %v705_v27 = vld [vmem:[%s13045_s1 + $0x158] sm:$0xff]  ;;  %v674_v28 = vld [vmem:[%s13045_s1 + $0x60] sm:$0xff] }
  0x23   : > { %13852 = vst [vmem:[#allocation19_spill] sm:$0xff] %v8102_v59  ;;  %13853 = vst [vmem:[#allocation20_spill] sm:$0xff] %v8104_v60  ;;  %6851 = vmatpush1.bf16.msra.mxu0 %v8097_v56  ;;  %6564 = vmatprep.subr.bf16.mxu1 %v13047_v9  ;;  %v8125_v8 = vpack.c.bf16 %v754_v62, %v751_v61  ;;  %v3352_v20 = vand.u32 4294901760, %v703_v11  ;;  %v757_v21 = vand.u32 4294901760, %v672_v13  ;;  %v760_v24 = vand.u32 4294901760, %v673_v14  ;;  %v675_v34 = vld [vmem:[%s13045_s1 + $0x68] sm:$0xff] }
  0x24   : > { %13854 = vst [vmem:[#allocation21_spill] sm:$0xff] %v8106_v63  ;;  %13855 = vst [vmem:[#allocation22_spill] sm:$0xff] %v8111_v2  ;;  %6852 = vmatprep.subr.bf16.mxu0 %v13047_v9  ;;  %v8152_v29 = vsub.f32 %v702_v10, %v3349_v12  ;;  %v3355_v30 = vand.u32 4294901760, %v704_v26  ;;  %v3358_v31 = vand.u32 4294901760, %v705_v27  ;;  %v763_v35 = vand.u32 4294901760, %v674_v28  ;;  %v706_v36 = vld [vmem:[%s13045_s1 + $0x160] sm:$0xff] }
  0x25   : > { %13856 = vst [vmem:[#allocation23_spill] sm:$0xff] %v8113_v3  ;;  %13857 = vst [vmem:[#allocation24_spill] sm:$0xff] %v8115_v4  ;;  %198 = vperm.xlu1 %7849, %v150_v0   ;;  %195 = vperm.xlu0 %7848, %v149_v1   ;;  %v707_v37 = vld [vmem:[%s13045_s1 + $0x168] sm:$0xff]  ;;  %v153_v38 = vld [vmem:[%s8050_s6 + $0x40] sm:$0xff]  ;;  %v8165_v39 = vpack.c.bf16 %v3352_v20, %v3349_v12  ;;  %v8167_v43 = vsub.f32 %v703_v11, %v3352_v20  ;;  %v766_v0 = vand.u32 4294901760, %v675_v34 }
  0x26   : > { %13858 = vst [vmem:[#allocation25_spill] sm:$0xff] %v8119_v5  ;;  %6566 = vmatpush1.bf16.msra.mxu1 %v8111_v2  ;;  %13859 = vst [vmem:[#allocation26_spill] sm:$0xff] %v8125_v8  ;;  %v8169_v47 = vpack.c.bf16 %v760_v24, %v757_v21  ;;  %v8171_v48 = vsub.f32 %v672_v13, %v757_v21  ;;  %v676_v49 = vld [vmem:[%s13045_s1 + $0x70] sm:$0xff]  ;;  %v677_v50 = vld [vmem:[%s13045_s1 + $0x78] sm:$0xff]  ;;  %v8180_v51 = vsub.f32 %v673_v14, %v760_v24 }
  0x27   : > { %6854 = vmatpush1.bf16.msra.mxu0 %v8119_v5  ;;  %6567 = vmatprep.subr.bf16.mxu1 %v13047_v9  ;;  %13860 = vst [vmem:[#allocation27_spill] sm:$0xff] %v8152_v29  ;;  %13861 = vst [vmem:[#allocation28_spill] sm:$0xff] %v8165_v39  ;;  %v8182_v54 = vpack.c.bf16 %v3358_v31, %v3355_v30  ;;  %v8184_v55 = vsub.f32 %v704_v26, %v3355_v30  ;;  %v708_v61 = vld [vmem:[%s13045_s1 + $0x170] sm:$0xff]  ;;  %v709_v62 = vld [vmem:[%s13045_s1 + $0x178] sm:$0xff]  ;;  %v769_v12 = vand.u32 4294901760, %v676_v49 }
  0x28   : > { %6855 = vmatprep.subr.bf16.mxu0 %v13047_v9  ;;  %13862 = vst [vmem:[#allocation29_spill] sm:$0xff] %v8167_v43  ;;  %13863 = vst [vmem:[#allocation30_spill] sm:$0xff] %v8169_v47  ;;  %v8186_v58 = vsub.f32 %v705_v27, %v3358_v31  ;;  %v8195_v1 = vsub.f32 %v674_v28, %v763_v35  ;;  %v8200_v10 = vld [vmem:[%s13045_s1 + $0x80] sm:$0xff]  ;;  %v156_v11 = vld [vmem:[%s8050_s6 + $0x58] sm:$0xff]  ;;  %v772_v13 = vand.u32 4294901760, %v677_v50  ;;  %v3367_v24 = vand.u32 4294901760, %v708_v61 }
  0x29   : > { %204 = vperm.xlu1 %7849, %v152_v6   ;;  %201 = vperm.xlu0 %7848, %v151_v7   ;;  %13864 = vst [vmem:[#allocation31_spill] sm:$0xff] %v8171_v48  ;;  %13865 = vst [vmem:[#allocation32_spill] sm:$0xff] %v8180_v51  ;;  %v3361_v6 = vand.u32 4294901760, %v706_v36  ;;  %v3364_v7 = vand.u32 4294901760, %v707_v37  ;;  %v155_v14 = vld [vmem:[%s8050_s6 + $0x50] sm:$0xff]  ;;  %v8206_v20 = vpack.c.bf16 %v766_v0, %v763_v35  ;;  %v3370_v26 = vand.u32 4294901760, %v709_v62 }
  0x2a   : > { %6569 = vmatpush1.bf16.msra.mxu1 %v8125_v8  ;;  %13866 = vst [vmem:[#allocation33_spill] sm:$0xff] %v8182_v54  ;;  %13867 = vst [vmem:[#allocation34_spill] sm:$0xff] %v8184_v55  ;;  %v8208_v21 = vsub.f32 %v675_v34, %v766_v0  ;;  %v679_v27 = vld [vmem:[%s13045_s1 + $0x88] sm:$0xff]  ;;  %v8221_v31 = vsub.f32 %v676_v49, %v769_v12  ;;  %v775_v34 = vand.u32 4294901760, %v8200_v10  ;;  %v8287_v44 = vld [vmem:[%s13045_s1 + $0x1a0] sm:$0xff] }
  0x2b   : > { %6570 = vmatprep.subr.bf16.mxu1 %v13047_v9  ;;  %13868 = vst [vmem:[#allocation35_spill] sm:$0xff] %v8186_v58  ;;  %6857 = vmatpush1.bf16.msra.mxu0 %v8165_v39  ;;  %13869 = vst [vmem:[#allocation36_spill] sm:$0xff] %v8195_v1  ;;  %v8217_v28 = vsub.f32 %v706_v36, %v3361_v6  ;;  %v8219_v30 = vsub.f32 %v707_v37, %v3364_v7  ;;  %v711_v35 = vld [vmem:[%s13045_s1 + $0x188] sm:$0xff]  ;;  %v8235_v36 = vld [vmem:[%s13045_s1 + $0x98] sm:$0xff] }
  0x2c   : > { %6858 = vmatprep.subr.bf16.mxu0 %v13047_v9  ;;  %13870 = vst [vmem:[#allocation37_spill] sm:$0xff] %v8206_v20  ;;  %13871 = vst [vmem:[#allocation38_spill] sm:$0xff] %v8208_v21  ;;  %v8238_v37 = vpack.c.bf16 %v3364_v7, %v3361_v6  ;;  %v8240_v49 = vsub.f32 %v677_v50, %v772_v13  ;;  %v8242_v0 = vsub.f32 %v708_v61, %v3367_v24  ;;  %v8254_v39 = vld [vmem:[%s13045_s1 + $0x198] sm:$0xff]  ;;  %v158_v7 = vld [vmem:[%s8050_s6 + $0x68] sm:$0xff] }
  0x2d   : > { %210 = vperm.xlu1 %7849, %v154_v19   ;;  %207 = vperm.xlu0 %7848, %v153_v38   ;;  %v710_v19 = vld [vmem:[%s13045_s1 + $0x180] sm:$0xff]  ;;  %13872 = vst [vmem:[#allocation39_spill] sm:$0xff] %v8217_v28  ;;  %13873 = vst [vmem:[#allocation40_spill] sm:$0xff] %v8219_v30  ;;  %v8230_v38 = vld [vmem:[%s13045_s1 + $0x90] sm:$0xff]  ;;  %v778_v6 = vand.u32 4294901760, %v679_v27  ;;  %v8257_v50 = vsub.f32 %v8200_v10, %v775_v34  ;;  %v8263_v8 = vpack.c.bf16 %v772_v13, %v769_v12 }
  0x2e   : > { %6572 = vmatpush1.bf16.msra.mxu1 %v8169_v47  ;;  %13874 = vst [vmem:[#allocation41_spill] sm:$0xff] %v8221_v31  ;;  %13875 = vst [vmem:[#allocation42_spill] sm:$0xff] %v8238_v37  ;;  %v8249_v47 = vld [vmem:[%s13045_s1 + $0x190] sm:$0xff]  ;;  %v3373_v61 = vand.u32 4294901760, %v710_v19  ;;  %v3376_v5 = vand.u32 4294901760, %v711_v35  ;;  %v781_v2 = vand.u32 4294901760, %v8230_v38 }
  0x2f   : > { %6573 = vmatprep.subr.bf16.mxu1 %v13047_v9  ;;  %6860 = vmatpush1.bf16.msra.mxu0 %v8182_v54  ;;  %13876 = vst [vmem:[#allocation43_spill] sm:$0xff] %v8240_v49  ;;  %13877 = vst [vmem:[#allocation44_spill] sm:$0xff] %v8242_v0  ;;  %v8244_v9 = vsub.f32 %v709_v62, %v3370_v26  ;;  %v157_v62 = vld [vmem:[%s8050_s6 + $0x60] sm:$0xff]  ;;  %v13880_v54 = vmov 0.0|0.0   ;;  %v784_v56 = vand.u32 4294901760, %v8235_v36  ;;  %v8273_v10 = vsub.f32 %v679_v27, %v778_v6  ;;  %v8303_v40 = vld [vmem:[%s13045_s1 + $0x1a8] sm:$0xff] }
  0x30   : > { %13879 = vst [vmem:[#allocation46_spill] sm:$0xff] %v8257_v50  ;;  %6861 = vmatprep.subr.bf16.mxu0 %v13880_v54  ;;  %13881 = vst [vmem:[#allocation47_spill] sm:$0xff] %v8263_v8  ;;  %v8290_v27 = vpack.c.bf16 %v3370_v26, %v3367_v24  ;;  %v8295_v12 = vsub.f32 %v8230_v38, %v781_v2  ;;  %v8308_v32 = vld [vmem:[%s13045_s1 + $0xb0] sm:$0xff]  ;;  %v160_v24 = vld [vmem:[%s8050_s6 + $0x78] sm:$0xff]  ;;  %v13888_v26 = vand.u32 4294901760, %v8249_v47  ;;  %v13890_v38 = vand.u32 4294901760, %v8254_v39 }
  0x31   : > { %13878 = vst [vmem:[#allocation45_spill] sm:$0xff] %v8244_v9  ;;  %216 = vperm.xlu1 %7849, %v156_v11   ;;  %213 = vperm.xlu0 %7848, %v155_v14   ;;  %v8270_v11 = vld [vmem:[%s13045_s1 + $0xa0] sm:$0xff]  ;;  %13882 = vst [vmem:[#allocation48_spill] sm:$0xff] %v8273_v10  ;;  %v8275_v14 = vsub.f32 %v710_v19, %v3373_v61  ;;  %v8292_v19 = vsub.f32 %v711_v35, %v3376_v5  ;;  %v8325_v22 = vld [vmem:[%s13045_s1 + $0xb8] sm:$0xff]  ;;  %v13930_v9 = vand.u32 4294901760, %v8303_v40 }
  0x32   : > { %6575 = vmatpush1.bf16.msra.mxu1 %v8206_v20  ;;  %v8282_v20 = vld [vmem:[%s13045_s1 + $0xa8] sm:$0xff]  ;;  %13884 = vst [vmem:[#allocation50_spill] sm:$0xff] %v8290_v27  ;;  %13886 = vst [vmem:[#allocation52_spill] sm:$0xff] %v8295_v12  ;;  %v8298_v13 = vsub.f32 %v8235_v36, %v784_v56  ;;  %v8314_v35 = vsub.f32 %v8249_v47, %v13888_v26  ;;  %v8319_v36 = vsub.f32 %v8254_v39, %v13890_v38  ;;  %v8342_v15 = vld [vmem:[%s13045_s1 + $0x1b8] sm:$0xff] }
  0x33   : > { %6576 = vmatprep.subr.bf16.mxu1 %v13880_v54  ;;  %13883 = vst [vmem:[#allocation49_spill] sm:$0xff] %v8275_v14  ;;  %6863 = vmatpush1.bf16.msra.mxu0 %v8238_v37  ;;  %13885 = vst [vmem:[#allocation51_spill] sm:$0xff] %v8292_v19  ;;  %v8335_v26 = vpack.c.bf16 %v778_v6, %v775_v34  ;;  %v790_v38 = vand.u32 4294901760, %v8282_v20  ;;  %v13894_v34 = vand.u32 4294901760, %v8270_v11  ;;  %v13901_v37 = vand.u32 4294901760, %v8308_v32  ;;  %v8400_v12 = vld [vmem:[%s13045_s1 + $0xd0] sm:$0xff] }
  0x34   : > { %13887 = vst [vmem:[#allocation53_spill] sm:$0xff] %v8298_v13  ;;  %13889 = vst [vmem:[#allocation54_spill] sm:$0xff] %v8314_v35  ;;  %6864 = vmatprep.subr.bf16.mxu0 %v13880_v54  ;;  %v8350_v35 = vpack.c.bf16 %v3376_v5, %v3373_v61  ;;  %v8362_v13 = vld [vmem:[%s13045_s1 + $0xc8] sm:$0xff]  ;;  %v13897_v61 = vand.u32 4294901760, %v8287_v44  ;;  %v8427_v14 = vld [vmem:[%s13045_s1 + $0x1d0] sm:$0xff] }
  0x35   : > { %222 = vperm.xlu1 %7849, %v158_v7   ;;  %219 = vperm.xlu0 %7848, %v157_v62   ;;  %13891 = vst [vmem:[#allocation55_spill] sm:$0xff] %v8319_v36  ;;  %v8330_v7 = vld [vmem:[%s13045_s1 + $0x1b0] sm:$0xff]  ;;  %13892 = vst [vmem:[#allocation56_spill] sm:$0xff] %v8335_v26  ;;  %v8347_v36 = vld [vmem:[%s13045_s1 + $0xc0] sm:$0xff]  ;;  %v8355_v6 = vsub.f32 %v8270_v11, %v13894_v34  ;;  %v8366_v5 = vsub.f32 %v8282_v20, %v790_v38  ;;  %v13899_v20 = vand.u32 4294901760, %v8303_v40 }
  0x36   : > { %v159_v62 = vld [vmem:[%s8050_s6 + $0x70] sm:$0xff]  ;;  %6578 = vmatpush1.bf16.msra.mxu1 %v8263_v8  ;;  %13893 = vst [vmem:[#allocation57_spill] sm:$0xff] %v8350_v35  ;;  %v8371_v34 = vsub.f32 %v8287_v44, %v13897_v61  ;;  %v8393_v8 = vsub.f32 %v8308_v32, %v13901_v37  ;;  %v8411_v37 = vpack.c.bf16 %v784_v56, %v781_v2  ;;  %v13908_v56 = vand.u32 4294901760, %v8342_v15  ;;  %v8464_v10 = vld [vmem:[%s13045_s1 + $0xe0] sm:$0xff]  ;;  %v8549_v31 = vld [vmem:[%s13045_s1 + $0x1f8] sm:$0xff] }
  0x37   : > { %6579 = vmatprep.subr.bf16.mxu1 %v13880_v54  ;;  %13895 = vst [vmem:[#allocation58_spill] sm:$0xff] %v8355_v6  ;;  %6866 = vmatpush1.bf16.msra.mxu0 %v8290_v27  ;;  %13896 = vst [vmem:[#allocation59_spill] sm:$0xff] %v8366_v5  ;;  %v8378_v6 = vld [vmem:[%s13045_s1 + $0x1c0] sm:$0xff]  ;;  %v8383_v27 = vld [vmem:[%s13045_s1 + $0x1c8] sm:$0xff]  ;;  %v8388_v61 = vsub.f32 %v8303_v40, %v13899_v20  ;;  %v13904_v5 = vand.u32 4294901760, %v8325_v22 }
  0x38   : > { %13898 = vst [vmem:[#allocation60_spill] sm:$0xff] %v8371_v34  ;;  %13902 = vst [vmem:[#allocation62_spill] sm:$0xff] %v8393_v8  ;;  %v161_v20 = vld [vmem:[%s8050_s6 + $0x80] sm:$0xff]  ;;  %6867 = vmatprep.subr.bf16.mxu0 %v13880_v54  ;;  %v13906_v8 = vand.u32 4294901760, %v8330_v7  ;;  %v8433_v2 = vsub.f32 %v8342_v15, %v13908_v56  ;;  %v13912_v56 = vand.u32 4294901760, %v8249_v47  ;;  %v164_v47 = vld [vmem:[%s8050_s6 + $0x98] sm:$0xff] }
  0x39   : > { %228 = vperm.xlu1 %7849, %v160_v24   ;;  %225 = vperm.xlu0 %7848, %v159_v62   ;;  %13900 = vst [vmem:[#allocation61_spill] sm:$0xff] %v8388_v61  ;;  %v8405_v24 = vld [vmem:[%s13045_s1 + $0xd8] sm:$0xff]  ;;  %v162_v62 = vld [vmem:[%s8050_s6 + $0x88] sm:$0xff]  ;;  %13903 = vst [vmem:[#allocation63_spill] sm:$0xff] %v8411_v37  ;;  %v8416_v34 = vsub.f32 %v8325_v22, %v13904_v5  ;;  %v13910_v5 = vand.u32 4294901760, %v8347_v36 }
  0x3a   : > { %6581 = vmatpush1.bf16.msra.mxu1 %v8335_v26  ;;  %v8421_v61 = vsub.f32 %v8330_v7, %v13906_v8  ;;  %13909 = vst [vmem:[#allocation66_spill] sm:$0xff] %v8433_v2  ;;  %v13913_v2 = vand.u32 4294901760, %v8254_v39  ;;  %v8469_v39 = vld [vmem:[%s13045_s1 + $0xe8] sm:$0xff]  ;;  %v13923_v26 = vand.u32 4294901760, %v8400_v12 }
  0x3b   : > { %13905 = vst [vmem:[#allocation64_spill] sm:$0xff] %v8416_v34  ;;  %6582 = vmatprep.subr.bf16.mxu1 %v13880_v54  ;;  %v8438_v8 = vsub.f32 %v8347_v36, %v13910_v5  ;;  %6869 = vmatpush1.bf16.msra.mxu0 %v8350_v35  ;;  %v13915_v5 = vand.u32 4294901760, %v8362_v13  ;;  %v8486_v35 = vld [vmem:[%s13045_s1 + $0x1e0] sm:$0xff] }
  0x3c   : > { %13907 = vst [vmem:[#allocation65_spill] sm:$0xff] %v8421_v61  ;;  %v8445_v61 = vld [vmem:[%s13045_s1 + $0x1d8] sm:$0xff]  ;;  %v8452_v34 = vpack.c.bf16 %v13913_v2, %v13912_v56  ;;  %v13917_v2 = vand.u32 4294901760, %v8378_v6  ;;  %6870 = vmatprep.subr.bf16.mxu0 %v13880_v54 }
  0x3d   : > { %13911 = vst [vmem:[#allocation67_spill] sm:$0xff] %v8438_v8  ;;  %v8457_v19 = vsub.f32 %v8362_v13, %v13915_v5  ;;  %234 = vperm.xlu1 %7849, %v162_v62   ;;  %231 = vperm.xlu0 %7848, %v161_v20   ;;  %v13919_v5 = vand.u32 4294901760, %v8383_v27  ;;  %v8491_v62 = vld [vmem:[%s13045_s1 + $0x1e8] sm:$0xff]  ;;  %v163_v20 = vld [vmem:[%s8050_s6 + $0x90] sm:$0xff]  ;;  %v3406_v50 = vand.u32 4294901760, %v8445_v61 }
  0x3e   : > { %13914 = vst [vmem:[#allocation68_spill] sm:$0xff] %v8452_v34  ;;  %v8475_v56 = vsub.f32 %v8378_v6, %v13917_v2  ;;  %6584 = vmatpush1.bf16.msra.mxu1 %v8411_v37  ;;  %v13921_v2 = vand.u32 4294901760, %v8270_v11  ;;  %v8514_v37 = vld [vmem:[%s13045_s1 + $0xf0] sm:$0xff]  ;;  %v8519_v11 = vld [vmem:[%s13045_s1 + $0xf8] sm:$0xff]  ;;  %v3412_v49 = vand.u32 4294901760, %v8491_v62 }
  0x3f   : > { %13916 = vst [vmem:[#allocation69_spill] sm:$0xff] %v8457_v19  ;;  %v8480_v8 = vsub.f32 %v8383_v27, %v13919_v5  ;;  %6585 = vmatprep.subr.bf16.mxu1 %v13880_v54  ;;  %6872 = vmatpush1.bf16.msra.mxu0 %v8452_v34  ;;  %v817_v40 = vand.u32 4294901760, %v8514_v37  ;;  %v165_v34 = vld [vmem:[%s8050_s6 + $0xa0] sm:$0xff] }
  0x40   : > { %13918 = vst [vmem:[#allocation70_spill] sm:$0xff] %v8475_v56  ;;  %v8498_v5 = vpack.c.bf16 %v790_v38, %v13921_v2  ;;  %v13925_v56 = vand.u32 4294901760, %v8405_v24  ;;  %v814_v2 = vand.u32 4294901760, %v8469_v39  ;;  %6873 = vmatprep.subr.bf16.mxu0 %v13880_v54 }
  0x41   : > { %13920 = vst [vmem:[#allocation71_spill] sm:$0xff] %v8480_v8  ;;  %v8503_v8 = vsub.f32 %v8400_v12, %v13923_v26  ;;  %v13927_v26 = vand.u32 4294901760, %v8427_v14  ;;  %240 = vperm.xlu1 %7849, %v164_v47   ;;  %237 = vperm.xlu0 %7848, %v163_v20   ;;  %v13935_v47 = vand.u32 4294901760, %v8308_v32  ;;  %v13936_v20 = vand.u32 4294901760, %v8325_v22 }
  0x42   : > { %13922 = vst [vmem:[#allocation72_spill] sm:$0xff] %v8498_v5  ;;  %v8508_v19 = vsub.f32 %v8405_v24, %v13925_v56  ;;  %v811_v56 = vand.u32 4294901760, %v8464_v10  ;;  %6587 = vmatpush1.bf16.msra.mxu1 %v8498_v5  ;;  %v3418_v22 = vand.u32 4294901760, %v8549_v31  ;;  %v167_v5 = vld [vmem:[%s8050_s6 + $0xb0] sm:$0xff] }
  0x43   : > { %13924 = vst [vmem:[#allocation73_spill] sm:$0xff] %v8503_v8  ;;  %v8525_v38 = vsub.f32 %v8427_v14, %v13927_v26  ;;  %v13929_v8 = vand.u32 4294901760, %v8287_v44  ;;  %v8542_v26 = vsub.f32 %v8445_v61, %v3406_v50  ;;  %v820_v61 = vand.u32 4294901760, %v8519_v11  ;;  %6588 = vmatprep.subr.bf16.mxu1 %v13880_v54 }
  0x44   : > { %13926 = vst [vmem:[#allocation74_spill] sm:$0xff] %v8508_v19  ;;  %v8532_v19 = vld [vmem:[%s13045_s1 + $0x1f0] sm:$0xff]  ;;  %v8552_v44 = vsub.f32 %v8464_v10, %v811_v56  ;;  %v8567_v10 = vpack.c.bf16 %v13936_v20, %v13935_v47  ;;  %v13943_v47 = vand.u32 4294901760, %v8342_v15  ;;  %v13947_v15 = vand.u32 4294901760, %v8347_v36  ;;  %v169_v36 = vld [vmem:[%s8050_s6 + $0xc0] sm:$0xff] }
  0x45   : > { %13928 = vst [vmem:[#allocation75_spill] sm:$0xff] %v8525_v38  ;;  %v8539_v0 = vpack.c.bf16 %v13930_v9, %v13929_v8  ;;  %13932 = vst [vmem:[#allocation77_spill] sm:$0xff] %v8542_v26  ;;  %v3409_v38 = vand.u32 4294901760, %v8486_v35  ;;  %v8555_v9 = vsub.f32 %v8469_v39, %v814_v2  ;;  %v166_v8 = vld [vmem:[%s8050_s6 + $0xa8] sm:$0xff]  ;;  %v8578_v26 = vsub.f32 %v8514_v37, %v817_v40 }
  0x46   : > { %13933 = vst [vmem:[#allocation78_spill] sm:$0xff] %v8552_v44  ;;  %13937 = vst [vmem:[#allocation80_spill] sm:$0xff] %v8567_v10  ;;  %v3415_v44 = vand.u32 4294901760, %v8532_v19  ;;  %v8581_v32 = vsub.f32 %v8519_v11, %v820_v61  ;;  %246 = vperm.xlu1 %7849, %v166_v8   ;;  %243 = vperm.xlu0 %7848, %v165_v34   ;;  %v8595_v37 = vsub.f32 %v8549_v31, %v3418_v22  ;;  %v168_v11 = vld [vmem:[%s8050_s6 + $0xb8] sm:$0xff]  ;;  %v170_v8 = vld [vmem:[%s8050_s6 + $0xc8] sm:$0xff] }
  0x47   : > { %13931 = vst [vmem:[#allocation76_spill] sm:$0xff] %v8539_v0  ;;  %13934 = vst [vmem:[#allocation79_spill] sm:$0xff] %v8555_v9  ;;  %v8570_v39 = vsub.f32 %v8486_v35, %v3409_v38  ;;  %v8573_v9 = vsub.f32 %v8491_v62, %v3412_v49  ;;  %6875 = vmatpush1.bf16.msra.mxu0 %v8539_v0  ;;  %v13942_v35 = vand.u32 4294901760, %v8330_v7  ;;  %6590 = vmatpush1.bf16.msra.mxu1 %v8567_v10 }
  0x48   : > { %13940 = vst [vmem:[#allocation83_spill] sm:$0xff] %v8578_v26  ;;  %13941 = vst [vmem:[#allocation84_spill] sm:$0xff] %v8581_v32  ;;  %v8592_v20 = vsub.f32 %v8532_v19, %v3415_v44  ;;  %6876 = vmatprep.subr.bf16.mxu0 %v13880_v54  ;;  %v13948_v7 = vand.u32 4294901760, %v8362_v13  ;;  %6591 = vmatprep.subr.bf16.mxu1 %v13880_v54  ;;  %v13950_v31 = vand.u32 4294901760, %v8378_v6  ;;  %v13951_v19 = vand.u32 4294901760, %v8383_v27 }
  0x49   : > { %13938 = vst [vmem:[#allocation81_spill] sm:$0xff] %v8570_v39  ;;  %13939 = vst [vmem:[#allocation82_spill] sm:$0xff] %v8573_v9  ;;  %v8589_v62 = vpack.c.bf16 %v13943_v47, %v13942_v35  ;;  %v13953_v13 = vand.u32 4294901760, %v8400_v12  ;;  %v13954_v47 = vand.u32 4294901760, %v8405_v24  ;;  %v13956_v27 = vand.u32 4294901760, %v8427_v14  ;;  %v173_v14 = vld [vmem:[%s8050_s6 + $0xe0] sm:$0xff] }
  0x4a   : > { %13945 = vst [vmem:[#allocation86_spill] sm:$0xff] %v8592_v20  ;;  %13946 = vst [vmem:[#allocation87_spill] sm:$0xff] %v8595_v37  ;;  %v8605_v35 = vpack.c.bf16 %v13948_v7, %v13947_v15  ;;  %v8613_v34 = vpack.c.bf16 %v13951_v19, %v13950_v31  ;;  %252 = vperm.xlu1 %7849, %v168_v11   ;;  %249 = vperm.xlu0 %7848, %v167_v5   ;;  %v172_v5 = vld [vmem:[%s8050_s6 + $0xd8] sm:$0xff]  ;;  %v171_v11 = vld [vmem:[%s8050_s6 + $0xd0] sm:$0xff]  ;;  %v13123_v31 = vand.u32 4294901760, %v8036_v23 }
  0x4b   : > { %13944 = vst [vmem:[#allocation85_spill] sm:$0xff] %v8589_v62  ;;  %6878 = vmatpush1.bf16.msra.mxu0 %v8589_v62  ;;  %v8623_v15 = vpack.c.bf16 %v13954_v47, %v13953_v13  ;;  %v8629_v6 = vpack.c.bf16 %v3406_v50, %v13956_v27  ;;  %v8635_v12 = vpack.c.bf16 %v814_v2, %v811_v56  ;;  %v174_v50 = vld [vmem:[%s8050_s6 + $0xe8] sm:$0xff]  ;;  %v177_v2 = vlaneseq }
  0x4c   : > { %13949 = vst [vmem:[#allocation88_spill] sm:$0xff] %v8605_v35  ;;  %13952 = vst [vmem:[#allocation89_spill] sm:$0xff] %v8613_v34  ;;  %6879 = vmatprep.subr.bf16.mxu0 %v13880_v54  ;;  %6593 = vmatpush1.bf16.msra.mxu1 %v8605_v35  ;;  %v8639_v24 = vpack.c.bf16 %v3412_v49, %v3409_v38  ;;  %v8645_v7 = vpack.c.bf16 %v820_v61, %v817_v40  ;;  %v176_v49 = vld [vmem:[%s8050_s6 + $0xf8] sm:$0xff]  ;;  %v175_v38 = vld [vmem:[%s8050_s6 + $0xf0] sm:$0xff]  ;;  %v13122_v61 = vand.u32 4294901760, %v8021_v17  ;;  %s135_s6 = sand.u32 1, %s7904_s10  }
  0x4d   : > { %13955 = vst [vmem:[#allocation90_spill] sm:$0xff] %v8623_v15  ;;  %6594 = vmatprep.subr.bf16.mxu1 %v13880_v54  ;;  %13957 = vst [vmem:[#allocation91_spill] sm:$0xff] %v8629_v6  ;;  %v8649_v56 = vpack.c.bf16 %v3418_v22, %v3415_v44  ;;  %v13124_v44 = vand.u32 4294901760, %v8019_v16  ;;  %v8659_v40 = vand.u32 127, %v177_v2  ;;  %v13121_v22 = vand.u32 4294901760, %v8023_v18  ;;  %s6034_s28 = sshll.u32 %s135_s6, 8 }
  0x4e   : > { %258 = vperm.xlu1 %7849, %v170_v8   ;;  %255 = vperm.xlu0 %7848, %v169_v36   ;;  %13958 = vst [vmem:[#allocation92_spill] sm:$0xff] %v8635_v12  ;;  %13959 = vst [vmem:[#allocation93_spill] sm:$0xff] %v8639_v24  ;;  %v13125_v19 = vand.u32 4294901760, %v8038_v25  ;;  %v1314_v13 = vsub.f32 %v8021_v17, %v13122_v61  ;;  %v3912_v27 = vsub.f32 %v8036_v23, %v13123_v31  ;;  %s12958_s29 = scalar_lea.vmem [#allocation2], %s6034_s28  ;;  %s13003_s13 = scalar_lea.sflag [#allocation3], %s135_s6 }
  0x4f   : > { %6881 = vmatpush1.bf16.msra.mxu0 %v8613_v34  ;;  %13960 = vst [vmem:[#allocation94_spill] sm:$0xff] %v8645_v7  ;;  %13961 = vst [vmem:[#allocation95_spill] sm:$0xff] %v8649_v56  ;;  %v1307_v8 = vsub.f32 %v8019_v16, %v13124_v44  ;;  %v8669_v36 = vadd.s32 128, %v8659_v40  ;;  %v3905_v47 = vsub.f32 %v8023_v18, %v13121_v22  ;;  %v13964_v2 = vand.u32 4294901760, %v8056_v33  ;;  %s5968_s3 = sshll.u32 %s12958_s29, 4  ;;  %s12998_s3 = int_to_ptr.vmem [resolvable:$true] %s5968_s3 }
  0x50   : > { %6882 = vmatprep.subr.bf16.mxu0 %v13880_v54  ;;  %6596 = vmatpush1.bf16.msra.mxu1 %v8623_v15  ;;  %13962 = vst [vmem:[#allocation96_spill] sm:$0xff] %v8659_v40  ;;  %v13965_v61 = vand.u32 4294901760, %v8069_v41  ;;  %v13966_v44 = vand.u32 4294901760, %v8071_v42  ;;  %v13975_v15 = vand.u32 4294901760, %v8113_v3  ;;  %v13976_v34 = vand.u32 4294901760, %v8115_v4  ;;  %s7850_s7 = scalar_lea.vmem %s12998_s3, 4096  ;;  %p7857_p0 = scmp.lt.s32.totalorder %s12998_s3, %s7855_s14 }
  0x51   : > { %6597 = vmatprep.subr.bf16.mxu1 %v13880_v54  ;;  %13963 = vst [vmem:[#allocation97_spill] sm:$0xff] %v8669_v36  ;;  %v1328_v22 = vsub.f32 %v8056_v33, %v13964_v2  ;;  %v13164_v10 = vand.u32 4294901760, %v8167_v43  ;;  %p7851_p11 = scmp.ne.s32.totalorder %s12998_s3, %s7850_s7  ;;  %p7858_p1 = scmp.lt.s32.totalorder %s7856_s16, %s7850_s7 }
  0x52   : > { %264 = vperm.xlu1 %7849, %v172_v5   ;;  %261 = vperm.xlu0 %7848, %v171_v11   ;;  %v1321_v5 = vsub.f32 %v8038_v25, %v13125_v19  ;;  %v3919_v31 = vsub.f32 %v8069_v41, %v13965_v61  ;;  %v3926_v19 = vsub.f32 %v8071_v42, %v13966_v44  ;;  %v13967_v11 = vand.u32 4294901760, %v8078_v45 }
  0x53   : > { %6884 = vmatpush1.bf16.msra.mxu0 %v8629_v6  ;;  %v13974_v6 = vand.u32 4294901760, %v8106_v63  ;;  %v1329_v62 = vand.u32 4294901760, %v1328_v22  ;;  %v8745_v22 = vsub.f32 %v8167_v43, %v13164_v10  ;;  %p7852_p12 = pnand %p7851_p11, %p7974_p5  ;;  %p7859_p2 = por %p7858_p1, %p7857_p0 }
  0x54   : > { %6885 = vmatprep.subr.bf16.mxu0 %v13880_v54  ;;  %6599 = vmatpush1.bf16.msra.mxu1 %v8635_v12  ;;  %v13973_v12 = vand.u32 4294901760, %v8104_v60  ;;  %v1322_v35 = vand.u32 4294901760, %v1321_v5  ;;  %v3920_v0 = vand.u32 4294901760, %v3919_v31  ;;  %v13166_v31 = vand.u32 4294901760, %v8171_v48 }
  0x55   : > { %6600 = vmatprep.subr.bf16.mxu1 %v13880_v54  ;;  %v8750_v5 = vadd.s32 256, %v8659_v40  ;;  %p7853_p13 = pneg %p7852_p12 }
  0x56   : > { %270 = vperm.xlu1 %7849, %v174_v50   ;;  %267 = vperm.xlu0 %7848, %v173_v14   ;;  %v1308_v14 = vand.u32 4294901760, %v1307_v8  ;;  %v1315_v50 = vand.u32 4294901760, %v1314_v13  ;;  %v1335_v8 = vsub.f32 %v8078_v45, %v13967_v11  ;;  %v13968_v13 = vand.u32 4294901760, %v8080_v46 }
  0x57   : > { %6887 = vmatpush1.bf16.msra.mxu0 %v8639_v24  ;;  %v13972_v24 = vand.u32 4294901760, %v8102_v59  ;;  %13977 = vst [vmem:[#allocation98_spill] sm:$0xff] %v8750_v5  ;;  %p7860_p3 = pnand %p7859_p2, %p7853_p13 }
  0x58   : > { %6888 = vmatprep.subr.bf16.mxu0 %v13880_v54  ;;  %6602 = vmatpush1.bf16.msra.mxu1 %v8645_v7  ;;  %v13971_v7 = vand.u32 4294901760, %v8099_v57 }
  0x59   : > { %6603 = vmatprep.subr.bf16.mxu1 %v13880_v54  ;;  %v1356_v11 = vsub.f32 %v8102_v59, %v13972_v24  ;;  %v13167_v24 = vand.u32 4294901760, %v8152_v29 }
  0x5a   : > { %276 = vperm.xlu1 %7849, %v176_v49   ;;  %273 = vperm.xlu0 %7848, %v175_v38   ;;  %v3906_v38 = vand.u32 4294901760, %v3905_v47  ;;  %v1342_v47 = vsub.f32 %v8080_v46, %v13968_v13  ;;  %v13970_v49 = vand.u32 4294901760, %v8093_v53  ;;  %v1349_v44 = vsub.f32 %v8099_v57, %v13971_v7 }
  0x5b   : > { %6890 = vmatpush1.bf16.msra.mxu0 %v8649_v56  ;;  %v3913_v56 = vand.u32 4294901760, %v3912_v27  ;;  %v13969_v27 = vand.u32 4294901760, %v8091_v52  ;;  %v3947_v13 = vsub.f32 %v8104_v60, %v13973_v12  ;;  %v1370_v7 = vsub.f32 %v8115_v4, %v13976_v34 }
  0x5c   : > { %6891 = vmatprep.subr.bf16.mxu0 %v13880_v54  ;;  %v3940_v61 = vsub.f32 %v8093_v53, %v13970_v49  ;;  %v1363_v49 = vsub.f32 %v8113_v3, %v13975_v15  ;;  %v3927_v12 = vand.u32 4294901760, %v3926_v19  ;;  %v1336_v60 = vand.u32 4294901760, %v1335_v8 }
  0x5d   : > { %v3933_v2 = vsub.f32 %v8091_v52, %v13969_v27  ;;  %v3954_v27 = vsub.f32 %v8106_v63, %v13974_v6  ;;  %v1343_v59 = vand.u32 4294901760, %v1342_v47  ;;  %v1350_v63 = vand.u32 4294901760, %v1349_v44 }
  0x5e   : > { %v3941_v6 = vand.u32 4294901760, %v3940_v61  ;;  %v1357_v53 = vand.u32 4294901760, %v1356_v11  ;;  %v3948_v52 = vand.u32 4294901760, %v3947_v13  ;;  %v1364_v3 = vand.u32 4294901760, %v1363_v49 }
  0x5f   : > { %v3934_v57 = vand.u32 4294901760, %v3933_v2  ;;  %v3955_v15 = vand.u32 4294901760, %v3954_v27  ;;  %v1371_v46 = vand.u32 4294901760, %v1370_v7  ;;  %v8740_v34 = vsub.f32 %v8152_v29, %v13167_v24 }
  0x60   : > { %v13165_v19 = vand.u32 4294901760, %v8180_v51  ;;  %v8753_v8 = vadd.s32 384, %v8659_v40  ;;  %v8755_v47 = vpack.c.bf16 %v1315_v50, %v1308_v14  ;;  %v8757_v2 = vpack.c.bf16 %v3913_v56, %v3906_v38 }
  0x61   : > { %v8759_v61 = vpack.c.bf16 %v1329_v62, %v1322_v35  ;;  %v8761_v44 = vpack.c.bf16 %v3927_v12, %v3920_v0  ;;  %v8763_v11 = vpack.c.bf16 %v1343_v59, %v1336_v60  ;;  %v8769_v49 = vpack.c.bf16 %v3941_v6, %v3934_v57 }
  0x62   : > { %13978 = vst [vmem:[#allocation99_spill] sm:$0xff] %v8753_v8  ;;  %v8771_v7 = vpack.c.bf16 %v1357_v53, %v1350_v63  ;;  %v8773_v10 = vpack.c.bf16 %v3955_v15, %v3948_v52  ;;  %v8775_v50 = vpack.c.bf16 %v1371_v46, %v1364_v3  ;;  %v3962_v56 = vand.u32 4294901760, %v8740_v34 }
  0x63   : > { %v3969_v62 = vand.u32 4294901760, %v8745_v22  ;;  %v8782_v59 = vsub.f32 %v8171_v48, %v13166_v31  ;;  %v8787_v57 = vsub.f32 %v8180_v51, %v13165_v19  ;;  %v13174_v46 = vmov 0.0  }
  0x64   : > { %v13178_v6 = vand.u32 4294901760, %v8184_v55  ;;  %v13181_v15 = vand.u32 4294901760, %v8186_v58  ;;  %v13989_v51 = vand.u32 4294901760, %v8208_v21 }
  0x65   : > { %v1378_v19 = vand.u32 4294901760, %v8782_v59  ;;  %v1385_v31 = vand.u32 4294901760, %v8787_v57 }
  0x66   : > { %v3975_v22 = vsub.f32 %v8184_v55, %v13178_v6  ;;  %v3982_v24 = vsub.f32 %v8186_v58, %v13181_v15  ;;  %v1398_v48 = vsub.f32 %v8208_v21, %v13989_v51 }
  0x9b   : > { %v8765_v13 = vpop.permute.xlu1 %189 }
  0x9c   : > { %13979 = vst [vmem:[#allocation100_spill] sm:$0xff] %v8765_v13  ;;  %v8767_v27 = vpop.permute.xlu0 %183  ;;  %vm13383_vm8 = vcmp.eq.s32.totalorder %v8765_v13, %v8669_v36  ;;  %vm13380_vm9 = vcmp.eq.s32.totalorder %v8765_v13, %v8753_v8  ;;  %vm13377_vm10 = vcmp.eq.s32.totalorder %v8765_v13, %v8659_v40  ;;  %vm13260_vm11 = vcmp.eq.s32.totalorder %v8765_v13, %v8750_v5 }
  0x9d   : > { %13980 = vst [vmem:[#allocation101_spill] sm:$0xff] %v8767_v27  ;;  %vm13391_vm0 = vcmp.eq.s32.totalorder %v8767_v27, %v8659_v40  ;;  %vm13756_vm1 = vcmp.eq.s32.totalorder %v8767_v27, %v8669_v36  ;;  %vm13390_vm2 = vcmp.eq.s32.totalorder %v8767_v27, %v8750_v5  ;;  %vm13755_vm3 = vcmp.eq.s32.totalorder %v8767_v27, %v8753_v8 }
  0x9e   : > { %v6038_v52 = vsel %vm13756_vm1, 1.0, %v13174_v46  ;;  %v6040_v53 = vsel %vm13755_vm3, 1.0, %v13174_v46  ;;  %v6037_v60 = vsel %vm13391_vm0, 1.0, %v13174_v46  ;;  %v6039_v63 = vsel %vm13390_vm2, 1.0, %v13174_v46 }
  0x9f   : > { %v8817_v35 = vsub.f32 %v6038_v52, %v6038_v52  ;;  %v8819_v14 = vsub.f32 %v6040_v53, %v6040_v53  ;;  %v8821_v38 = vsub.f32 %v6037_v60, %v6037_v60  ;;  %v8823_v12 = vsub.f32 %v6039_v63, %v6039_v63 }
  0xa0   : > { %v8813_v3 = vpop.permute.xlu1 %192  ;;  %v8815_v0 = vpop.permute.xlu0 %186  ;;  %v13988_v60 = vand.u32 4294901760, %v8195_v1 }
  0xa1   : > { %13981 = vst [vmem:[#allocation102_spill] sm:$0xff] %v8813_v3  ;;  %13982 = vst [vmem:[#allocation103_spill] sm:$0xff] %v8815_v0  ;;  %vm13385_vm4 = vcmp.eq.s32.totalorder %v8815_v0, %v8659_v40  ;;  %vm13389_vm5 = vcmp.eq.s32.totalorder %v8815_v0, %v8669_v36  ;;  %vm13384_vm6 = vcmp.eq.s32.totalorder %v8815_v0, %v8750_v5  ;;  %v13990_v43 = vand.u32 4294901760, %v8817_v35 }
  0xa2   : > { %13983 = vst [vmem:[#allocation104_spill] sm:$0xff] %v8817_v35  ;;  %13984 = vst [vmem:[#allocation105_spill] sm:$0xff] %v8819_v14  ;;  %vm13386_vm7 = vcmp.eq.s32.totalorder %v8815_v0, %v8753_v8  ;;  %v6042_v52 = vsel %vm13389_vm5, 1.0, %v13174_v46  ;;  %v6041_v59 = vsel %vm13385_vm4, 1.0, %v13174_v46  ;;  %v6043_v57 = vsel %vm13384_vm6, 1.0, %v13174_v46 }
  0xa3   : > { %13985 = vst [vmem:[#allocation106_spill] sm:$0xff] %v8821_v38  ;;  %13986 = vst [vmem:[#allocation107_spill] sm:$0xff] %v8823_v12  ;;  %v6044_v63 = vsel %vm13386_vm7, 1.0, %v13174_v46  ;;  %v1391_v53 = vsub.f32 %v8195_v1, %v13988_v60  ;;  %v825_v46 = vsub.f32 %v8817_v35, %v13990_v43  ;;  %v13991_v29 = vand.u32 4294901760, %v8819_v14 }
  0xa4   : > { %v8845_v34 = vpop.permute.xlu1 %198  ;;  %v13992_v55 = vand.u32 4294901760, %v8821_v38  ;;  %v13993_v58 = vand.u32 4294901760, %v8823_v12  ;;  %v8887_v1 = vsub.f32 %v6042_v52, %v6042_v52  ;;  %v8889_v4 = vsub.f32 %v6044_v63, %v6044_v63 }
  0xa5   : > { %13987 = vst [vmem:[#allocation108_spill] sm:$0xff] %v8845_v34  ;;  %v3423_v6 = vsub.f32 %v8819_v14, %v13991_v29  ;;  %v8891_v51 = vsub.f32 %v6041_v59, %v6041_v59  ;;  %v8893_v21 = vsub.f32 %v6043_v57, %v6043_v57  ;;  %v826_v43 = vand.u32 4294901760, %v825_v46 }
  0xa6   : > { %v831_v15 = vsub.f32 %v8821_v38, %v13992_v55  ;;  %v3429_v60 = vsub.f32 %v8823_v12, %v13993_v58  ;;  %13994 = vst [vmem:[#allocation109_spill] sm:$0xff] %v8887_v1  ;;  %13995 = vst [vmem:[#allocation110_spill] sm:$0xff] %v8889_v4  ;;  %v13998_v29 = vand.u32 4294901760, %v8217_v28  ;;  %v13999_v55 = vand.u32 4294901760, %v8219_v30 }
  0xa7   : > { %13996 = vst [vmem:[#allocation111_spill] sm:$0xff] %v8891_v51  ;;  %13997 = vst [vmem:[#allocation112_spill] sm:$0xff] %v8893_v21  ;;  %v3424_v35 = vand.u32 4294901760, %v3423_v6  ;;  %v8901_v52 = vpack.c.bf16 %v3969_v62, %v3962_v56  ;;  %v3976_v63 = vand.u32 4294901760, %v3975_v22  ;;  %827 = vmatprep.mubr.f32.mxu1 %v826_v43  ;;  %v13202_v6 = vand.u32 4294901760, %v8887_v1 }
  0xa8   : > { %v3989_v14 = vsub.f32 %v8217_v28, %v13998_v29  ;;  %v3996_v38 = vsub.f32 %v8219_v30, %v13999_v55  ;;  %v832_v45 = vand.u32 4294901760, %v831_v15  ;;  %v3430_v58 = vand.u32 4294901760, %v3429_v60  ;;  %v8905_v46 = vpop.permute.xlu1 %204  ;;  %v8908_v29 = vpop.permute.xlu0 %195  ;;  %v14076_v30 = vld [vmem:[#allocation49_spill] sm:$0xff] }
  0xa9   : > { %3425 = vmatprep.mubr.f32.mxu0 %v3424_v35  ;;  %14000 = vst [vmem:[#allocation113_spill] sm:$0xff] %v8905_v46  ;;  %v3983_v59 = vand.u32 4294901760, %v3982_v24  ;;  %v1392_v57 = vand.u32 4294901760, %v1391_v53  ;;  %14001 = vst [vmem:[#allocation114_spill] sm:$0xff] %v8908_v29  ;;  %v13200_v15 = vand.u32 4294901760, %v8889_v4  ;;  %v13198_v56 = vand.u32 4294901760, %v8891_v51 }
  0xaa   : > { %833 = vmatmul.mubr.f32.vlgmr.msra.gmra.mrb[0].mxu1 %v832_v45  ;;  %3431 = vmatmul.mubr.f32.vlgmr.msra.gmra.mrb[0].mxu0 %v3430_v58  ;;  %v13199_v62 = vand.u32 4294901760, %v8893_v21  ;;  %v1399_v22 = vand.u32 4294901760, %v1398_v48  ;;  %v840_v24 = vsub.f32 %v8887_v1, %v13202_v6  ;;  %v8918_v35 = vpack.c.bf16 %v1385_v31, %v1378_v19 }
  0xab   : > { %6605 = vmatpush1.bf16.msra.mxu1 %v8755_v47  ;;  %6893 = vmatpush1.bf16.msra.mxu0 %v8757_v2  ;;  %v3990_v53 = vand.u32 4294901760, %v3989_v14  ;;  %v3997_v45 = vand.u32 4294901760, %v3996_v38  ;;  %v3438_v60 = vsub.f32 %v8889_v4, %v13200_v15  ;;  %v846_v48 = vsub.f32 %v8891_v51, %v13198_v56  ;;  %v14018_v51 = vld [vmem:[#allocation45_spill] sm:$0xff] }
  0xac   : > { %v14002_v47 = vmov 0.0   ;;  %6606 = vmatprep.subr.bf16.mxu1 %v13880_v54  ;;  %v841_v31 = vand.u32 4294901760, %v840_v24  ;;  %v3444_v19 = vsub.f32 %v8893_v21, %v13199_v62  ;;  %6894 = vmatprep.subr.bf16.mxu0 %v13880_v54  ;;  %v8939_v14 = vpack.c.bf16 %v3983_v59, %v3976_v63  ;;  %v8945_v58 = vpop.permute.xlu1 %210  ;;  %v8958_v59 = vpop.permute.xlu0 %201 }
  0xad   : > { %v6046_v2 = vsel %vm13383_vm8, 1.0, %v14002_v47  ;;  %v3439_v38 = vand.u32 4294901760, %v3438_v60  ;;  %v847_v43 = vand.u32 4294901760, %v846_v48  ;;  %v8943_v55 = vpack.c.bf16 %v1399_v22, %v1392_v57  ;;  %14003 = vst [vmem:[#allocation115_spill] sm:$0xff] %v8945_v58  ;;  %14005 = vst [vmem:[#allocation117_spill] sm:$0xff] %v8958_v59  ;;  %v14007_v60 = vld [vmem:[#allocation41_spill] sm:$0xff] }
  0xae   : > { %842 = vmatprep.mubr.f32.mxu1 %v841_v31  ;;  %v3445_v56 = vand.u32 4294901760, %v3444_v19  ;;  %v8947_v24 = vsub.f32 %v6046_v2, %v6046_v2  ;;  %v6048_v62 = vsel %vm13380_vm9, 1.0, %v14002_v47  ;;  %v8954_v63 = vpack.c.bf16 %v3997_v45, %v3990_v53  ;;  %v14010_v31 = vld [vmem:[#allocation43_spill] sm:$0xff] }
  0xaf   : > { %6608 = vmatpush1.bf16.msra.mxu1 %v8759_v61  ;;  %vm13214_vm12 = vcmp.eq.s32.totalorder %v8813_v3, %v8669_v36  ;;  %3440 = vmatprep.mubr.f32.mxu0 %v3439_v38  ;;  %v8960_v57 = vsub.f32 %v6048_v62, %v6048_v62  ;;  %v6045_v22 = vsel %vm13377_vm10, 1.0, %v14002_v47  ;;  %vm13213_vm13 = vcmp.eq.s32.totalorder %v8813_v3, %v8753_v8 }
  0xb0   : > { %14004 = vst [vmem:[#allocation116_spill] sm:$0xff] %v8947_v24  ;;  %848 = vmatmul.mubr.f32.gmra.mrb[2].mxu1 %v847_v43  ;;  %3446 = vmatmul.mubr.f32.gmra.mrb[2].mxu0 %v3445_v56  ;;  %v13201_v61 = vand.u32 4294901760, %v8947_v24  ;;  %v8970_v53 = vsub.f32 %v6045_v22, %v6045_v22  ;;  %v6047_v62 = vsel %vm13260_vm11, 1.0, %v14002_v47  ;;  %v14011_v56 = vld [vmem:[#allocation44_spill] sm:$0xff]  ;;  %vm13215_vm14 = vcmp.eq.s32.totalorder %v8813_v3, %v8659_v40  ;;  %v9015_v48 = vpop.permute.xlu0 %207 }
  0xb1   : > { %14006 = vst [vmem:[#allocation118_spill] sm:$0xff] %v8960_v57  ;;  %6609 = vmatprep.subr.bf16.mxu1 %v13880_v54  ;;  %v13203_v45 = vand.u32 4294901760, %v8960_v57  ;;  %v8978_v2 = vsub.f32 %v6047_v62, %v6047_v62  ;;  %6896 = vmatpush1.bf16.msra.mxu0 %v8761_v44  ;;  %vm13224_vm15 = vcmp.eq.s32.totalorder %v8813_v3, %v8750_v5  ;;  %v6050_v15 = vsel %vm13214_vm12, 1.0, %v14002_v47 }
  0xb2   : > { %14008 = vst [vmem:[#allocation119_spill] sm:$0xff] %v8970_v53  ;;  %v855_v43 = vsub.f32 %v8947_v24, %v13201_v61  ;;  %v13212_v22 = vand.u32 4294901760, %v8970_v53  ;;  %6897 = vmatprep.subr.bf16.mxu0 %v13880_v54  ;;  %v6052_v61 = vsel %vm13213_vm13, 1.0, %v14002_v47  ;;  %v9011_v38 = vsub.f32 %v6050_v15, %v6050_v15  ;;  %14015 = vst [vmem:[#allocation124_spill] sm:$0xff] %v9015_v48 }
  0xb3   : > { %14009 = vst [vmem:[#allocation120_spill] sm:$0xff] %v8978_v2  ;;  %6611 = vmatpush1.bf16.msra.mxu1 %v8763_v11  ;;  %v3453_v44 = vsub.f32 %v8960_v57, %v13203_v45  ;;  %v9006_v11 = vpop.permute.xlu1 %216  ;;  %v9013_v19 = vsub.f32 %v6052_v61, %v6052_v61  ;;  %v14016_v57 = vand.u32 4294901760, %v8978_v2  ;;  %vm13246_vm13 = vcmp.eq.s32.totalorder %v8908_v29, %v8669_v36 }
  0xb4   : > { %6612 = vmatprep.subr.bf16.mxu1 %v13880_v54  ;;  %v856_v6 = vand.u32 4294901760, %v855_v43  ;;  %14012 = vst [vmem:[#allocation121_spill] sm:$0xff] %v9006_v11  ;;  %v861_v45 = vsub.f32 %v8970_v53, %v13212_v22  ;;  %14013 = vst [vmem:[#allocation122_spill] sm:$0xff] %v9011_v38  ;;  %v14017_v43 = vand.u32 4294901760, %v14007_v60  ;;  %v13216_v61 = vand.u32 4294901760, %v9011_v38 }
  0xb5   : > { %14014 = vst [vmem:[#allocation123_spill] sm:$0xff] %v9013_v19  ;;  %v3454_v62 = vand.u32 4294901760, %v3453_v44  ;;  %v3459_v24 = vsub.f32 %v8978_v2, %v14016_v57  ;;  %6899 = vmatpush1.bf16.msra.mxu0 %v8769_v49  ;;  %v13217_v44 = vand.u32 4294901760, %v9013_v19  ;;  %vm13229_vm12 = vcmp.eq.s32.totalorder %v8908_v29, %v8753_v8 }
  0xb6   : > { %v9024_v21 = vsub.f32 %v14007_v60, %v14017_v43  ;;  %857 = vmatprep.mubr.f32.mxu1 %v856_v6  ;;  %v862_v15 = vand.u32 4294901760, %v861_v45  ;;  %6900 = vmatprep.subr.bf16.mxu0 %v13880_v54  ;;  %v6049_v57 = vsel %vm13215_vm14, 1.0, %v14002_v47  ;;  %v6051_v6 = vsel %vm13224_vm15, 1.0, %v14002_v47 }
  0xb7   : > { %3455 = vmatprep.mubr.f32.mxu0 %v3454_v62  ;;  %v3460_v49 = vand.u32 4294901760, %v3459_v24  ;;  %6614 = vmatpush1.bf16.msra.mxu1 %v8771_v7  ;;  %v870_v45 = vsub.f32 %v9011_v38, %v13216_v61  ;;  %v3468_v24 = vsub.f32 %v9013_v19, %v13217_v44  ;;  %v9049_v62 = vsub.f32 %v6049_v57, %v6049_v57  ;;  %v9070_v38 = vpop.permute.xlu1 %222 }
  0xb8   : > { %863 = vmatmul.mubr.f32.gmra.mrb[4].mxu1 %v862_v15  ;;  %v9051_v43 = vsub.f32 %v6051_v6, %v6051_v6  ;;  %vm13232_vm14 = vcmp.eq.s32.totalorder %v8908_v29, %v8659_v40  ;;  %v14021_v22 = vand.u32 4294901760, %v14010_v31  ;;  %v14022_v15 = vand.u32 4294901760, %v14011_v56  ;;  %14024 = vst [vmem:[#allocation127_spill] sm:$0xff] %v9070_v38  ;;  %6615 = vmatprep.subr.bf16.mxu1 %v13880_v54 }
  0xb9   : > { %14019 = vst [vmem:[#allocation125_spill] sm:$0xff] %v9049_v62  ;;  %3461 = vmatmul.mubr.f32.gmra.mrb[4].mxu0 %v3460_v49  ;;  %v14023_v44 = vand.u32 4294901760, %v14018_v51  ;;  %v871_v6 = vand.u32 4294901760, %v870_v45  ;;  %v3469_v19 = vand.u32 4294901760, %v3468_v24  ;;  %v13231_v49 = vand.u32 4294901760, %v9049_v62 }
  0xba   : > { %14020 = vst [vmem:[#allocation126_spill] sm:$0xff] %v9051_v43  ;;  %v9058_v7 = vsub.f32 %v14010_v31, %v14021_v22  ;;  %v9063_v61 = vsub.f32 %v14011_v56, %v14022_v15  ;;  %v13230_v2 = vand.u32 4294901760, %v9051_v43  ;;  %6902 = vmatpush1.bf16.msra.mxu0 %v8773_v10  ;;  %vm13235_vm15 = vcmp.eq.s32.totalorder %v8908_v29, %v8750_v5  ;;  %v9078_v22 = vpop.permute.xlu0 %213  ;;  %v14068_v56 = vld [vmem:[#allocation48_spill] sm:$0xff] }
  0xbb   : > { %v9068_v57 = vsub.f32 %v14018_v51, %v14023_v44  ;;  %14025 = vst [vmem:[#allocation128_spill] sm:$0xff] %v9078_v22  ;;  %v6054_v44 = vsel %vm13246_vm13, 1.0, %v14002_v47  ;;  %v6056_v45 = vsel %vm13229_vm12, 1.0, %v14002_v47  ;;  %6903 = vmatprep.subr.bf16.mxu0 %v13880_v54  ;;  %6617 = vmatpush1.bf16.msra.mxu1 %v8775_v50  ;;  %v1406_v10 = vand.u32 4294901760, %v9024_v21 }
  0xbc   : > { %872 = vmatprep.mubr.f32.mxu1 %v871_v6  ;;  %3470 = vmatprep.mubr.f32.mxu0 %v3469_v19  ;;  %v876_v24 = vsub.f32 %v9049_v62, %v13231_v49  ;;  %v3474_v15 = vsub.f32 %v9051_v43, %v13230_v2  ;;  %v9097_v53 = vsub.f32 %v6054_v44, %v6054_v44  ;;  %v6053_v4 = vsel %vm13232_vm14, 1.0, %v14002_v47 }
  0xbd   : > { %vm13237_vm12 = vcmp.eq.s32.totalorder %v8845_v34, %v8669_v36  ;;  %v9105_v21 = vsub.f32 %v6056_v45, %v6056_v45  ;;  %v9107_v50 = vsub.f32 %v6053_v4, %v6053_v4  ;;  %6618 = vmatprep.subr.bf16.mxu1 %v13880_v54  ;;  %v1413_v19 = vand.u32 4294901760, %v9058_v7 }
  0xbe   : > { %14026 = vst [vmem:[#allocation129_spill] sm:$0xff] %v9097_v53  ;;  %v877_v6 = vand.u32 4294901760, %v876_v24  ;;  %v3475_v2 = vand.u32 4294901760, %v3474_v15  ;;  %v13236_v44 = vand.u32 4294901760, %v9097_v53  ;;  %v6055_v49 = vsel %vm13235_vm15, 1.0, %v14002_v47  ;;  %6905 = vmatpush1.bf16.msra.mxu0 %v8901_v52  ;;  %v9128_v52 = vpop.permute.xlu1 %228 }
  0xbf   : > { %14027 = vst [vmem:[#allocation130_spill] sm:$0xff] %v9105_v21  ;;  %14028 = vst [vmem:[#allocation131_spill] sm:$0xff] %v9107_v50  ;;  %vm13247_vm14 = vcmp.eq.s32.totalorder %v8845_v34, %v8753_v8  ;;  %v13240_v4 = vand.u32 4294901760, %v9105_v21  ;;  %v13243_v45 = vand.u32 4294901760, %v9107_v50  ;;  %v9121_v43 = vsub.f32 %v6055_v49, %v6055_v49  ;;  %6906 = vmatprep.subr.bf16.mxu0 %v13880_v54 }
  0xc0   : > { %6620 = vmatpush1.bf16.msra.mxu1 %v8918_v35  ;;  %3476 = vmatmul.mubr.f32.gmra.mrb[6].mxu0 %v3475_v2  ;;  %v885_v7 = vsub.f32 %v9097_v53, %v13236_v44  ;;  %14030 = vst [vmem:[#allocation133_spill] sm:$0xff] %v9128_v52  ;;  %v6058_v24 = vsel %vm13237_vm12, 1.0, %v14002_v47  ;;  %v4004_v49 = vand.u32 4294901760, %v9063_v61  ;;  %v4011_v15 = vand.u32 4294901760, %v9068_v57  ;;  %v9138_v35 = vpop.permute.xlu0 %219 }
  0xc1   : > { %14029 = vst [vmem:[#allocation132_spill] sm:$0xff] %v9121_v43  ;;  %878 = vmatmul.mubr.f32.gmra.mrb[6].mxu1 %v877_v6  ;;  %vm13248_vm15 = vcmp.eq.s32.totalorder %v8845_v34, %v8659_v40  ;;  %14031 = vst [vmem:[#allocation134_spill] sm:$0xff] %v9138_v35  ;;  %v3483_v2 = vsub.f32 %v9105_v21, %v13240_v4  ;;  %v891_v6 = vsub.f32 %v9107_v50, %v13243_v45 }
  0xc2   : > { %v13250_v44 = vand.u32 4294901760, %v9121_v43  ;;  %6621 = vmatprep.subr.bf16.mxu1 %v13880_v54  ;;  %vm13251_vm12 = vcmp.eq.s32.totalorder %v8845_v34, %v8750_v5  ;;  %v886_v61 = vand.u32 4294901760, %v885_v7  ;;  %v9150_v57 = vsub.f32 %v6058_v24, %v6058_v24  ;;  %6908 = vmatpush1.bf16.msra.mxu0 %v8939_v14 }
  0xc3   : > { %v6060_v53 = vsel %vm13247_vm14, 1.0, %v14002_v47  ;;  %v3484_v4 = vand.u32 4294901760, %v3483_v2  ;;  %v892_v21 = vand.u32 4294901760, %v891_v6  ;;  %6909 = vmatprep.subr.bf16.mxu0 %v13880_v54  ;;  %vm13252_vm13 = vcmp.eq.s32.totalorder %v8958_v59, %v8669_v36 }
  0xc4   : > { %14032 = vst [vmem:[#allocation135_spill] sm:$0xff] %v9150_v57  ;;  %v3489_v45 = vsub.f32 %v9121_v43, %v13250_v44  ;;  %v9160_v50 = vsub.f32 %v6060_v53, %v6060_v53  ;;  %6623 = vmatpush1.bf16.msra.mxu1 %v8943_v55  ;;  %887 = vmatprep.mubr.f32.mxu1 %v886_v61  ;;  %v13249_v7 = vand.u32 4294901760, %v9150_v57  ;;  %v6057_v53 = vsel %vm13248_vm15, 1.0, %v14002_v47 }
  0xc5   : > { %6624 = vmatprep.subr.bf16.mxu1 %v13880_v54  ;;  %v6625_v14 = vpack.c.bf16 %v1413_v19, %v1406_v10  ;;  %3485 = vmatprep.mubr.f32.mxu0 %v3484_v4  ;;  %v6059_v55 = vsel %vm13251_vm12, 1.0, %v14002_v47  ;;  %vm13253_vm14 = vcmp.eq.s32.totalorder %v8958_v59, %v8753_v8  ;;  %v9184_v19 = vsub.f32 %v6057_v53, %v6057_v53 }
  0xc6   : > { %14033 = vst [vmem:[#allocation136_spill] sm:$0xff] %v9160_v50  ;;  %893 = vmatmul.mubr.f32.gmra.mrb[8].mxu1 %v892_v21  ;;  %v3490_v24 = vand.u32 4294901760, %v3489_v45  ;;  %v13256_v2 = vand.u32 4294901760, %v9160_v50  ;;  %v900_v10 = vsub.f32 %v9150_v57, %v13249_v7  ;;  %v9182_v21 = vpop.permute.xlu1 %234  ;;  %v9186_v4 = vsub.f32 %v6059_v55, %v6059_v55  ;;  %6911 = vmatpush1.bf16.msra.mxu0 %v8954_v63  ;;  %v9191_v45 = vpop.permute.xlu0 %225 }
  0xc7   : > { %14034 = vst [vmem:[#allocation137_spill] sm:$0xff] %v9182_v21  ;;  %14035 = vst [vmem:[#allocation138_spill] sm:$0xff] %v9184_v19  ;;  %vm13259_vm15 = vcmp.eq.s32.totalorder %v8958_v59, %v8659_v40  ;;  %v6913_v61 = vpack.c.bf16 %v4011_v15, %v4004_v49  ;;  %v13254_v44 = vand.u32 4294901760, %v9184_v19  ;;  %v6062_v63 = vsel %vm13252_vm13, 1.0, %v14002_v47  ;;  %6912 = vmatprep.subr.bf16.mxu0 %v13880_v54 }
  0xc8   : > { %14036 = vst [vmem:[#allocation139_spill] sm:$0xff] %v9186_v4  ;;  %3491 = vmatmul.mubr.f32.gmra.mrb[8].mxu0 %v3490_v24  ;;  %14037 = vst [vmem:[#allocation140_spill] sm:$0xff] %v9191_v45  ;;  %v3498_v6 = vsub.f32 %v9160_v50, %v13256_v2  ;;  %v901_v7 = vand.u32 4294901760, %v900_v10  ;;  %v13255_v53 = vand.u32 4294901760, %v9186_v4  ;;  %6626 = vmatpush1.bf16.msra.mxu1 %v6625_v14  ;;  %v6064_v49 = vsel %vm13253_vm14, 1.0, %v14002_v47 }
  0xc9   : > { %v9203_v55 = vsub.f32 %v6062_v63, %v6062_v63  ;;  %6627 = vmatprep.subr.bf16.mxu1 %v13880_v54  ;;  %vm13279_vm12 = vcmp.eq.s32.totalorder %v8958_v59, %v8750_v5  ;;  %v906_v15 = vsub.f32 %v9184_v19, %v13254_v44  ;;  %v9218_v10 = vsub.f32 %v6064_v49, %v6064_v49 }
  0xca   : > { %v3499_v24 = vand.u32 4294901760, %v3498_v6  ;;  %902 = vmatprep.mubr.f32.mxu1 %v901_v7  ;;  %v3504_v14 = vsub.f32 %v9186_v4, %v13255_v53  ;;  %vm13267_vm13 = vcmp.eq.s32.totalorder %v8905_v46, %v8669_v36  ;;  %vm13274_vm14 = vcmp.eq.s32.totalorder %v8905_v46, %v8753_v8  ;;  %6914 = vmatpush1.bf16.msra.mxu0 %v6913_v61  ;;  %v9230_v53 = vpop.permute.xlu1 %240  ;;  %v9235_v4 = vpop.permute.xlu0 %231 }
  0xcb   : > { %14038 = vst [vmem:[#allocation141_spill] sm:$0xff] %v9203_v55  ;;  %14039 = vst [vmem:[#allocation142_spill] sm:$0xff] %v9218_v10  ;;  %v13261_v6 = vand.u32 4294901760, %v9203_v55  ;;  %v6061_v7 = vsel %vm13259_vm15, 1.0, %v14002_v47  ;;  %v907_v63 = vand.u32 4294901760, %v906_v15  ;;  %v13264_v49 = vand.u32 4294901760, %v9218_v10  ;;  %6915 = vmatprep.subr.bf16.mxu0 %v13880_v54 }
  0xcc   : > { %3500 = vmatprep.mubr.f32.mxu0 %v3499_v24  ;;  %v3505_v44 = vand.u32 4294901760, %v3504_v14  ;;  %14040 = vst [vmem:[#allocation143_spill] sm:$0xff] %v9230_v53  ;;  %v9232_v2 = vsub.f32 %v6061_v7, %v6061_v7  ;;  %14042 = vst [vmem:[#allocation145_spill] sm:$0xff] %v9235_v4  ;;  %v6063_v61 = vsel %vm13279_vm12, 1.0, %v14002_v47  ;;  %vm13299_vm15 = vcmp.eq.s32.totalorder %v8905_v46, %v8659_v40 }
  0xcd   : > { %v915_v24 = vsub.f32 %v9203_v55, %v13261_v6  ;;  %908 = vmatmul.mubr.f32.gmra.mrb[10].mxu1 %v907_v63  ;;  %v3513_v15 = vsub.f32 %v9218_v10, %v13264_v49  ;;  %v9250_v7 = vsub.f32 %v6063_v61, %v6063_v61  ;;  %vm13287_vm11 = vcmp.eq.s32.totalorder %v8905_v46, %v8750_v5 }
  0xce   : > { %14041 = vst [vmem:[#allocation144_spill] sm:$0xff] %v9232_v2  ;;  %3506 = vmatmul.mubr.f32.gmra.mrb[10].mxu0 %v3505_v44  ;;  %v13276_v14 = vand.u32 4294901760, %v9232_v2  ;;  %v6066_v55 = vsel %vm13267_vm13, 1.0, %v14002_v47  ;;  %v6068_v44 = vsel %vm13274_vm14, 1.0, %v14002_v47  ;;  %vm13288_vm13 = vcmp.eq.s32.totalorder %v9015_v48, %v8669_v36  ;;  %v9276_v57 = vpop.permute.xlu1 %246 }
  0xcf   : > { %14043 = vst [vmem:[#allocation146_spill] sm:$0xff] %v9250_v7  ;;  %v916_v6 = vand.u32 4294901760, %v915_v24  ;;  %v3514_v63 = vand.u32 4294901760, %v3513_v15  ;;  %v13275_v49 = vand.u32 4294901760, %v9250_v7  ;;  %v9266_v10 = vsub.f32 %v6066_v55, %v6066_v55  ;;  %14046 = vst [vmem:[#allocation149_spill] sm:$0xff] %v9276_v57  ;;  %v9280_v55 = vpop.permute.xlu0 %237 }
  0xd0   : > { %v921_v61 = vsub.f32 %v9232_v2, %v13276_v14  ;;  %v9268_v24 = vsub.f32 %v6068_v44, %v6068_v44  ;;  %vm13289_vm14 = vcmp.eq.s32.totalorder %v9015_v48, %v8753_v8  ;;  %14047 = vst [vmem:[#allocation150_spill] sm:$0xff] %v9280_v55  ;;  %v6065_v44 = vsel %vm13299_vm15, 1.0, %v14002_v47 }
  0xd1   : > { %14044 = vst [vmem:[#allocation147_spill] sm:$0xff] %v9266_v10  ;;  %917 = vmatprep.mubr.f32.mxu1 %v916_v6  ;;  %3515 = vmatprep.mubr.f32.mxu0 %v3514_v63  ;;  %v3519_v15 = vsub.f32 %v9250_v7, %v13275_v49  ;;  %v13284_v50 = vand.u32 4294901760, %v9266_v10  ;;  %v6067_v63 = vsel %vm13287_vm11, 1.0, %v14002_v47  ;;  %v9294_v14 = vsub.f32 %v6065_v44, %v6065_v44 }
  0xd2   : > { %14045 = vst [vmem:[#allocation148_spill] sm:$0xff] %v9268_v24  ;;  %v922_v19 = vand.u32 4294901760, %v921_v61  ;;  %v13290_v6 = vand.u32 4294901760, %v9268_v24  ;;  %v9296_v7 = vsub.f32 %v6067_v63, %v6067_v63  ;;  %vm13300_vm12 = vcmp.eq.s32.totalorder %v9015_v48, %v8659_v40 }
  0xd3   : > { %v3520_v61 = vand.u32 4294901760, %v3519_v15  ;;  %v930_v49 = vsub.f32 %v9266_v10, %v13284_v50  ;;  %14048 = vst [vmem:[#allocation151_spill] sm:$0xff] %v9294_v14  ;;  %v6070_v44 = vsel %vm13288_vm13, 1.0, %v14002_v47  ;;  %v6072_v10 = vsel %vm13289_vm14, 1.0, %v14002_v47 }
  0xd4   : > { %923 = vmatmul.mubr.f32.gmra.mrb[12].mxu1 %v922_v19  ;;  %14049 = vst [vmem:[#allocation152_spill] sm:$0xff] %v9296_v7  ;;  %v3528_v2 = vsub.f32 %v9268_v24, %v13290_v6  ;;  %v13292_v19 = vand.u32 4294901760, %v9294_v14  ;;  %v13291_v15 = vand.u32 4294901760, %v9296_v7  ;;  %v9309_v50 = vsub.f32 %v6070_v44, %v6070_v44  ;;  %v9325_v44 = vpop.permute.xlu1 %252 }
  0xd5   : > { %3521 = vmatmul.mubr.f32.gmra.mrb[12].mxu0 %v3520_v61  ;;  %v931_v43 = vand.u32 4294901760, %v930_v49  ;;  %vm13319_vm11 = vcmp.eq.s32.totalorder %v9015_v48, %v8750_v5  ;;  %14052 = vst [vmem:[#allocation155_spill] sm:$0xff] %v9325_v44  ;;  %vm13311_vm13 = vcmp.eq.s32.totalorder %v8945_v58, %v8669_v36  ;;  %vm13315_vm14 = vcmp.eq.s32.totalorder %v8945_v58, %v8753_v8 }
  0xd6   : > { %v3529_v63 = vand.u32 4294901760, %v3528_v2  ;;  %14050 = vst [vmem:[#allocation153_spill] sm:$0xff] %v9309_v50  ;;  %v936_v49 = vsub.f32 %v9294_v14, %v13292_v19  ;;  %v3534_v61 = vsub.f32 %v9296_v7, %v13291_v15  ;;  %v9323_v2 = vsub.f32 %v6072_v10, %v6072_v10 }
  0xd7   : > { %932 = vmatprep.mubr.f32.mxu1 %v931_v43  ;;  %v9331_v43 = vpop.permute.xlu0 %243  ;;  %v13301_v6 = vand.u32 4294901760, %v9309_v50  ;;  %v6069_v15 = vsel %vm13300_vm12, 1.0, %v14002_v47  ;;  %vm13366_vm15 = vcmp.eq.s32.totalorder %v8945_v58, %v8659_v40  ;;  %vm13329_vm12 = vcmp.eq.s32.totalorder %v8945_v58, %v8750_v5 }
  0xd8   : > { %14051 = vst [vmem:[#allocation154_spill] sm:$0xff] %v9323_v2  ;;  %3530 = vmatprep.mubr.f32.mxu0 %v3529_v63  ;;  %14053 = vst [vmem:[#allocation156_spill] sm:$0xff] %v9331_v43  ;;  %v937_v10 = vand.u32 4294901760, %v936_v49  ;;  %v3535_v19 = vand.u32 4294901760, %v3534_v61  ;;  %v13304_v7 = vand.u32 4294901760, %v9323_v2  ;;  %v9339_v14 = vsub.f32 %v6069_v15, %v6069_v15 }
  0xd9   : > { %v945_v24 = vsub.f32 %v9309_v50, %v13301_v6  ;;  %v6071_v63 = vsel %vm13319_vm11, 1.0, %v14002_v47  ;;  %v6074_v50 = vsel %vm13311_vm13, 1.0, %v14002_v47  ;;  %vm13331_vm13 = vcmp.eq.s32.totalorder %v9078_v22, %v8669_v36 }
  0xda   : > { %14054 = vst [vmem:[#allocation157_spill] sm:$0xff] %v9339_v14  ;;  %938 = vmatmul.mubr.f32.gmra.mrb[14].mxu1 %v937_v10  ;;  %3536 = vmatmul.mubr.f32.gmra.mrb[14].mxu0 %v3535_v19  ;;  %v3543_v49 = vsub.f32 %v9323_v2, %v13304_v7  ;;  %v13312_v15 = vand.u32 4294901760, %v9339_v14  ;;  %v9354_v61 = vsub.f32 %v6071_v63, %v6071_v63  ;;  %v6076_v19 = vsel %vm13315_vm14, 1.0, %v14002_v47 }
  0xdb   : > { %v946_v6 = vand.u32 4294901760, %v945_v24  ;;  %v9370_v2 = vsub.f32 %v6074_v50, %v6074_v50  ;;  %v9372_v24 = vpop.permute.xlu1 %258  ;;  %v9374_v62 = vpop.permute.xlu0 %249  ;;  %v9376_v1 = vsub.f32 %v6076_v19, %v6076_v19  ;;  %vm13332_vm14 = vcmp.eq.s32.totalorder %v9078_v22, %v8753_v8 }
  0xdc   : > { %14055 = vst [vmem:[#allocation158_spill] sm:$0xff] %v9354_v61  ;;  %v3544_v10 = vand.u32 4294901760, %v3543_v49  ;;  %v951_v63 = vsub.f32 %v9339_v14, %v13312_v15  ;;  %v13316_v7 = vand.u32 4294901760, %v9354_v61  ;;  %14057 = vst [vmem:[#allocation160_spill] sm:$0xff] %v9372_v24  ;;  %v6075_v19 = vsel %vm13329_vm12, 1.0, %v14002_v47 }
  0xdd   : > { %14056 = vst [vmem:[#allocation159_spill] sm:$0xff] %v9370_v2  ;;  %947 = vmatprep.mubr.f32.mxu1 %v946_v6  ;;  %14058 = vst [vmem:[#allocation161_spill] sm:$0xff] %v9374_v62  ;;  %v13324_v14 = vand.u32 4294901760, %v9370_v2  ;;  %v13330_v50 = vand.u32 4294901760, %v9376_v1  ;;  %v6073_v6 = vsel %vm13366_vm15, 1.0, %v14002_v47  ;;  %vm13344_vm11 = vcmp.eq.s32.totalorder %v9078_v22, %v8659_v40 }
  0xde   : > { %14059 = vst [vmem:[#allocation162_spill] sm:$0xff] %v9376_v1  ;;  %3545 = vmatprep.mubr.f32.mxu0 %v3544_v10  ;;  %v952_v49 = vand.u32 4294901760, %v951_v63  ;;  %v3549_v15 = vsub.f32 %v9354_v61, %v13316_v7  ;;  %v9398_v7 = vsub.f32 %v6073_v6, %v6073_v6  ;;  %v9400_v61 = vsub.f32 %v6075_v19, %v6075_v19 }
  0xdf   : > { %v960_v63 = vsub.f32 %v9370_v2, %v13324_v14  ;;  %v3558_v12 = vsub.f32 %v9376_v1, %v13330_v50  ;;  %v6078_v6 = vsel %vm13331_vm13, 1.0, %v14002_v47  ;;  %v9413_v19 = vpop.permute.xlu1 %264  ;;  %v9415_v2 = vpop.permute.xlu0 %255  ;;  %vm13346_vm12 = vcmp.eq.s32.totalorder %v9078_v22, %v8750_v5  ;;  %v14067_v1 = vld [vmem:[#allocation46_spill] sm:$0xff] }
  0xe0   : > { %953 = vmatmul.mubr.f32.gmra.mrb[16].mxu1 %v952_v49  ;;  %v3550_v10 = vand.u32 4294901760, %v3549_v15  ;;  %14060 = vst [vmem:[#allocation163_spill] sm:$0xff] %v9398_v7  ;;  %14061 = vst [vmem:[#allocation164_spill] sm:$0xff] %v9400_v61  ;;  %v13333_v49 = vand.u32 4294901760, %v9398_v7  ;;  %v13336_v15 = vand.u32 4294901760, %v9400_v61  ;;  %v9417_v48 = vsub.f32 %v6078_v6, %v6078_v6 }
  0xe1   : > { %v961_v58 = vand.u32 4294901760, %v960_v63  ;;  %14062 = vst [vmem:[#allocation165_spill] sm:$0xff] %v9413_v19  ;;  %v3559_v14 = vand.u32 4294901760, %v3558_v12  ;;  %14063 = vst [vmem:[#allocation166_spill] sm:$0xff] %v9415_v2  ;;  %vm13362_vm13 = vcmp.eq.s32.totalorder %v9006_v11, %v8669_v36  ;;  %v14074_v22 = vand.u32 4294901760, %v14067_v1 }
  0xe2   : > { %3551 = vmatmul.mubr.f32.gmra.mrb[16].mxu0 %v3550_v10  ;;  %14064 = vst [vmem:[#allocation167_spill] sm:$0xff] %v9417_v48  ;;  %v6080_v10 = vsel %vm13332_vm14, 1.0, %v14002_v47  ;;  %v966_v63 = vsub.f32 %v9398_v7, %v13333_v49  ;;  %v3564_v12 = vsub.f32 %v9400_v61, %v13336_v15  ;;  %vm13361_vm14 = vcmp.eq.s32.totalorder %v9006_v11, %v8753_v8 }
  0xe3   : > { %962 = vmatprep.mubr.f32.mxu1 %v961_v58  ;;  %v9431_v50 = vsub.f32 %v6080_v10, %v6080_v10  ;;  %3560 = vmatprep.mubr.f32.mxu0 %v3559_v14  ;;  %v13345_v6 = vand.u32 4294901760, %v9417_v48  ;;  %v6077_v58 = vsel %vm13344_vm11, 1.0, %v14002_v47  ;;  %v6079_v14 = vsel %vm13346_vm12, 1.0, %v14002_v47  ;;  %v9466_v31 = vpop.permute.xlu0 %261 }
  0xe4   : > { %v967_v49 = vand.u32 4294901760, %v966_v63  ;;  %v3565_v7 = vand.u32 4294901760, %v3564_v12  ;;  %v9443_v10 = vsub.f32 %v6077_v58, %v6077_v58  ;;  %vm13365_vm11 = vcmp.eq.s32.totalorder %v9006_v11, %v8659_v40  ;;  %14071 = vst [vmem:[#allocation172_spill] sm:$0xff] %v9466_v31 }
  0xe5   : > { %14065 = vst [vmem:[#allocation168_spill] sm:$0xff] %v9431_v50  ;;  %v13347_v15 = vand.u32 4294901760, %v9431_v50  ;;  %v975_v61 = vsub.f32 %v9417_v48, %v13345_v6  ;;  %v9460_v58 = vsub.f32 %v6079_v14, %v6079_v14  ;;  %v9462_v6 = vpop.permute.xlu1 %270  ;;  %vm13376_vm12 = vcmp.eq.s32.totalorder %v9006_v11, %v8750_v5 }
  0xe6   : > { %14066 = vst [vmem:[#allocation169_spill] sm:$0xff] %v9443_v10  ;;  %968 = vmatmul.mubr.f32.gmra.mrb[18].mxu1 %v967_v49  ;;  %3566 = vmatmul.mubr.f32.gmra.mrb[18].mxu0 %v3565_v7  ;;  %v13364_v12 = vand.u32 4294901760, %v9443_v10  ;;  %14070 = vst [vmem:[#allocation171_spill] sm:$0xff] %v9462_v6  ;;  %v6082_v7 = vsel %vm13362_vm13, 1.0, %v14002_v47  ;;  %v6084_v49 = vsel %vm13361_vm14, 1.0, %v14002_v47  ;;  %v9487_v60 = vsub.f32 %v14067_v1, %v14074_v22 }
  0xe7   : > { %v3573_v63 = vsub.f32 %v9431_v50, %v13347_v15  ;;  %14069 = vst [vmem:[#allocation170_spill] sm:$0xff] %v9460_v58  ;;  %v976_v51 = vand.u32 4294901760, %v975_v61  ;;  %v13363_v50 = vand.u32 4294901760, %v9460_v58  ;;  %v9480_v61 = vsub.f32 %v6082_v7, %v6082_v7 }
  0xe8   : > { %v981_v15 = vsub.f32 %v9443_v10, %v13364_v12  ;;  %v9482_v48 = vsub.f32 %v6084_v49, %v6084_v49  ;;  %v14075_v46 = vand.u32 4294901760, %v14068_v56  ;;  %vm13381_vm14 = vcmp.eq.s32.totalorder %v9138_v35, %v8669_v36  ;;  %v14082_v10 = vld [vmem:[#allocation51_spill] sm:$0xff] }
  0xe9   : > { %v3574_v14 = vand.u32 4294901760, %v3573_v63  ;;  %14072 = vst [vmem:[#allocation173_spill] sm:$0xff] %v9480_v61  ;;  %977 = vmatprep.mubr.f32.mxu1 %v976_v51  ;;  %v3579_v51 = vsub.f32 %v9460_v58, %v13363_v50  ;;  %v13371_v49 = vand.u32 4294901760, %v9480_v61  ;;  %vm13382_vm13 = vcmp.eq.s32.totalorder %v9138_v35, %v8753_v8  ;;  %v9519_v22 = vpop.permute.xlu1 %276 }
  0xea   : > { %14073 = vst [vmem:[#allocation174_spill] sm:$0xff] %v9482_v48  ;;  %v9492_v63 = vsub.f32 %v14068_v56, %v14075_v46  ;;  %v982_v7 = vand.u32 4294901760, %v981_v15  ;;  %v6081_v46 = vsel %vm13365_vm11, 1.0, %v14002_v47  ;;  %v6083_v15 = vsel %vm13376_vm12, 1.0, %v14002_v47  ;;  %14079 = vst [vmem:[#allocation177_spill] sm:$0xff] %v9519_v22 }
  0xeb   : > { %3575 = vmatprep.mubr.f32.mxu0 %v3574_v14  ;;  %v3580_v14 = vand.u32 4294901760, %v3579_v51  ;;  %v990_v50 = vsub.f32 %v9480_v61, %v13371_v49  ;;  %v9515_v12 = vsub.f32 %v6081_v46, %v6081_v46  ;;  %v9517_v28 = vsub.f32 %v6083_v15, %v6083_v15  ;;  %v9528_v51 = vpop.permute.xlu0 %267 }
  0xec   : > { %983 = vmatmul.mubr.f32.gmra.mrb[20].mxu1 %v982_v7  ;;  %vm13412_vm11 = vcmp.eq.s32.totalorder %v9138_v35, %v8659_v40  ;;  %vm13411_vm15 = vcmp.eq.s32.totalorder %v9138_v35, %v8750_v5  ;;  %v14080_v58 = vand.u32 4294901760, %v9482_v48  ;;  %14081 = vst [vmem:[#allocation178_spill] sm:$0xff] %v9528_v51  ;;  %v6086_v11 = vsel %vm13381_vm14, 1.0, %v14002_v47 }
  0xed   : > { %14077 = vst [vmem:[#allocation175_spill] sm:$0xff] %v9515_v12  ;;  %14078 = vst [vmem:[#allocation176_spill] sm:$0xff] %v9517_v28  ;;  %3581 = vmatmul.mubr.f32.gmra.mrb[20].mxu0 %v3580_v14  ;;  %v991_v46 = vand.u32 4294901760, %v990_v50  ;;  %v13388_v15 = vand.u32 4294901760, %v9515_v12  ;;  %v13387_v61 = vand.u32 4294901760, %v9517_v28  ;;  %vm331_vm12 = vcmp.eq.s32.totalorder %v9070_v38, %v8669_v36 }
  0xee   : > { %v3588_v7 = vsub.f32 %v9482_v48, %v14080_v58  ;;  %vm13430_vm10 = vcmp.eq.s32.totalorder %v9070_v38, %v8753_v8  ;;  %v9541_v48 = vsub.f32 %v6086_v11, %v6086_v11  ;;  %v6088_v50 = vsel %vm13382_vm13, 1.0, %v14002_v47 }
  0xef   : > { %vm13408_vm9 = vcmp.eq.s32.totalorder %v9519_v22, %v8659_v40  ;;  %vm330_vm14 = vcmp.eq.s32.totalorder %v9070_v38, %v8659_v40  ;;  %992 = vmatprep.mubr.f32.mxu1 %v991_v46  ;;  %v996_v14 = vsub.f32 %v9515_v12, %v13388_v15  ;;  %v3594_v11 = vsub.f32 %v9517_v28, %v13387_v61  ;;  %v9598_v12 = vpop.permute.xlu0 %273 }
  0xf0   : > { %v3589_v58 = vand.u32 4294901760, %v3588_v7  ;;  %14083 = vst [vmem:[#allocation179_spill] sm:$0xff] %v9541_v48  ;;  %v9557_v7 = vsub.f32 %v6088_v50, %v6088_v50  ;;  %vm13410_vm13 = vcmp.eq.s32.totalorder %v9519_v22, %v8669_v36  ;;  %vm332_vm8 = vcmp.eq.s32.totalorder %v9070_v38, %v8750_v5  ;;  %14086 = vst [vmem:[#allocation182_spill] sm:$0xff] %v9598_v12 }
  0xf1   : > { %vm13458_vm6 = vcmp.eq.s32.totalorder %v9191_v45, %v8669_v36  ;;  %v13397_v46 = vand.u32 4294901760, %v9541_v48  ;;  %vm13407_vm4 = vcmp.eq.s32.totalorder %v9519_v22, %v8750_v5  ;;  %vm13409_vm7 = vcmp.eq.s32.totalorder %v9519_v22, %v8753_v8 }
  0xf2   : > { %14084 = vst [vmem:[#allocation180_spill] sm:$0xff] %v9557_v7  ;;  %3590 = vmatprep.mubr.f32.mxu0 %v3589_v58  ;;  %v6161_v50 = vsel %vm13408_vm9, 1.0, %v14002_v47  ;;  %v997_v61 = vand.u32 4294901760, %v996_v14  ;;  %v3595_v15 = vand.u32 4294901760, %v3594_v11  ;;  %v6162_v58 = vsel %vm13410_vm13, 1.0, %v14002_v47 }
  0xf3   : > { %vm13456_vm5 = vcmp.eq.s32.totalorder %v9191_v45, %v8659_v40  ;;  %vm13447_vm2 = vcmp.eq.s32.totalorder %v9191_v45, %v8750_v5  ;;  %vm13457_vm0 = vcmp.eq.s32.totalorder %v9191_v45, %v8753_v8  ;;  %v1005_v14 = vsub.f32 %v9541_v48, %v13397_v46 }
  0xf4   : > { %v6163_v11 = vsel %vm13407_vm4, 1.0, %v14002_v47  ;;  %v6164_v49 = vsel %vm13409_vm7, 1.0, %v14002_v47  ;;  %v9596_v28 = vsub.f32 %v6162_v58, %v6162_v58  ;;  %998 = vmatmul.mubr.f32.gmra.mrb[22].mxu1 %v997_v61  ;;  %3596 = vmatmul.mubr.f32.gmra.mrb[22].mxu0 %v3595_v15  ;;  %v14087_v56 = vand.u32 4294901760, %v9557_v7 }
  0xf5   : > { %v9603_v48 = vsub.f32 %v6161_v50, %v6161_v50  ;;  %v9605_v1 = vsub.f32 %v6164_v49, %v6164_v49  ;;  %v6085_v22 = vsel %vm13412_vm11, 1.0, %v14002_v47  ;;  %v1006_v59 = vand.u32 4294901760, %v1005_v14 }
  0xf6   : > { %14085 = vst [vmem:[#allocation181_spill] sm:$0xff] %v9596_v28  ;;  %v3603_v46 = vsub.f32 %v9557_v7, %v14087_v56  ;;  %v9611_v58 = vsub.f32 %v6163_v11, %v6163_v11  ;;  %v9613_v34 = vsub.f32 %v6085_v22, %v6085_v22  ;;  %v6087_v61 = vsel %vm13411_vm15, 1.0, %v14002_v47 }
  0xf7   : > { %14088 = vst [vmem:[#allocation183_spill] sm:$0xff] %v9603_v48  ;;  %14089 = vst [vmem:[#allocation184_spill] sm:$0xff] %v9605_v1  ;;  %v9619_v15 = vsub.f32 %v6087_v61, %v6087_v61  ;;  %vm13413_vm4 = vcmp.eq.s32.totalorder %v9598_v12, %v8659_v40  ;;  %vm13415_vm9 = vcmp.eq.s32.totalorder %v9598_v12, %v8669_v36  ;;  %1007 = vmatprep.mubr.f32.mxu1 %v1006_v59 }
  0xf8   : > { %14090 = vst [vmem:[#allocation185_spill] sm:$0xff] %v9613_v34  ;;  %v3604_v56 = vand.u32 4294901760, %v3603_v46  ;;  %v13420_v49 = vand.u32 4294901760, %v9613_v34  ;;  %vm13414_vm7 = vcmp.eq.s32.totalorder %v9598_v12, %v8750_v5  ;;  %vm13429_vm13 = vcmp.eq.s32.totalorder %v9598_v12, %v8753_v8 }
  0xf9   : > { %14091 = vst [vmem:[#allocation186_spill] sm:$0xff] %v9619_v15  ;;  %v6157_v22 = vsel %vm13413_vm4, 1.0, %v14002_v47  ;;  %vm13464_vm15 = vcmp.eq.s32.totalorder %v9128_v52, %v8669_v36  ;;  %vm13462_vm11 = vcmp.eq.s32.totalorder %v9128_v52, %v8753_v8  ;;  %v6158_v46 = vsel %vm13415_vm9, 1.0, %v14002_v47 }
  0xfa   : > { %3605 = vmatprep.mubr.f32.mxu0 %v3604_v56  ;;  %v6159_v50 = vsel %vm13414_vm7, 1.0, %v14002_v47  ;;  %v6160_v14 = vsel %vm13429_vm13, 1.0, %v14002_v47  ;;  %v1011_v11 = vsub.f32 %v9613_v34, %v13420_v49  ;;  %v9654_v61 = vsub.f32 %v6158_v46, %v6158_v46 }
  0xfb   : > { %v9656_v56 = vsub.f32 %v6157_v22, %v6157_v22  ;;  %v9658_v59 = vsub.f32 %v6160_v14, %v6160_v14  ;;  %vm13463_vm4 = vcmp.eq.s32.totalorder %v9128_v52, %v8659_v40  ;;  %vm340_vm7 = vcmp.eq.s32.totalorder %v9128_v52, %v8750_v5 }
  0xfc   : > { %14092 = vst [vmem:[#allocation187_spill] sm:$0xff] %v9654_v61  ;;  %vm13469_vm9 = vcmp.eq.s32.totalorder %v9235_v4, %v8669_v36  ;;  %v14095_v7 = vand.u32 4294901760, %v9619_v15  ;;  %v9669_v49 = vsub.f32 %v6159_v50, %v6159_v50  ;;  %v6090_v22 = vsel %vm331_vm12, 1.0, %v14002_v47 }
  0xfd   : > { %14093 = vst [vmem:[#allocation188_spill] sm:$0xff] %v9656_v56  ;;  %14094 = vst [vmem:[#allocation189_spill] sm:$0xff] %v9658_v59  ;;  %v6092_v46 = vsel %vm13430_vm10, 1.0, %v14002_v47  ;;  %v1012_v14 = vand.u32 4294901760, %v1011_v11  ;;  %v9679_v34 = vsub.f32 %v6090_v22, %v6090_v22  ;;  %v6091_v29 = vsel %vm332_vm8, 1.0, %v14002_v47 }
  0xfe   : > { %v3609_v12 = vsub.f32 %v9619_v15, %v14095_v7  ;;  %14096 = vst [vmem:[#allocation190_spill] sm:$0xff] %v9669_v49  ;;  %v9681_v35 = vsub.f32 %v6092_v46, %v6092_v46  ;;  %v6089_v7 = vsel %vm330_vm14, 1.0, %v14002_v47  ;;  %v6094_v11 = vsel %vm13458_vm6, 1.0, %v14002_v47 }
  0xff   : > { %14097 = vst [vmem:[#allocation191_spill] sm:$0xff] %v9679_v34  ;;  %v9687_v15 = vsub.f32 %v6089_v7, %v6089_v7  ;;  %vm13486_vm13 = vcmp.eq.s32.totalorder %v9235_v4, %v8659_v40  ;;  %vm13779_vm10 = vcmp.eq.s32.totalorder %v9235_v4, %v8753_v8  ;;  %1013 = vmatmul.mubr.f32.gmra.mrb[24].mxu1 %v1012_v14  ;;  %v6096_v3 = vsel %vm13457_vm0, 1.0, %v14002_v47 }
 0x100   : > { %14098 = vst [vmem:[#allocation192_spill] sm:$0xff] %v9681_v35  ;;  %v3610_v50 = vand.u32 4294901760, %v3609_v12  ;;  %v13448_v12 = vand.u32 4294901760, %v9679_v34  ;;  %v13451_v22 = vand.u32 4294901760, %v9681_v35  ;;  %v9703_v46 = vsub.f32 %v6091_v29, %v6091_v29 }
 0x101   : > { %14099 = vst [vmem:[#allocation193_spill] sm:$0xff] %v9687_v15  ;;  %v9705_v7 = vsub.f32 %v6094_v11, %v6094_v11  ;;  %v6093_v14 = vsel %vm13456_vm5, 1.0, %v14002_v47  ;;  %v6095_v29 = vsel %vm13447_vm2, 1.0, %v14002_v47  ;;  %v14102_v42 = vand.u32 4294901760, %v9687_v15 }
 0x102   : > { %14100 = vst [vmem:[#allocation194_spill] sm:$0xff] %v9703_v46  ;;  %3611 = vmatmul.mubr.f32.gmra.mrb[24].mxu0 %v3610_v50  ;;  %v1020_v50 = vsub.f32 %v9679_v34, %v13448_v12  ;;  %v3618_v11 = vsub.f32 %v9681_v35, %v13451_v22  ;;  %v13466_v38 = vand.u32 4294901760, %v9703_v46  ;;  %v9731_v0 = vsub.f32 %v6096_v3, %v6096_v3 }
 0x103   : > { %14101 = vst [vmem:[#allocation195_spill] sm:$0xff] %v9705_v7  ;;  %v13459_v13 = vand.u32 4294901760, %v9705_v7  ;;  %v1026_v41 = vsub.f32 %v9687_v15, %v14102_v42  ;;  %v9733_v45 = vsub.f32 %v6093_v14, %v6093_v14  ;;  %v9735_v33 = vsub.f32 %v6095_v29, %v6095_v29 }
 0x104   : > { %14103 = vst [vmem:[#allocation196_spill] sm:$0xff] %v9731_v0  ;;  %vm13489_vm2 = vcmp.eq.s32.totalorder %v9235_v4, %v8750_v5  ;;  %v1021_v12 = vand.u32 4294901760, %v1020_v50  ;;  %v3619_v34 = vand.u32 4294901760, %v3618_v11  ;;  %v3624_v22 = vsub.f32 %v9703_v46, %v13466_v38 }
 0x105   : > { %14104 = vst [vmem:[#allocation197_spill] sm:$0xff] %v9733_v45  ;;  %14105 = vst [vmem:[#allocation198_spill] sm:$0xff] %v9735_v33  ;;  %v1035_v35 = vsub.f32 %v9705_v7, %v13459_v13  ;;  %v1027_v42 = vand.u32 4294901760, %v1026_v41  ;;  %v13465_v3 = vand.u32 4294901760, %v9731_v0  ;;  %v13460_v14 = vand.u32 4294901760, %v9733_v45 }
 0x106   : > { %v13461_v29 = vand.u32 4294901760, %v9735_v33  ;;  %1022 = vmatprep.mubr.f32.mxu1 %v1021_v12  ;;  %3620 = vmatprep.mubr.f32.mxu0 %v3619_v34  ;;  %v3625_v15 = vand.u32 4294901760, %v3624_v22  ;;  %v6098_v11 = vsel %vm13464_vm15, 1.0, %v14002_v47  ;;  %v6100_v41 = vsel %vm13462_vm11, 1.0, %v14002_v47 }
 0x107   : > { %v1036_v50 = vand.u32 4294901760, %v1035_v35  ;;  %vm13493_vm5 = vcmp.eq.s32.totalorder %v9182_v21, %v8659_v40  ;;  %vm13488_vm0 = vcmp.eq.s32.totalorder %v9182_v21, %v8669_v36  ;;  %vm13490_vm6 = vcmp.eq.s32.totalorder %v9182_v21, %v8753_v8  ;;  %1028 = vmatmul.mubr.f32.gmra.mrb[26].mxu1 %v1027_v42 }
 0x108   : > { %v3633_v34 = vsub.f32 %v9731_v0, %v13465_v3  ;;  %v1041_v35 = vsub.f32 %v9733_v45, %v13460_v14  ;;  %v3639_v12 = vsub.f32 %v9735_v33, %v13461_v29  ;;  %v9771_v22 = vsub.f32 %v6098_v11, %v6098_v11  ;;  %3626 = vmatmul.mubr.f32.gmra.mrb[26].mxu0 %v3625_v15 }
 0x109   : > { %1037 = vmatprep.mubr.f32.mxu1 %v1036_v50  ;;  %v9773_v13 = vsub.f32 %v6100_v41, %v6100_v41  ;;  %v6097_v42 = vsel %vm13463_vm4, 1.0, %v14002_v47  ;;  %v6099_v14 = vsel %vm340_vm7, 1.0, %v14002_v47  ;;  %v6102_v11 = vsel %vm13469_vm9, 1.0, %v14002_v47 }
 0x10a   : > { %14106 = vst [vmem:[#allocation199_spill] sm:$0xff] %v9771_v22  ;;  %v3634_v29 = vand.u32 4294901760, %v3633_v34  ;;  %v1042_v15 = vand.u32 4294901760, %v1041_v35  ;;  %v3640_v50 = vand.u32 4294901760, %v3639_v12  ;;  %v13470_v41 = vand.u32 4294901760, %v9771_v22 }
 0x10b   : > { %14107 = vst [vmem:[#allocation200_spill] sm:$0xff] %v9773_v13  ;;  %vm13525_vm11 = vcmp.eq.s32.totalorder %v9182_v21, %v8750_v5  ;;  %vm13510_vm4 = vcmp.eq.s32.totalorder %v9280_v55, %v8669_v36  ;;  %vm13499_vm15 = vcmp.eq.s32.totalorder %v9280_v55, %v8753_v8  ;;  %v13479_v3 = vand.u32 4294901760, %v9773_v13 }
 0x10c   : > { %v9795_v38 = vsub.f32 %v6097_v42, %v6097_v42  ;;  %v9797_v33 = vsub.f32 %v6099_v14, %v6099_v14  ;;  %v9799_v34 = vsub.f32 %v6102_v11, %v6102_v11  ;;  %3635 = vmatprep.mubr.f32.mxu0 %v3634_v29  ;;  %1043 = vmatmul.mubr.f32.gmra.mrb[28].mxu1 %v1042_v15  ;;  %v6104_v12 = vsel %vm13779_vm10, 1.0, %v14002_v47 }
 0x10d   : > { %v1050_v35 = vsub.f32 %v9771_v22, %v13470_v41  ;;  %v6101_v42 = vsel %vm13486_vm13, 1.0, %v14002_v47  ;;  %v1420_v14 = vand.u32 4294901760, %v9487_v60  ;;  %vm13504_vm9 = vcmp.eq.s32.totalorder %v9280_v55, %v8659_v40  ;;  %3641 = vmatmul.mubr.f32.gmra.mrb[28].mxu0 %v3640_v50 }
 0x10e   : > { %14108 = vst [vmem:[#allocation201_spill] sm:$0xff] %v9795_v38  ;;  %14109 = vst [vmem:[#allocation202_spill] sm:$0xff] %v9797_v33  ;;  %v3648_v29 = vsub.f32 %v9773_v13, %v13479_v3  ;;  %v13482_v11 = vand.u32 4294901760, %v9795_v38  ;;  %v13485_v15 = vand.u32 4294901760, %v9797_v33  ;;  %v13492_v41 = vand.u32 4294901760, %v9799_v34 }
 0x10f   : > { %14110 = vst [vmem:[#allocation203_spill] sm:$0xff] %v9799_v34  ;;  %v1051_v22 = vand.u32 4294901760, %v1050_v35  ;;  %v9821_v45 = vsub.f32 %v6104_v12, %v6104_v12  ;;  %v9823_v0 = vsub.f32 %v6101_v42, %v6101_v42  ;;  %v1427_v60 = vand.u32 4294901760, %v9492_v63 }
 0x110   : > { %v3649_v7 = vand.u32 4294901760, %v3648_v29  ;;  %v1056_v50 = vsub.f32 %v9795_v38, %v13482_v11  ;;  %v3654_v3 = vsub.f32 %v9797_v33, %v13485_v15  ;;  %v1065_v13 = vsub.f32 %v9799_v34, %v13492_v41 }
 0x111   : > { %14111 = vst [vmem:[#allocation204_spill] sm:$0xff] %v9821_v45  ;;  %14112 = vst [vmem:[#allocation205_spill] sm:$0xff] %v9823_v0  ;;  %1052 = vmatprep.mubr.f32.mxu1 %v1051_v22  ;;  %v13491_v35 = vand.u32 4294901760, %v9821_v45  ;;  %v13487_v12 = vand.u32 4294901760, %v9823_v0  ;;  %v6628_v42 = vpack.c.bf16 %v1427_v60, %v1420_v14  ;;  %v6103_v63 = vsel %vm13489_vm2, 1.0, %v14002_v47 }
 0x112   : > { %3650 = vmatprep.mubr.f32.mxu0 %v3649_v7  ;;  %v1057_v29 = vand.u32 4294901760, %v1056_v50  ;;  %v3655_v11 = vand.u32 4294901760, %v3654_v3  ;;  %v1066_v38 = vand.u32 4294901760, %v1065_v13  ;;  %v9841_v15 = vsub.f32 %v6103_v63, %v6103_v63 }
 0x113   : > { %vm13540_vm13 = vcmp.eq.s32.totalorder %v9280_v55, %v8750_v5  ;;  %v3663_v22 = vsub.f32 %v9821_v45, %v13491_v35  ;;  %v1071_v14 = vsub.f32 %v9823_v0, %v13487_v12  ;;  %6629 = vmatpush1.bf16.msra.mxu1 %v6628_v42  ;;  %v14114_v60 = vand.u32 4294901760, %v14076_v30 }
 0x114   : > { %14113 = vst [vmem:[#allocation206_spill] sm:$0xff] %v9841_v15  ;;  %v14115_v13 = vand.u32 4294901760, %v14082_v10  ;;  %1058 = vmatmul.mubr.f32.gmra.mrb[30].mxu1 %v1057_v29  ;;  %3656 = vmatmul.mubr.f32.gmra.mrb[30].mxu0 %v3655_v11  ;;  %v13494_v50 = vand.u32 4294901760, %v9841_v15  ;;  %v6106_v63 = vsel %vm13488_vm0, 1.0, %v14002_v47  ;;  %v6108_v42 = vsel %vm13490_vm6, 1.0, %v14002_v47 }
 0x115   : > { %v4017_v7 = vsub.f32 %v14076_v30, %v14114_v60  ;;  %v6105_v60 = vsel %vm13493_vm5, 1.0, %v14002_v47  ;;  %1067 = vmatprep.mubr.f32.mxu1 %v1066_v38  ;;  %v3664_v29 = vand.u32 4294901760, %v3663_v22  ;;  %v1072_v11 = vand.u32 4294901760, %v1071_v14  ;;  %6630 = vmatprep.subr.bf16.mxu1 %v13880_v54 }
 0x116   : > { %v4024_v3 = vsub.f32 %v14082_v10, %v14115_v13  ;;  %vm13537_vm0 = vcmp.eq.s32.totalorder %v9230_v53, %v8659_v40  ;;  %vm13528_vm2 = vcmp.eq.s32.totalorder %v9230_v53, %v8669_v36  ;;  %vm13538_vm6 = vcmp.eq.s32.totalorder %v9230_v53, %v8753_v8 }
 0x117   : > { %v4018_v13 = vand.u32 4294901760, %v4017_v7  ;;  %v3669_v35 = vsub.f32 %v9841_v15, %v13494_v50  ;;  %v9880_v38 = vsub.f32 %v6106_v63, %v6106_v63  ;;  %v9882_v22 = vsub.f32 %v6108_v42, %v6108_v42  ;;  %3665 = vmatprep.mubr.f32.mxu0 %v3664_v29 }
 0x118   : > { %v4025_v12 = vand.u32 4294901760, %v4024_v3  ;;  %v9884_v14 = vsub.f32 %v6105_v60, %v6105_v60  ;;  %v6107_v3 = vsel %vm13525_vm11, 1.0, %v14002_v47  ;;  %v6110_v41 = vsel %vm13510_vm4, 1.0, %v14002_v47  ;;  %1073 = vmatmul.mubr.f32.gmra.mrb[32].mxu1 %v1072_v11 }
 0x119   : > { %14116 = vst [vmem:[#allocation207_spill] sm:$0xff] %v9880_v38  ;;  %14117 = vst [vmem:[#allocation208_spill] sm:$0xff] %v9882_v22  ;;  %v6112_v63 = vsel %vm13499_vm15, 1.0, %v14002_v47  ;;  %vm13539_vm5 = vcmp.eq.s32.totalorder %v9230_v53, %v8750_v5  ;;  %v13506_v42 = vand.u32 4294901760, %v9880_v38  ;;  %v13505_v60 = vand.u32 4294901760, %v9882_v22 }
 0x11a   : > { %14118 = vst [vmem:[#allocation209_spill] sm:$0xff] %v9884_v14  ;;  %v6916_v7 = vpack.c.bf16 %v4025_v12, %v4018_v13  ;;  %v3670_v12 = vand.u32 4294901760, %v3669_v35  ;;  %v13509_v29 = vand.u32 4294901760, %v9884_v14  ;;  %v9903_v13 = vsub.f32 %v6107_v3, %v6107_v3 }
 0x11b   : > { %v9905_v50 = vsub.f32 %v6110_v41, %v6110_v41  ;;  %v9907_v15 = vsub.f32 %v6112_v63, %v6112_v63  ;;  %v6109_v0 = vsel %vm13504_vm9, 1.0, %v14002_v47  ;;  %vm13544_vm15 = vcmp.eq.s32.totalorder %v9331_v43, %v8669_v36 }
 0x11c   : > { %6917 = vmatpush1.bf16.msra.mxu0 %v6916_v7  ;;  %14119 = vst [vmem:[#allocation210_spill] sm:$0xff] %v9903_v13  ;;  %v1080_v35 = vsub.f32 %v9880_v38, %v13506_v42  ;;  %v3678_v41 = vsub.f32 %v9882_v22, %v13505_v60  ;;  %v1086_v11 = vsub.f32 %v9884_v14, %v13509_v29  ;;  %v14122_v7 = vld [vmem:[#allocation52_spill] sm:$0xff]  ;;  %v13516_v63 = vand.u32 4294901760, %v9903_v13 }
 0x11d   : > { %14120 = vst [vmem:[#allocation211_spill] sm:$0xff] %v9905_v50  ;;  %14121 = vst [vmem:[#allocation212_spill] sm:$0xff] %v9907_v15  ;;  %3671 = vmatmul.mubr.f32.gmra.mrb[32].mxu0 %v3670_v12  ;;  %6918 = vmatprep.subr.bf16.mxu0 %v13880_v54  ;;  %v13513_v3 = vand.u32 4294901760, %v14122_v7  ;;  %v9929_v34 = vsub.f32 %v6109_v0, %v6109_v0  ;;  %vm13545_vm9 = vcmp.eq.s32.totalorder %v9331_v43, %v8753_v8 }
 0x11e   : > { %v1081_v60 = vand.u32 4294901760, %v1080_v35  ;;  %v3679_v42 = vand.u32 4294901760, %v3678_v41  ;;  %v1087_v22 = vand.u32 4294901760, %v1086_v11  ;;  %vm13572_vm4 = vcmp.eq.s32.totalorder %v9331_v43, %v8659_v40 }
 0x11f   : > { %14123 = vst [vmem:[#allocation213_spill] sm:$0xff] %v9929_v34  ;;  %v1433_v29 = vsub.f32 %v14122_v7, %v13513_v3  ;;  %v3684_v12 = vsub.f32 %v9903_v13, %v13516_v63  ;;  %v14124_v0 = vand.u32 4294901760, %v9905_v50  ;;  %v14125_v14 = vand.u32 4294901760, %v9907_v15  ;;  %v14126_v3 = vld [vmem:[#allocation53_spill] sm:$0xff]  ;;  %v14127_v13 = vld [vmem:[#allocation54_spill] sm:$0xff] }
 0x120   : > { %v13526_v41 = vand.u32 4294901760, %v9929_v34  ;;  %1082 = vmatprep.mubr.f32.mxu1 %v1081_v60  ;;  %3680 = vmatprep.mubr.f32.mxu0 %v3679_v42  ;;  %v13529_v38 = vand.u32 4294901760, %v14126_v3  ;;  %v6111_v63 = vsel %vm13540_vm13, 1.0, %v14002_v47  ;;  %v13527_v33 = vand.u32 4294901760, %v14127_v13 }
 0x121   : > { %v1095_v45 = vsub.f32 %v9905_v50, %v14124_v0  ;;  %v3693_v35 = vsub.f32 %v9907_v15, %v14125_v14  ;;  %v1434_v11 = vand.u32 4294901760, %v1433_v29  ;;  %1088 = vmatmul.mubr.f32.gmra.mrb[34].mxu1 %v1087_v22  ;;  %v3685_v0 = vand.u32 4294901760, %v3684_v12  ;;  %v14129_v29 = vld [vmem:[#allocation55_spill] sm:$0xff] }
 0x122   : > { %v1101_v14 = vsub.f32 %v9929_v34, %v13526_v41  ;;  %vm13563_vm11 = vcmp.eq.s32.totalorder %v9331_v43, %v8750_v5  ;;  %v1440_v42 = vsub.f32 %v14126_v3, %v13529_v38  ;;  %v9962_v60 = vsub.f32 %v6111_v63, %v6111_v63 }
 0x123   : > { %v1096_v50 = vand.u32 4294901760, %v1095_v45  ;;  %v3694_v46 = vand.u32 4294901760, %v3693_v35  ;;  %v4031_v22 = vsub.f32 %v14127_v13, %v13527_v33  ;;  %v13534_v45 = vand.u32 4294901760, %v14129_v29  ;;  %3686 = vmatmul.mubr.f32.gmra.mrb[34].mxu0 %v3685_v0 }
 0x124   : > { %14128 = vst [vmem:[#allocation214_spill] sm:$0xff] %v9962_v60  ;;  %v1102_v12 = vand.u32 4294901760, %v1101_v14  ;;  %v6114_v35 = vsel %vm13528_vm2, 1.0, %v14002_v47  ;;  %v6116_v63 = vsel %vm13538_vm6, 1.0, %v14002_v47  ;;  %v6113_v41 = vsel %vm13537_vm0, 1.0, %v14002_v47 }
 0x125   : > { %1097 = vmatprep.mubr.f32.mxu1 %v1096_v50  ;;  %3695 = vmatprep.mubr.f32.mxu0 %v3694_v46  ;;  %v1441_v33 = vand.u32 4294901760, %v1440_v42  ;;  %v13541_v50 = vand.u32 4294901760, %v9962_v60  ;;  %v4032_v0 = vand.u32 4294901760, %v4031_v22  ;;  %v4038_v14 = vsub.f32 %v14129_v29, %v13534_v45 }
 0x126   : > { %vm13571_vm2 = vcmp.eq.s32.totalorder %v9276_v57, %v8669_v36  ;;  %1103 = vmatmul.mubr.f32.gmra.mrb[36].mxu1 %v1102_v12  ;;  %v9986_v38 = vsub.f32 %v6114_v35, %v6114_v35  ;;  %v9988_v34 = vsub.f32 %v6116_v63, %v6116_v63  ;;  %v9990_v15 = vsub.f32 %v6113_v41, %v6113_v41 }
 0x127   : > { %v6115_v46 = vsel %vm13539_vm5, 1.0, %v14002_v47  ;;  %v6631_v42 = vpack.c.bf16 %v1441_v33, %v1434_v11  ;;  %v3699_v22 = vsub.f32 %v9962_v60, %v13541_v50  ;;  %v4039_v45 = vand.u32 4294901760, %v4038_v14 }
 0x128   : > { %14130 = vst [vmem:[#allocation215_spill] sm:$0xff] %v9986_v38  ;;  %14131 = vst [vmem:[#allocation216_spill] sm:$0xff] %v9988_v34  ;;  %v9999_v55 = vsub.f32 %v6115_v46, %v6115_v46  ;;  %vm13579_vm0 = vcmp.eq.s32.totalorder %v9276_v57, %v8659_v40  ;;  %vm13580_vm6 = vcmp.eq.s32.totalorder %v9276_v57, %v8753_v8  ;;  %v13542_v41 = vand.u32 4294901760, %v9986_v38 }
 0x129   : > { %14132 = vst [vmem:[#allocation217_spill] sm:$0xff] %v9990_v15  ;;  %v13546_v12 = vand.u32 4294901760, %v9988_v34  ;;  %v13543_v35 = vand.u32 4294901760, %v9990_v15  ;;  %v6118_v33 = vsel %vm13544_vm15, 1.0, %v14002_v47  ;;  %6632 = vmatpush1.bf16.msra.mxu1 %v6631_v42  ;;  %v3700_v11 = vand.u32 4294901760, %v3699_v22 }
 0x12a   : > { %14133 = vst [vmem:[#allocation218_spill] sm:$0xff] %v9999_v55  ;;  %v6919_v63 = vpack.c.bf16 %v4039_v45, %v4032_v0  ;;  %v13549_v14 = vand.u32 4294901760, %v9999_v55  ;;  %v10013_v46 = vsub.f32 %v6118_v33, %v6118_v33  ;;  %vm13582_vm5 = vcmp.eq.s32.totalorder %v9276_v57, %v8750_v5  ;;  %6633 = vmatprep.subr.bf16.mxu1 %v13880_v54 }
 0x12b   : > { %vm13581_vm13 = vcmp.eq.s32.totalorder %v9374_v62, %v8669_v36  ;;  %v1110_v50 = vsub.f32 %v9986_v38, %v13542_v41  ;;  %v3708_v42 = vsub.f32 %v9988_v34, %v13546_v12  ;;  %v1116_v45 = vsub.f32 %v9990_v15, %v13543_v35  ;;  %3701 = vmatmul.mubr.f32.gmra.mrb[36].mxu0 %v3700_v11  ;;  %v14138_v38 = vld [vmem:[#allocation58_spill] sm:$0xff] }
 0x12c   : > { %14134 = vst [vmem:[#allocation219_spill] sm:$0xff] %v10013_v46  ;;  %v6120_v0 = vsel %vm13545_vm9, 1.0, %v14002_v47  ;;  %v3714_v22 = vsub.f32 %v9999_v55, %v13549_v14  ;;  %v6117_v35 = vsel %vm13572_vm4, 1.0, %v14002_v47  ;;  %vm13594_vm15 = vcmp.eq.s32.totalorder %v9374_v62, %v8659_v40  ;;  %6920 = vmatpush1.bf16.msra.mxu0 %v6919_v63 }
 0x12d   : > { %v10037_v41 = vsub.f32 %v6120_v0, %v6120_v0  ;;  %vm13604_vm9 = vcmp.eq.s32.totalorder %v9374_v62, %v8753_v8  ;;  %v1111_v11 = vand.u32 4294901760, %v1110_v50  ;;  %v3709_v12 = vand.u32 4294901760, %v3708_v42  ;;  %6921 = vmatprep.subr.bf16.mxu0 %v13880_v54  ;;  %v14139_v50 = vld [vmem:[#allocation59_spill] sm:$0xff] }
 0x12e   : > { %v1117_v15 = vand.u32 4294901760, %v1116_v45  ;;  %v10047_v14 = vsub.f32 %v6117_v35, %v6117_v35  ;;  %v3715_v33 = vand.u32 4294901760, %v3714_v22  ;;  %v14137_v0 = vand.u32 4294901760, %v10013_v46  ;;  %v14140_v45 = vld [vmem:[#allocation60_spill] sm:$0xff] }
 0x12f   : > { %14135 = vst [vmem:[#allocation220_spill] sm:$0xff] %v10037_v41  ;;  %v13562_v34 = vand.u32 4294901760, %v10037_v41  ;;  %1112 = vmatprep.mubr.f32.mxu1 %v1111_v11  ;;  %3710 = vmatprep.mubr.f32.mxu0 %v3709_v12  ;;  %v6119_v35 = vsel %vm13563_vm11, 1.0, %v14002_v47  ;;  %v13570_v22 = vand.u32 4294901760, %v14140_v45  ;;  %v14141_v12 = vand.u32 4294901760, %v14138_v38 }
 0x130   : > { %14136 = vst [vmem:[#allocation221_spill] sm:$0xff] %v10047_v14  ;;  %v1125_v55 = vsub.f32 %v10013_v46, %v14137_v0  ;;  %1118 = vmatmul.mubr.f32.gmra.mrb[38].mxu1 %v1117_v15  ;;  %3716 = vmatmul.mubr.f32.gmra.mrb[38].mxu0 %v3715_v33  ;;  %v10068_v63 = vsub.f32 %v6119_v35, %v6119_v35  ;;  %v14143_v42 = vand.u32 4294901760, %v10047_v14  ;;  %v14144_v43 = vand.u32 4294901760, %v14139_v50  ;;  %v14145_v33 = vld [vmem:[#allocation61_spill] sm:$0xff] }
 0x131   : > { %v3723_v60 = vsub.f32 %v10037_v41, %v13562_v34  ;;  %v1447_v11 = vsub.f32 %v14138_v38, %v14141_v12  ;;  %v13574_v34 = vand.u32 4294901760, %v14145_v33  ;;  %vm13610_vm11 = vcmp.eq.s32.totalorder %v9374_v62, %v8750_v5 }
 0x132   : > { %v1126_v0 = vand.u32 4294901760, %v1125_v55  ;;  %14142 = vst [vmem:[#allocation222_spill] sm:$0xff] %v10068_v63  ;;  %v1131_v46 = vsub.f32 %v10047_v14, %v14143_v42  ;;  %v1454_v15 = vsub.f32 %v14139_v50, %v14144_v43  ;;  %v4045_v55 = vsub.f32 %v14140_v45, %v13570_v22 }
 0x133   : > { %v3724_v35 = vand.u32 4294901760, %v3723_v60  ;;  %v1448_v12 = vand.u32 4294901760, %v1447_v11  ;;  %v13573_v41 = vand.u32 4294901760, %v10068_v63  ;;  %v6122_v42 = vsel %vm13571_vm2, 1.0, %v14002_v47 }
 0x134   : > { %1127 = vmatprep.mubr.f32.mxu1 %v1126_v0  ;;  %v1132_v43 = vand.u32 4294901760, %v1131_v46  ;;  %v1455_v14 = vand.u32 4294901760, %v1454_v15  ;;  %v4046_v53 = vand.u32 4294901760, %v4045_v55  ;;  %v4052_v22 = vsub.f32 %v14145_v33, %v13574_v34 }
 0x135   : > { %3725 = vmatprep.mubr.f32.mxu0 %v3724_v35  ;;  %v3729_v60 = vsub.f32 %v10068_v63, %v13573_v41  ;;  %v10093_v0 = vsub.f32 %v6122_v42, %v6122_v42  ;;  %v6124_v11 = vsel %vm13580_vm6, 1.0, %v14002_v47  ;;  %v6121_v46 = vsel %vm13579_vm0, 1.0, %v14002_v47 }
 0x136   : > { %vm13630_vm2 = vcmp.eq.s32.totalorder %v9325_v44, %v8669_v36  ;;  %vm13612_vm4 = vcmp.eq.s32.totalorder %v9325_v44, %v8753_v8  ;;  %1133 = vmatmul.mubr.f32.gmra.mrb[40].mxu1 %v1132_v43  ;;  %v6634_v15 = vpack.c.bf16 %v1455_v14, %v1448_v12  ;;  %v4053_v55 = vand.u32 4294901760, %v4052_v22 }
 0x137   : > { %14146 = vst [vmem:[#allocation223_spill] sm:$0xff] %v10093_v0  ;;  %v10107_v35 = vsub.f32 %v6124_v11, %v6124_v11  ;;  %v10109_v42 = vsub.f32 %v6121_v46, %v6121_v46  ;;  %v3730_v41 = vand.u32 4294901760, %v3729_v60  ;;  %v13583_v34 = vand.u32 4294901760, %v10093_v0 }
 0x138   : > { %v6123_v63 = vsel %vm13582_vm5, 1.0, %v14002_v47  ;;  %v6126_v21 = vsel %vm13581_vm13, 1.0, %v14002_v47  ;;  %vm13628_vm0 = vcmp.eq.s32.totalorder %v9325_v44, %v8659_v40  ;;  %vm13617_vm6 = vcmp.eq.s32.totalorder %v9325_v44, %v8750_v5  ;;  %6635 = vmatpush1.bf16.msra.mxu1 %v6634_v15 }
 0x139   : > { %14147 = vst [vmem:[#allocation224_spill] sm:$0xff] %v10107_v35  ;;  %14148 = vst [vmem:[#allocation225_spill] sm:$0xff] %v10109_v42  ;;  %v6922_v14 = vpack.c.bf16 %v4053_v55, %v4046_v53  ;;  %v13592_v22 = vand.u32 4294901760, %v10107_v35  ;;  %v13593_v12 = vand.u32 4294901760, %v10109_v42  ;;  %v10126_v43 = vsub.f32 %v6123_v63, %v6123_v63  ;;  %3731 = vmatmul.mubr.f32.gmra.mrb[40].mxu0 %v3730_v41 }
 0x13a   : > { %v1140_v60 = vsub.f32 %v10093_v0, %v13583_v34  ;;  %v10131_v11 = vsub.f32 %v6126_v21, %v6126_v21  ;;  %v6128_v46 = vsel %vm13604_vm9, 1.0, %v14002_v47  ;;  %6636 = vmatprep.subr.bf16.mxu1 %v13880_v54  ;;  %v6125_v53 = vsel %vm13594_vm15, 1.0, %v14002_v47 }
 0x13b   : > { %14149 = vst [vmem:[#allocation226_spill] sm:$0xff] %v10126_v43  ;;  %vm13618_vm13 = vcmp.eq.s32.totalorder %v9415_v2, %v8669_v36  ;;  %vm13625_vm5 = vcmp.eq.s32.totalorder %v9415_v2, %v8753_v8  ;;  %6923 = vmatpush1.bf16.msra.mxu0 %v6922_v14  ;;  %v3738_v21 = vsub.f32 %v10107_v35, %v13592_v22  ;;  %v13595_v63 = vand.u32 4294901760, %v10126_v43  ;;  %v14153_v14 = vld [vmem:[#allocation62_spill] sm:$0xff] }
 0x13c   : > { %14150 = vst [vmem:[#allocation227_spill] sm:$0xff] %v10131_v11  ;;  %v1146_v41 = vsub.f32 %v10109_v42, %v13593_v12  ;;  %v10153_v15 = vsub.f32 %v6128_v46, %v6128_v46  ;;  %v1141_v55 = vand.u32 4294901760, %v1140_v60  ;;  %v13598_v34 = vand.u32 4294901760, %v10131_v11  ;;  %6924 = vmatprep.subr.bf16.mxu0 %v13880_v54 }
 0x13d   : > { %v10157_v0 = vsub.f32 %v6125_v53, %v6125_v53  ;;  %v13603_v57 = vand.u32 4294901760, %v14153_v14  ;;  %v3739_v4 = vand.u32 4294901760, %v3738_v21  ;;  %v3744_v22 = vsub.f32 %v10126_v43, %v13595_v63  ;;  %v14154_v21 = vld [vmem:[#allocation64_spill] sm:$0xff] }
 0x13e   : > { %14151 = vst [vmem:[#allocation228_spill] sm:$0xff] %v10153_v15  ;;  %v1147_v52 = vand.u32 4294901760, %v1146_v41  ;;  %v13605_v12 = vand.u32 4294901760, %v10153_v15  ;;  %vm13639_vm15 = vcmp.eq.s32.totalorder %v9415_v2, %v8659_v40  ;;  %1142 = vmatprep.mubr.f32.mxu1 %v1141_v55  ;;  %v1155_v60 = vsub.f32 %v10131_v11, %v13598_v34  ;;  %v14155_v34 = vld [vmem:[#allocation65_spill] sm:$0xff] }
 0x13f   : > { %14152 = vst [vmem:[#allocation229_spill] sm:$0xff] %v10157_v0  ;;  %v1461_v53 = vsub.f32 %v14153_v14, %v13603_v57  ;;  %3740 = vmatprep.mubr.f32.mxu0 %v3739_v4  ;;  %v3745_v63 = vand.u32 4294901760, %v3744_v22  ;;  %v6127_v55 = vsel %vm13610_vm11, 1.0, %v14002_v47  ;;  %v13611_v46 = vand.u32 4294901760, %v14155_v34  ;;  %v14190_v14 = vld [vmem:[#allocation77_spill] sm:$0xff] }
 0x140   : > { %1148 = vmatmul.mubr.f32.gmra.mrb[42].mxu1 %v1147_v52  ;;  %v3753_v43 = vsub.f32 %v10153_v15, %v13605_v12  ;;  %v1156_v11 = vand.u32 4294901760, %v1155_v60  ;;  %v14156_v42 = vand.u32 4294901760, %v10157_v0  ;;  %v14157_v52 = vand.u32 4294901760, %v14154_v21  ;;  %v14159_v15 = vld [vmem:[#allocation66_spill] sm:$0xff] }
 0x141   : > { %v1462_v41 = vand.u32 4294901760, %v1461_v53  ;;  %vm13657_vm9 = vcmp.eq.s32.totalorder %v9415_v2, %v8750_v5  ;;  %3746 = vmatmul.mubr.f32.gmra.mrb[42].mxu0 %v3745_v63  ;;  %v10190_v12 = vsub.f32 %v6127_v55, %v6127_v55  ;;  %v4059_v60 = vsub.f32 %v14155_v34, %v13611_v46  ;;  %v14174_v2 = vld [vmem:[#allocation71_spill] sm:$0xff] }
 0x142   : > { %v1161_v57 = vsub.f32 %v10157_v0, %v14156_v42  ;;  %v1468_v4 = vsub.f32 %v14154_v21, %v14157_v52  ;;  %v3754_v22 = vand.u32 4294901760, %v3753_v43  ;;  %v13613_v35 = vand.u32 4294901760, %v14159_v15  ;;  %1157 = vmatprep.mubr.f32.mxu1 %v1156_v11 }
 0x143   : > { %14158 = vst [vmem:[#allocation230_spill] sm:$0xff] %v10190_v12  ;;  %v6130_v52 = vsel %vm13630_vm2, 1.0, %v14002_v47  ;;  %v6132_v43 = vsel %vm13612_vm4, 1.0, %v14002_v47  ;;  %v13616_v63 = vand.u32 4294901760, %v10190_v12  ;;  %v4060_v55 = vand.u32 4294901760, %v4059_v60 }
 0x144   : > { %v1162_v42 = vand.u32 4294901760, %v1161_v57  ;;  %v1469_v53 = vand.u32 4294901760, %v1468_v4  ;;  %3755 = vmatprep.mubr.f32.mxu0 %v3754_v22  ;;  %v4066_v11 = vsub.f32 %v14159_v15, %v13613_v35  ;;  %v10208_v57 = vsub.f32 %v6130_v52, %v6130_v52 }
 0x145   : > { %vm13651_vm11 = vcmp.eq.s32.totalorder %v9372_v24, %v8669_v36  ;;  %v10212_v46 = vsub.f32 %v6132_v43, %v6132_v43  ;;  %v6129_v22 = vsel %vm13628_vm0, 1.0, %v14002_v47  ;;  %v6131_v60 = vsel %vm13617_vm6, 1.0, %v14002_v47 }
 0x146   : > { %14160 = vst [vmem:[#allocation231_spill] sm:$0xff] %v10208_v57  ;;  %1163 = vmatmul.mubr.f32.gmra.mrb[44].mxu1 %v1162_v42  ;;  %v6637_v4 = vpack.c.bf16 %v1469_v53, %v1462_v41  ;;  %vm13656_vm4 = vcmp.eq.s32.totalorder %v9372_v24, %v8753_v8  ;;  %v3759_v42 = vsub.f32 %v10190_v12, %v13616_v63  ;;  %v4067_v41 = vand.u32 4294901760, %v4066_v11 }
 0x147   : > { %14161 = vst [vmem:[#allocation232_spill] sm:$0xff] %v10212_v46  ;;  %v13627_v53 = vand.u32 4294901760, %v10208_v57  ;;  %v10228_v52 = vsub.f32 %v6129_v22, %v6129_v22  ;;  %v13626_v43 = vand.u32 4294901760, %v10212_v46  ;;  %v10231_v35 = vsub.f32 %v6131_v60, %v6131_v60 }
 0x148   : > { %6638 = vmatpush1.bf16.msra.mxu1 %v6637_v4  ;;  %v6134_v0 = vsel %vm13618_vm13, 1.0, %v14002_v47  ;;  %v6136_v63 = vsel %vm13625_vm5, 1.0, %v14002_v47  ;;  %vm13658_vm6 = vcmp.eq.s32.totalorder %v9372_v24, %v8659_v40  ;;  %v3760_v11 = vand.u32 4294901760, %v3759_v42 }
 0x149   : > { %14162 = vst [vmem:[#allocation233_spill] sm:$0xff] %v10228_v52  ;;  %14163 = vst [vmem:[#allocation234_spill] sm:$0xff] %v10231_v35  ;;  %v6925_v22 = vpack.c.bf16 %v4067_v41, %v4060_v55  ;;  %v1170_v4 = vsub.f32 %v10208_v57, %v13627_v53  ;;  %v13629_v60 = vand.u32 4294901760, %v10228_v52  ;;  %6639 = vmatprep.subr.bf16.mxu1 %v13880_v54  ;;  %v14166_v53 = vld [vmem:[#allocation67_spill] sm:$0xff]  ;;  %v13653_v15 = vand.u32 4294901760, %v14174_v2 }
 0x14a   : > { %vm13666_vm13 = vcmp.eq.s32.totalorder %v9372_v24, %v8750_v5  ;;  %v3768_v12 = vsub.f32 %v10212_v46, %v13626_v43  ;;  %v10254_v62 = vsub.f32 %v6134_v0, %v6134_v0  ;;  %v10256_v55 = vsub.f32 %v6136_v63, %v6136_v63  ;;  %3761 = vmatmul.mubr.f32.gmra.mrb[44].mxu0 %v3760_v11  ;;  %v14170_v46 = vld [vmem:[#allocation69_spill] sm:$0xff] }
 0x14b   : > { %vm13659_vm5 = vcmp.eq.s32.totalorder %v9466_v31, %v8669_v36  ;;  %v1171_v42 = vand.u32 4294901760, %v1170_v4  ;;  %v1176_v41 = vsub.f32 %v10228_v52, %v13629_v60  ;;  %v6133_v43 = vsel %vm13639_vm15, 1.0, %v14002_v47  ;;  %6926 = vmatpush1.bf16.msra.mxu0 %v6925_v22 }
 0x14c   : > { %14164 = vst [vmem:[#allocation235_spill] sm:$0xff] %v10254_v62  ;;  %14165 = vst [vmem:[#allocation236_spill] sm:$0xff] %v10256_v55  ;;  %vm13665_vm0 = vcmp.eq.s32.totalorder %v9466_v31, %v8753_v8  ;;  %v3769_v0 = vand.u32 4294901760, %v3768_v12  ;;  %v14167_v63 = vand.u32 4294901760, %v10231_v35  ;;  %v13640_v4 = vand.u32 4294901760, %v10254_v62  ;;  %6927 = vmatprep.subr.bf16.mxu0 %v13880_v54 }
 0x14d   : > { %vm13690_vm2 = vcmp.eq.s32.totalorder %v9466_v31, %v8659_v40  ;;  %1172 = vmatprep.mubr.f32.mxu1 %v1171_v42  ;;  %v1177_v52 = vand.u32 4294901760, %v1176_v41  ;;  %v10278_v44 = vsub.f32 %v6133_v43, %v6133_v43  ;;  %v14169_v22 = vand.u32 4294901760, %v14166_v53 }
 0x14e   : > { %v3774_v11 = vsub.f32 %v10231_v35, %v14167_v63  ;;  %v13650_v57 = vand.u32 4294901760, %v14170_v46  ;;  %3770 = vmatprep.mubr.f32.mxu0 %v3769_v0  ;;  %v1185_v60 = vsub.f32 %v10254_v62, %v13640_v4  ;;  %v14171_v35 = vand.u32 4294901760, %v10256_v55 }
 0x14f   : > { %14168 = vst [vmem:[#allocation237_spill] sm:$0xff] %v10278_v44  ;;  %v1475_v12 = vsub.f32 %v14166_v53, %v14169_v22  ;;  %v6135_v43 = vsel %vm13657_vm9, 1.0, %v14002_v47  ;;  %1178 = vmatmul.mubr.f32.gmra.mrb[46].mxu1 %v1177_v52  ;;  %v13649_v41 = vand.u32 4294901760, %v10278_v44  ;;  %vm13684_vm15 = vcmp.eq.s32.totalorder %v9466_v31, %v8750_v5 }
 0x150   : > { %v3775_v63 = vand.u32 4294901760, %v3774_v11  ;;  %v3783_v42 = vsub.f32 %v10256_v55, %v14171_v35  ;;  %v1482_v0 = vsub.f32 %v14170_v46, %v13650_v57  ;;  %v10298_v11 = vsub.f32 %v6135_v43, %v6135_v43  ;;  %v14173_v55 = vld [vmem:[#allocation70_spill] sm:$0xff] }
 0x151   : > { %v1476_v22 = vand.u32 4294901760, %v1475_v12  ;;  %v1186_v35 = vand.u32 4294901760, %v1185_v60  ;;  %v13652_v62 = vand.u32 4294901760, %v14173_v55  ;;  %v1191_v52 = vsub.f32 %v10278_v44, %v13649_v41 }
 0x152   : > { %14172 = vst [vmem:[#allocation238_spill] sm:$0xff] %v10298_v11  ;;  %3776 = vmatmul.mubr.f32.gmra.mrb[46].mxu0 %v3775_v63  ;;  %v3784_v4 = vand.u32 4294901760, %v3783_v42  ;;  %v1483_v12 = vand.u32 4294901760, %v1482_v0  ;;  %v13662_v34 = vand.u32 4294901760, %v10298_v11  ;;  %v6138_v43 = vsel %vm13651_vm11, 1.0, %v14002_v47 }
 0x153   : > { %1187 = vmatprep.mubr.f32.mxu1 %v1186_v35  ;;  %v4073_v60 = vsub.f32 %v14173_v55, %v13652_v62  ;;  %v4080_v63 = vsub.f32 %v14174_v2, %v13653_v15  ;;  %v10318_v42 = vsub.f32 %v6138_v43, %v6138_v43  ;;  %v6140_v0 = vsel %vm13656_vm4, 1.0, %v14002_v47 }
 0x154   : > { %3785 = vmatprep.mubr.f32.mxu0 %v3784_v4  ;;  %v1192_v41 = vand.u32 4294901760, %v1191_v52  ;;  %v6640_v57 = vpack.c.bf16 %v1483_v12, %v1476_v22  ;;  %v3789_v4 = vsub.f32 %v10298_v11, %v13662_v34  ;;  %v10327_v35 = vsub.f32 %v6140_v0, %v6140_v0 }
 0x155   : > { %14175 = vst [vmem:[#allocation239_spill] sm:$0xff] %v10318_v42  ;;  %vm13692_vm11 = vcmp.eq.s32.totalorder %v9413_v19, %v8669_v36  ;;  %v4074_v62 = vand.u32 4294901760, %v4073_v60  ;;  %v4081_v15 = vand.u32 4294901760, %v4080_v63  ;;  %v13660_v43 = vand.u32 4294901760, %v10318_v42 }
 0x156   : > { %14176 = vst [vmem:[#allocation240_spill] sm:$0xff] %v10327_v35  ;;  %v6137_v44 = vsel %vm13658_vm6, 1.0, %v14002_v47  ;;  %vm13691_vm4 = vcmp.eq.s32.totalorder %v9413_v19, %v8753_v8  ;;  %1193 = vmatmul.mubr.f32.gmra.mrb[48].mxu1 %v1192_v41  ;;  %v3790_v22 = vand.u32 4294901760, %v3789_v4  ;;  %v13661_v52 = vand.u32 4294901760, %v10327_v35 }
 0x157   : > { %v10339_v12 = vsub.f32 %v6137_v44, %v6137_v44  ;;  %v6139_v60 = vsel %vm13666_vm13, 1.0, %v14002_v47  ;;  %vm386_vm9 = vcmp.eq.s32.totalorder %v9413_v19, %v8659_v40  ;;  %6641 = vmatpush1.bf16.msra.mxu1 %v6640_v57  ;;  %v6928_v63 = vpack.c.bf16 %v4081_v15, %v4074_v62 }
 0x158   : > { %v1200_v0 = vsub.f32 %v10318_v42, %v13660_v43  ;;  %v10350_v41 = vsub.f32 %v6139_v60, %v6139_v60  ;;  %v6142_v44 = vsel %vm13659_vm5, 1.0, %v14002_v47  ;;  %vm13696_vm6 = vcmp.eq.s32.totalorder %v9413_v19, %v8750_v5  ;;  %3791 = vmatmul.mubr.f32.gmra.mrb[48].mxu0 %v3790_v22  ;;  %6642 = vmatprep.subr.bf16.mxu1 %v13880_v54 }
 0x159   : > { %14177 = vst [vmem:[#allocation241_spill] sm:$0xff] %v10339_v12  ;;  %v3798_v57 = vsub.f32 %v10327_v35, %v13661_v52  ;;  %v13667_v62 = vand.u32 4294901760, %v10339_v12  ;;  %v10362_v15 = vsub.f32 %v6142_v44, %v6142_v44  ;;  %v6144_v4 = vsel %vm13665_vm0, 1.0, %v14002_v47  ;;  %6929 = vmatpush1.bf16.msra.mxu0 %v6928_v63  ;;  %v14183_v35 = vld [vmem:[#allocation74_spill] sm:$0xff] }
 0x15a   : > { %14178 = vst [vmem:[#allocation242_spill] sm:$0xff] %v10350_v41  ;;  %vm391_vm5 = vcmp.eq.s32.totalorder %v9528_v51, %v8669_v36  ;;  %v1201_v22 = vand.u32 4294901760, %v1200_v0  ;;  %v13676_v60 = vand.u32 4294901760, %v10350_v41  ;;  %v10372_v43 = vsub.f32 %v6144_v4, %v6144_v4  ;;  %6930 = vmatprep.subr.bf16.mxu0 %v13880_v54  ;;  %v14182_v4 = vld [vmem:[#allocation73_spill] sm:$0xff] }
 0x15b   : > { %14179 = vst [vmem:[#allocation243_spill] sm:$0xff] %v10362_v15  ;;  %v6141_v44 = vsel %vm13690_vm2, 1.0, %v14002_v47  ;;  %v3799_v52 = vand.u32 4294901760, %v3798_v57  ;;  %v1206_v34 = vsub.f32 %v10339_v12, %v13667_v62  ;;  %vm390_vm0 = vcmp.eq.s32.totalorder %v9528_v51, %v8659_v40 }
 0x15c   : > { %14180 = vst [vmem:[#allocation244_spill] sm:$0xff] %v10372_v43  ;;  %v10383_v63 = vsub.f32 %v6141_v44, %v6141_v44  ;;  %vm393_vm13 = vcmp.eq.s32.totalorder %v9528_v51, %v8753_v8  ;;  %1202 = vmatprep.mubr.f32.mxu1 %v1201_v22  ;;  %v3804_v0 = vsub.f32 %v10350_v41, %v13676_v60  ;;  %v13685_v57 = vand.u32 4294901760, %v10372_v43 }
 0x15d   : > { %3800 = vmatprep.mubr.f32.mxu0 %v3799_v52  ;;  %v1207_v44 = vand.u32 4294901760, %v1206_v34  ;;  %v14184_v42 = vand.u32 4294901760, %v10362_v15  ;;  %v6143_v22 = vsel %vm13684_vm15, 1.0, %v14002_v47  ;;  %v14185_v12 = vand.u32 4294901760, %v14182_v4 }
 0x15e   : > { %14181 = vst [vmem:[#allocation245_spill] sm:$0xff] %v10383_v63  ;;  %v3805_v60 = vand.u32 4294901760, %v3804_v0  ;;  %v3813_v62 = vsub.f32 %v10372_v43, %v13685_v57  ;;  %v14186_v52 = vand.u32 4294901760, %v14183_v35  ;;  %v10415_v31 = vsub.f32 %v6143_v22, %v6143_v22  ;;  %v14189_v0 = vld [vmem:[#allocation75_spill] sm:$0xff] }
 0x15f   : > { %v1215_v11 = vsub.f32 %v10362_v15, %v14184_v42  ;;  %v1489_v34 = vsub.f32 %v14182_v4, %v14185_v12  ;;  %1208 = vmatmul.mubr.f32.gmra.mrb[50].mxu1 %v1207_v44  ;;  %v14187_v15 = vand.u32 4294901760, %v10383_v63  ;;  %v13695_v21 = vand.u32 4294901760, %v14189_v0 }
 0x160   : > { %v1496_v42 = vsub.f32 %v14183_v35, %v14186_v52  ;;  %14188 = vst [vmem:[#allocation246_spill] sm:$0xff] %v10415_v31  ;;  %vm392_vm15 = vcmp.eq.s32.totalorder %v9528_v51, %v8750_v5  ;;  %3806 = vmatmul.mubr.f32.gmra.mrb[50].mxu0 %v3805_v60  ;;  %v3814_v57 = vand.u32 4294901760, %v3813_v62  ;;  %v13694_v33 = vand.u32 4294901760, %v14190_v14 }
 0x161   : > { %v1216_v24 = vand.u32 4294901760, %v1215_v11  ;;  %v1221_v41 = vsub.f32 %v10383_v63, %v14187_v15  ;;  %v1490_v12 = vand.u32 4294901760, %v1489_v34  ;;  %v13693_v11 = vand.u32 4294901760, %v10415_v31  ;;  %v14198_v63 = vld [vmem:[#allocation78_spill] sm:$0xff] }
 0x162   : > { %v1497_v43 = vand.u32 4294901760, %v1496_v42  ;;  %v4087_v15 = vsub.f32 %v14189_v0, %v13695_v21  ;;  %v6146_v22 = vsel %vm13692_vm11, 1.0, %v14002_v47  ;;  %3815 = vmatprep.mubr.f32.mxu0 %v3814_v57  ;;  %v4094_v62 = vsub.f32 %v14190_v14, %v13694_v33 }
 0x163   : > { %1217 = vmatprep.mubr.f32.mxu1 %v1216_v24  ;;  %v1222_v44 = vand.u32 4294901760, %v1221_v41  ;;  %v10432_v34 = vsub.f32 %v6146_v22, %v6146_v22  ;;  %v6148_v24 = vsel %vm13691_vm4, 1.0, %v14002_v47  ;;  %vm395_vm2 = vcmp.eq.s32.totalorder %v9462_v6, %v8669_v36 }
 0x164   : > { %v6643_v60 = vpack.c.bf16 %v1497_v43, %v1490_v12  ;;  %v3819_v41 = vsub.f32 %v10415_v31, %v13693_v11  ;;  %v4088_v43 = vand.u32 4294901760, %v4087_v15  ;;  %v10443_v57 = vsub.f32 %v6148_v24, %v6148_v24 }
 0x165   : > { %14191 = vst [vmem:[#allocation247_spill] sm:$0xff] %v10432_v34  ;;  %1223 = vmatmul.mubr.f32.gmra.mrb[52].mxu1 %v1222_v44  ;;  %v6145_v52 = vsel %vm386_vm9, 1.0, %v14002_v47  ;;  %v4095_v42 = vand.u32 4294901760, %v4094_v62  ;;  %v13698_v12 = vand.u32 4294901760, %v10432_v34  ;;  %v6147_v44 = vsel %vm13696_vm6, 1.0, %v14002_v47 }
 0x166   : > { %14192 = vst [vmem:[#allocation248_spill] sm:$0xff] %v10443_v57  ;;  %6644 = vmatpush1.bf16.msra.mxu1 %v6643_v60  ;;  %v10450_v22 = vsub.f32 %v6145_v52, %v6145_v52  ;;  %vm13757_vm4 = vcmp.eq.s32.totalorder %v9462_v6, %v8659_v40  ;;  %vm397_vm11 = vcmp.eq.s32.totalorder %v9462_v6, %v8753_v8  ;;  %v3820_v15 = vand.u32 4294901760, %v3819_v41 }
 0x167   : > { %v13697_v24 = vand.u32 4294901760, %v10443_v57  ;;  %v10461_v60 = vsub.f32 %v6147_v44, %v6147_v44  ;;  %v6150_v62 = vsel %vm391_vm5, 1.0, %v14002_v47  ;;  %6645 = vmatprep.subr.bf16.mxu1 %v13880_v54  ;;  %v6931_v52 = vpack.c.bf16 %v4095_v42, %v4088_v43 }
 0x168   : > { %14193 = vst [vmem:[#allocation249_spill] sm:$0xff] %v10450_v22  ;;  %v1230_v11 = vsub.f32 %v10432_v34, %v13698_v12  ;;  %v13707_v33 = vand.u32 4294901760, %v10450_v22  ;;  %v10472_v21 = vsub.f32 %v6150_v62, %v6150_v62  ;;  %vm13754_vm6 = vcmp.eq.s32.totalorder %v9462_v6, %v8750_v5  ;;  %3821 = vmatmul.mubr.f32.gmra.mrb[52].mxu0 %v3820_v15 }
 0x169   : > { %14194 = vst [vmem:[#allocation250_spill] sm:$0xff] %v10461_v60  ;;  %v3828_v41 = vsub.f32 %v10443_v57, %v13697_v24  ;;  %v6152_v43 = vsel %vm393_vm13, 1.0, %v14002_v47  ;;  %v6149_v42 = vsel %vm390_vm0, 1.0, %v14002_v47  ;;  %6932 = vmatpush1.bf16.msra.mxu0 %v6931_v52  ;;  %v14196_v57 = vand.u32 4294901760, %v10461_v60 }
 0x16a   : > { %14195 = vst [vmem:[#allocation251_spill] sm:$0xff] %v10472_v21  ;;  %v1231_v62 = vand.u32 4294901760, %v1230_v11  ;;  %v1236_v15 = vsub.f32 %v10450_v22, %v13707_v33  ;;  %v13712_v24 = vand.u32 4294901760, %v10472_v21  ;;  %v10492_v12 = vsub.f32 %v6152_v43, %v6152_v43  ;;  %6933 = vmatprep.subr.bf16.mxu0 %v13880_v54  ;;  %v14199_v22 = vld [vmem:[#allocation79_spill] sm:$0xff] }
 0x16b   : > { %v3829_v44 = vand.u32 4294901760, %v3828_v41  ;;  %v3834_v34 = vsub.f32 %v10461_v60, %v14196_v57  ;;  %v10498_v31 = vsub.f32 %v6149_v42, %v6149_v42  ;;  %v13713_v52 = vand.u32 4294901760, %v14198_v63 }
 0x16c   : > { %1232 = vmatprep.mubr.f32.mxu1 %v1231_v62  ;;  %v1237_v11 = vand.u32 4294901760, %v1236_v15  ;;  %v1245_v33 = vsub.f32 %v10472_v21, %v13712_v24  ;;  %v13720_v43 = vand.u32 4294901760, %v10492_v12  ;;  %v13722_v41 = vand.u32 4294901760, %v14199_v22 }
 0x16d   : > { %14197 = vst [vmem:[#allocation252_spill] sm:$0xff] %v10498_v31  ;;  %3830 = vmatprep.mubr.f32.mxu0 %v3829_v44  ;;  %v3835_v19 = vand.u32 4294901760, %v3834_v34  ;;  %v13721_v57 = vand.u32 4294901760, %v10498_v31  ;;  %v1503_v42 = vsub.f32 %v14198_v63, %v13713_v52  ;;  %v6151_v62 = vsel %vm392_vm15, 1.0, %v14002_v47 }
 0x16e   : > { %1238 = vmatmul.mubr.f32.gmra.mrb[54].mxu1 %v1237_v11  ;;  %v1246_v15 = vand.u32 4294901760, %v1245_v33  ;;  %v3843_v24 = vsub.f32 %v10492_v12, %v13720_v43  ;;  %v1510_v34 = vsub.f32 %v14199_v22, %v13722_v41  ;;  %v10520_v44 = vsub.f32 %v6151_v62, %v6151_v62 }
 0x16f   : > { %3836 = vmatmul.mubr.f32.gmra.mrb[54].mxu0 %v3835_v19  ;;  %v1251_v52 = vsub.f32 %v10498_v31, %v13721_v57  ;;  %v1504_v21 = vand.u32 4294901760, %v1503_v42  ;;  %v13725_v60 = vand.u32 4294901760, %v8570_v39  ;;  %v13723_v33 = vand.u32 4294901760, %v8573_v9 }
 0x170   : > { %14200 = vst [vmem:[#allocation253_spill] sm:$0xff] %v10520_v44  ;;  %1247 = vmatprep.mubr.f32.mxu1 %v1246_v15  ;;  %v3844_v11 = vand.u32 4294901760, %v3843_v24  ;;  %v1511_v51 = vand.u32 4294901760, %v1510_v34  ;;  %v13724_v43 = vand.u32 4294901760, %v10520_v44  ;;  %v6154_v62 = vsel %vm395_vm2, 1.0, %v14002_v47 }
 0x171   : > { %v1252_v19 = vand.u32 4294901760, %v1251_v52  ;;  %v4101_v57 = vsub.f32 %v8570_v39, %v13725_v60  ;;  %v4108_v42 = vsub.f32 %v8573_v9, %v13723_v33  ;;  %v10538_v41 = vsub.f32 %v6154_v62, %v6154_v62 }
 0x172   : > { %3845 = vmatprep.mubr.f32.mxu0 %v3844_v11  ;;  %v6646_v24 = vpack.c.bf16 %v1511_v51, %v1504_v21  ;;  %v3849_v15 = vsub.f32 %v10520_v44, %v13724_v43  ;;  %v6156_v52 = vsel %vm397_vm11, 1.0, %v14002_v47  ;;  %v6153_v34 = vsel %vm13757_vm4, 1.0, %v14002_v47 }
 0x173   : > { %1253 = vmatmul.mubr.f32.gmra.mrb[56].mxu1 %v1252_v19  ;;  %v4102_v33 = vand.u32 4294901760, %v4101_v57  ;;  %v4109_v62 = vand.u32 4294901760, %v4108_v42  ;;  %v13730_v11 = vand.u32 4294901760, %v10538_v41  ;;  %v10552_v51 = vsub.f32 %v6156_v52, %v6156_v52 }
 0x174   : > { %6647 = vmatpush1.bf16.msra.mxu1 %v6646_v24  ;;  %v3850_v21 = vand.u32 4294901760, %v3849_v15  ;;  %v10554_v43 = vsub.f32 %v6153_v34, %v6153_v34  ;;  %v6155_v60 = vsel %vm13754_vm6, 1.0, %v14002_v47  ;;  %v13731_v44 = vand.u32 4294901760, %v9654_v61 }
 0x175   : > { %14201 = vst [vmem:[#allocation254_spill] sm:$0xff] %v10552_v51  ;;  %v6934_v31 = vpack.c.bf16 %v4109_v62, %v4102_v33  ;;  %v1260_v57 = vsub.f32 %v10538_v41, %v13730_v11  ;;  %v13732_v19 = vand.u32 4294901760, %v10552_v51  ;;  %v10565_v42 = vsub.f32 %v6155_v60, %v6155_v60  ;;  %6648 = vmatprep.subr.bf16.mxu1 %v13880_v54 }
 0x176   : > { %14202 = vst [vmem:[#allocation255_spill] sm:$0xff] %v10554_v43  ;;  %3851 = vmatmul.mubr.f32.gmra.mrb[56].mxu0 %v3850_v21  ;;  %v13733_v24 = vand.u32 4294901760, %v10554_v43  ;;  %v1275_v47 = vsub.f32 %v9654_v61, %v13731_v44  ;;  %v13736_v15 = vand.u32 4294901760, %v9658_v59  ;;  %v13743_v33 = vand.u32 4294901760, %v9656_v56 }
 0x177   : > { %14203 = vst [vmem:[#allocation256_spill] sm:$0xff] %v10565_v42  ;;  %6935 = vmatpush1.bf16.msra.mxu0 %v6934_v31  ;;  %v1261_v52 = vand.u32 4294901760, %v1260_v57  ;;  %v3858_v60 = vsub.f32 %v10552_v51, %v13732_v19  ;;  %v13744_v34 = vand.u32 4294901760, %v10565_v42  ;;  %v13748_v62 = vand.u32 4294901760, %v8578_v26 }
 0x178   : > { %v1266_v21 = vsub.f32 %v10554_v43, %v13733_v24  ;;  %v1276_v11 = vand.u32 4294901760, %v1275_v47  ;;  %v3873_v44 = vsub.f32 %v9658_v59, %v13736_v15  ;;  %6936 = vmatprep.subr.bf16.mxu0 %v13880_v54  ;;  %v1281_v31 = vsub.f32 %v9656_v56, %v13743_v33 }
 0x179   : > { %1262 = vmatprep.mubr.f32.mxu1 %v1261_v52  ;;  %v3859_v57 = vand.u32 4294901760, %v3858_v60  ;;  %v3864_v19 = vsub.f32 %v10565_v42, %v13744_v34  ;;  %v1517_v47 = vsub.f32 %v8578_v26, %v13748_v62  ;;  %v13745_v24 = vand.u32 4294901760, %v8581_v32 }
 0x17a   : > { %v1267_v61 = vand.u32 4294901760, %v1266_v21  ;;  %v3874_v15 = vand.u32 4294901760, %v3873_v44  ;;  %v1282_v59 = vand.u32 4294901760, %v1281_v31  ;;  %v13746_v43 = vand.u32 4294901760, %v9669_v49 }
 0x17b   : > { %3860 = vmatprep.mubr.f32.mxu0 %v3859_v57  ;;  %v3865_v51 = vand.u32 4294901760, %v3864_v19  ;;  %v1518_v33 = vand.u32 4294901760, %v1517_v47  ;;  %v1524_v52 = vsub.f32 %v8581_v32, %v13745_v24  ;;  %v13747_v60 = vand.u32 4294901760, %v8592_v20 }
 0x17c   : > { %1268 = vmatmul.mubr.f32.gmra.mrb[58].mxu1 %v1267_v61  ;;  %v3879_v34 = vsub.f32 %v9669_v49, %v13746_v43  ;;  %v13749_v21 = vand.u32 4294901760, %v8595_v37  ;;  %v13752_v44 = vand.u32 4294901760, %v9596_v28  ;;  %v13753_v31 = vand.u32 4294901760, %v9605_v1 }
 0x17d   : > { %3866 = vmatmul.mubr.f32.gmra.mrb[58].mxu0 %v3865_v51  ;;  %1277 = vmatprep.mubr.f32.mxu1 %v1276_v11  ;;  %v1525_v19 = vand.u32 4294901760, %v1524_v52  ;;  %v4115_v57 = vsub.f32 %v8592_v20, %v13747_v60  ;;  %v13759_v47 = vand.u32 4294901760, %v9603_v48  ;;  %v13758_v61 = vand.u32 4294901760, %v9611_v58 }
 0x17e   : > { %3875 = vmatprep.mubr.f32.mxu0 %v3874_v15  ;;  %v3880_v24 = vand.u32 4294901760, %v3879_v34  ;;  %v4122_v43 = vsub.f32 %v8595_v37, %v13749_v21  ;;  %v1290_v51 = vsub.f32 %v9596_v28, %v13752_v44  ;;  %v3888_v11 = vsub.f32 %v9605_v1, %v13753_v31 }
 0x17f   : > { %v6649_v52 = vpack.c.bf16 %v1525_v19, %v1518_v33  ;;  %v4116_v60 = vand.u32 4294901760, %v4115_v57  ;;  %v1296_v62 = vsub.f32 %v9603_v48, %v13759_v47  ;;  %v3894_v15 = vsub.f32 %v9611_v58, %v13758_v61  ;;  %v14218_v61 = vld [vmem:[#allocation14_spill] sm:$0xff]  ;;  %v14227_v57 = vld [vmem:[#allocation19_spill] sm:$0xff] }
 0x180   : > { %1283 = vmatmul.mubr.f32.gmra.mrb[60].mxu1 %v1282_v59  ;;  %v4123_v34 = vand.u32 4294901760, %v4122_v43  ;;  %v1291_v21 = vand.u32 4294901760, %v1290_v51  ;;  %v3889_v49 = vand.u32 4294901760, %v3888_v11  ;;  %v13805_v19 = vmov 1.0   ;;  %v14205_v43 = vld [vmem:[#allocation8_spill] sm:$0xff] }
 0x181   : > { %6650 = vmatpush1.bf16.msra.mxu1 %v6649_v52  ;;  %3881 = vmatmul.mubr.f32.gmra.mrb[60].mxu0 %v3880_v24  ;;  %v1297_v31 = vand.u32 4294901760, %v1296_v62  ;;  %v3895_v33 = vand.u32 4294901760, %v3894_v15  ;;  %v6652_v59 = vpack.c.bf16 %v8021_v17, %v8019_v16  ;;  %vm14204_vm6 = vcmp.eq.s32.totalorder %v8767_v27, %v8659_v40  ;;  %v14210_v52 = vld [vmem:[#allocation10_spill] sm:$0xff]  ;;  %v14211_v15 = vld [vmem:[#allocation11_spill] sm:$0xff]  ;;  %v14220_v11 = vld [vmem:[#allocation16_spill] sm:$0xff] }
 0x182   : > { %v6937_v44 = vpack.c.bf16 %v4123_v34, %v4116_v60  ;;  %1292 = vmatprep.mubr.f32.mxu1 %v1291_v21  ;;  %3890 = vmatprep.mubr.f32.mxu0 %v3889_v49  ;;  %v6940_v49 = vpack.c.bf16 %v8036_v23, %v8023_v18  ;;  %v6655_v24 = vpack.c.bf16 %v14205_v43, %v8038_v25  ;;  %v14228_v21 = vld [vmem:[#allocation20_spill] sm:$0xff]  ;;  %v14229_v60 = vld [vmem:[#allocation21_spill] sm:$0xff] }
 0x183   : > { %6651 = vmatprep.subr.bf16.mxu1 %v13880_v54  ;;  %v6943_v34 = vpack.c.bf16 %v14211_v15, %v14210_v52  ;;  %v6949_v62 = vpack.c.bf16 %v14229_v60, %v14228_v21 }
 0x184   : > { %6938 = vmatpush1.bf16.msra.mxu0 %v6937_v44  ;;  %1298 = vmatmul.mubr.f32.gmra.mrb[62].mxu1 %v1297_v31  ;;  %v14207_v31 = vld [vmem:[#allocation103_spill] sm:$0xff] }
 0x185   : > { %3896 = vmatmul.mubr.f32.gmra.mrb[62].mxu0 %v3895_v33  ;;  %6165 = vmatprep.mubr.msk.f32.mxu1 %vm13756_vm1, %v13805_v19  ;;  %vm14213_vm1 = vcmp.eq.s32.totalorder %v14207_v31, %v8750_v5  ;;  %v14219_v33 = vld [vmem:[#allocation15_spill] sm:$0xff] }
 0x186   : > { %6357 = vmatprep.mubr.msk.f32.mxu0 %vm13755_vm3, %v13805_v19  ;;  %6939 = vmatprep.subr.bf16.mxu0 %v13880_v54  ;;  %vm14206_vm3 = vcmp.eq.s32.totalorder %v8767_v27, %v8750_v5  ;;  %v6946_v51 = vpack.c.bf16 %v14220_v11, %v14219_v33  ;;  %v14237_v27 = vld [vmem:[#allocation27_spill] sm:$0xff] }
 0x188   : > { %6166 = vmatmul.mubr.msk.f32.vlgmr.msra.gmra.mrb[0].mxu1 %vm14204_vm6, %v13805_v19  ;;  %vm14208_vm6 = vcmp.eq.s32.totalorder %v14207_v31, %v8669_v36 }
 0x189   : > { %6653 = vmatpush1.bf16.msra.mxu1 %v6652_v59  ;;  %6358 = vmatmul.mubr.msk.f32.vlgmr.msra.gmra.mrb[0].mxu0 %vm14206_vm3, %v13805_v19  ;;  %vm14209_vm3 = vcmp.eq.s32.totalorder %v14207_v31, %v8753_v8  ;;  %v14214_v59 = vld [vmem:[#allocation100_spill] sm:$0xff] }
 0x18a   : > { %6941 = vmatpush1.bf16.msra.mxu0 %v6940_v49  ;;  %6167 = vmatprep.mubr.msk.f32.mxu1 %vm14208_vm6, %v13805_v19  ;;  %vm14212_vm6 = vcmp.eq.s32.totalorder %v14207_v31, %v8659_v40  ;;  %vm14216_vm4 = vcmp.eq.s32.totalorder %v14214_v59, %v8753_v8  ;;  %v14217_v49 = vld [vmem:[#allocation13_spill] sm:$0xff] }
 0x18b   : > { %6359 = vmatprep.mubr.msk.f32.mxu0 %vm14209_vm3, %v13805_v19  ;;  %6654 = vmatprep.subr.bf16.mxu1 %v13880_v54  ;;  %vm14215_vm3 = vcmp.eq.s32.totalorder %v14214_v59, %v8669_v36  ;;  %v6658_v47 = vpack.c.bf16 %v14218_v61, %v14217_v49 }
 0x18c   : > { %6168 = vmatmul.mubr.msk.f32.gmra.mrb[2].mxu1 %vm14212_vm6, %v13805_v19  ;;  %6942 = vmatprep.subr.bf16.mxu0 %v13880_v54 }
 0x18d   : > { %6360 = vmatmul.mubr.msk.f32.gmra.mrb[2].mxu0 %vm14213_vm1, %v13805_v19  ;;  %6169 = vmatprep.mubr.msk.f32.mxu1 %vm14215_vm3, %v13805_v19  ;;  %vm14221_vm1 = vcmp.eq.s32.totalorder %v14214_v59, %v8659_v40 }
 0x18e   : > { %6361 = vmatprep.mubr.msk.f32.mxu0 %vm14216_vm4, %v13805_v19  ;;  %6656 = vmatpush1.bf16.msra.mxu1 %v6655_v24  ;;  %vm14222_vm4 = vcmp.eq.s32.totalorder %v14214_v59, %v8750_v5  ;;  %v14223_v24 = vld [vmem:[#allocation102_spill] sm:$0xff]  ;;  %v14236_v59 = vld [vmem:[#allocation24_spill] sm:$0xff] }
 0x18f   : > { %6944 = vmatpush1.bf16.msra.mxu0 %v6943_v34  ;;  %6657 = vmatprep.subr.bf16.mxu1 %v13880_v54  ;;  %vm14224_vm6 = vcmp.eq.s32.totalorder %v14223_v24, %v8669_v36  ;;  %vm14225_vm3 = vcmp.eq.s32.totalorder %v14223_v24, %v8753_v8  ;;  %v14226_v34 = vld [vmem:[#allocation18_spill] sm:$0xff] }
 0x190   : > { %6170 = vmatmul.mubr.msk.f32.gmra.mrb[4].mxu1 %vm14221_vm1, %v13805_v19  ;;  %6945 = vmatprep.subr.bf16.mxu0 %v13880_v54  ;;  %v6661_v44 = vpack.c.bf16 %v14227_v57, %v14226_v34  ;;  %vm14230_vm1 = vcmp.eq.s32.totalorder %v14223_v24, %v8659_v40 }
 0x191   : > { %6362 = vmatmul.mubr.msk.f32.gmra.mrb[4].mxu0 %vm14222_vm4, %v13805_v19  ;;  %6171 = vmatprep.mubr.msk.f32.mxu1 %vm14224_vm6, %v13805_v19  ;;  %vm14231_vm4 = vcmp.eq.s32.totalorder %v14223_v24, %v8750_v5  ;;  %v14238_v24 = vld [vmem:[#allocation29_spill] sm:$0xff] }
 0x192   : > { %6363 = vmatprep.mubr.msk.f32.mxu0 %vm14225_vm3, %v13805_v19  ;;  %6659 = vmatpush1.bf16.msra.mxu1 %v6658_v47  ;;  %v14232_v47 = vld [vmem:[#allocation114_spill] sm:$0xff]  ;;  %v6952_v60 = vpack.c.bf16 %v14238_v24, %v14237_v27  ;;  %v14245_v24 = vld [vmem:[#allocation32_spill] sm:$0xff] }
 0x193   : > { %6947 = vmatpush1.bf16.msra.mxu0 %v6946_v51  ;;  %6660 = vmatprep.subr.bf16.mxu1 %v13880_v54  ;;  %vm14233_vm6 = vcmp.eq.s32.totalorder %v14232_v47, %v8669_v36  ;;  %vm14234_vm3 = vcmp.eq.s32.totalorder %v14232_v47, %v8753_v8  ;;  %v14235_v51 = vld [vmem:[#allocation23_spill] sm:$0xff] }
 0x194   : > { %6172 = vmatmul.mubr.msk.f32.gmra.mrb[6].mxu1 %vm14230_vm1, %v13805_v19  ;;  %6948 = vmatprep.subr.bf16.mxu0 %v13880_v54  ;;  %v6664_v31 = vpack.c.bf16 %v14236_v59, %v14235_v51  ;;  %vm14239_vm1 = vcmp.eq.s32.totalorder %v14232_v47, %v8659_v40  ;;  %v14246_v59 = vld [vmem:[#allocation34_spill] sm:$0xff] }
 0x195   : > { %6364 = vmatmul.mubr.msk.f32.gmra.mrb[6].mxu0 %vm14231_vm4, %v13805_v19  ;;  %6173 = vmatprep.mubr.msk.f32.mxu1 %vm14233_vm6, %v13805_v19  ;;  %vm14240_vm4 = vcmp.eq.s32.totalorder %v14232_v47, %v8750_v5  ;;  %v14247_v47 = vld [vmem:[#allocation35_spill] sm:$0xff] }
 0x196   : > { %6365 = vmatprep.mubr.msk.f32.mxu0 %vm14234_vm3, %v13805_v19  ;;  %6662 = vmatpush1.bf16.msra.mxu1 %v6661_v44  ;;  %v14241_v44 = vld [vmem:[#allocation108_spill] sm:$0xff]  ;;  %v6955_v51 = vpack.c.bf16 %v14247_v47, %v14246_v59  ;;  %v14254_v47 = vld [vmem:[#allocation38_spill] sm:$0xff] }
 0x197   : > { %6950 = vmatpush1.bf16.msra.mxu0 %v6949_v62  ;;  %6663 = vmatprep.subr.bf16.mxu1 %v13880_v54  ;;  %vm14242_vm6 = vcmp.eq.s32.totalorder %v14241_v44, %v8669_v36  ;;  %vm14243_vm3 = vcmp.eq.s32.totalorder %v14241_v44, %v8753_v8  ;;  %v14244_v62 = vld [vmem:[#allocation31_spill] sm:$0xff] }
 0x198   : > { %6174 = vmatmul.mubr.msk.f32.gmra.mrb[8].mxu1 %vm14239_vm1, %v13805_v19  ;;  %6951 = vmatprep.subr.bf16.mxu0 %v13880_v54  ;;  %v6667_v27 = vpack.c.bf16 %v14245_v24, %v14244_v62  ;;  %vm14248_vm1 = vcmp.eq.s32.totalorder %v14241_v44, %v8659_v40  ;;  %v14255_v24 = vld [vmem:[#allocation39_spill] sm:$0xff] }
 0x199   : > { %6366 = vmatmul.mubr.msk.f32.gmra.mrb[8].mxu0 %vm14240_vm4, %v13805_v19  ;;  %6175 = vmatprep.mubr.msk.f32.mxu1 %vm14242_vm6, %v13805_v19  ;;  %vm14249_vm4 = vcmp.eq.s32.totalorder %v14241_v44, %v8750_v5  ;;  %v14256_v44 = vld [vmem:[#allocation40_spill] sm:$0xff] }
 0x19a   : > { %6367 = vmatprep.mubr.msk.f32.mxu0 %vm14243_vm3, %v13805_v19  ;;  %6665 = vmatpush1.bf16.msra.mxu1 %v6664_v31  ;;  %v14250_v31 = vld [vmem:[#allocation117_spill] sm:$0xff]  ;;  %v6958_v62 = vpack.c.bf16 %v14256_v44, %v14255_v24  ;;  %v14263_v44 = vld [vmem:[#allocation43_spill] sm:$0xff] }
 0x19b   : > { %6953 = vmatpush1.bf16.msra.mxu0 %v6952_v60  ;;  %6666 = vmatprep.subr.bf16.mxu1 %v13880_v54  ;;  %vm14251_vm6 = vcmp.eq.s32.totalorder %v14250_v31, %v8669_v36  ;;  %vm14252_vm3 = vcmp.eq.s32.totalorder %v14250_v31, %v8753_v8  ;;  %v14253_v60 = vld [vmem:[#allocation36_spill] sm:$0xff] }
 0x19c   : > { %6176 = vmatmul.mubr.msk.f32.gmra.mrb[10].mxu1 %vm14248_vm1, %v13805_v19  ;;  %6954 = vmatprep.subr.bf16.mxu0 %v13880_v54  ;;  %v6670_v59 = vpack.c.bf16 %v14254_v47, %v14253_v60  ;;  %vm14257_vm1 = vcmp.eq.s32.totalorder %v14250_v31, %v8659_v40  ;;  %v14264_v47 = vld [vmem:[#allocation44_spill] sm:$0xff] }
 0x19d   : > { %6368 = vmatmul.mubr.msk.f32.gmra.mrb[10].mxu0 %vm14249_vm4, %v13805_v19  ;;  %6177 = vmatprep.mubr.msk.f32.mxu1 %vm14251_vm6, %v13805_v19  ;;  %vm14258_vm4 = vcmp.eq.s32.totalorder %v14250_v31, %v8750_v5  ;;  %v14265_v31 = vld [vmem:[#allocation45_spill] sm:$0xff] }
 0x19e   : > { %6369 = vmatprep.mubr.msk.f32.mxu0 %vm14252_vm3, %v13805_v19  ;;  %6668 = vmatpush1.bf16.msra.mxu1 %v6667_v27  ;;  %v14259_v27 = vld [vmem:[#allocation113_spill] sm:$0xff]  ;;  %v6961_v60 = vpack.c.bf16 %v14265_v31, %v14264_v47  ;;  %v14272_v31 = vld [vmem:[#allocation48_spill] sm:$0xff] }
 0x19f   : > { %6956 = vmatpush1.bf16.msra.mxu0 %v6955_v51  ;;  %6669 = vmatprep.subr.bf16.mxu1 %v13880_v54  ;;  %vm14260_vm6 = vcmp.eq.s32.totalorder %v14259_v27, %v8669_v36  ;;  %vm14261_vm3 = vcmp.eq.s32.totalorder %v14259_v27, %v8753_v8  ;;  %v14262_v51 = vld [vmem:[#allocation41_spill] sm:$0xff] }
 0x1a0   : > { %6178 = vmatmul.mubr.msk.f32.gmra.mrb[12].mxu1 %vm14257_vm1, %v13805_v19  ;;  %6957 = vmatprep.subr.bf16.mxu0 %v13880_v54  ;;  %v6673_v24 = vpack.c.bf16 %v14263_v44, %v14262_v51  ;;  %vm14266_vm1 = vcmp.eq.s32.totalorder %v14259_v27, %v8659_v40  ;;  %v14443_v44 = vld [vmem:[#allocation162_spill] sm:$0xff] }
 0x1a1   : > { %6370 = vmatmul.mubr.msk.f32.gmra.mrb[12].mxu0 %vm14258_vm4, %v13805_v19  ;;  %6179 = vmatprep.mubr.msk.f32.mxu1 %vm14260_vm6, %v13805_v19  ;;  %vm14267_vm4 = vcmp.eq.s32.totalorder %v14259_v27, %v8750_v5  ;;  %v6964_v27 = vpack.c.bf16 %v14082_v10, %v14076_v30  ;;  %v14436_v10 = vld [vmem:[#allocation153_spill] sm:$0xff]  ;;  %v14437_v30 = vld [vmem:[#allocation154_spill] sm:$0xff] }
 0x1a2   : > { %6371 = vmatprep.mubr.msk.f32.mxu0 %vm14261_vm3, %v13805_v19  ;;  %6671 = vmatpush1.bf16.msra.mxu1 %v6670_v59  ;;  %v14268_v59 = vld [vmem:[#allocation124_spill] sm:$0xff]  ;;  %v14497_v51 = vld [vmem:[#allocation214_spill] sm:$0xff] }
 0x1a3   : > { %6959 = vmatpush1.bf16.msra.mxu0 %v6958_v62  ;;  %6672 = vmatprep.subr.bf16.mxu1 %v13880_v54  ;;  %vm14269_vm6 = vcmp.eq.s32.totalorder %v14268_v59, %v8669_v36  ;;  %vm14270_vm3 = vcmp.eq.s32.totalorder %v14268_v59, %v8753_v8  ;;  %v14271_v62 = vld [vmem:[#allocation46_spill] sm:$0xff] }
 0x1a4   : > { %6180 = vmatmul.mubr.msk.f32.gmra.mrb[14].mxu1 %vm14266_vm1, %v13805_v19  ;;  %6960 = vmatprep.subr.bf16.mxu0 %v13880_v54  ;;  %v6676_v47 = vpack.c.bf16 %v14272_v31, %v14271_v62  ;;  %vm14273_vm1 = vcmp.eq.s32.totalorder %v14268_v59, %v8659_v40  ;;  %v14438_v31 = vld [vmem:[#allocation47_spill] sm:$0xff]  ;;  %v14439_v62 = vld [vmem:[#allocation50_spill] sm:$0xff] }
 0x1a5   : > { %6372 = vmatmul.mubr.msk.f32.gmra.mrb[14].mxu0 %vm14267_vm4, %v13805_v19  ;;  %6181 = vmatprep.mubr.msk.f32.mxu1 %vm14269_vm6, %v13805_v19  ;;  %vm14274_vm4 = vcmp.eq.s32.totalorder %v14268_v59, %v8750_v5  ;;  %v6967_v59 = vpack.c.bf16 %v14129_v29, %v14127_v13  ;;  %v14431_v13 = vld [vmem:[#allocation148_spill] sm:$0xff] }
 0x1a6   : > { %6373 = vmatprep.mubr.msk.f32.mxu0 %vm14270_vm3, %v13805_v19  ;;  %6674 = vmatpush1.bf16.msra.mxu1 %v6673_v24  ;;  %v14275_v24 = vld [vmem:[#allocation115_spill] sm:$0xff] }
 0x1a7   : > { %6962 = vmatpush1.bf16.msra.mxu0 %v6961_v60  ;;  %6675 = vmatprep.subr.bf16.mxu1 %v13880_v54  ;;  %vm14276_vm6 = vcmp.eq.s32.totalorder %v14275_v24, %v8669_v36  ;;  %vm14277_vm3 = vcmp.eq.s32.totalorder %v14275_v24, %v8753_v8  ;;  %v6679_v60 = vpack.c.bf16 %v14126_v3, %v14122_v7  ;;  %v14432_v3 = vld [vmem:[#allocation37_spill] sm:$0xff]  ;;  %v14433_v7 = vld [vmem:[#allocation42_spill] sm:$0xff] }
 0x1a8   : > { %6182 = vmatmul.mubr.msk.f32.gmra.mrb[16].mxu1 %vm14273_vm1, %v13805_v19  ;;  %6963 = vmatprep.subr.bf16.mxu0 %v13880_v54  ;;  %vm14278_vm1 = vcmp.eq.s32.totalorder %v14275_v24, %v8659_v40 }
 0x1a9   : > { %6374 = vmatmul.mubr.msk.f32.gmra.mrb[16].mxu0 %vm14274_vm4, %v13805_v19  ;;  %6183 = vmatprep.mubr.msk.f32.mxu1 %vm14276_vm6, %v13805_v19  ;;  %vm14279_vm4 = vcmp.eq.s32.totalorder %v14275_v24, %v8750_v5  ;;  %v14283_v24 = vld [vmem:[#allocation61_spill] sm:$0xff] }
 0x1aa   : > { %6375 = vmatprep.mubr.msk.f32.mxu0 %vm14277_vm3, %v13805_v19  ;;  %6677 = vmatpush1.bf16.msra.mxu1 %v6676_v47  ;;  %v14280_v47 = vld [vmem:[#allocation128_spill] sm:$0xff]  ;;  %v6970_v29 = vpack.c.bf16 %v14283_v24, %v14140_v45 }
 0x1ab   : > { %6965 = vmatpush1.bf16.msra.mxu0 %v6964_v27  ;;  %6678 = vmatprep.subr.bf16.mxu1 %v13880_v54  ;;  %vm14281_vm6 = vcmp.eq.s32.totalorder %v14280_v47, %v8669_v36  ;;  %vm14282_vm3 = vcmp.eq.s32.totalorder %v14280_v47, %v8753_v8  ;;  %v6682_v27 = vpack.c.bf16 %v14139_v50, %v14138_v38  ;;  %v14290_v24 = vld [vmem:[#allocation64_spill] sm:$0xff]  ;;  %v14291_v50 = vld [vmem:[#allocation65_spill] sm:$0xff] }
 0x1ac   : > { %6184 = vmatmul.mubr.msk.f32.gmra.mrb[18].mxu1 %vm14278_vm1, %v13805_v19  ;;  %6966 = vmatprep.subr.bf16.mxu0 %v13880_v54  ;;  %vm14284_vm1 = vcmp.eq.s32.totalorder %v14280_v47, %v8659_v40 }
 0x1ad   : > { %6376 = vmatmul.mubr.msk.f32.gmra.mrb[18].mxu0 %vm14279_vm4, %v13805_v19  ;;  %6185 = vmatprep.mubr.msk.f32.mxu1 %vm14281_vm6, %v13805_v19  ;;  %vm14285_vm4 = vcmp.eq.s32.totalorder %v14280_v47, %v8750_v5  ;;  %v14292_v47 = vld [vmem:[#allocation66_spill] sm:$0xff] }
 0x1ae   : > { %6377 = vmatprep.mubr.msk.f32.mxu0 %vm14282_vm3, %v13805_v19  ;;  %6680 = vmatpush1.bf16.msra.mxu1 %v6679_v60  ;;  %v14286_v60 = vld [vmem:[#allocation121_spill] sm:$0xff]  ;;  %v6973_v38 = vpack.c.bf16 %v14292_v47, %v14291_v50  ;;  %v14425_v47 = vld [vmem:[#allocation142_spill] sm:$0xff] }
 0x1af   : > { %6968 = vmatpush1.bf16.msra.mxu0 %v6967_v59  ;;  %6681 = vmatprep.subr.bf16.mxu1 %v13880_v54  ;;  %vm14287_vm6 = vcmp.eq.s32.totalorder %v14286_v60, %v8669_v36  ;;  %vm14288_vm3 = vcmp.eq.s32.totalorder %v14286_v60, %v8753_v8  ;;  %v14289_v59 = vld [vmem:[#allocation62_spill] sm:$0xff] }
 0x1b0   : > { %6186 = vmatmul.mubr.msk.f32.gmra.mrb[20].mxu1 %vm14284_vm1, %v13805_v19  ;;  %6969 = vmatprep.subr.bf16.mxu0 %v13880_v54  ;;  %v6685_v45 = vpack.c.bf16 %v14290_v24, %v14289_v59  ;;  %vm14293_vm1 = vcmp.eq.s32.totalorder %v14286_v60, %v8659_v40  ;;  %v14426_v50 = vld [vmem:[#allocation30_spill] sm:$0xff]  ;;  %v14427_v24 = vld [vmem:[#allocation33_spill] sm:$0xff]  ;;  %v14430_v59 = vld [vmem:[#allocation147_spill] sm:$0xff] }
 0x1b1   : > { %6378 = vmatmul.mubr.msk.f32.gmra.mrb[20].mxu0 %vm14285_vm4, %v13805_v19  ;;  %6187 = vmatprep.mubr.msk.f32.mxu1 %vm14287_vm6, %v13805_v19  ;;  %vm14294_vm4 = vcmp.eq.s32.totalorder %v14286_v60, %v8750_v5  ;;  %v14394_v60 = vld [vmem:[#allocation107_spill] sm:$0xff] }
 0x1b2   : > { %6379 = vmatprep.mubr.msk.f32.mxu0 %vm14288_vm3, %v13805_v19  ;;  %6683 = vmatpush1.bf16.msra.mxu1 %v6682_v27  ;;  %v14295_v27 = vld [vmem:[#allocation134_spill] sm:$0xff] }
 0x1b3   : > { %6971 = vmatpush1.bf16.msra.mxu0 %v6970_v29  ;;  %6684 = vmatprep.subr.bf16.mxu1 %v13880_v54  ;;  %vm14296_vm6 = vcmp.eq.s32.totalorder %v14295_v27, %v8669_v36  ;;  %vm14297_vm3 = vcmp.eq.s32.totalorder %v14295_v27, %v8753_v8  ;;  %v14300_v29 = vld [vmem:[#allocation127_spill] sm:$0xff] }
 0x1b4   : > { %6188 = vmatmul.mubr.msk.f32.gmra.mrb[22].mxu1 %vm14293_vm1, %v13805_v19  ;;  %6972 = vmatprep.subr.bf16.mxu0 %v13880_v54  ;;  %vm14298_vm1 = vcmp.eq.s32.totalorder %v14295_v27, %v8659_v40 }
 0x1b5   : > { %6380 = vmatmul.mubr.msk.f32.gmra.mrb[22].mxu0 %vm14294_vm4, %v13805_v19  ;;  %6189 = vmatprep.mubr.msk.f32.mxu1 %vm14296_vm6, %v13805_v19  ;;  %vm14299_vm4 = vcmp.eq.s32.totalorder %v14295_v27, %v8750_v5  ;;  %vm14301_vm6 = vcmp.eq.s32.totalorder %v14300_v29, %v8753_v8  ;;  %v14308_v27 = vpack.c.bf16 %v14190_v14, %v14189_v0  ;;  %v14413_v14 = vld [vmem:[#allocation130_spill] sm:$0xff] }
 0x1b6   : > { %6381 = vmatprep.mubr.msk.f32.mxu0 %vm14297_vm3, %v13805_v19  ;;  %6686 = vmatpush1.bf16.msra.mxu1 %v6685_v45  ;;  %v14303_v45 = vpack.c.bf16 %v14174_v2, %v14173_v55  ;;  %v14315_v29 = vpack.c.bf16 %v8573_v9, %v8570_v39  ;;  %v14407_v9 = vld [vmem:[#allocation123_spill] sm:$0xff]  ;;  %v14408_v39 = vld [vmem:[#allocation12_spill] sm:$0xff]  ;;  %v14414_v0 = vld [vmem:[#allocation22_spill] sm:$0xff] }
 0x1b7   : > { %6974 = vmatpush1.bf16.msra.mxu0 %v6973_v38  ;;  %6687 = vmatprep.subr.bf16.mxu1 %v13880_v54  ;;  %v14302_v38 = vpack.c.bf16 %v14170_v46, %v14166_v53  ;;  %v14419_v2 = vld [vmem:[#allocation136_spill] sm:$0xff]  ;;  %v14420_v55 = vld [vmem:[#allocation26_spill] sm:$0xff]  ;;  %v14424_v53 = vld [vmem:[#allocation141_spill] sm:$0xff] }
 0x1b8   : > { %6190 = vmatmul.mubr.msk.f32.gmra.mrb[24].mxu1 %vm14298_vm1, %v13805_v19  ;;  %6975 = vmatprep.subr.bf16.mxu0 %v13880_v54  ;;  %v14421_v46 = vld [vmem:[#allocation28_spill] sm:$0xff] }
 0x1b9   : > { %6382 = vmatmul.mubr.msk.f32.gmra.mrb[24].mxu0 %vm14299_vm4, %v13805_v19  ;;  %6191 = vmatprep.mubr.msk.f32.mxu1 %vm331_vm12, %v13805_v19 }
 0x1ba   : > { %6383 = vmatprep.mubr.msk.f32.mxu0 %vm14301_vm6, %v13805_v19  ;;  %6689 = vmatpush1.bf16.msra.mxu1 %v14302_v38  ;;  %v14304_v38 = vld [vmem:[#allocation140_spill] sm:$0xff] }
 0x1bb   : > { %6977 = vmatpush1.bf16.msra.mxu0 %v14303_v45  ;;  %6690 = vmatprep.subr.bf16.mxu1 %v13880_v54  ;;  %vm14305_vm3 = vcmp.eq.s32.totalorder %v14304_v38, %v8669_v36  ;;  %vm14306_vm1 = vcmp.eq.s32.totalorder %v14304_v38, %v8753_v8  ;;  %v14307_v45 = vpack.c.bf16 %v14183_v35, %v14182_v4  ;;  %v14415_v35 = vld [vmem:[#allocation25_spill] sm:$0xff]  ;;  %v14418_v4 = vld [vmem:[#allocation135_spill] sm:$0xff] }
 0x1bc   : > { %6192 = vmatmul.mubr.msk.f32.gmra.mrb[26].mxu1 %vm330_vm14, %v13805_v19  ;;  %6978 = vmatprep.subr.bf16.mxu0 %v13880_v54  ;;  %vm14309_vm4 = vcmp.eq.s32.totalorder %v14304_v38, %v8659_v40  ;;  %vm14310_vm6 = vcmp.eq.s32.totalorder %v14304_v38, %v8750_v5  ;;  %v14320_v38 = vpack.c.bf16 %v8595_v37, %v8592_v20  ;;  %v14401_v37 = vld [vmem:[#allocation118_spill] sm:$0xff]  ;;  %v14403_v20 = vld [vmem:[#allocation9_spill] sm:$0xff] }
 0x1bd   : > { %6384 = vmatmul.mubr.msk.f32.gmra.mrb[26].mxu0 %vm332_vm8, %v13805_v19  ;;  %6193 = vmatprep.mubr.msk.f32.mxu1 %vm14305_vm3, %v13805_v19 }
 0x1be   : > { %6385 = vmatprep.mubr.msk.f32.mxu0 %vm14306_vm1, %v13805_v19  ;;  %6692 = vmatpush1.bf16.msra.mxu1 %v14307_v45  ;;  %v14311_v45 = vld [vmem:[#allocation133_spill] sm:$0xff] }
 0x1bf   : > { %6980 = vmatpush1.bf16.msra.mxu0 %v14308_v27  ;;  %6693 = vmatprep.subr.bf16.mxu1 %v13880_v54  ;;  %vm14312_vm3 = vcmp.eq.s32.totalorder %v14311_v45, %v8669_v36  ;;  %vm14313_vm1 = vcmp.eq.s32.totalorder %v14311_v45, %v8753_v8  ;;  %v14314_v27 = vpack.c.bf16 %v14199_v22, %v14198_v63  ;;  %v14409_v22 = vld [vmem:[#allocation17_spill] sm:$0xff] }
 0x1c0   : > { %6194 = vmatmul.mubr.msk.f32.gmra.mrb[28].mxu1 %vm14309_vm4, %v13805_v19  ;;  %6981 = vmatprep.subr.bf16.mxu0 %v13880_v54  ;;  %vm14316_vm4 = vcmp.eq.s32.totalorder %v14311_v45, %v8659_v40  ;;  %v14393_v45 = vld [vmem:[#allocation5_spill] sm:$0xff] }
 0x1c1   : > { %6386 = vmatmul.mubr.msk.f32.gmra.mrb[28].mxu0 %vm14310_vm6, %v13805_v19  ;;  %6195 = vmatprep.mubr.msk.f32.mxu1 %vm14312_vm3, %v13805_v19  ;;  %v14412_v63 = vld [vmem:[#allocation129_spill] sm:$0xff] }
 0x1c2   : > { %6387 = vmatprep.mubr.msk.f32.mxu0 %vm14313_vm1, %v13805_v19  ;;  %6695 = vmatpush1.bf16.msra.mxu1 %v14314_v27  ;;  %v14317_v27 = vld [vmem:[#allocation145_spill] sm:$0xff] }
 0x1c3   : > { %6983 = vmatpush1.bf16.msra.mxu0 %v14315_v29  ;;  %6696 = vmatprep.subr.bf16.mxu1 %v13880_v54  ;;  %vm14318_vm6 = vcmp.eq.s32.totalorder %v14317_v27, %v8669_v36  ;;  %v14319_v29 = vpack.c.bf16 %v8581_v32, %v8578_v26  ;;  %vm14321_vm3 = vcmp.eq.s32.totalorder %v14317_v27, %v8659_v40  ;;  %v14405_v32 = vld [vmem:[#allocation120_spill] sm:$0xff]  ;;  %v14406_v26 = vld [vmem:[#allocation122_spill] sm:$0xff] }
 0x1c4   : > { %6196 = vmatmul.mubr.msk.f32.gmra.mrb[30].mxu1 %vm14316_vm4, %v13805_v19  ;;  %6984 = vmatprep.subr.bf16.mxu0 %v13880_v54  ;;  %vm14322_vm1 = vcmp.eq.s32.totalorder %v14317_v27, %v8750_v5  ;;  %v14392_v27 = vld [vmem:[#allocation106_spill] sm:$0xff] }
 0x1c5   : > { %6388 = vmatmul.mubr.msk.f32.gmra.mrb[30].mxu0 %vm340_vm7, %v13805_v19  ;;  %6197 = vmatprep.mubr.msk.f32.mxu1 %vm14318_vm6, %v13805_v19 }
 0x1c6   : > { %6389 = vmatprep.mubr.msk.f32.mxu0 %vm13779_vm10, %v13805_v19  ;;  %6698 = vmatpush1.bf16.msra.mxu1 %v14319_v29  ;;  %v14323_v29 = vld [vmem:[#allocation137_spill] sm:$0xff] }
 0x1c7   : > { %6986 = vmatpush1.bf16.msra.mxu0 %v14320_v38  ;;  %6699 = vmatprep.subr.bf16.mxu1 %v13880_v54  ;;  %vm14324_vm4 = vcmp.eq.s32.totalorder %v14323_v29, %v8669_v36  ;;  %vm14325_vm6 = vcmp.eq.s32.totalorder %v14323_v29, %v8753_v8  ;;  %vm14327_vm10 = vcmp.eq.s32.totalorder %v14323_v29, %v8750_v5  ;;  %v14328_v38 = vld [vmem:[#allocation150_spill] sm:$0xff] }
 0x1c8   : > { %6198 = vmatmul.mubr.msk.f32.gmra.mrb[32].mxu1 %vm14321_vm3, %v13805_v19  ;;  %6987 = vmatprep.subr.bf16.mxu0 %v13880_v54  ;;  %vm14326_vm3 = vcmp.eq.s32.totalorder %v14323_v29, %v8659_v40  ;;  %v14333_v29 = vld [vmem:[#allocation143_spill] sm:$0xff] }
 0x1c9   : > { %6390 = vmatmul.mubr.msk.f32.gmra.mrb[32].mxu0 %vm14322_vm1, %v13805_v19  ;;  %6199 = vmatprep.mubr.msk.f32.mxu1 %vm14324_vm4, %v13805_v19  ;;  %vm14329_vm1 = vcmp.eq.s32.totalorder %v14328_v38, %v8669_v36  ;;  %vm14330_vm4 = vcmp.eq.s32.totalorder %v14328_v38, %v8753_v8 }
 0x1ca   : > { %6391 = vmatprep.mubr.msk.f32.mxu0 %vm14325_vm6, %v13805_v19  ;;  %vm14331_vm6 = vcmp.eq.s32.totalorder %v14328_v38, %v8659_v40 }
 0x1cc   : > { %6200 = vmatmul.mubr.msk.f32.gmra.mrb[34].mxu1 %vm14326_vm3, %v13805_v19  ;;  %vm14332_vm3 = vcmp.eq.s32.totalorder %v14328_v38, %v8750_v5  ;;  %v14338_v38 = vld [vmem:[#allocation156_spill] sm:$0xff] }
 0x1cd   : > { %6392 = vmatmul.mubr.msk.f32.gmra.mrb[34].mxu0 %vm14327_vm10, %v13805_v19  ;;  %6201 = vmatprep.mubr.msk.f32.mxu1 %vm14329_vm1, %v13805_v19  ;;  %vm14334_vm10 = vcmp.eq.s32.totalorder %v14333_v29, %v8669_v36  ;;  %vm14335_vm1 = vcmp.eq.s32.totalorder %v14333_v29, %v8753_v8 }
 0x1ce   : > { %6393 = vmatprep.mubr.msk.f32.mxu0 %vm14330_vm4, %v13805_v19  ;;  %vm14336_vm4 = vcmp.eq.s32.totalorder %v14333_v29, %v8659_v40 }
 0x1d0   : > { %6202 = vmatmul.mubr.msk.f32.gmra.mrb[36].mxu1 %vm14331_vm6, %v13805_v19  ;;  %vm14337_vm6 = vcmp.eq.s32.totalorder %v14333_v29, %v8750_v5  ;;  %v14343_v29 = vld [vmem:[#allocation149_spill] sm:$0xff] }
 0x1d1   : > { %6394 = vmatmul.mubr.msk.f32.gmra.mrb[36].mxu0 %vm14332_vm3, %v13805_v19  ;;  %6203 = vmatprep.mubr.msk.f32.mxu1 %vm14334_vm10, %v13805_v19  ;;  %vm14339_vm3 = vcmp.eq.s32.totalorder %v14338_v38, %v8669_v36  ;;  %vm14340_vm10 = vcmp.eq.s32.totalorder %v14338_v38, %v8753_v8 }
 0x1d2   : > { %6395 = vmatprep.mubr.msk.f32.mxu0 %vm14335_vm1, %v13805_v19  ;;  %vm14341_vm1 = vcmp.eq.s32.totalorder %v14338_v38, %v8659_v40 }
 0x1d4   : > { %6204 = vmatmul.mubr.msk.f32.gmra.mrb[38].mxu1 %vm14336_vm4, %v13805_v19  ;;  %vm14342_vm4 = vcmp.eq.s32.totalorder %v14338_v38, %v8750_v5  ;;  %v14348_v38 = vld [vmem:[#allocation161_spill] sm:$0xff] }
 0x1d5   : > { %6396 = vmatmul.mubr.msk.f32.gmra.mrb[38].mxu0 %vm14337_vm6, %v13805_v19  ;;  %6205 = vmatprep.mubr.msk.f32.mxu1 %vm14339_vm3, %v13805_v19  ;;  %vm14344_vm6 = vcmp.eq.s32.totalorder %v14343_v29, %v8669_v36  ;;  %vm14345_vm3 = vcmp.eq.s32.totalorder %v14343_v29, %v8753_v8 }
 0x1d6   : > { %6397 = vmatprep.mubr.msk.f32.mxu0 %vm14340_vm10, %v13805_v19  ;;  %vm14346_vm10 = vcmp.eq.s32.totalorder %v14343_v29, %v8659_v40 }
 0x1d8   : > { %6206 = vmatmul.mubr.msk.f32.gmra.mrb[40].mxu1 %vm14341_vm1, %v13805_v19  ;;  %vm14347_vm1 = vcmp.eq.s32.totalorder %v14343_v29, %v8750_v5  ;;  %v14353_v29 = vld [vmem:[#allocation155_spill] sm:$0xff] }
 0x1d9   : > { %6398 = vmatmul.mubr.msk.f32.gmra.mrb[40].mxu0 %vm14342_vm4, %v13805_v19  ;;  %6207 = vmatprep.mubr.msk.f32.mxu1 %vm14344_vm6, %v13805_v19  ;;  %vm14349_vm4 = vcmp.eq.s32.totalorder %v14348_v38, %v8669_v36  ;;  %vm14350_vm6 = vcmp.eq.s32.totalorder %v14348_v38, %v8753_v8 }
 0x1da   : > { %6399 = vmatprep.mubr.msk.f32.mxu0 %vm14345_vm3, %v13805_v19  ;;  %vm14351_vm3 = vcmp.eq.s32.totalorder %v14348_v38, %v8659_v40 }
 0x1dc   : > { %6208 = vmatmul.mubr.msk.f32.gmra.mrb[42].mxu1 %vm14346_vm10, %v13805_v19  ;;  %vm14352_vm10 = vcmp.eq.s32.totalorder %v14348_v38, %v8750_v5  ;;  %v14358_v38 = vld [vmem:[#allocation166_spill] sm:$0xff] }
 0x1dd   : > { %6400 = vmatmul.mubr.msk.f32.gmra.mrb[42].mxu0 %vm14347_vm1, %v13805_v19  ;;  %6209 = vmatprep.mubr.msk.f32.mxu1 %vm14349_vm4, %v13805_v19  ;;  %vm14354_vm1 = vcmp.eq.s32.totalorder %v14353_v29, %v8669_v36  ;;  %vm14355_vm4 = vcmp.eq.s32.totalorder %v14353_v29, %v8753_v8 }
 0x1de   : > { %6401 = vmatprep.mubr.msk.f32.mxu0 %vm14350_vm6, %v13805_v19  ;;  %vm14356_vm6 = vcmp.eq.s32.totalorder %v14353_v29, %v8659_v40 }
 0x1e0   : > { %6210 = vmatmul.mubr.msk.f32.gmra.mrb[44].mxu1 %vm14351_vm3, %v13805_v19  ;;  %vm14357_vm3 = vcmp.eq.s32.totalorder %v14353_v29, %v8750_v5  ;;  %v14363_v29 = vld [vmem:[#allocation160_spill] sm:$0xff] }
 0x1e1   : > { %6402 = vmatmul.mubr.msk.f32.gmra.mrb[44].mxu0 %vm14352_vm10, %v13805_v19  ;;  %6211 = vmatprep.mubr.msk.f32.mxu1 %vm14354_vm1, %v13805_v19  ;;  %vm14359_vm10 = vcmp.eq.s32.totalorder %v14358_v38, %v8669_v36  ;;  %vm14360_vm1 = vcmp.eq.s32.totalorder %v14358_v38, %v8753_v8 }
 0x1e2   : > { %6403 = vmatprep.mubr.msk.f32.mxu0 %vm14355_vm4, %v13805_v19  ;;  %vm14361_vm4 = vcmp.eq.s32.totalorder %v14358_v38, %v8659_v40 }
 0x1e4   : > { %6212 = vmatmul.mubr.msk.f32.gmra.mrb[46].mxu1 %vm14356_vm6, %v13805_v19  ;;  %vm14362_vm6 = vcmp.eq.s32.totalorder %v14358_v38, %v8750_v5  ;;  %v14368_v38 = vld [vmem:[#allocation172_spill] sm:$0xff] }
 0x1e5   : > { %6404 = vmatmul.mubr.msk.f32.gmra.mrb[46].mxu0 %vm14357_vm3, %v13805_v19  ;;  %6213 = vmatprep.mubr.msk.f32.mxu1 %vm14359_vm10, %v13805_v19  ;;  %vm14364_vm3 = vcmp.eq.s32.totalorder %v14363_v29, %v8669_v36  ;;  %vm14365_vm10 = vcmp.eq.s32.totalorder %v14363_v29, %v8753_v8 }
 0x1e6   : > { %6405 = vmatprep.mubr.msk.f32.mxu0 %vm14360_vm1, %v13805_v19  ;;  %vm14366_vm1 = vcmp.eq.s32.totalorder %v14363_v29, %v8659_v40 }
 0x1e8   : > { %6214 = vmatmul.mubr.msk.f32.gmra.mrb[48].mxu1 %vm14361_vm4, %v13805_v19  ;;  %vm14367_vm4 = vcmp.eq.s32.totalorder %v14363_v29, %v8750_v5  ;;  %v14373_v29 = vld [vmem:[#allocation165_spill] sm:$0xff] }
 0x1e9   : > { %6406 = vmatmul.mubr.msk.f32.gmra.mrb[48].mxu0 %vm14362_vm6, %v13805_v19  ;;  %6215 = vmatprep.mubr.msk.f32.mxu1 %vm14364_vm3, %v13805_v19  ;;  %vm14369_vm6 = vcmp.eq.s32.totalorder %v14368_v38, %v8669_v36  ;;  %vm14370_vm3 = vcmp.eq.s32.totalorder %v14368_v38, %v8753_v8 }
 0x1ea   : > { %6407 = vmatprep.mubr.msk.f32.mxu0 %vm14365_vm10, %v13805_v19  ;;  %vm14371_vm10 = vcmp.eq.s32.totalorder %v14368_v38, %v8659_v40 }
 0x1ec   : > { %6216 = vmatmul.mubr.msk.f32.gmra.mrb[50].mxu1 %vm14366_vm1, %v13805_v19  ;;  %vm14372_vm1 = vcmp.eq.s32.totalorder %v14368_v38, %v8750_v5  ;;  %v14380_v38 = vld [vmem:[#allocation182_spill] sm:$0xff] }
 0x1ed   : > { %6408 = vmatmul.mubr.msk.f32.gmra.mrb[50].mxu0 %vm14367_vm4, %v13805_v19  ;;  %6217 = vmatprep.mubr.msk.f32.mxu1 %vm14369_vm6, %v13805_v19  ;;  %vm14374_vm4 = vcmp.eq.s32.totalorder %v14373_v29, %v8669_v36  ;;  %vm14375_vm6 = vcmp.eq.s32.totalorder %v14373_v29, %v8753_v8 }
 0x1ee   : > { %6409 = vmatprep.mubr.msk.f32.mxu0 %vm14370_vm3, %v13805_v19  ;;  %vm14376_vm3 = vcmp.eq.s32.totalorder %v14373_v29, %v8750_v5  ;;  %v14391_v29 = vld [vmem:[#allocation105_spill] sm:$0xff] }
 0x1f0   : > { %6218 = vmatmul.mubr.msk.f32.gmra.mrb[52].mxu1 %vm14371_vm10, %v13805_v19  ;;  %vm14378_vm10 = vcmp.eq.s32.totalorder %v9462_v6, %v8659_v40 }
 0x1f1   : > { %6410 = vmatmul.mubr.msk.f32.gmra.mrb[52].mxu0 %vm14372_vm1, %v13805_v19  ;;  %6219 = vmatprep.mubr.msk.f32.mxu1 %vm14374_vm4, %v13805_v19  ;;  %vm14379_vm1 = vcmp.eq.s32.totalorder %v9462_v6, %v8750_v5  ;;  %vm14381_vm4 = vcmp.eq.s32.totalorder %v14380_v38, %v8669_v36  ;;  %v14385_v6 = vld [vmem:[#allocation177_spill] sm:$0xff] }
 0x1f2   : > { %6411 = vmatprep.mubr.msk.f32.mxu0 %vm14375_vm6, %v13805_v19  ;;  %vm14382_vm6 = vcmp.eq.s32.totalorder %v14380_v38, %v8753_v8 }
 0x1f4   : > { %6220 = vmatmul.mubr.msk.f32.gmra.mrb[54].mxu1 %vm386_vm9, %v13805_v19 }
 0x1f5   : > { %6412 = vmatmul.mubr.msk.f32.gmra.mrb[54].mxu0 %vm14376_vm3, %v13805_v19  ;;  %6221 = vmatprep.mubr.msk.f32.mxu1 %vm391_vm5, %v13805_v19  ;;  %vm14383_vm3 = vcmp.eq.s32.totalorder %v14380_v38, %v8659_v40 }
 0x1f6   : > { %6413 = vmatprep.mubr.msk.f32.mxu0 %vm393_vm13, %v13805_v19 }
 0x1f8   : > { %6222 = vmatmul.mubr.msk.f32.gmra.mrb[56].mxu1 %vm390_vm0, %v13805_v19 }
 0x1f9   : > { %6414 = vmatmul.mubr.msk.f32.gmra.mrb[56].mxu0 %vm392_vm15, %v13805_v19  ;;  %6223 = vmatprep.mubr.msk.f32.mxu1 %vm395_vm2, %v13805_v19 }
 0x1fa   : > { %6415 = vmatprep.mubr.msk.f32.mxu0 %vm397_vm11, %v13805_v19 }
 0x1fc   : > { %6224 = vmatmul.mubr.msk.f32.gmra.mrb[58].mxu1 %vm14378_vm10, %v13805_v19  ;;  %vm14384_vm10 = vcmp.eq.s32.totalorder %v14380_v38, %v8750_v5  ;;  %v14390_v38 = vld [vmem:[#allocation104_spill] sm:$0xff] }
 0x1fd   : > { %6416 = vmatmul.mubr.msk.f32.gmra.mrb[58].mxu0 %vm14379_vm1, %v13805_v19  ;;  %6225 = vmatprep.mubr.msk.f32.mxu1 %vm14381_vm4, %v13805_v19  ;;  %vm14386_vm1 = vcmp.eq.s32.totalorder %v14385_v6, %v8669_v36  ;;  %vm14387_vm4 = vcmp.eq.s32.totalorder %v14385_v6, %v8753_v8  ;;  %v14395_v8 = vld [vmem:[#allocation6_spill] sm:$0xff]  ;;  %v14396_v36 = vld [vmem:[#allocation109_spill] sm:$0xff] }
 0x1fe   : > { %6417 = vmatprep.mubr.msk.f32.mxu0 %vm14382_vm6, %v13805_v19  ;;  %vm14388_vm6 = vcmp.eq.s32.totalorder %v14385_v6, %v8659_v40  ;;  %v14397_v40 = vld [vmem:[#allocation110_spill] sm:$0xff] }
 0x200   : > { %6226 = vmatmul.mubr.msk.f32.gmra.mrb[60].mxu1 %vm14383_vm3, %v13805_v19  ;;  %vm14389_vm3 = vcmp.eq.s32.totalorder %v14385_v6, %v8750_v5  ;;  %v14398_v6 = vld [vmem:[#allocation111_spill] sm:$0xff]  ;;  %v14400_v5 = vld [vmem:[#allocation116_spill] sm:$0xff] }
 0x201   : > { %6418 = vmatmul.mubr.msk.f32.gmra.mrb[60].mxu0 %vm14384_vm10, %v13805_v19  ;;  %6227 = vmatprep.mubr.msk.f32.mxu1 %vm14386_vm1, %v13805_v19 }
 0x202   : > { %6419 = vmatprep.mubr.msk.f32.mxu0 %vm14387_vm4, %v13805_v19 }
 0x204   : > { %6228 = vmatmul.mubr.msk.f32.gmra.mrb[62].mxu1 %vm14388_vm6, %v13805_v19 }
 0x205   : > { %6420 = vmatmul.mubr.msk.f32.gmra.mrb[62].mxu0 %vm14389_vm3, %v13805_v19  ;;  %1882 = vmatprep.mubr.f32.mxu1 %v14390_v38  ;;  %v14399_v19 = vld [vmem:[#allocation112_spill] sm:$0xff] }
 0x206   : > { %4480 = vmatprep.mubr.f32.mxu0 %v14391_v29 }
 0x208   : > { %1885 = vmatmul.mubr.f32.vlgmr.msra.gmra.mrb[0].mxu1 %v14392_v27 }
 0x209   : > { %6701 = vmatpush1.bf16.msra.mxu1 %v14393_v45  ;;  %4483 = vmatmul.mubr.f32.vlgmr.msra.gmra.mrb[0].mxu0 %v14394_v60  ;;  %v14402_v45 = vld [vmem:[#allocation7_spill] sm:$0xff] }
 0x20a   : > { %6989 = vmatpush1.bf16.msra.mxu0 %v14395_v8  ;;  %1891 = vmatprep.mubr.f32.mxu1 %v14396_v36  ;;  %v14404_v8 = vld [vmem:[#allocation119_spill] sm:$0xff] }
 0x20b   : > { %4489 = vmatprep.mubr.f32.mxu0 %v14397_v40  ;;  %6702 = vmatprep.subr.bf16.mxu1 %v13880_v54 }
 0x20c   : > { %1894 = vmatmul.mubr.f32.gmra.mrb[2].mxu1 %v14398_v6  ;;  %6990 = vmatprep.subr.bf16.mxu0 %v13880_v54 }
 0x20d   : > { %4492 = vmatmul.mubr.f32.gmra.mrb[2].mxu0 %v14399_v19  ;;  %1900 = vmatprep.mubr.f32.mxu1 %v14400_v5 }
 0x20e   : > { %4498 = vmatprep.mubr.f32.mxu0 %v14401_v37  ;;  %6704 = vmatpush1.bf16.msra.mxu1 %v14402_v45  ;;  %v14410_v45 = vld [vmem:[#allocation125_spill] sm:$0xff] }
 0x20f   : > { %6992 = vmatpush1.bf16.msra.mxu0 %v14403_v20  ;;  %6705 = vmatprep.subr.bf16.mxu1 %v13880_v54  ;;  %v14411_v20 = vld [vmem:[#allocation126_spill] sm:$0xff] }
 0x210   : > { %1903 = vmatmul.mubr.f32.gmra.mrb[4].mxu1 %v14404_v8  ;;  %6993 = vmatprep.subr.bf16.mxu0 %v13880_v54 }
 0x211   : > { %4501 = vmatmul.mubr.f32.gmra.mrb[4].mxu0 %v14405_v32  ;;  %1909 = vmatprep.mubr.f32.mxu1 %v14406_v26 }
 0x212   : > { %4507 = vmatprep.mubr.f32.mxu0 %v14407_v9  ;;  %6707 = vmatpush1.bf16.msra.mxu1 %v14408_v39  ;;  %v14416_v39 = vld [vmem:[#allocation131_spill] sm:$0xff] }
 0x213   : > { %6995 = vmatpush1.bf16.msra.mxu0 %v14409_v22  ;;  %6708 = vmatprep.subr.bf16.mxu1 %v13880_v54  ;;  %v14417_v22 = vld [vmem:[#allocation132_spill] sm:$0xff] }
 0x214   : > { %1912 = vmatmul.mubr.f32.gmra.mrb[6].mxu1 %v14410_v45  ;;  %6996 = vmatprep.subr.bf16.mxu0 %v13880_v54 }
 0x215   : > { %4510 = vmatmul.mubr.f32.gmra.mrb[6].mxu0 %v14411_v20  ;;  %1918 = vmatprep.mubr.f32.mxu1 %v14412_v63 }
 0x216   : > { %4516 = vmatprep.mubr.f32.mxu0 %v14413_v14  ;;  %6710 = vmatpush1.bf16.msra.mxu1 %v14414_v0  ;;  %v14422_v0 = vld [vmem:[#allocation138_spill] sm:$0xff] }
 0x217   : > { %6998 = vmatpush1.bf16.msra.mxu0 %v14415_v35  ;;  %6711 = vmatprep.subr.bf16.mxu1 %v13880_v54  ;;  %v14423_v35 = vld [vmem:[#allocation139_spill] sm:$0xff] }
 0x218   : > { %1921 = vmatmul.mubr.f32.gmra.mrb[8].mxu1 %v14416_v39  ;;  %6999 = vmatprep.subr.bf16.mxu0 %v13880_v54 }
 0x219   : > { %4519 = vmatmul.mubr.f32.gmra.mrb[8].mxu0 %v14417_v22  ;;  %1927 = vmatprep.mubr.f32.mxu1 %v14418_v4 }
 0x21a   : > { %4525 = vmatprep.mubr.f32.mxu0 %v14419_v2  ;;  %6713 = vmatpush1.bf16.msra.mxu1 %v14420_v55  ;;  %v14428_v55 = vld [vmem:[#allocation144_spill] sm:$0xff] }
 0x21b   : > { %7001 = vmatpush1.bf16.msra.mxu0 %v14421_v46  ;;  %6714 = vmatprep.subr.bf16.mxu1 %v13880_v54  ;;  %v14429_v46 = vld [vmem:[#allocation146_spill] sm:$0xff] }
 0x21c   : > { %1930 = vmatmul.mubr.f32.gmra.mrb[10].mxu1 %v14422_v0  ;;  %7002 = vmatprep.subr.bf16.mxu0 %v13880_v54 }
 0x21d   : > { %4528 = vmatmul.mubr.f32.gmra.mrb[10].mxu0 %v14423_v35  ;;  %1936 = vmatprep.mubr.f32.mxu1 %v14424_v53 }
 0x21e   : > { %4534 = vmatprep.mubr.f32.mxu0 %v14425_v47  ;;  %6716 = vmatpush1.bf16.msra.mxu1 %v14426_v50  ;;  %v14434_v50 = vld [vmem:[#allocation151_spill] sm:$0xff] }
 0x21f   : > { %7004 = vmatpush1.bf16.msra.mxu0 %v14427_v24  ;;  %6717 = vmatprep.subr.bf16.mxu1 %v13880_v54  ;;  %v14435_v24 = vld [vmem:[#allocation152_spill] sm:$0xff] }
 0x220   : > { %1939 = vmatmul.mubr.f32.gmra.mrb[12].mxu1 %v14428_v55  ;;  %7005 = vmatprep.subr.bf16.mxu0 %v13880_v54 }
 0x221   : > { %4537 = vmatmul.mubr.f32.gmra.mrb[12].mxu0 %v14429_v46  ;;  %1945 = vmatprep.mubr.f32.mxu1 %v14430_v59 }
 0x222   : > { %4543 = vmatprep.mubr.f32.mxu0 %v14431_v13  ;;  %6719 = vmatpush1.bf16.msra.mxu1 %v14432_v3  ;;  %v14440_v3 = vld [vmem:[#allocation157_spill] sm:$0xff]  ;;  %v14499_v13 = vld [vmem:[#allocation216_spill] sm:$0xff] }
 0x223   : > { %7007 = vmatpush1.bf16.msra.mxu0 %v14433_v7  ;;  %6720 = vmatprep.subr.bf16.mxu1 %v13880_v54  ;;  %v14441_v7 = vld [vmem:[#allocation158_spill] sm:$0xff] }
 0x224   : > { %1948 = vmatmul.mubr.f32.gmra.mrb[14].mxu1 %v14434_v50  ;;  %7008 = vmatprep.subr.bf16.mxu0 %v13880_v54  ;;  %v14442_v50 = vld [vmem:[#allocation159_spill] sm:$0xff] }
 0x225   : > { %4546 = vmatmul.mubr.f32.gmra.mrb[14].mxu0 %v14435_v24  ;;  %1954 = vmatprep.mubr.f32.mxu1 %v14436_v10  ;;  %v14444_v24 = vld [vmem:[#allocation56_spill] sm:$0xff]  ;;  %v14445_v10 = vld [vmem:[#allocation57_spill] sm:$0xff] }
 0x226   : > { %4552 = vmatprep.mubr.f32.mxu0 %v14437_v30  ;;  %6722 = vmatpush1.bf16.msra.mxu1 %v14438_v31  ;;  %v14446_v31 = vld [vmem:[#allocation163_spill] sm:$0xff]  ;;  %v14449_v30 = vld [vmem:[#allocation168_spill] sm:$0xff] }
 0x227   : > { %7010 = vmatpush1.bf16.msra.mxu0 %v14439_v62  ;;  %6723 = vmatprep.subr.bf16.mxu1 %v13880_v54  ;;  %v14447_v62 = vld [vmem:[#allocation164_spill] sm:$0xff] }
 0x228   : > { %1957 = vmatmul.mubr.f32.gmra.mrb[16].mxu1 %v14440_v3  ;;  %7011 = vmatprep.subr.bf16.mxu0 %v13880_v54  ;;  %v14448_v3 = vld [vmem:[#allocation167_spill] sm:$0xff] }
 0x229   : > { %4555 = vmatmul.mubr.f32.gmra.mrb[16].mxu0 %v14441_v7  ;;  %1963 = vmatprep.mubr.f32.mxu1 %v14442_v50  ;;  %v14450_v7 = vld [vmem:[#allocation63_spill] sm:$0xff]  ;;  %v14451_v50 = vld [vmem:[#allocation68_spill] sm:$0xff] }
 0x22a   : > { %4561 = vmatprep.mubr.f32.mxu0 %v14443_v44  ;;  %6725 = vmatpush1.bf16.msra.mxu1 %v14444_v24  ;;  %v14452_v24 = vld [vmem:[#allocation169_spill] sm:$0xff]  ;;  %v14455_v44 = vld [vmem:[#allocation174_spill] sm:$0xff] }
 0x22b   : > { %7013 = vmatpush1.bf16.msra.mxu0 %v14445_v10  ;;  %6726 = vmatprep.subr.bf16.mxu1 %v13880_v54  ;;  %v14453_v10 = vld [vmem:[#allocation170_spill] sm:$0xff] }
 0x22c   : > { %1966 = vmatmul.mubr.f32.gmra.mrb[18].mxu1 %v14446_v31  ;;  %7014 = vmatprep.subr.bf16.mxu0 %v13880_v54  ;;  %v14454_v31 = vld [vmem:[#allocation173_spill] sm:$0xff] }
 0x22d   : > { %4564 = vmatmul.mubr.f32.gmra.mrb[18].mxu0 %v14447_v62  ;;  %1972 = vmatprep.mubr.f32.mxu1 %v14448_v3  ;;  %v14456_v62 = vld [vmem:[#allocation72_spill] sm:$0xff] }
 0x22e   : > { %4570 = vmatprep.mubr.f32.mxu0 %v14449_v30  ;;  %6728 = vmatpush1.bf16.msra.mxu1 %v14450_v7  ;;  %v14457_v3 = vld [vmem:[#allocation76_spill] sm:$0xff]  ;;  %v14458_v7 = vld [vmem:[#allocation175_spill] sm:$0xff] }
 0x22f   : > { %7016 = vmatpush1.bf16.msra.mxu0 %v14451_v50  ;;  %6729 = vmatprep.subr.bf16.mxu1 %v13880_v54  ;;  %v14459_v50 = vld [vmem:[#allocation176_spill] sm:$0xff] }
 0x230   : > { %1975 = vmatmul.mubr.f32.gmra.mrb[20].mxu1 %v14452_v24  ;;  %7017 = vmatprep.subr.bf16.mxu0 %v13880_v54  ;;  %v14460_v24 = vld [vmem:[#allocation179_spill] sm:$0xff]  ;;  %v14461_v30 = vld [vmem:[#allocation180_spill] sm:$0xff] }
 0x231   : > { %4573 = vmatmul.mubr.f32.gmra.mrb[20].mxu0 %v14453_v10  ;;  %1981 = vmatprep.mubr.f32.mxu1 %v14454_v31  ;;  %v14462_v10 = vld [vmem:[#allocation80_spill] sm:$0xff]  ;;  %v14463_v31 = vld [vmem:[#allocation85_spill] sm:$0xff] }
 0x232   : > { %4579 = vmatprep.mubr.f32.mxu0 %v14455_v44  ;;  %6731 = vmatpush1.bf16.msra.mxu1 %v14456_v62  ;;  %v14464_v62 = vld [vmem:[#allocation185_spill] sm:$0xff]  ;;  %v14467_v44 = vld [vmem:[#allocation192_spill] sm:$0xff] }
 0x233   : > { %7019 = vmatpush1.bf16.msra.mxu0 %v14457_v3  ;;  %6732 = vmatprep.subr.bf16.mxu1 %v13880_v54  ;;  %v14465_v3 = vld [vmem:[#allocation186_spill] sm:$0xff] }
 0x234   : > { %1984 = vmatmul.mubr.f32.gmra.mrb[22].mxu1 %v14458_v7  ;;  %7020 = vmatprep.subr.bf16.mxu0 %v13880_v54  ;;  %v14466_v7 = vld [vmem:[#allocation191_spill] sm:$0xff] }
 0x235   : > { %4582 = vmatmul.mubr.f32.gmra.mrb[22].mxu0 %v14459_v50  ;;  %1990 = vmatprep.mubr.f32.mxu1 %v14460_v24  ;;  %v14468_v50 = vld [vmem:[#allocation88_spill] sm:$0xff]  ;;  %v14469_v24 = vld [vmem:[#allocation89_spill] sm:$0xff] }
 0x236   : > { %4588 = vmatprep.mubr.f32.mxu0 %v14461_v30  ;;  %6734 = vmatpush1.bf16.msra.mxu1 %v14462_v10  ;;  %v14470_v10 = vld [vmem:[#allocation193_spill] sm:$0xff]  ;;  %v14473_v30 = vld [vmem:[#allocation196_spill] sm:$0xff] }
 0x237   : > { %7022 = vmatpush1.bf16.msra.mxu0 %v14463_v31  ;;  %6735 = vmatprep.subr.bf16.mxu1 %v13880_v54  ;;  %v14471_v31 = vld [vmem:[#allocation194_spill] sm:$0xff] }
 0x238   : > { %1993 = vmatmul.mubr.f32.gmra.mrb[24].mxu1 %v14464_v62  ;;  %7023 = vmatprep.subr.bf16.mxu0 %v13880_v54  ;;  %v14472_v62 = vld [vmem:[#allocation195_spill] sm:$0xff] }
 0x239   : > { %4591 = vmatmul.mubr.f32.gmra.mrb[24].mxu0 %v14465_v3  ;;  %1999 = vmatprep.mubr.f32.mxu1 %v14466_v7  ;;  %v14474_v3 = vld [vmem:[#allocation90_spill] sm:$0xff]  ;;  %v14475_v7 = vld [vmem:[#allocation91_spill] sm:$0xff] }
 0x23a   : > { %4597 = vmatprep.mubr.f32.mxu0 %v14467_v44  ;;  %6737 = vmatpush1.bf16.msra.mxu1 %v14468_v50  ;;  %v14476_v50 = vld [vmem:[#allocation197_spill] sm:$0xff]  ;;  %v14479_v44 = vld [vmem:[#allocation200_spill] sm:$0xff] }
 0x23b   : > { %7025 = vmatpush1.bf16.msra.mxu0 %v14469_v24  ;;  %6738 = vmatprep.subr.bf16.mxu1 %v13880_v54  ;;  %v14477_v24 = vld [vmem:[#allocation198_spill] sm:$0xff] }
 0x23c   : > { %2002 = vmatmul.mubr.f32.gmra.mrb[26].mxu1 %v14470_v10  ;;  %7026 = vmatprep.subr.bf16.mxu0 %v13880_v54  ;;  %v14478_v10 = vld [vmem:[#allocation199_spill] sm:$0xff] }
 0x23d   : > { %4600 = vmatmul.mubr.f32.gmra.mrb[26].mxu0 %v14471_v31  ;;  %2008 = vmatprep.mubr.f32.mxu1 %v14472_v62  ;;  %v14480_v31 = vld [vmem:[#allocation92_spill] sm:$0xff]  ;;  %v14481_v62 = vld [vmem:[#allocation93_spill] sm:$0xff] }
 0x23e   : > { %4606 = vmatprep.mubr.f32.mxu0 %v14473_v30  ;;  %6740 = vmatpush1.bf16.msra.mxu1 %v14474_v3  ;;  %v14482_v3 = vld [vmem:[#allocation201_spill] sm:$0xff]  ;;  %v14485_v30 = vld [vmem:[#allocation204_spill] sm:$0xff] }
 0x23f   : > { %7028 = vmatpush1.bf16.msra.mxu0 %v14475_v7  ;;  %6741 = vmatprep.subr.bf16.mxu1 %v13880_v54  ;;  %v14483_v7 = vld [vmem:[#allocation202_spill] sm:$0xff] }
 0x240   : > { %2011 = vmatmul.mubr.f32.gmra.mrb[28].mxu1 %v14476_v50  ;;  %7029 = vmatprep.subr.bf16.mxu0 %v13880_v54  ;;  %v14484_v50 = vld [vmem:[#allocation203_spill] sm:$0xff] }
 0x241   : > { %4609 = vmatmul.mubr.f32.gmra.mrb[28].mxu0 %v14477_v24  ;;  %2017 = vmatprep.mubr.f32.mxu1 %v14478_v10  ;;  %v14486_v24 = vld [vmem:[#allocation94_spill] sm:$0xff]  ;;  %v14487_v10 = vld [vmem:[#allocation95_spill] sm:$0xff] }
 0x242   : > { %4615 = vmatprep.mubr.f32.mxu0 %v14479_v44  ;;  %6743 = vmatpush1.bf16.msra.mxu1 %v14480_v31  ;;  %v14488_v31 = vld [vmem:[#allocation205_spill] sm:$0xff]  ;;  %v14491_v44 = vld [vmem:[#allocation208_spill] sm:$0xff] }
 0x243   : > { %7031 = vmatpush1.bf16.msra.mxu0 %v14481_v62  ;;  %6744 = vmatprep.subr.bf16.mxu1 %v13880_v54  ;;  %v14489_v62 = vld [vmem:[#allocation206_spill] sm:$0xff] }
 0x244   : > { %2020 = vmatmul.mubr.f32.gmra.mrb[30].mxu1 %v14482_v3  ;;  %7032 = vmatprep.subr.bf16.mxu0 %v13880_v54  ;;  %v14490_v3 = vld [vmem:[#allocation207_spill] sm:$0xff] }
 0x245   : > { %4618 = vmatmul.mubr.f32.gmra.mrb[30].mxu0 %v14483_v7  ;;  %2026 = vmatprep.mubr.f32.mxu1 %v14484_v50  ;;  %v14492_v7 = vld [vmem:[#allocation209_spill] sm:$0xff]  ;;  %v14493_v50 = vld [vmem:[#allocation210_spill] sm:$0xff] }
 0x246   : > { %4624 = vmatprep.mubr.f32.mxu0 %v14485_v30  ;;  %6746 = vmatpush1.bf16.msra.mxu1 %v14486_v24  ;;  %v14494_v30 = vld [vmem:[#allocation211_spill] sm:$0xff]  ;;  %v14495_v24 = vld [vmem:[#allocation212_spill] sm:$0xff] }
 0x247   : > { %7034 = vmatpush1.bf16.msra.mxu0 %v14487_v10  ;;  %6747 = vmatprep.subr.bf16.mxu1 %v13880_v54  ;;  %v14496_v10 = vld [vmem:[#allocation213_spill] sm:$0xff] }
 0x248   : > { %2029 = vmatmul.mubr.f32.gmra.mrb[32].mxu1 %v14488_v31  ;;  %7035 = vmatprep.subr.bf16.mxu0 %v13880_v54  ;;  %v14498_v31 = vld [vmem:[#allocation215_spill] sm:$0xff] }
 0x249   : > { %4627 = vmatmul.mubr.f32.gmra.mrb[32].mxu0 %v14489_v62  ;;  %2035 = vmatprep.mubr.f32.mxu1 %v14490_v3  ;;  %v14500_v62 = vld [vmem:[#allocation217_spill] sm:$0xff]  ;;  %v14501_v3 = vld [vmem:[#allocation218_spill] sm:$0xff] }
 0x24a   : > { %4633 = vmatprep.mubr.f32.mxu0 %v14491_v44  ;;  %v14502_v44 = vld [vmem:[#allocation219_spill] sm:$0xff] }
 0x24c   : > { %2038 = vmatmul.mubr.f32.gmra.mrb[34].mxu1 %v14492_v7  ;;  %v14503_v7 = vld [vmem:[#allocation220_spill] sm:$0xff] }
 0x24d   : > { %4636 = vmatmul.mubr.f32.gmra.mrb[34].mxu0 %v14493_v50  ;;  %2044 = vmatprep.mubr.f32.mxu1 %v14494_v30  ;;  %v14504_v50 = vld [vmem:[#allocation221_spill] sm:$0xff]  ;;  %v14505_v30 = vld [vmem:[#allocation222_spill] sm:$0xff] }
 0x24e   : > { %4642 = vmatprep.mubr.f32.mxu0 %v14495_v24  ;;  %v14506_v24 = vld [vmem:[#allocation223_spill] sm:$0xff] }
 0x250   : > { %2047 = vmatmul.mubr.f32.gmra.mrb[36].mxu1 %v14496_v10  ;;  %v14507_v10 = vld [vmem:[#allocation224_spill] sm:$0xff] }
 0x251   : > { %4645 = vmatmul.mubr.f32.gmra.mrb[36].mxu0 %v14497_v51  ;;  %2053 = vmatprep.mubr.f32.mxu1 %v14498_v31  ;;  %v14508_v51 = vld [vmem:[#allocation225_spill] sm:$0xff]  ;;  %v14509_v31 = vld [vmem:[#allocation226_spill] sm:$0xff] }
 0x252   : > { %4651 = vmatprep.mubr.f32.mxu0 %v14499_v13  ;;  %v14510_v13 = vld [vmem:[#allocation227_spill] sm:$0xff] }
 0x254   : > { %2056 = vmatmul.mubr.f32.gmra.mrb[38].mxu1 %v14500_v62  ;;  %v14511_v62 = vld [vmem:[#allocation228_spill] sm:$0xff] }
 0x255   : > { %4654 = vmatmul.mubr.f32.gmra.mrb[38].mxu0 %v14501_v3  ;;  %2062 = vmatprep.mubr.f32.mxu1 %v14502_v44  ;;  %v14512_v3 = vld [vmem:[#allocation229_spill] sm:$0xff]  ;;  %v14513_v44 = vld [vmem:[#allocation230_spill] sm:$0xff] }
 0x256   : > { %4660 = vmatprep.mubr.f32.mxu0 %v14503_v7  ;;  %v14514_v7 = vld [vmem:[#allocation231_spill] sm:$0xff] }
 0x258   : > { %2065 = vmatmul.mubr.f32.gmra.mrb[40].mxu1 %v14504_v50  ;;  %v14515_v50 = vld [vmem:[#allocation232_spill] sm:$0xff] }
 0x259   : > { %4663 = vmatmul.mubr.f32.gmra.mrb[40].mxu0 %v14505_v30  ;;  %2071 = vmatprep.mubr.f32.mxu1 %v14506_v24  ;;  %v14516_v30 = vld [vmem:[#allocation233_spill] sm:$0xff]  ;;  %v14517_v24 = vld [vmem:[#allocation234_spill] sm:$0xff] }
 0x25a   : > { %4669 = vmatprep.mubr.f32.mxu0 %v14507_v10  ;;  %v14518_v10 = vld [vmem:[#allocation235_spill] sm:$0xff] }
 0x25c   : > { %2074 = vmatmul.mubr.f32.gmra.mrb[42].mxu1 %v14508_v51  ;;  %v14519_v51 = vld [vmem:[#allocation236_spill] sm:$0xff] }
 0x25d   : > { %4672 = vmatmul.mubr.f32.gmra.mrb[42].mxu0 %v14509_v31  ;;  %2080 = vmatprep.mubr.f32.mxu1 %v14510_v13  ;;  %v14520_v31 = vld [vmem:[#allocation237_spill] sm:$0xff]  ;;  %v14521_v13 = vld [vmem:[#allocation238_spill] sm:$0xff] }
 0x25e   : > { %4678 = vmatprep.mubr.f32.mxu0 %v14511_v62  ;;  %v14522_v62 = vld [vmem:[#allocation239_spill] sm:$0xff] }
 0x260   : > { %2083 = vmatmul.mubr.f32.gmra.mrb[44].mxu1 %v14512_v3  ;;  %v14523_v3 = vld [vmem:[#allocation240_spill] sm:$0xff] }
 0x261   : > { %4681 = vmatmul.mubr.f32.gmra.mrb[44].mxu0 %v14513_v44  ;;  %2089 = vmatprep.mubr.f32.mxu1 %v14514_v7  ;;  %v14524_v44 = vld [vmem:[#allocation241_spill] sm:$0xff]  ;;  %v14525_v7 = vld [vmem:[#allocation242_spill] sm:$0xff] }
 0x262   : > { %4687 = vmatprep.mubr.f32.mxu0 %v14515_v50  ;;  %v14526_v50 = vld [vmem:[#allocation243_spill] sm:$0xff] }
 0x264   : > { %2092 = vmatmul.mubr.f32.gmra.mrb[46].mxu1 %v14516_v30  ;;  %v14527_v30 = vld [vmem:[#allocation244_spill] sm:$0xff] }
 0x265   : > { %4690 = vmatmul.mubr.f32.gmra.mrb[46].mxu0 %v14517_v24  ;;  %2098 = vmatprep.mubr.f32.mxu1 %v14518_v10  ;;  %v14528_v24 = vld [vmem:[#allocation245_spill] sm:$0xff]  ;;  %v14529_v10 = vld [vmem:[#allocation246_spill] sm:$0xff] }
 0x266   : > { %4696 = vmatprep.mubr.f32.mxu0 %v14519_v51  ;;  %v14530_v51 = vld [vmem:[#allocation247_spill] sm:$0xff] }
 0x268   : > { %2101 = vmatmul.mubr.f32.gmra.mrb[48].mxu1 %v14520_v31  ;;  %v14531_v31 = vld [vmem:[#allocation248_spill] sm:$0xff] }
 0x269   : > { %4699 = vmatmul.mubr.f32.gmra.mrb[48].mxu0 %v14521_v13  ;;  %2107 = vmatprep.mubr.f32.mxu1 %v14522_v62  ;;  %v14532_v13 = vld [vmem:[#allocation249_spill] sm:$0xff]  ;;  %v14533_v62 = vld [vmem:[#allocation250_spill] sm:$0xff] }
 0x26a   : > { %4705 = vmatprep.mubr.f32.mxu0 %v14523_v3  ;;  %v14534_v3 = vld [vmem:[#allocation251_spill] sm:$0xff] }
 0x26c   : > { %2110 = vmatmul.mubr.f32.gmra.mrb[50].mxu1 %v14524_v44 }
 0x26d   : > { %4708 = vmatmul.mubr.f32.gmra.mrb[50].mxu0 %v14525_v7  ;;  %2116 = vmatprep.mubr.f32.mxu1 %v14526_v50  ;;  %v14535_v7 = vld [vmem:[#allocation252_spill] sm:$0xff]  ;;  %v14536_v50 = vld [vmem:[#allocation253_spill] sm:$0xff] }
 0x26e   : > { %4714 = vmatprep.mubr.f32.mxu0 %v14527_v30 }
 0x270   : > { %2119 = vmatmul.mubr.f32.gmra.mrb[52].mxu1 %v14528_v24  ;;  %v14537_v24 = vld [vmem:[#allocation254_spill] sm:$0xff] }
 0x271   : > { %4717 = vmatmul.mubr.f32.gmra.mrb[52].mxu0 %v14529_v10  ;;  %2125 = vmatprep.mubr.f32.mxu1 %v14530_v51  ;;  %v14538_v10 = vld [vmem:[#allocation255_spill] sm:$0xff] }
 0x272   : > { %4723 = vmatprep.mubr.f32.mxu0 %v14531_v31  ;;  %v14539_v31 = vld [vmem:[#allocation187_spill] sm:$0xff] }
 0x274   : > { %2128 = vmatmul.mubr.f32.gmra.mrb[54].mxu1 %v14532_v13  ;;  %v14540_v13 = vld [vmem:[#allocation189_spill] sm:$0xff] }
 0x275   : > { %4726 = vmatmul.mubr.f32.gmra.mrb[54].mxu0 %v14533_v62  ;;  %2134 = vmatprep.mubr.f32.mxu1 %v14534_v3  ;;  %v14541_v3 = vld [vmem:[#allocation190_spill] sm:$0xff] }
 0x276   : > { %4732 = vmatprep.mubr.f32.mxu0 %v10492_v12 }
 0x278   : > { %2137 = vmatmul.mubr.f32.gmra.mrb[56].mxu1 %v14535_v7 }
 0x279   : > { %4735 = vmatmul.mubr.f32.gmra.mrb[56].mxu0 %v14536_v50  ;;  %2143 = vmatprep.mubr.f32.mxu1 %v10538_v41 }
 0x27a   : > { %4741 = vmatprep.mubr.f32.mxu0 %v14537_v24 }
 0x27c   : > { %2146 = vmatmul.mubr.f32.gmra.mrb[58].mxu1 %v14538_v10  ;;  %v14542_v10 = vand.u32 4294901760, %v14390_v38  ;;  %v14549_v38 = vand.u32 4294901760, %v14394_v60  ;;  %v14577_v60 = vld [vmem:[#allocation23_spill] sm:$0xff] }
 0x27d   : > { %4744 = vmatmul.mubr.f32.gmra.mrb[58].mxu0 %v10565_v42  ;;  %2152 = vmatprep.mubr.f32.mxu1 %v14539_v31  ;;  %v14543_v42 = vand.u32 4294901760, %v8019_v16  ;;  %v14544_v31 = vand.u32 4294901760, %v8021_v17  ;;  %v14550_v16 = vand.u32 4294901760, %v14396_v36  ;;  %v14551_v17 = vand.u32 4294901760, %v8038_v25 }
 0x27e   : > { %4750 = vmatprep.mubr.f32.mxu0 %v14540_v13  ;;  %v14557_v25 = vand.u32 4294901760, %v14399_v19  ;;  %v14558_v36 = vand.u32 4294901760, %v14400_v5  ;;  %v14563_v19 = vand.u32 4294901760, %v14220_v11  ;;  %v14564_v5 = vand.u32 4294901760, %v14404_v8 }
 0x27f   : > { %v6748_v13 = vpack.c.bf16 %v14544_v31, %v14543_v42  ;;  %v14569_v11 = vand.u32 4294901760, %v14227_v57  ;;  %v14570_v8 = vand.u32 4294901760, %v14228_v21  ;;  %v14576_v57 = vand.u32 4294901760, %v14413_v14 }
 0x280   : > { %2155 = vmatmul.mubr.f32.gmra.mrb[60].mxu1 %v9656_v56  ;;  %v14545_v56 = vand.u32 4294901760, %v14391_v29  ;;  %v14578_v21 = vand.u32 4294901760, %v14577_v60  ;;  %v14586_v14 = vand.u32 4294901760, %v14417_v22 }
 0x281   : > { %4753 = vmatmul.mubr.f32.gmra.mrb[60].mxu0 %v14541_v3  ;;  %2161 = vmatprep.mubr.f32.mxu1 %v9596_v28  ;;  %v14546_v3 = vand.u32 4294901760, %v8023_v18  ;;  %v14547_v28 = vand.u32 4294901760, %v8036_v23  ;;  %v14553_v18 = vand.u32 4294901760, %v14397_v40  ;;  %v14554_v23 = vand.u32 4294901760, %v14210_v52 }
 0x282   : > { %4759 = vmatprep.mubr.f32.mxu0 %v9605_v1  ;;  %v14559_v40 = vand.u32 4294901760, %v14401_v37  ;;  %v14565_v37 = vand.u32 4294901760, %v14405_v32  ;;  %v14566_v52 = vand.u32 4294901760, %v14406_v26  ;;  %v14573_v26 = vand.u32 4294901760, %v14410_v45  ;;  %v14581_v45 = vld [vmem:[#allocation27_spill] sm:$0xff] }
 0x283   : > { %v7036_v1 = vpack.c.bf16 %v14547_v28, %v14546_v3  ;;  %v14555_v28 = vand.u32 4294901760, %v14211_v15  ;;  %v14561_v3 = vand.u32 4294901760, %v14218_v61  ;;  %v14567_v61 = vand.u32 4294901760, %v14407_v9 }
 0x284   : > { %2164 = vmatmul.mubr.f32.gmra.mrb[62].mxu1 %v9603_v48  ;;  %v14548_v48 = vand.u32 4294901760, %v14392_v27  ;;  %v14568_v15 = vand.u32 4294901760, %v14226_v34  ;;  %v14574_v9 = vand.u32 4294901760, %v14411_v20  ;;  %v14575_v34 = vand.u32 4294901760, %v14412_v63  ;;  %v14579_v27 = vld [vmem:[#allocation24_spill] sm:$0xff] }
 0x285   : > { %4762 = vmatmul.mubr.f32.gmra.mrb[62].mxu0 %v9611_v58  ;;  %2268 = vmatprep.mubr.f32.mxu1 %v14542_v10  ;;  %v14552_v10 = vand.u32 4294901760, %v14205_v43  ;;  %v14580_v29 = vand.u32 4294901760, %v14579_v27  ;;  %v14585_v63 = vand.u32 4294901760, %v14416_v39  ;;  %v14593_v39 = vld [vmem:[#allocation34_spill] sm:$0xff]  ;;  %v14624_v27 = vld [vmem:[#allocation152_spill] sm:$0xff] }
 0x286   : > { %4866 = vmatprep.mubr.f32.mxu0 %v14545_v56 }
 0x287   : > { %v6751_v56 = vpack.c.bf16 %v14552_v10, %v14551_v17  ;;  %v14583_v17 = vld [vmem:[#allocation29_spill] sm:$0xff] }
 0x288   : > { %2272 = vmatmul.mubr.f32.vlgmr.msra.gmra.mrb[0].mxu1 %v14548_v48  ;;  %v7039_v48 = vpack.c.bf16 %v14555_v28, %v14554_v23  ;;  %v14584_v20 = vand.u32 4294901760, %v14583_v17  ;;  %v14589_v23 = vld [vmem:[#allocation31_spill] sm:$0xff] }
 0x289   : > { %6749 = vmatpush1.bf16.msra.mxu1 %v6748_v13  ;;  %4870 = vmatmul.mubr.f32.vlgmr.msra.gmra.mrb[0].mxu0 %v14549_v38  ;;  %v14560_v13 = vand.u32 4294901760, %v14217_v49  ;;  %v14571_v49 = vld [vmem:[#allocation21_spill] sm:$0xff]  ;;  %v6760_v38 = vpack.c.bf16 %v14580_v29, %v14578_v21  ;;  %v14590_v28 = vand.u32 4294901760, %v14589_v23  ;;  %v14622_v21 = vld [vmem:[#allocation151_spill] sm:$0xff]  ;;  %v14625_v29 = vand.u32 4294901760, %v14624_v27 }
 0x28a   : > { %7037 = vmatpush1.bf16.msra.mxu0 %v7036_v1  ;;  %2279 = vmatprep.mubr.f32.mxu1 %v14550_v16  ;;  %v14556_v1 = vand.u32 4294901760, %v14398_v6  ;;  %v14562_v6 = vand.u32 4294901760, %v14219_v33  ;;  %v6757_v33 = vpack.c.bf16 %v14569_v11, %v14568_v15  ;;  %v14572_v32 = vand.u32 4294901760, %v14571_v49  ;;  %v14614_v49 = vld [vmem:[#allocation41_spill] sm:$0xff] }
 0x28b   : > { %4877 = vmatprep.mubr.f32.mxu0 %v14553_v18  ;;  %6750 = vmatprep.subr.bf16.mxu1 %v13880_v54  ;;  %v6754_v42 = vpack.c.bf16 %v14561_v3, %v14560_v13  ;;  %v14582_v16 = vand.u32 4294901760, %v14581_v45  ;;  %v14588_v18 = vand.u32 4294901760, %v14419_v2  ;;  %v14598_v2 = vand.u32 4294901760, %v14423_v35 }
 0x28c   : > { %2283 = vmatmul.mubr.f32.gmra.mrb[2].mxu1 %v14556_v1  ;;  %7038 = vmatprep.subr.bf16.mxu0 %v13880_v54  ;;  %v7042_v43 = vpack.c.bf16 %v14563_v19, %v14562_v6  ;;  %v7045_v31 = vpack.c.bf16 %v14572_v32, %v14570_v8  ;;  %v14599_v3 = vand.u32 4294901760, %v14424_v53  ;;  %v14601_v6 = vld [vmem:[#allocation36_spill] sm:$0xff]  ;;  %v14609_v53 = vand.u32 4294901760, %v14428_v55 }
 0x28d   : > { %4881 = vmatmul.mubr.f32.gmra.mrb[2].mxu0 %v14557_v25  ;;  %2290 = vmatprep.mubr.f32.mxu1 %v14558_v36  ;;  %v7048_v10 = vpack.c.bf16 %v14584_v20, %v14582_v16  ;;  %v14594_v36 = vand.u32 4294901760, %v14593_v39  ;;  %v14602_v19 = vand.u32 4294901760, %v14601_v6  ;;  %v14611_v11 = vand.u32 4294901760, %v14430_v59  ;;  %v14618_v55 = vld [vmem:[#allocation44_spill] sm:$0xff]  ;;  %v14628_v16 = vld [vmem:[#allocation154_spill] sm:$0xff]  ;;  %v14648_v6 = vld [vmem:[#allocation53_spill] sm:$0xff] }
 0x28e   : > { %4888 = vmatprep.mubr.f32.mxu0 %v14559_v40  ;;  %6752 = vmatpush1.bf16.msra.mxu1 %v6751_v56  ;;  %v14587_v56 = vand.u32 4294901760, %v14418_v4  ;;  %v14595_v40 = vld [vmem:[#allocation35_spill] sm:$0xff]  ;;  %v14597_v4 = vand.u32 4294901760, %v14422_v0  ;;  %v14615_v32 = vand.u32 4294901760, %v14614_v49  ;;  %v14623_v59 = vand.u32 4294901760, %v14622_v21  ;;  %v14630_v20 = vld [vmem:[#allocation46_spill] sm:$0xff] }
 0x28f   : > { %7040 = vmatpush1.bf16.msra.mxu0 %v7039_v48  ;;  %6753 = vmatprep.subr.bf16.mxu1 %v13880_v54  ;;  %v14591_v48 = vld [vmem:[#allocation32_spill] sm:$0xff]  ;;  %v14596_v22 = vand.u32 4294901760, %v14595_v40  ;;  %v14605_v0 = vld [vmem:[#allocation39_spill] sm:$0xff]  ;;  %v14629_v17 = vand.u32 4294901760, %v14628_v16 }
 0x290   : > { %2294 = vmatmul.mubr.f32.gmra.mrb[4].mxu1 %v14564_v5  ;;  %7041 = vmatprep.subr.bf16.mxu0 %v13880_v54  ;;  %v14592_v1 = vand.u32 4294901760, %v14591_v48 }
 0x291   : > { %4892 = vmatmul.mubr.f32.gmra.mrb[4].mxu0 %v14565_v37  ;;  %2301 = vmatprep.mubr.f32.mxu1 %v14566_v52  ;;  %v7051_v13 = vpack.c.bf16 %v14596_v22, %v14594_v36  ;;  %v14606_v52 = vand.u32 4294901760, %v14605_v0  ;;  %v14640_v36 = vld [vmem:[#allocation158_spill] sm:$0xff]  ;;  %v14642_v22 = vld [vmem:[#allocation159_spill] sm:$0xff] }
 0x292   : > { %4899 = vmatprep.mubr.f32.mxu0 %v14567_v61  ;;  %6755 = vmatpush1.bf16.msra.mxu1 %v6754_v42  ;;  %v6763_v25 = vpack.c.bf16 %v14592_v1, %v14590_v28  ;;  %v14600_v42 = vand.u32 4294901760, %v14425_v47  ;;  %v14607_v61 = vld [vmem:[#allocation40_spill] sm:$0xff]  ;;  %v14610_v47 = vand.u32 4294901760, %v14429_v46  ;;  %v14636_v28 = vld [vmem:[#allocation51_spill] sm:$0xff]  ;;  %v14641_v40 = vand.u32 4294901760, %v14640_v36 }
 0x293   : > { %7043 = vmatpush1.bf16.msra.mxu0 %v7042_v43  ;;  %6756 = vmatprep.subr.bf16.mxu1 %v13880_v54  ;;  %v14603_v43 = vld [vmem:[#allocation38_spill] sm:$0xff]  ;;  %v14608_v35 = vand.u32 4294901760, %v14607_v61  ;;  %v14637_v48 = vand.u32 4294901760, %v14636_v28  ;;  %v14652_v0 = vld [vmem:[#allocation55_spill] sm:$0xff] }
 0x294   : > { %2305 = vmatmul.mubr.f32.gmra.mrb[6].mxu1 %v14573_v26  ;;  %7044 = vmatprep.subr.bf16.mxu0 %v13880_v54  ;;  %v14604_v5 = vand.u32 4294901760, %v14603_v43 }
 0x295   : > { %4903 = vmatmul.mubr.f32.gmra.mrb[6].mxu0 %v14574_v9  ;;  %2312 = vmatprep.mubr.f32.mxu1 %v14575_v34  ;;  %v7054_v15 = vpack.c.bf16 %v14608_v35, %v14606_v52  ;;  %v14619_v34 = vand.u32 4294901760, %v14618_v55  ;;  %v14653_v52 = vand.u32 4294901760, %v14652_v0  ;;  %v14654_v35 = vld [vmem:[#allocation163_spill] sm:$0xff] }
 0x296   : > { %4910 = vmatprep.mubr.f32.mxu0 %v14576_v57  ;;  %6758 = vmatpush1.bf16.msra.mxu1 %v6757_v33  ;;  %v6766_v37 = vpack.c.bf16 %v14604_v5, %v14602_v19  ;;  %v14612_v33 = vld [vmem:[#allocation148_spill] sm:$0xff]  ;;  %v14620_v57 = vld [vmem:[#allocation45_spill] sm:$0xff]  ;;  %v14649_v19 = vand.u32 4294901760, %v14648_v6  ;;  %v14650_v5 = vld [vmem:[#allocation54_spill] sm:$0xff] }
 0x297   : > { %7046 = vmatpush1.bf16.msra.mxu0 %v7045_v31  ;;  %6759 = vmatprep.subr.bf16.mxu1 %v13880_v54  ;;  %v14613_v8 = vand.u32 4294901760, %v14612_v33  ;;  %v14616_v31 = vld [vmem:[#allocation43_spill] sm:$0xff]  ;;  %v14621_v46 = vand.u32 4294901760, %v14620_v57 }
 0x298   : > { %2316 = vmatmul.mubr.f32.gmra.mrb[8].mxu1 %v14585_v63  ;;  %7047 = vmatprep.subr.bf16.mxu0 %v13880_v54  ;;  %v14617_v26 = vand.u32 4294901760, %v14616_v31  ;;  %v14632_v63 = vld [vmem:[#allocation48_spill] sm:$0xff] }
 0x299   : > { %4914 = vmatmul.mubr.f32.gmra.mrb[8].mxu0 %v14586_v14  ;;  %2323 = vmatprep.mubr.f32.mxu1 %v14587_v56  ;;  %v7057_v60 = vpack.c.bf16 %v14621_v46, %v14619_v34  ;;  %v14633_v14 = vand.u32 4294901760, %v14632_v63  ;;  %v14666_v34 = vld [vmem:[#allocation60_spill] sm:$0xff]  ;;  %v14668_v46 = vld [vmem:[#allocation61_spill] sm:$0xff] }
 0x29a   : > { %4921 = vmatprep.mubr.f32.mxu0 %v14588_v18  ;;  %6761 = vmatpush1.bf16.msra.mxu1 %v6760_v38  ;;  %v6769_v9 = vpack.c.bf16 %v14617_v26, %v14615_v32  ;;  %v14626_v38 = vld [vmem:[#allocation153_spill] sm:$0xff]  ;;  %v14662_v32 = vld [vmem:[#allocation58_spill] sm:$0xff]  ;;  %v14664_v26 = vld [vmem:[#allocation59_spill] sm:$0xff]  ;;  %v14667_v57 = vand.u32 4294901760, %v14666_v34 }
 0x29b   : > { %7049 = vmatpush1.bf16.msra.mxu0 %v7048_v10  ;;  %6762 = vmatprep.subr.bf16.mxu1 %v13880_v54  ;;  %v14627_v45 = vand.u32 4294901760, %v14626_v38  ;;  %v14631_v10 = vand.u32 4294901760, %v14630_v20  ;;  %v14634_v18 = vld [vmem:[#allocation49_spill] sm:$0xff]  ;;  %v14663_v31 = vand.u32 4294901760, %v14662_v32 }
 0x29c   : > { %2327 = vmatmul.mubr.f32.gmra.mrb[10].mxu1 %v14597_v4  ;;  %7050 = vmatprep.subr.bf16.mxu0 %v13880_v54  ;;  %v14635_v23 = vand.u32 4294901760, %v14634_v18  ;;  %v14644_v4 = vld [vmem:[#allocation162_spill] sm:$0xff] }
 0x29d   : > { %4925 = vmatmul.mubr.f32.gmra.mrb[10].mxu0 %v14598_v2  ;;  %2334 = vmatprep.mubr.f32.mxu1 %v14599_v3  ;;  %v6772_v56 = vpack.c.bf16 %v14633_v14, %v14631_v10  ;;  %v14645_v2 = vand.u32 4294901760, %v14644_v4  ;;  %v14646_v3 = vld [vmem:[#allocation52_spill] sm:$0xff]  ;;  %v14678_v10 = vld [vmem:[#allocation62_spill] sm:$0xff] }
 0x29e   : > { %4932 = vmatprep.mubr.f32.mxu0 %v14600_v42  ;;  %6764 = vmatpush1.bf16.msra.mxu1 %v6763_v25  ;;  %v7060_v1 = vpack.c.bf16 %v14637_v48, %v14635_v23  ;;  %v14638_v25 = vld [vmem:[#allocation157_spill] sm:$0xff]  ;;  %v14647_v42 = vand.u32 4294901760, %v14646_v3  ;;  %v14679_v63 = vand.u32 4294901760, %v14678_v10  ;;  %v14680_v14 = vld [vmem:[#allocation64_spill] sm:$0xff]  ;;  %v14684_v48 = vld [vmem:[#allocation66_spill] sm:$0xff] }
 0x29f   : > { %7052 = vmatpush1.bf16.msra.mxu0 %v7051_v13  ;;  %6765 = vmatprep.subr.bf16.mxu1 %v13880_v54  ;;  %v14639_v39 = vand.u32 4294901760, %v14638_v25  ;;  %v14643_v13 = vand.u32 4294901760, %v14642_v22  ;;  %v14682_v23 = vld [vmem:[#allocation65_spill] sm:$0xff] }
 0x2a0   : > { %2338 = vmatmul.mubr.f32.gmra.mrb[12].mxu1 %v14609_v53  ;;  %7053 = vmatprep.subr.bf16.mxu0 %v13880_v54  ;;  %v6775_v43 = vpack.c.bf16 %v14649_v19, %v14647_v42  ;;  %v14656_v53 = vld [vmem:[#allocation164_spill] sm:$0xff]  ;;  %v14683_v28 = vand.u32 4294901760, %v14682_v23  ;;  %v14694_v42 = vld [vmem:[#allocation67_spill] sm:$0xff]  ;;  %v14696_v19 = vld [vmem:[#allocation69_spill] sm:$0xff] }
 0x2a1   : > { %4936 = vmatmul.mubr.f32.gmra.mrb[12].mxu0 %v14610_v47  ;;  %2345 = vmatprep.mubr.f32.mxu1 %v14611_v11  ;;  %v14657_v47 = vand.u32 4294901760, %v14656_v53  ;;  %v14658_v11 = vld [vmem:[#allocation167_spill] sm:$0xff]  ;;  %v14695_v6 = vand.u32 4294901760, %v14694_v42 }
 0x2a2   : > { %4943 = vmatprep.mubr.f32.mxu0 %v14613_v8  ;;  %6767 = vmatpush1.bf16.msra.mxu1 %v6766_v37  ;;  %v14651_v37 = vand.u32 4294901760, %v14650_v5  ;;  %v14659_v33 = vand.u32 4294901760, %v14658_v11  ;;  %v14660_v8 = vld [vmem:[#allocation168_spill] sm:$0xff] }
 0x2a3   : > { %7055 = vmatpush1.bf16.msra.mxu0 %v7054_v15  ;;  %6768 = vmatprep.subr.bf16.mxu1 %v13880_v54  ;;  %v14655_v15 = vand.u32 4294901760, %v14654_v35  ;;  %v14661_v49 = vand.u32 4294901760, %v14660_v8 }
 0x2a4   : > { %2349 = vmatmul.mubr.f32.gmra.mrb[14].mxu1 %v14623_v59  ;;  %7056 = vmatprep.subr.bf16.mxu0 %v13880_v54  ;;  %v7063_v61 = vpack.c.bf16 %v14653_v52, %v14651_v37  ;;  %v14670_v59 = vld [vmem:[#allocation169_spill] sm:$0xff]  ;;  %v14698_v37 = vld [vmem:[#allocation70_spill] sm:$0xff]  ;;  %v14700_v52 = vld [vmem:[#allocation71_spill] sm:$0xff] }
 0x2a5   : > { %4947 = vmatmul.mubr.f32.gmra.mrb[14].mxu0 %v14625_v29  ;;  %2356 = vmatprep.mubr.f32.mxu1 %v14627_v45  ;;  %v14671_v27 = vand.u32 4294901760, %v14670_v59  ;;  %v14672_v29 = vld [vmem:[#allocation170_spill] sm:$0xff]  ;;  %v14674_v45 = vld [vmem:[#allocation173_spill] sm:$0xff]  ;;  %v14699_v0 = vand.u32 4294901760, %v14698_v37 }
 0x2a6   : > { %4954 = vmatprep.mubr.f32.mxu0 %v14629_v17  ;;  %6770 = vmatpush1.bf16.msra.mxu1 %v6769_v9  ;;  %v14665_v9 = vand.u32 4294901760, %v14664_v26  ;;  %v14673_v38 = vand.u32 4294901760, %v14672_v29  ;;  %v14675_v16 = vand.u32 4294901760, %v14674_v45  ;;  %v14676_v17 = vld [vmem:[#allocation174_spill] sm:$0xff] }
 0x2a7   : > { %7058 = vmatpush1.bf16.msra.mxu0 %v7057_v60  ;;  %6771 = vmatprep.subr.bf16.mxu1 %v13880_v54  ;;  %v14669_v60 = vand.u32 4294901760, %v14668_v46  ;;  %v14677_v20 = vand.u32 4294901760, %v14676_v17 }
 0x2a8   : > { %2360 = vmatmul.mubr.f32.gmra.mrb[16].mxu1 %v14639_v39  ;;  %7059 = vmatprep.subr.bf16.mxu0 %v13880_v54  ;;  %v6778_v55 = vpack.c.bf16 %v14665_v9, %v14663_v31  ;;  %v14686_v39 = vld [vmem:[#allocation175_spill] sm:$0xff]  ;;  %v14710_v31 = vld [vmem:[#allocation73_spill] sm:$0xff]  ;;  %v14712_v9 = vld [vmem:[#allocation74_spill] sm:$0xff] }
 0x2a9   : > { %4958 = vmatmul.mubr.f32.gmra.mrb[16].mxu0 %v14641_v40  ;;  %2367 = vmatprep.mubr.f32.mxu1 %v14643_v13  ;;  %v7066_v21 = vpack.c.bf16 %v14669_v60, %v14667_v57  ;;  %v14687_v36 = vand.u32 4294901760, %v14686_v39  ;;  %v14688_v40 = vld [vmem:[#allocation176_spill] sm:$0xff]  ;;  %v14690_v13 = vld [vmem:[#allocation179_spill] sm:$0xff]  ;;  %v14711_v26 = vand.u32 4294901760, %v14710_v31  ;;  %v14716_v60 = vld [vmem:[#allocation77_spill] sm:$0xff] }
 0x2aa   : > { %4965 = vmatprep.mubr.f32.mxu0 %v14645_v2  ;;  %6773 = vmatpush1.bf16.msra.mxu1 %v6772_v56  ;;  %v14681_v56 = vand.u32 4294901760, %v14680_v14  ;;  %v14689_v22 = vand.u32 4294901760, %v14688_v40  ;;  %v14691_v4 = vand.u32 4294901760, %v14690_v13  ;;  %v14692_v2 = vld [vmem:[#allocation180_spill] sm:$0xff]  ;;  %v14714_v57 = vld [vmem:[#allocation75_spill] sm:$0xff] }
 0x2ab   : > { %7061 = vmatpush1.bf16.msra.mxu0 %v7060_v1  ;;  %6774 = vmatprep.subr.bf16.mxu1 %v13880_v54  ;;  %v14685_v1 = vand.u32 4294901760, %v14684_v48  ;;  %v14693_v3 = vand.u32 4294901760, %v14692_v2  ;;  %v14715_v46 = vand.u32 4294901760, %v14714_v57  ;;  %v14762_v57 = vld [vmem:[#allocation207_spill] sm:$0xff] }
 0x2ac   : > { %2371 = vmatmul.mubr.f32.gmra.mrb[18].mxu1 %v14655_v15  ;;  %7062 = vmatprep.subr.bf16.mxu0 %v13880_v54  ;;  %v6781_v18 = vpack.c.bf16 %v14681_v56, %v14679_v63  ;;  %v14702_v15 = vld [vmem:[#allocation185_spill] sm:$0xff]  ;;  %v14726_v63 = vld [vmem:[#allocation78_spill] sm:$0xff]  ;;  %v14728_v56 = vld [vmem:[#allocation79_spill] sm:$0xff] }
 0x2ad   : > { %4969 = vmatmul.mubr.f32.gmra.mrb[18].mxu0 %v14657_v47  ;;  %2378 = vmatprep.mubr.f32.mxu1 %v14659_v33  ;;  %v7069_v25 = vpack.c.bf16 %v14685_v1, %v14683_v28  ;;  %v14703_v53 = vand.u32 4294901760, %v14702_v15  ;;  %v14704_v47 = vld [vmem:[#allocation186_spill] sm:$0xff]  ;;  %v14706_v33 = vld [vmem:[#allocation191_spill] sm:$0xff]  ;;  %v14727_v14 = vand.u32 4294901760, %v14726_v63  ;;  %v14730_v28 = vld [vmem:[#allocation81_spill] sm:$0xff] }
 0x2ae   : > { %4976 = vmatprep.mubr.f32.mxu0 %v14661_v49  ;;  %6776 = vmatpush1.bf16.msra.mxu1 %v6775_v43  ;;  %v14697_v43 = vand.u32 4294901760, %v14696_v19  ;;  %v14705_v11 = vand.u32 4294901760, %v14704_v47  ;;  %v14707_v8 = vand.u32 4294901760, %v14706_v33  ;;  %v14708_v49 = vld [vmem:[#allocation192_spill] sm:$0xff]  ;;  %v14731_v48 = vand.u32 4294901760, %v14730_v28  ;;  %v14732_v1 = vld [vmem:[#allocation82_spill] sm:$0xff] }
 0x2af   : > { %7064 = vmatpush1.bf16.msra.mxu0 %v7063_v61  ;;  %6777 = vmatprep.subr.bf16.mxu1 %v13880_v54  ;;  %v14701_v61 = vand.u32 4294901760, %v14700_v52  ;;  %v14709_v32 = vand.u32 4294901760, %v14708_v49  ;;  %v14780_v28 = vld [vmem:[#allocation216_spill] sm:$0xff] }
 0x2b0   : > { %2382 = vmatmul.mubr.f32.gmra.mrb[20].mxu1 %v14671_v27  ;;  %7065 = vmatprep.subr.bf16.mxu0 %v13880_v54  ;;  %v6784_v5 = vpack.c.bf16 %v14697_v43, %v14695_v6  ;;  %v14718_v27 = vld [vmem:[#allocation193_spill] sm:$0xff]  ;;  %v14742_v6 = vld [vmem:[#allocation83_spill] sm:$0xff]  ;;  %v14744_v43 = vld [vmem:[#allocation84_spill] sm:$0xff] }
 0x2b1   : > { %4980 = vmatmul.mubr.f32.gmra.mrb[20].mxu0 %v14673_v38  ;;  %2389 = vmatprep.mubr.f32.mxu1 %v14675_v16  ;;  %v7072_v35 = vpack.c.bf16 %v14701_v61, %v14699_v0  ;;  %v14719_v29 = vand.u32 4294901760, %v14718_v27  ;;  %v14720_v38 = vld [vmem:[#allocation194_spill] sm:$0xff]  ;;  %v14722_v16 = vld [vmem:[#allocation195_spill] sm:$0xff]  ;;  %v14743_v19 = vand.u32 4294901760, %v14742_v6 }
 0x2b2   : > { %4987 = vmatprep.mubr.f32.mxu0 %v14677_v20  ;;  %6779 = vmatpush1.bf16.msra.mxu1 %v6778_v55  ;;  %v14713_v55 = vand.u32 4294901760, %v14712_v9  ;;  %v14721_v45 = vand.u32 4294901760, %v14720_v38  ;;  %v14723_v17 = vand.u32 4294901760, %v14722_v16  ;;  %v14724_v20 = vld [vmem:[#allocation196_spill] sm:$0xff]  ;;  %v14746_v0 = vld [vmem:[#allocation86_spill] sm:$0xff]  ;;  %v14748_v61 = vld [vmem:[#allocation87_spill] sm:$0xff] }
 0x2b3   : > { %7067 = vmatpush1.bf16.msra.mxu0 %v7066_v21  ;;  %6780 = vmatprep.subr.bf16.mxu1 %v13880_v54  ;;  %v14717_v21 = vand.u32 4294901760, %v14716_v60  ;;  %v14725_v10 = vand.u32 4294901760, %v14724_v20  ;;  %v14747_v52 = vand.u32 4294901760, %v14746_v0  ;;  %v14764_v60 = vld [vmem:[#allocation208_spill] sm:$0xff]  ;;  %v14798_v0 = vld [vmem:[#allocation225_spill] sm:$0xff] }
 0x2b4   : > { %2393 = vmatmul.mubr.f32.gmra.mrb[22].mxu1 %v14687_v36  ;;  %7068 = vmatprep.subr.bf16.mxu0 %v13880_v54  ;;  %v6787_v34 = vpack.c.bf16 %v14713_v55, %v14711_v26  ;;  %v14734_v36 = vld [vmem:[#allocation197_spill] sm:$0xff]  ;;  %v14760_v55 = vld [vmem:[#allocation206_spill] sm:$0xff] }
 0x2b5   : > { %4991 = vmatmul.mubr.f32.gmra.mrb[22].mxu0 %v14689_v22  ;;  %2400 = vmatprep.mubr.f32.mxu1 %v14691_v4  ;;  %v7075_v59 = vpack.c.bf16 %v14717_v21, %v14715_v46  ;;  %v14735_v40 = vand.u32 4294901760, %v14734_v36  ;;  %v14736_v22 = vld [vmem:[#allocation198_spill] sm:$0xff]  ;;  %v14738_v4 = vld [vmem:[#allocation199_spill] sm:$0xff]  ;;  %v14758_v26 = vld [vmem:[#allocation205_spill] sm:$0xff]  ;;  %v14763_v46 = vand.u32 4294901760, %v14762_v57  ;;  %v14765_v21 = vand.u32 4294901760, %v14764_v60 }
 0x2b6   : > { %4998 = vmatprep.mubr.f32.mxu0 %v14693_v3  ;;  %6782 = vmatpush1.bf16.msra.mxu1 %v6781_v18  ;;  %v14729_v18 = vand.u32 4294901760, %v14728_v56  ;;  %v14737_v13 = vand.u32 4294901760, %v14736_v22  ;;  %v14739_v2 = vand.u32 4294901760, %v14738_v4  ;;  %v14740_v3 = vld [vmem:[#allocation200_spill] sm:$0xff]  ;;  %v14759_v9 = vand.u32 4294901760, %v14758_v26 }
 0x2b7   : > { %7070 = vmatpush1.bf16.msra.mxu0 %v7069_v25  ;;  %6783 = vmatprep.subr.bf16.mxu1 %v13880_v54  ;;  %v14733_v25 = vand.u32 4294901760, %v14732_v1  ;;  %v14741_v42 = vand.u32 4294901760, %v14740_v3  ;;  %v14782_v1 = vld [vmem:[#allocation217_spill] sm:$0xff] }
 0x2b8   : > { %2404 = vmatmul.mubr.f32.gmra.mrb[24].mxu1 %v14703_v53  ;;  %7071 = vmatprep.subr.bf16.mxu0 %v13880_v54  ;;  %v6790_v23 = vpack.c.bf16 %v14729_v18, %v14727_v14  ;;  %v14750_v53 = vld [vmem:[#allocation201_spill] sm:$0xff]  ;;  %v14776_v14 = vld [vmem:[#allocation214_spill] sm:$0xff]  ;;  %v14778_v18 = vld [vmem:[#allocation215_spill] sm:$0xff] }
 0x2b9   : > { %5002 = vmatmul.mubr.f32.gmra.mrb[24].mxu0 %v14705_v11  ;;  %2411 = vmatprep.mubr.f32.mxu1 %v14707_v8  ;;  %v7078_v39 = vpack.c.bf16 %v14733_v25, %v14731_v48  ;;  %v14751_v47 = vand.u32 4294901760, %v14750_v53  ;;  %v14752_v11 = vld [vmem:[#allocation202_spill] sm:$0xff]  ;;  %v14754_v8 = vld [vmem:[#allocation203_spill] sm:$0xff]  ;;  %v14777_v56 = vand.u32 4294901760, %v14776_v14  ;;  %v14781_v48 = vand.u32 4294901760, %v14780_v28 }
 0x2ba   : > { %5009 = vmatprep.mubr.f32.mxu0 %v14709_v32  ;;  %6785 = vmatpush1.bf16.msra.mxu1 %v6784_v5  ;;  %v14745_v5 = vand.u32 4294901760, %v14744_v43  ;;  %v14753_v33 = vand.u32 4294901760, %v14752_v11  ;;  %v14755_v49 = vand.u32 4294901760, %v14754_v8  ;;  %v14756_v32 = vld [vmem:[#allocation204_spill] sm:$0xff]  ;;  %v14783_v25 = vand.u32 4294901760, %v14782_v1  ;;  %v14833_v28 = vld [vmem:[#allocation243_spill] sm:$0xff] }
 0x2bb   : > { %7073 = vmatpush1.bf16.msra.mxu0 %v7072_v35  ;;  %6786 = vmatprep.subr.bf16.mxu1 %v13880_v54  ;;  %v14749_v35 = vand.u32 4294901760, %v14748_v61  ;;  %v14757_v31 = vand.u32 4294901760, %v14756_v32  ;;  %v14800_v61 = vld [vmem:[#allocation226_spill] sm:$0xff]  ;;  %v14835_v1 = vand.u32 4294901760, %v14527_v30  ;;  %v14846_v30 = vld [vmem:[#allocation251_spill] sm:$0xff] }
 0x2bc   : > { %2415 = vmatmul.mubr.f32.gmra.mrb[26].mxu1 %v14719_v29  ;;  %7074 = vmatprep.subr.bf16.mxu0 %v13880_v54  ;;  %v6793_v37 = vpack.c.bf16 %v14745_v5, %v14743_v19  ;;  %v14768_v29 = vld [vmem:[#allocation210_spill] sm:$0xff]  ;;  %v14794_v19 = vld [vmem:[#allocation223_spill] sm:$0xff]  ;;  %v14796_v5 = vld [vmem:[#allocation224_spill] sm:$0xff] }
 0x2bd   : > { %5013 = vmatmul.mubr.f32.gmra.mrb[26].mxu0 %v14721_v45  ;;  %2422 = vmatprep.mubr.f32.mxu1 %v14723_v17  ;;  %v7081_v15 = vpack.c.bf16 %v14749_v35, %v14747_v52  ;;  %v14769_v38 = vand.u32 4294901760, %v14768_v29  ;;  %v14770_v45 = vld [vmem:[#allocation211_spill] sm:$0xff]  ;;  %v14772_v17 = vld [vmem:[#allocation212_spill] sm:$0xff]  ;;  %v14795_v43 = vand.u32 4294901760, %v14794_v19  ;;  %v14799_v52 = vand.u32 4294901760, %v14798_v0 }
 0x2be   : > { %5020 = vmatprep.mubr.f32.mxu0 %v14725_v10  ;;  %6788 = vmatpush1.bf16.msra.mxu1 %v6787_v34  ;;  %v14761_v34 = vand.u32 4294901760, %v14760_v55  ;;  %v14771_v16 = vand.u32 4294901760, %v14770_v45  ;;  %v14773_v20 = vand.u32 4294901760, %v14772_v17  ;;  %v14774_v10 = vld [vmem:[#allocation213_spill] sm:$0xff]  ;;  %v14801_v35 = vand.u32 4294901760, %v14800_v61  ;;  %v14855_v0 = vld [vmem:[#allocation256_spill] sm:$0xff] }
 0x2bf   : > { %7076 = vmatpush1.bf16.msra.mxu0 %v7075_v59  ;;  %6789 = vmatprep.subr.bf16.mxu1 %v13880_v54  ;;  %v14766_v59 = vld [vmem:[#allocation209_spill] sm:$0xff]  ;;  %v14775_v63 = vand.u32 4294901760, %v14774_v10  ;;  %v14849_v19 = vand.u32 4294901760, %v14535_v7 }
 0x2c0   : > { %2426 = vmatmul.mubr.f32.gmra.mrb[28].mxu1 %v14735_v40  ;;  %7077 = vmatprep.subr.bf16.mxu0 %v13880_v54  ;;  %v14767_v27 = vand.u32 4294901760, %v14766_v59  ;;  %v14786_v40 = vld [vmem:[#allocation219_spill] sm:$0xff]  ;;  %v14859_v7 = vld [vmem:[#allocation189_spill] sm:$0xff] }
 0x2c1   : > { %5024 = vmatmul.mubr.f32.gmra.mrb[28].mxu0 %v14737_v13  ;;  %2433 = vmatprep.mubr.f32.mxu1 %v14739_v2  ;;  %v14787_v22 = vand.u32 4294901760, %v14786_v40  ;;  %v14788_v13 = vld [vmem:[#allocation220_spill] sm:$0xff]  ;;  %v14790_v2 = vld [vmem:[#allocation221_spill] sm:$0xff] }
 0x2c2   : > { %5031 = vmatprep.mubr.f32.mxu0 %v14741_v42  ;;  %6791 = vmatpush1.bf16.msra.mxu1 %v6790_v23  ;;  %v14779_v23 = vand.u32 4294901760, %v14778_v18  ;;  %v14789_v4 = vand.u32 4294901760, %v14788_v13  ;;  %v14791_v3 = vand.u32 4294901760, %v14790_v2  ;;  %v14792_v42 = vld [vmem:[#allocation222_spill] sm:$0xff] }
 0x2c3   : > { %7079 = vmatpush1.bf16.msra.mxu0 %v7078_v39  ;;  %6792 = vmatprep.subr.bf16.mxu1 %v13880_v54  ;;  %v14784_v39 = vld [vmem:[#allocation218_spill] sm:$0xff]  ;;  %v14793_v6 = vand.u32 4294901760, %v14792_v42  ;;  %v14847_v42 = vand.u32 4294901760, %v14846_v30  ;;  %v14955_v30 = vld [vmem:[#allocation72_spill] sm:$0xff] }
 0x2c4   : > { %2437 = vmatmul.mubr.f32.gmra.mrb[30].mxu1 %v14751_v47  ;;  %7080 = vmatprep.subr.bf16.mxu0 %v13880_v54  ;;  %v14785_v36 = vand.u32 4294901760, %v14784_v39  ;;  %v14804_v47 = vld [vmem:[#allocation228_spill] sm:$0xff]  ;;  %v14831_v18 = vld [vmem:[#allocation242_spill] sm:$0xff] }
 0x2c5   : > { %5035 = vmatmul.mubr.f32.gmra.mrb[30].mxu0 %v14753_v33  ;;  %2444 = vmatprep.mubr.f32.mxu1 %v14755_v49  ;;  %v14805_v11 = vand.u32 4294901760, %v14804_v47  ;;  %v14806_v33 = vld [vmem:[#allocation229_spill] sm:$0xff]  ;;  %v14808_v49 = vld [vmem:[#allocation230_spill] sm:$0xff] }
 0x2c6   : > { %5042 = vmatprep.mubr.f32.mxu0 %v14757_v31  ;;  %6794 = vmatpush1.bf16.msra.mxu1 %v6793_v37  ;;  %v14797_v37 = vand.u32 4294901760, %v14796_v5  ;;  %v14807_v8 = vand.u32 4294901760, %v14806_v33  ;;  %v14809_v32 = vand.u32 4294901760, %v14808_v49  ;;  %v14810_v31 = vld [vmem:[#allocation231_spill] sm:$0xff]  ;;  %v14852_v5 = vand.u32 4294901760, %v14537_v24  ;;  %v14865_v24 = vld [vmem:[#allocation181_spill] sm:$0xff] }
 0x2c7   : > { %7082 = vmatpush1.bf16.msra.mxu0 %v7081_v15  ;;  %6795 = vmatprep.subr.bf16.mxu1 %v13880_v54  ;;  %v14802_v15 = vld [vmem:[#allocation227_spill] sm:$0xff]  ;;  %v14811_v26 = vand.u32 4294901760, %v14810_v31  ;;  %v14866_v47 = vand.u32 4294901760, %v14865_v24  ;;  %v14872_v31 = vmov 1.0   ;;  %v15005_v24 = vld [vmem:[#allocation156_spill] sm:$0xff] }
 0x2c8   : > { %2448 = vmatmul.mubr.f32.gmra.mrb[32].mxu1 %v14759_v9  ;;  %7083 = vmatprep.subr.bf16.mxu0 %v13880_v54  ;;  %v14803_v53 = vand.u32 4294901760, %v14802_v15  ;;  %v14812_v9 = vld [vmem:[#allocation232_spill] sm:$0xff] }
 0x2c9   : > { %5046 = vmatmul.mubr.f32.gmra.mrb[32].mxu0 %v14761_v34  ;;  %2455 = vmatprep.mubr.f32.mxu1 %v14763_v46  ;;  %v14813_v55 = vand.u32 4294901760, %v14812_v9  ;;  %v14814_v34 = vld [vmem:[#allocation233_spill] sm:$0xff]  ;;  %v14816_v46 = vld [vmem:[#allocation234_spill] sm:$0xff] }
 0x2ca   : > { %5053 = vmatprep.mubr.f32.mxu0 %v14765_v21  ;;  %v14815_v57 = vand.u32 4294901760, %v14814_v34  ;;  %v14817_v60 = vand.u32 4294901760, %v14816_v46  ;;  %v14818_v21 = vld [vmem:[#allocation235_spill] sm:$0xff]  ;;  %v14874_v9 = vld [vmem:[#allocation97_spill] sm:$0xff]  ;;  %v14878_v34 = vld [vmem:[#allocation96_spill] sm:$0xff] }
 0x2cb   : > { %v14819_v59 = vand.u32 4294901760, %v14818_v21  ;;  %v14883_v46 = vld [vmem:[#allocation6_spill] sm:$0xff]  ;;  %v14889_v21 = vld [vmem:[#allocation100_spill] sm:$0xff] }
 0x2cc   : > { %2459 = vmatmul.mubr.f32.gmra.mrb[34].mxu1 %v14767_v27  ;;  %v14820_v27 = vld [vmem:[#allocation236_spill] sm:$0xff] }
 0x2cd   : > { %5057 = vmatmul.mubr.f32.gmra.mrb[34].mxu0 %v14769_v38  ;;  %2466 = vmatprep.mubr.f32.mxu1 %v14771_v16  ;;  %v14821_v29 = vand.u32 4294901760, %v14820_v27  ;;  %v14822_v38 = vld [vmem:[#allocation237_spill] sm:$0xff]  ;;  %v14824_v16 = vld [vmem:[#allocation238_spill] sm:$0xff] }
 0x2ce   : > { %5064 = vmatprep.mubr.f32.mxu0 %v14773_v20  ;;  %v14823_v45 = vand.u32 4294901760, %v14822_v38  ;;  %v14825_v17 = vand.u32 4294901760, %v14824_v16  ;;  %v14826_v20 = vld [vmem:[#allocation239_spill] sm:$0xff]  ;;  %v14893_v27 = vld [vmem:[#allocation9_spill] sm:$0xff]  ;;  %v14899_v38 = vld [vmem:[#allocation12_spill] sm:$0xff] }
 0x2cf   : > { %v14827_v10 = vand.u32 4294901760, %v14826_v20  ;;  %v14903_v16 = vld [vmem:[#allocation114_spill] sm:$0xff]  ;;  %v14907_v20 = vld [vmem:[#allocation25_spill] sm:$0xff] }
 0x2d0   : > { %2470 = vmatmul.mubr.f32.gmra.mrb[36].mxu1 %v14775_v63  ;;  %v14828_v63 = vld [vmem:[#allocation240_spill] sm:$0xff] }
 0x2d1   : > { %5068 = vmatmul.mubr.f32.gmra.mrb[36].mxu0 %v14777_v56  ;;  %2477 = vmatprep.mubr.f32.mxu1 %v14779_v23  ;;  %v14829_v14 = vand.u32 4294901760, %v14828_v63  ;;  %v14830_v56 = vand.u32 4294901760, %v14524_v44  ;;  %v14832_v23 = vand.u32 4294901760, %v14831_v18  ;;  %v14841_v44 = vld [vmem:[#allocation248_spill] sm:$0xff]  ;;  %v14913_v63 = vld [vmem:[#allocation26_spill] sm:$0xff] }
 0x2d2   : > { %5075 = vmatprep.mubr.f32.mxu0 %v14781_v48  ;;  %v14834_v48 = vand.u32 4294901760, %v14833_v28  ;;  %v14842_v13 = vand.u32 4294901760, %v14841_v44  ;;  %v14920_v18 = vld [vmem:[#allocation30_spill] sm:$0xff]  ;;  %v14924_v28 = vld [vmem:[#allocation113_spill] sm:$0xff] }
 0x2d3   : > { %v14942_v44 = vld [vmem:[#allocation57_spill] sm:$0xff] }
 0x2d4   : > { %2481 = vmatmul.mubr.f32.gmra.mrb[38].mxu1 %v14783_v25  ;;  %v14836_v25 = vld [vmem:[#allocation245_spill] sm:$0xff] }
 0x2d5   : > { %5079 = vmatmul.mubr.f32.gmra.mrb[38].mxu0 %v14785_v36  ;;  %2488 = vmatprep.mubr.f32.mxu1 %v14787_v22  ;;  %v14837_v39 = vand.u32 4294901760, %v14836_v25  ;;  %v14838_v36 = vld [vmem:[#allocation246_spill] sm:$0xff]  ;;  %v14840_v22 = vand.u32 4294901760, %v14530_v51  ;;  %v14850_v51 = vand.u32 4294901760, %v14536_v50  ;;  %v14861_v50 = vld [vmem:[#allocation188_spill] sm:$0xff] }
 0x2d6   : > { %5086 = vmatprep.mubr.f32.mxu0 %v14789_v4  ;;  %v14839_v40 = vand.u32 4294901760, %v14838_v36  ;;  %v14843_v4 = vld [vmem:[#allocation249_spill] sm:$0xff]  ;;  %v14862_v15 = vand.u32 4294901760, %v14861_v50  ;;  %v14931_v25 = vld [vmem:[#allocation124_spill] sm:$0xff]  ;;  %v14935_v36 = vld [vmem:[#allocation50_spill] sm:$0xff] }
 0x2d7   : > { %v14844_v2 = vand.u32 4294901760, %v14843_v4  ;;  %v14948_v4 = vld [vmem:[#allocation63_spill] sm:$0xff]  ;;  %v14986_v50 = vld [vmem:[#allocation94_spill] sm:$0xff] }
 0x2d8   : > { %2492 = vmatmul.mubr.f32.gmra.mrb[40].mxu1 %v14791_v3  ;;  %v14845_v3 = vand.u32 4294901760, %v14533_v62  ;;  %v14853_v62 = vld [vmem:[#allocation255_spill] sm:$0xff] }
 0x2d9   : > { %5090 = vmatmul.mubr.f32.gmra.mrb[40].mxu0 %v14793_v6  ;;  %2499 = vmatprep.mubr.f32.mxu1 %v14795_v43  ;;  %v14848_v6 = vand.u32 4294901760, %v10492_v12  ;;  %v14851_v43 = vand.u32 4294901760, %v10538_v41  ;;  %v14857_v12 = vld [vmem:[#allocation187_spill] sm:$0xff]  ;;  %v14863_v41 = vld [vmem:[#allocation190_spill] sm:$0xff] }
 0x2da   : > { %5097 = vmatprep.mubr.f32.mxu0 %v14797_v37  ;;  %v14854_v37 = vand.u32 4294901760, %v14853_v62  ;;  %v14858_v61 = vand.u32 4294901760, %v14857_v12  ;;  %v14969_v62 = vld [vmem:[#allocation89_spill] sm:$0xff] }
 0x2db   : > { %v14977_v12 = vld [vmem:[#allocation133_spill] sm:$0xff] }
 0x2dc   : > { %2503 = vmatmul.mubr.f32.gmra.mrb[42].mxu1 %v14799_v52  ;;  %v14856_v52 = vand.u32 4294901760, %v14855_v0  ;;  %v14973_v0 = vld [vmem:[#allocation90_spill] sm:$0xff] }
 0x2dd   : > { %5101 = vmatmul.mubr.f32.gmra.mrb[42].mxu0 %v14801_v35  ;;  %2510 = vmatprep.mubr.f32.mxu1 %v14803_v53  ;;  %v14860_v35 = vand.u32 4294901760, %v14859_v7  ;;  %v14864_v53 = vand.u32 4294901760, %v14863_v41  ;;  %v14981_v7 = vld [vmem:[#allocation93_spill] sm:$0xff]  ;;  %v14995_v41 = vld [vmem:[#allocation150_spill] sm:$0xff] }
 0x2de   : > { %5108 = vmatprep.mubr.f32.mxu0 %v14805_v11  ;;  %v14867_v11 = vld [vmem:[#allocation184_spill] sm:$0xff] }
 0x2df   : > { %v14868_v33 = vand.u32 4294901760, %v14867_v11  ;;  %v15015_v11 = vld [vmem:[#allocation161_spill] sm:$0xff] }
 0x2e0   : > { %2514 = vmatmul.mubr.f32.gmra.mrb[44].mxu1 %v14807_v8  ;;  %v14869_v8 = vld [vmem:[#allocation183_spill] sm:$0xff] }
 0x2e1   : > { %5112 = vmatmul.mubr.f32.gmra.mrb[44].mxu0 %v14809_v32  ;;  %2521 = vmatprep.mubr.f32.mxu1 %v14811_v26  ;;  %v14870_v49 = vand.u32 4294901760, %v14869_v8  ;;  %v14871_v32 = vand.u32 4294901760, %v9611_v58  ;;  %v14873_v26 = vld [vmem:[#allocation101_spill] sm:$0xff]  ;;  %v14881_v58 = vld [vmem:[#allocation98_spill] sm:$0xff] }
 0x2e2   : > { %5119 = vmatprep.mubr.f32.mxu0 %v14813_v55  ;;  %vm14875_vm10 = vcmp.eq.s32.totalorder %v14873_v26, %v14874_v9  ;;  %v14876_v55 = vld [vmem:[#allocation99_spill] sm:$0xff]  ;;  %vm14879_vm4 = vcmp.eq.s32.totalorder %v14873_v26, %v14878_v34  ;;  %vm14882_vm6 = vcmp.eq.s32.totalorder %v14873_v26, %v14881_v58  ;;  %v15025_v8 = vld [vmem:[#allocation166_spill] sm:$0xff] }
 0x2e3   : > { %vm14877_vm1 = vcmp.eq.s32.totalorder %v14873_v26, %v14876_v55 }
 0x2e4   : > { %2525 = vmatmul.mubr.f32.gmra.mrb[46].mxu1 %v14815_v57  ;;  %v14880_v57 = vld [vmem:[#allocation5_spill] sm:$0xff] }
 0x2e5   : > { %5123 = vmatmul.mubr.f32.gmra.mrb[46].mxu0 %v14817_v60  ;;  %2532 = vmatprep.mubr.f32.mxu1 %v14819_v59  ;;  %v14884_v60 = vld [vmem:[#allocation103_spill] sm:$0xff] }
 0x2e6   : > { %5130 = vmatprep.mubr.f32.mxu0 %v14821_v29  ;;  %vm14885_vm3 = vcmp.eq.s32.totalorder %v14884_v60, %v14874_v9  ;;  %v14892_v59 = vld [vmem:[#allocation7_spill] sm:$0xff]  ;;  %v14896_v29 = vld [vmem:[#allocation102_spill] sm:$0xff] }
 0x2e8   : > { %2536 = vmatmul.mubr.f32.gmra.mrb[48].mxu1 %v14823_v45  ;;  %v14900_v45 = vld [vmem:[#allocation17_spill] sm:$0xff] }
 0x2e9   : > { %5134 = vmatmul.mubr.f32.gmra.mrb[48].mxu0 %v14825_v17  ;;  %2543 = vmatprep.mubr.f32.mxu1 %v14827_v10  ;;  %v14906_v17 = vld [vmem:[#allocation22_spill] sm:$0xff]  ;;  %v14910_v10 = vld [vmem:[#allocation108_spill] sm:$0xff] }
 0x2ea   : > { %5141 = vmatprep.mubr.f32.mxu0 %v14829_v14  ;;  %v14914_v14 = vld [vmem:[#allocation28_spill] sm:$0xff] }
 0x2ec   : > { %2547 = vmatmul.mubr.f32.gmra.mrb[50].mxu1 %v14830_v56  ;;  %v14917_v56 = vld [vmem:[#allocation117_spill] sm:$0xff] }
 0x2ed   : > { %5145 = vmatmul.mubr.f32.gmra.mrb[50].mxu0 %v14832_v23  ;;  %2554 = vmatprep.mubr.f32.mxu1 %v14834_v48  ;;  %v14921_v23 = vld [vmem:[#allocation33_spill] sm:$0xff] }
 0x2ee   : > { %5152 = vmatprep.mubr.f32.mxu0 %v14835_v1  ;;  %v14927_v48 = vld [vmem:[#allocation37_spill] sm:$0xff]  ;;  %v14928_v1 = vld [vmem:[#allocation42_spill] sm:$0xff] }
 0x2f0   : > { %2558 = vmatmul.mubr.f32.gmra.mrb[52].mxu1 %v14837_v39  ;;  %v14934_v39 = vld [vmem:[#allocation47_spill] sm:$0xff] }
 0x2f1   : > { %5156 = vmatmul.mubr.f32.gmra.mrb[52].mxu0 %v14839_v40  ;;  %2565 = vmatprep.mubr.f32.mxu1 %v14840_v22  ;;  %v14938_v40 = vld [vmem:[#allocation115_spill] sm:$0xff]  ;;  %v14941_v22 = vld [vmem:[#allocation56_spill] sm:$0xff] }
 0x2f2   : > { %5163 = vmatprep.mubr.f32.mxu0 %v14842_v13  ;;  %v14945_v13 = vld [vmem:[#allocation128_spill] sm:$0xff] }
 0x2f4   : > { %2569 = vmatmul.mubr.f32.gmra.mrb[54].mxu1 %v14844_v2  ;;  %v14949_v2 = vld [vmem:[#allocation68_spill] sm:$0xff] }
 0x2f5   : > { %5167 = vmatmul.mubr.f32.gmra.mrb[54].mxu0 %v14845_v3  ;;  %2576 = vmatprep.mubr.f32.mxu1 %v14847_v42  ;;  %v14952_v3 = vld [vmem:[#allocation121_spill] sm:$0xff]  ;;  %v14956_v42 = vld [vmem:[#allocation76_spill] sm:$0xff] }
 0x2f6   : > { %5174 = vmatprep.mubr.f32.mxu0 %v14848_v6  ;;  %v14959_v6 = vld [vmem:[#allocation134_spill] sm:$0xff] }
 0x2f8   : > { %2580 = vmatmul.mubr.f32.gmra.mrb[56].mxu1 %v14849_v19  ;;  %v14962_v19 = vld [vmem:[#allocation80_spill] sm:$0xff] }
 0x2f9   : > { %5178 = vmatmul.mubr.f32.gmra.mrb[56].mxu0 %v14850_v51  ;;  %2587 = vmatprep.mubr.f32.mxu1 %v14851_v43  ;;  %v14963_v51 = vld [vmem:[#allocation85_spill] sm:$0xff]  ;;  %v14966_v43 = vld [vmem:[#allocation127_spill] sm:$0xff] }
 0x2fa   : > { %5185 = vmatprep.mubr.f32.mxu0 %v14852_v5  ;;  %v14968_v5 = vld [vmem:[#allocation88_spill] sm:$0xff] }
 0x2fc   : > { %2591 = vmatmul.mubr.f32.gmra.mrb[58].mxu1 %v14854_v37  ;;  %v14970_v37 = vld [vmem:[#allocation140_spill] sm:$0xff] }
 0x2fd   : > { %5189 = vmatmul.mubr.f32.gmra.mrb[58].mxu0 %v14856_v52  ;;  %2598 = vmatprep.mubr.f32.mxu1 %v14858_v61  ;;  %v14974_v52 = vld [vmem:[#allocation91_spill] sm:$0xff]  ;;  %v14980_v61 = vld [vmem:[#allocation92_spill] sm:$0xff] }
 0x2fe   : > { %5196 = vmatprep.mubr.f32.mxu0 %v14860_v35  ;;  %v14983_v35 = vld [vmem:[#allocation145_spill] sm:$0xff] }
 0x300   : > { %2602 = vmatmul.mubr.f32.gmra.mrb[60].mxu1 %v14862_v15  ;;  %v14987_v15 = vld [vmem:[#allocation95_spill] sm:$0xff] }
 0x301   : > { %5200 = vmatmul.mubr.f32.gmra.mrb[60].mxu0 %v14864_v53  ;;  %2609 = vmatprep.mubr.f32.mxu1 %v14866_v47  ;;  %v15000_v53 = vld [vmem:[#allocation143_spill] sm:$0xff]  ;;  %v15010_v47 = vld [vmem:[#allocation149_spill] sm:$0xff] }
 0x302   : > { %5207 = vmatprep.mubr.f32.mxu0 %v14868_v33  ;;  %v15020_v33 = vld [vmem:[#allocation155_spill] sm:$0xff] }
 0x304   : > { %2613 = vmatmul.mubr.f32.gmra.mrb[62].mxu1 %v14870_v49  ;;  %v15030_v49 = vld [vmem:[#allocation160_spill] sm:$0xff] }
 0x305   : > { %5211 = vmatmul.mubr.f32.gmra.mrb[62].mxu0 %v14871_v32  ;;  %6229 = vmatprep.mubr.msk.f32.mxu1 %vm14875_vm10, %v14872_v31  ;;  %vm14886_vm10 = vcmp.eq.s32.totalorder %v14884_v60, %v14876_v55  ;;  %v15035_v32 = vld [vmem:[#allocation172_spill] sm:$0xff] }
 0x306   : > { %6421 = vmatprep.mubr.msk.f32.mxu0 %vm14877_vm1, %v14872_v31  ;;  %vm14887_vm1 = vcmp.eq.s32.totalorder %v14884_v60, %v14878_v34 }
 0x308   : > { %6230 = vmatmul.mubr.msk.f32.vlgmr.msra.gmra.mrb[0].mxu1 %vm14879_vm4, %v14872_v31  ;;  %vm14888_vm4 = vcmp.eq.s32.totalorder %v14884_v60, %v14881_v58 }
 0x309   : > { %6797 = vmatpush1.bf16.msra.mxu1 %v14880_v57  ;;  %6422 = vmatmul.mubr.msk.f32.vlgmr.msra.gmra.mrb[0].mxu0 %vm14882_vm6, %v14872_v31  ;;  %vm14890_vm6 = vcmp.eq.s32.totalorder %v14889_v21, %v14874_v9  ;;  %v15040_v57 = vld [vmem:[#allocation165_spill] sm:$0xff] }
 0x30a   : > { %7085 = vmatpush1.bf16.msra.mxu0 %v14883_v46  ;;  %6231 = vmatprep.mubr.msk.f32.mxu1 %vm14885_vm3, %v14872_v31  ;;  %vm14891_vm3 = vcmp.eq.s32.totalorder %v14889_v21, %v14876_v55 }
 0x30b   : > { %6423 = vmatprep.mubr.msk.f32.mxu0 %vm14886_vm10, %v14872_v31  ;;  %6798 = vmatprep.subr.bf16.mxu1 %v13880_v54  ;;  %vm14894_vm10 = vcmp.eq.s32.totalorder %v14889_v21, %v14878_v34 }
 0x30c   : > { %6232 = vmatmul.mubr.msk.f32.gmra.mrb[2].mxu1 %vm14887_vm1, %v14872_v31  ;;  %7086 = vmatprep.subr.bf16.mxu0 %v13880_v54  ;;  %vm14895_vm1 = vcmp.eq.s32.totalorder %v14889_v21, %v14881_v58 }
 0x30d   : > { %6424 = vmatmul.mubr.msk.f32.gmra.mrb[2].mxu0 %vm14888_vm4, %v14872_v31  ;;  %6233 = vmatprep.mubr.msk.f32.mxu1 %vm14890_vm6, %v14872_v31  ;;  %vm14897_vm4 = vcmp.eq.s32.totalorder %v14896_v29, %v14874_v9  ;;  %vm14898_vm6 = vcmp.eq.s32.totalorder %v14896_v29, %v14876_v55 }
 0x30e   : > { %6425 = vmatprep.mubr.msk.f32.mxu0 %vm14891_vm3, %v14872_v31  ;;  %6800 = vmatpush1.bf16.msra.mxu1 %v14892_v59  ;;  %vm14901_vm3 = vcmp.eq.s32.totalorder %v14896_v29, %v14878_v34  ;;  %v15045_v59 = vld [vmem:[#allocation171_spill] sm:$0xff] }
 0x30f   : > { %7088 = vmatpush1.bf16.msra.mxu0 %v14893_v27  ;;  %6801 = vmatprep.subr.bf16.mxu1 %v13880_v54  ;;  %v15048_v27 = vld [vmem:[#allocation182_spill] sm:$0xff] }
 0x310   : > { %6234 = vmatmul.mubr.msk.f32.gmra.mrb[4].mxu1 %vm14894_vm10, %v14872_v31  ;;  %7089 = vmatprep.subr.bf16.mxu0 %v13880_v54  ;;  %vm14902_vm10 = vcmp.eq.s32.totalorder %v14896_v29, %v14881_v58 }
 0x311   : > { %6426 = vmatmul.mubr.msk.f32.gmra.mrb[4].mxu0 %vm14895_vm1, %v14872_v31  ;;  %6235 = vmatprep.mubr.msk.f32.mxu1 %vm14897_vm4, %v14872_v31  ;;  %vm14904_vm1 = vcmp.eq.s32.totalorder %v14903_v16, %v14874_v9  ;;  %vm14905_vm4 = vcmp.eq.s32.totalorder %v14903_v16, %v14876_v55 }
 0x312   : > { %6427 = vmatprep.mubr.msk.f32.mxu0 %vm14898_vm6, %v14872_v31  ;;  %6803 = vmatpush1.bf16.msra.mxu1 %v14899_v38  ;;  %vm14908_vm6 = vcmp.eq.s32.totalorder %v14903_v16, %v14878_v34  ;;  %v15053_v38 = vld [vmem:[#allocation177_spill] sm:$0xff] }
 0x313   : > { %7091 = vmatpush1.bf16.msra.mxu0 %v14900_v45  ;;  %6804 = vmatprep.subr.bf16.mxu1 %v13880_v54 }
 0x314   : > { %6236 = vmatmul.mubr.msk.f32.gmra.mrb[6].mxu1 %vm14901_vm3, %v14872_v31  ;;  %7092 = vmatprep.subr.bf16.mxu0 %v13880_v54  ;;  %vm14909_vm3 = vcmp.eq.s32.totalorder %v14903_v16, %v14881_v58 }
 0x315   : > { %6428 = vmatmul.mubr.msk.f32.gmra.mrb[6].mxu0 %vm14902_vm10, %v14872_v31  ;;  %6237 = vmatprep.mubr.msk.f32.mxu1 %vm14904_vm1, %v14872_v31  ;;  %vm14911_vm10 = vcmp.eq.s32.totalorder %v14910_v10, %v14874_v9  ;;  %vm14912_vm1 = vcmp.eq.s32.totalorder %v14910_v10, %v14876_v55 }
 0x316   : > { %6429 = vmatprep.mubr.msk.f32.mxu0 %vm14905_vm4, %v14872_v31  ;;  %6806 = vmatpush1.bf16.msra.mxu1 %v14906_v17  ;;  %vm14915_vm4 = vcmp.eq.s32.totalorder %v14910_v10, %v14878_v34 }
 0x317   : > { %7094 = vmatpush1.bf16.msra.mxu0 %v14907_v20  ;;  %6807 = vmatprep.subr.bf16.mxu1 %v13880_v54 }
 0x318   : > { %6238 = vmatmul.mubr.msk.f32.gmra.mrb[8].mxu1 %vm14908_vm6, %v14872_v31  ;;  %7095 = vmatprep.subr.bf16.mxu0 %v13880_v54  ;;  %vm14916_vm6 = vcmp.eq.s32.totalorder %v14910_v10, %v14881_v58 }
 0x319   : > { %6430 = vmatmul.mubr.msk.f32.gmra.mrb[8].mxu0 %vm14909_vm3, %v14872_v31  ;;  %6239 = vmatprep.mubr.msk.f32.mxu1 %vm14911_vm10, %v14872_v31  ;;  %vm14918_vm3 = vcmp.eq.s32.totalorder %v14917_v56, %v14874_v9  ;;  %vm14919_vm10 = vcmp.eq.s32.totalorder %v14917_v56, %v14876_v55 }
 0x31a   : > { %6431 = vmatprep.mubr.msk.f32.mxu0 %vm14912_vm1, %v14872_v31  ;;  %6809 = vmatpush1.bf16.msra.mxu1 %v14913_v63  ;;  %vm14922_vm1 = vcmp.eq.s32.totalorder %v14917_v56, %v14878_v34 }
 0x31b   : > { %7097 = vmatpush1.bf16.msra.mxu0 %v14914_v14  ;;  %6810 = vmatprep.subr.bf16.mxu1 %v13880_v54 }
 0x31c   : > { %6240 = vmatmul.mubr.msk.f32.gmra.mrb[10].mxu1 %vm14915_vm4, %v14872_v31  ;;  %7098 = vmatprep.subr.bf16.mxu0 %v13880_v54  ;;  %vm14923_vm4 = vcmp.eq.s32.totalorder %v14917_v56, %v14881_v58 }
 0x31d   : > { %6432 = vmatmul.mubr.msk.f32.gmra.mrb[10].mxu0 %vm14916_vm6, %v14872_v31  ;;  %6241 = vmatprep.mubr.msk.f32.mxu1 %vm14918_vm3, %v14872_v31  ;;  %vm14925_vm6 = vcmp.eq.s32.totalorder %v14924_v28, %v14874_v9  ;;  %vm14926_vm3 = vcmp.eq.s32.totalorder %v14924_v28, %v14876_v55 }
 0x31e   : > { %6433 = vmatprep.mubr.msk.f32.mxu0 %vm14919_vm10, %v14872_v31  ;;  %6812 = vmatpush1.bf16.msra.mxu1 %v14920_v18  ;;  %vm14929_vm10 = vcmp.eq.s32.totalorder %v14924_v28, %v14878_v34 }
 0x31f   : > { %7100 = vmatpush1.bf16.msra.mxu0 %v14921_v23  ;;  %6813 = vmatprep.subr.bf16.mxu1 %v13880_v54 }
 0x320   : > { %6242 = vmatmul.mubr.msk.f32.gmra.mrb[12].mxu1 %vm14922_vm1, %v14872_v31  ;;  %7101 = vmatprep.subr.bf16.mxu0 %v13880_v54  ;;  %vm14930_vm1 = vcmp.eq.s32.totalorder %v14924_v28, %v14881_v58 }
 0x321   : > { %6434 = vmatmul.mubr.msk.f32.gmra.mrb[12].mxu0 %vm14923_vm4, %v14872_v31  ;;  %6243 = vmatprep.mubr.msk.f32.mxu1 %vm14925_vm6, %v14872_v31  ;;  %vm14932_vm4 = vcmp.eq.s32.totalorder %v14931_v25, %v14874_v9  ;;  %vm14933_vm6 = vcmp.eq.s32.totalorder %v14931_v25, %v14876_v55 }
 0x322   : > { %6435 = vmatprep.mubr.msk.f32.mxu0 %vm14926_vm3, %v14872_v31  ;;  %6815 = vmatpush1.bf16.msra.mxu1 %v14927_v48  ;;  %vm14936_vm3 = vcmp.eq.s32.totalorder %v14931_v25, %v14878_v34 }
 0x323   : > { %7103 = vmatpush1.bf16.msra.mxu0 %v14928_v1  ;;  %6816 = vmatprep.subr.bf16.mxu1 %v13880_v54 }
 0x324   : > { %6244 = vmatmul.mubr.msk.f32.gmra.mrb[14].mxu1 %vm14929_vm10, %v14872_v31  ;;  %7104 = vmatprep.subr.bf16.mxu0 %v13880_v54  ;;  %vm14937_vm10 = vcmp.eq.s32.totalorder %v14931_v25, %v14881_v58 }
 0x325   : > { %6436 = vmatmul.mubr.msk.f32.gmra.mrb[14].mxu0 %vm14930_vm1, %v14872_v31  ;;  %6245 = vmatprep.mubr.msk.f32.mxu1 %vm14932_vm4, %v14872_v31  ;;  %vm14939_vm1 = vcmp.eq.s32.totalorder %v14938_v40, %v14874_v9  ;;  %vm14940_vm4 = vcmp.eq.s32.totalorder %v14938_v40, %v14876_v55 }
 0x326   : > { %6437 = vmatprep.mubr.msk.f32.mxu0 %vm14933_vm6, %v14872_v31  ;;  %6818 = vmatpush1.bf16.msra.mxu1 %v14934_v39  ;;  %vm14943_vm6 = vcmp.eq.s32.totalorder %v14938_v40, %v14878_v34 }
 0x327   : > { %7106 = vmatpush1.bf16.msra.mxu0 %v14935_v36  ;;  %6819 = vmatprep.subr.bf16.mxu1 %v13880_v54 }
 0x328   : > { %6246 = vmatmul.mubr.msk.f32.gmra.mrb[16].mxu1 %vm14936_vm3, %v14872_v31  ;;  %7107 = vmatprep.subr.bf16.mxu0 %v13880_v54  ;;  %vm14944_vm3 = vcmp.eq.s32.totalorder %v14938_v40, %v14881_v58 }
 0x329   : > { %6438 = vmatmul.mubr.msk.f32.gmra.mrb[16].mxu0 %vm14937_vm10, %v14872_v31  ;;  %6247 = vmatprep.mubr.msk.f32.mxu1 %vm14939_vm1, %v14872_v31  ;;  %vm14946_vm10 = vcmp.eq.s32.totalorder %v14945_v13, %v14874_v9  ;;  %vm14947_vm1 = vcmp.eq.s32.totalorder %v14945_v13, %v14876_v55 }
 0x32a   : > { %6439 = vmatprep.mubr.msk.f32.mxu0 %vm14940_vm4, %v14872_v31  ;;  %6821 = vmatpush1.bf16.msra.mxu1 %v14941_v22  ;;  %vm14950_vm4 = vcmp.eq.s32.totalorder %v14945_v13, %v14878_v34 }
 0x32b   : > { %7109 = vmatpush1.bf16.msra.mxu0 %v14942_v44  ;;  %6822 = vmatprep.subr.bf16.mxu1 %v13880_v54 }
 0x32c   : > { %6248 = vmatmul.mubr.msk.f32.gmra.mrb[18].mxu1 %vm14943_vm6, %v14872_v31  ;;  %7110 = vmatprep.subr.bf16.mxu0 %v13880_v54  ;;  %vm14951_vm6 = vcmp.eq.s32.totalorder %v14945_v13, %v14881_v58 }
 0x32d   : > { %6440 = vmatmul.mubr.msk.f32.gmra.mrb[18].mxu0 %vm14944_vm3, %v14872_v31  ;;  %6249 = vmatprep.mubr.msk.f32.mxu1 %vm14946_vm10, %v14872_v31  ;;  %vm14953_vm3 = vcmp.eq.s32.totalorder %v14952_v3, %v14874_v9  ;;  %vm14954_vm10 = vcmp.eq.s32.totalorder %v14952_v3, %v14876_v55 }
 0x32e   : > { %6441 = vmatprep.mubr.msk.f32.mxu0 %vm14947_vm1, %v14872_v31  ;;  %6824 = vmatpush1.bf16.msra.mxu1 %v14948_v4  ;;  %vm14957_vm1 = vcmp.eq.s32.totalorder %v14952_v3, %v14878_v34 }
 0x32f   : > { %7112 = vmatpush1.bf16.msra.mxu0 %v14949_v2  ;;  %6825 = vmatprep.subr.bf16.mxu1 %v13880_v54 }
 0x330   : > { %6250 = vmatmul.mubr.msk.f32.gmra.mrb[20].mxu1 %vm14950_vm4, %v14872_v31  ;;  %7113 = vmatprep.subr.bf16.mxu0 %v13880_v54  ;;  %vm14958_vm4 = vcmp.eq.s32.totalorder %v14952_v3, %v14881_v58 }
 0x331   : > { %6442 = vmatmul.mubr.msk.f32.gmra.mrb[20].mxu0 %vm14951_vm6, %v14872_v31  ;;  %6251 = vmatprep.mubr.msk.f32.mxu1 %vm14953_vm3, %v14872_v31  ;;  %vm14960_vm6 = vcmp.eq.s32.totalorder %v14959_v6, %v14874_v9  ;;  %vm14961_vm3 = vcmp.eq.s32.totalorder %v14959_v6, %v14876_v55 }
 0x332   : > { %6443 = vmatprep.mubr.msk.f32.mxu0 %vm14954_vm10, %v14872_v31  ;;  %6827 = vmatpush1.bf16.msra.mxu1 %v14955_v30  ;;  %vm14964_vm10 = vcmp.eq.s32.totalorder %v14959_v6, %v14878_v34 }
 0x333   : > { %7115 = vmatpush1.bf16.msra.mxu0 %v14956_v42  ;;  %6828 = vmatprep.subr.bf16.mxu1 %v13880_v54 }
 0x334   : > { %6252 = vmatmul.mubr.msk.f32.gmra.mrb[22].mxu1 %vm14957_vm1, %v14872_v31  ;;  %7116 = vmatprep.subr.bf16.mxu0 %v13880_v54  ;;  %vm14965_vm1 = vcmp.eq.s32.totalorder %v14959_v6, %v14881_v58 }
 0x335   : > { %6444 = vmatmul.mubr.msk.f32.gmra.mrb[22].mxu0 %vm14958_vm4, %v14872_v31  ;;  %6253 = vmatprep.mubr.msk.f32.mxu1 %vm14960_vm6, %v14872_v31  ;;  %vm14967_vm4 = vcmp.eq.s32.totalorder %v14966_v43, %v14876_v55  ;;  %vm14971_vm6 = vcmp.eq.s32.totalorder %v14970_v37, %v14874_v9 }
 0x336   : > { %6445 = vmatprep.mubr.msk.f32.mxu0 %vm14961_vm3, %v14872_v31  ;;  %6830 = vmatpush1.bf16.msra.mxu1 %v14962_v19  ;;  %vm14972_vm3 = vcmp.eq.s32.totalorder %v14970_v37, %v14876_v55 }
 0x337   : > { %7118 = vmatpush1.bf16.msra.mxu0 %v14963_v51  ;;  %6831 = vmatprep.subr.bf16.mxu1 %v13880_v54 }
 0x338   : > { %6254 = vmatmul.mubr.msk.f32.gmra.mrb[24].mxu1 %vm14964_vm10, %v14872_v31  ;;  %7119 = vmatprep.subr.bf16.mxu0 %v13880_v54  ;;  %vm14975_vm10 = vcmp.eq.s32.totalorder %v14970_v37, %v14878_v34 }
 0x339   : > { %6446 = vmatmul.mubr.msk.f32.gmra.mrb[24].mxu0 %vm14965_vm1, %v14872_v31  ;;  %6255 = vmatprep.mubr.msk.f32.mxu1 %vm331_vm12, %v14872_v31  ;;  %vm14976_vm1 = vcmp.eq.s32.totalorder %v14970_v37, %v14881_v58 }
 0x33a   : > { %6447 = vmatprep.mubr.msk.f32.mxu0 %vm14967_vm4, %v14872_v31  ;;  %6833 = vmatpush1.bf16.msra.mxu1 %v14968_v5  ;;  %vm14978_vm4 = vcmp.eq.s32.totalorder %v14977_v12, %v14874_v9 }
 0x33b   : > { %7121 = vmatpush1.bf16.msra.mxu0 %v14969_v62  ;;  %6834 = vmatprep.subr.bf16.mxu1 %v13880_v54 }
 0x33c   : > { %6256 = vmatmul.mubr.msk.f32.gmra.mrb[26].mxu1 %vm330_vm14, %v14872_v31  ;;  %7122 = vmatprep.subr.bf16.mxu0 %v13880_v54 }
 0x33d   : > { %6448 = vmatmul.mubr.msk.f32.gmra.mrb[26].mxu0 %vm332_vm8, %v14872_v31  ;;  %6257 = vmatprep.mubr.msk.f32.mxu1 %vm14971_vm6, %v14872_v31  ;;  %vm14979_vm6 = vcmp.eq.s32.totalorder %v14977_v12, %v14876_v55 }
 0x33e   : > { %6449 = vmatprep.mubr.msk.f32.mxu0 %vm14972_vm3, %v14872_v31  ;;  %6836 = vmatpush1.bf16.msra.mxu1 %v14973_v0  ;;  %vm14982_vm3 = vcmp.eq.s32.totalorder %v14977_v12, %v14878_v34 }
 0x33f   : > { %7124 = vmatpush1.bf16.msra.mxu0 %v14974_v52  ;;  %6837 = vmatprep.subr.bf16.mxu1 %v13880_v54 }
 0x340   : > { %6258 = vmatmul.mubr.msk.f32.gmra.mrb[28].mxu1 %vm14975_vm10, %v14872_v31  ;;  %7125 = vmatprep.subr.bf16.mxu0 %v13880_v54  ;;  %vm14984_vm10 = vcmp.eq.s32.totalorder %v14983_v35, %v14874_v9 }
 0x341   : > { %6450 = vmatmul.mubr.msk.f32.gmra.mrb[28].mxu0 %vm14976_vm1, %v14872_v31  ;;  %6259 = vmatprep.mubr.msk.f32.mxu1 %vm14978_vm4, %v14872_v31  ;;  %vm14985_vm1 = vcmp.eq.s32.totalorder %v14983_v35, %v14876_v55  ;;  %vm14988_vm4 = vcmp.eq.s32.totalorder %v14983_v35, %v14878_v34 }
 0x342   : > { %6451 = vmatprep.mubr.msk.f32.mxu0 %vm14979_vm6, %v14872_v31  ;;  %6839 = vmatpush1.bf16.msra.mxu1 %v14980_v61  ;;  %vm14989_vm6 = vcmp.eq.s32.totalorder %v14983_v35, %v14881_v58 }
 0x343   : > { %7127 = vmatpush1.bf16.msra.mxu0 %v14981_v7  ;;  %6840 = vmatprep.subr.bf16.mxu1 %v13880_v54 }
 0x344   : > { %6260 = vmatmul.mubr.msk.f32.gmra.mrb[30].mxu1 %vm14982_vm3, %v14872_v31  ;;  %7128 = vmatprep.subr.bf16.mxu0 %v13880_v54  ;;  %v14990_v54 = vld [vmem:[#allocation137_spill] sm:$0xff] }
 0x345   : > { %6452 = vmatmul.mubr.msk.f32.gmra.mrb[30].mxu0 %vm340_vm7, %v14872_v31  ;;  %6261 = vmatprep.mubr.msk.f32.mxu1 %vm14984_vm10, %v14872_v31  ;;  %vm14991_vm3 = vcmp.eq.s32.totalorder %v14990_v54, %v14874_v9  ;;  %vm14992_vm10 = vcmp.eq.s32.totalorder %v14990_v54, %v14876_v55 }
 0x346   : > { %6453 = vmatprep.mubr.msk.f32.mxu0 %vm14985_vm1, %v14872_v31  ;;  %6842 = vmatpush1.bf16.msra.mxu1 %v14986_v50  ;;  %vm14993_vm1 = vcmp.eq.s32.totalorder %v14990_v54, %v14878_v34 }
 0x347   : > { %7130 = vmatpush1.bf16.msra.mxu0 %v14987_v15 }
 0x348   : > { %6262 = vmatmul.mubr.msk.f32.gmra.mrb[32].mxu1 %vm14988_vm4, %v14872_v31  ;;  %vm14994_vm4 = vcmp.eq.s32.totalorder %v14990_v54, %v14881_v58 }
 0x349   : > { %6454 = vmatmul.mubr.msk.f32.gmra.mrb[32].mxu0 %vm14989_vm6, %v14872_v31  ;;  %6263 = vmatprep.mubr.msk.f32.mxu1 %vm14991_vm3, %v14872_v31  ;;  %vm14996_vm6 = vcmp.eq.s32.totalorder %v14995_v41, %v14874_v9  ;;  %vm14997_vm3 = vcmp.eq.s32.totalorder %v14995_v41, %v14876_v55 }
 0x34a   : > { %6455 = vmatprep.mubr.msk.f32.mxu0 %vm14992_vm10, %v14872_v31  ;;  %vm14998_vm10 = vcmp.eq.s32.totalorder %v14995_v41, %v14878_v34 }
 0x34c   : > { %6264 = vmatmul.mubr.msk.f32.gmra.mrb[34].mxu1 %vm14993_vm1, %v14872_v31  ;;  %vm14999_vm1 = vcmp.eq.s32.totalorder %v14995_v41, %v14881_v58 }
 0x34d   : > { %6456 = vmatmul.mubr.msk.f32.gmra.mrb[34].mxu0 %vm14994_vm4, %v14872_v31  ;;  %6265 = vmatprep.mubr.msk.f32.mxu1 %vm14996_vm6, %v14872_v31  ;;  %vm15001_vm4 = vcmp.eq.s32.totalorder %v15000_v53, %v14874_v9  ;;  %vm15002_vm6 = vcmp.eq.s32.totalorder %v15000_v53, %v14876_v55 }
 0x34e   : > { %6457 = vmatprep.mubr.msk.f32.mxu0 %vm14997_vm3, %v14872_v31  ;;  %vm15003_vm3 = vcmp.eq.s32.totalorder %v15000_v53, %v14878_v34 }
 0x350   : > { %6266 = vmatmul.mubr.msk.f32.gmra.mrb[36].mxu1 %vm14998_vm10, %v14872_v31  ;;  %vm15004_vm10 = vcmp.eq.s32.totalorder %v15000_v53, %v14881_v58 }
 0x351   : > { %6458 = vmatmul.mubr.msk.f32.gmra.mrb[36].mxu0 %vm14999_vm1, %v14872_v31  ;;  %6267 = vmatprep.mubr.msk.f32.mxu1 %vm15001_vm4, %v14872_v31  ;;  %vm15006_vm1 = vcmp.eq.s32.totalorder %v15005_v24, %v14874_v9  ;;  %vm15007_vm4 = vcmp.eq.s32.totalorder %v15005_v24, %v14876_v55 }
 0x352   : > { %6459 = vmatprep.mubr.msk.f32.mxu0 %vm15002_vm6, %v14872_v31  ;;  %vm15008_vm6 = vcmp.eq.s32.totalorder %v15005_v24, %v14878_v34 }
 0x354   : > { %6268 = vmatmul.mubr.msk.f32.gmra.mrb[38].mxu1 %vm15003_vm3, %v14872_v31  ;;  %vm15009_vm3 = vcmp.eq.s32.totalorder %v15005_v24, %v14881_v58 }
 0x355   : > { %6460 = vmatmul.mubr.msk.f32.gmra.mrb[38].mxu0 %vm15004_vm10, %v14872_v31  ;;  %6269 = vmatprep.mubr.msk.f32.mxu1 %vm15006_vm1, %v14872_v31  ;;  %vm15011_vm10 = vcmp.eq.s32.totalorder %v15010_v47, %v14874_v9  ;;  %vm15012_vm1 = vcmp.eq.s32.totalorder %v15010_v47, %v14876_v55 }
 0x356   : > { %6461 = vmatprep.mubr.msk.f32.mxu0 %vm15007_vm4, %v14872_v31  ;;  %vm15013_vm4 = vcmp.eq.s32.totalorder %v15010_v47, %v14878_v34 }
 0x358   : > { %6270 = vmatmul.mubr.msk.f32.gmra.mrb[40].mxu1 %vm15008_vm6, %v14872_v31  ;;  %vm15014_vm6 = vcmp.eq.s32.totalorder %v15010_v47, %v14881_v58 }
 0x359   : > { %6462 = vmatmul.mubr.msk.f32.gmra.mrb[40].mxu0 %vm15009_vm3, %v14872_v31  ;;  %6271 = vmatprep.mubr.msk.f32.mxu1 %vm15011_vm10, %v14872_v31  ;;  %vm15016_vm3 = vcmp.eq.s32.totalorder %v15015_v11, %v14874_v9  ;;  %vm15017_vm10 = vcmp.eq.s32.totalorder %v15015_v11, %v14876_v55 }
 0x35a   : > { %6463 = vmatprep.mubr.msk.f32.mxu0 %vm15012_vm1, %v14872_v31  ;;  %vm15018_vm1 = vcmp.eq.s32.totalorder %v15015_v11, %v14878_v34 }
 0x35c   : > { %6272 = vmatmul.mubr.msk.f32.gmra.mrb[42].mxu1 %vm15013_vm4, %v14872_v31  ;;  %vm15019_vm4 = vcmp.eq.s32.totalorder %v15015_v11, %v14881_v58 }
 0x35d   : > { %6464 = vmatmul.mubr.msk.f32.gmra.mrb[42].mxu0 %vm15014_vm6, %v14872_v31  ;;  %6273 = vmatprep.mubr.msk.f32.mxu1 %vm15016_vm3, %v14872_v31  ;;  %vm15021_vm6 = vcmp.eq.s32.totalorder %v15020_v33, %v14874_v9  ;;  %vm15022_vm3 = vcmp.eq.s32.totalorder %v15020_v33, %v14876_v55 }
 0x35e   : > { %6465 = vmatprep.mubr.msk.f32.mxu0 %vm15017_vm10, %v14872_v31  ;;  %vm15023_vm10 = vcmp.eq.s32.totalorder %v15020_v33, %v14878_v34 }
 0x360   : > { %6274 = vmatmul.mubr.msk.f32.gmra.mrb[44].mxu1 %vm15018_vm1, %v14872_v31  ;;  %vm15024_vm1 = vcmp.eq.s32.totalorder %v15020_v33, %v14881_v58 }
 0x361   : > { %6466 = vmatmul.mubr.msk.f32.gmra.mrb[44].mxu0 %vm15019_vm4, %v14872_v31  ;;  %6275 = vmatprep.mubr.msk.f32.mxu1 %vm15021_vm6, %v14872_v31  ;;  %vm15026_vm4 = vcmp.eq.s32.totalorder %v15025_v8, %v14874_v9  ;;  %vm15027_vm6 = vcmp.eq.s32.totalorder %v15025_v8, %v14876_v55 }
 0x362   : > { %6467 = vmatprep.mubr.msk.f32.mxu0 %vm15022_vm3, %v14872_v31  ;;  %vm15028_vm3 = vcmp.eq.s32.totalorder %v15025_v8, %v14878_v34 }
 0x364   : > { %6276 = vmatmul.mubr.msk.f32.gmra.mrb[46].mxu1 %vm15023_vm10, %v14872_v31  ;;  %vm15029_vm10 = vcmp.eq.s32.totalorder %v15025_v8, %v14881_v58 }
 0x365   : > { %6468 = vmatmul.mubr.msk.f32.gmra.mrb[46].mxu0 %vm15024_vm1, %v14872_v31  ;;  %6277 = vmatprep.mubr.msk.f32.mxu1 %vm15026_vm4, %v14872_v31  ;;  %vm15031_vm1 = vcmp.eq.s32.totalorder %v15030_v49, %v14874_v9  ;;  %vm15032_vm4 = vcmp.eq.s32.totalorder %v15030_v49, %v14876_v55 }
 0x366   : > { %6469 = vmatprep.mubr.msk.f32.mxu0 %vm15027_vm6, %v14872_v31  ;;  %vm15033_vm6 = vcmp.eq.s32.totalorder %v15030_v49, %v14878_v34 }
 0x368   : > { %6278 = vmatmul.mubr.msk.f32.gmra.mrb[48].mxu1 %vm15028_vm3, %v14872_v31  ;;  %vm15034_vm3 = vcmp.eq.s32.totalorder %v15030_v49, %v14881_v58 }
 0x369   : > { %6470 = vmatmul.mubr.msk.f32.gmra.mrb[48].mxu0 %vm15029_vm10, %v14872_v31  ;;  %6279 = vmatprep.mubr.msk.f32.mxu1 %vm15031_vm1, %v14872_v31  ;;  %vm15036_vm10 = vcmp.eq.s32.totalorder %v15035_v32, %v14874_v9  ;;  %vm15037_vm1 = vcmp.eq.s32.totalorder %v15035_v32, %v14876_v55 }
 0x36a   : > { %6471 = vmatprep.mubr.msk.f32.mxu0 %vm15032_vm4, %v14872_v31  ;;  %vm15038_vm4 = vcmp.eq.s32.totalorder %v15035_v32, %v14878_v34 }
 0x36c   : > { %6280 = vmatmul.mubr.msk.f32.gmra.mrb[50].mxu1 %vm15033_vm6, %v14872_v31  ;;  %vm15039_vm6 = vcmp.eq.s32.totalorder %v15035_v32, %v14881_v58 }
 0x36d   : > { %6472 = vmatmul.mubr.msk.f32.gmra.mrb[50].mxu0 %vm15034_vm3, %v14872_v31  ;;  %6281 = vmatprep.mubr.msk.f32.mxu1 %vm15036_vm10, %v14872_v31  ;;  %vm15041_vm3 = vcmp.eq.s32.totalorder %v15040_v57, %v14874_v9  ;;  %vm15042_vm10 = vcmp.eq.s32.totalorder %v15040_v57, %v14876_v55 }
 0x36e   : > { %6473 = vmatprep.mubr.msk.f32.mxu0 %vm15037_vm1, %v14872_v31  ;;  %vm15043_vm1 = vcmp.eq.s32.totalorder %v15040_v57, %v14881_v58 }
 0x370   : > { %6282 = vmatmul.mubr.msk.f32.gmra.mrb[52].mxu1 %vm15038_vm4, %v14872_v31  ;;  %vm15046_vm4 = vcmp.eq.s32.totalorder %v15045_v59, %v14878_v34 }
 0x371   : > { %6474 = vmatmul.mubr.msk.f32.gmra.mrb[52].mxu0 %vm15039_vm6, %v14872_v31  ;;  %6283 = vmatprep.mubr.msk.f32.mxu1 %vm15041_vm3, %v14872_v31  ;;  %vm15047_vm6 = vcmp.eq.s32.totalorder %v15045_v59, %v14881_v58  ;;  %vm15049_vm3 = vcmp.eq.s32.totalorder %v15048_v27, %v14874_v9 }
 0x372   : > { %6475 = vmatprep.mubr.msk.f32.mxu0 %vm15042_vm10, %v14872_v31  ;;  %vm15050_vm10 = vcmp.eq.s32.totalorder %v15048_v27, %v14876_v55 }
 0x374   : > { %6284 = vmatmul.mubr.msk.f32.gmra.mrb[54].mxu1 %vm386_vm9, %v14872_v31 }
 0x375   : > { %6476 = vmatmul.mubr.msk.f32.gmra.mrb[54].mxu0 %vm15043_vm1, %v14872_v31  ;;  %6285 = vmatprep.mubr.msk.f32.mxu1 %vm391_vm5, %v14872_v31  ;;  %vm15051_vm1 = vcmp.eq.s32.totalorder %v15048_v27, %v14878_v34 }
 0x376   : > { %6477 = vmatprep.mubr.msk.f32.mxu0 %vm393_vm13, %v14872_v31 }
 0x378   : > { %6286 = vmatmul.mubr.msk.f32.gmra.mrb[56].mxu1 %vm390_vm0, %v14872_v31 }
 0x379   : > { %6478 = vmatmul.mubr.msk.f32.gmra.mrb[56].mxu0 %vm392_vm15, %v14872_v31  ;;  %6287 = vmatprep.mubr.msk.f32.mxu1 %vm395_vm2, %v14872_v31 }
 0x37a   : > { %6479 = vmatprep.mubr.msk.f32.mxu0 %vm397_vm11, %v14872_v31 }
 0x37c   : > { %6288 = vmatmul.mubr.msk.f32.gmra.mrb[58].mxu1 %vm15046_vm4, %v14872_v31  ;;  %vm15052_vm4 = vcmp.eq.s32.totalorder %v15048_v27, %v14881_v58 }
 0x37d   : > { %6480 = vmatmul.mubr.msk.f32.gmra.mrb[58].mxu0 %vm15047_vm6, %v14872_v31  ;;  %6289 = vmatprep.mubr.msk.f32.mxu1 %vm15049_vm3, %v14872_v31  ;;  %vm15054_vm6 = vcmp.eq.s32.totalorder %v15053_v38, %v14874_v9  ;;  %vm15055_vm3 = vcmp.eq.s32.totalorder %v15053_v38, %v14876_v55 }
 0x37e   : > { %6481 = vmatprep.mubr.msk.f32.mxu0 %vm15050_vm10, %v14872_v31  ;;  %vm15056_vm10 = vcmp.eq.s32.totalorder %v15053_v38, %v14878_v34 }
 0x380   : > { %6290 = vmatmul.mubr.msk.f32.gmra.mrb[60].mxu1 %vm15051_vm1, %v14872_v31  ;;  %vm15057_vm1 = vcmp.eq.s32.totalorder %v15053_v38, %v14881_v58 }
 0x381   : > { %6482 = vmatmul.mubr.msk.f32.gmra.mrb[60].mxu0 %vm15052_vm4, %v14872_v31  ;;  %6291 = vmatprep.mubr.msk.f32.mxu1 %vm15054_vm6, %v14872_v31  ;;  %vm15058_vm4 = vcmp.eq.s32.totalorder %v14873_v26, %v14874_v9  ;;  %vm15059_vm6 = vcmp.eq.s32.totalorder %v14873_v26, %v14876_v55 }
 0x382   : > { %6483 = vmatprep.mubr.msk.f32.mxu0 %vm15055_vm3, %v14872_v31  ;;  %vm15060_vm3 = vcmp.eq.s32.totalorder %v14873_v26, %v14878_v34 }
 0x384   : > { %6292 = vmatmul.mubr.msk.f32.gmra.mrb[62].mxu1 %vm15056_vm10, %v14872_v31  ;;  %vm15061_vm10 = vcmp.eq.s32.totalorder %v14873_v26, %v14881_v58 }
 0x385   : > { %6484 = vmatmul.mubr.msk.f32.gmra.mrb[62].mxu0 %vm15057_vm1, %v14872_v31  ;;  %6293 = vmatprep.mubr.msk.f32.mxu1 %vm15058_vm4, %v14872_v31  ;;  %vm15062_vm1 = vcmp.eq.s32.totalorder %v14884_v60, %v14874_v9  ;;  %vm15063_vm4 = vcmp.eq.s32.totalorder %v14884_v60, %v14876_v55 }
 0x386   : > { %6485 = vmatprep.mubr.msk.f32.mxu0 %vm15059_vm6, %v14872_v31  ;;  %vm15064_vm6 = vcmp.eq.s32.totalorder %v14884_v60, %v14878_v34 }
 0x388   : > { %6294 = vmatmul.mubr.msk.f32.vlgmr.msra.gmra.mrb[0].mxu1 %vm15060_vm3, %v14872_v31  ;;  %vm15065_vm3 = vcmp.eq.s32.totalorder %v14884_v60, %v14881_v58 }
 0x389   : > { %6486 = vmatmul.mubr.msk.f32.vlgmr.msra.gmra.mrb[0].mxu0 %vm15061_vm10, %v14872_v31  ;;  %6295 = vmatprep.mubr.msk.f32.mxu1 %vm15062_vm1, %v14872_v31  ;;  %vm15066_vm10 = vcmp.eq.s32.totalorder %v14889_v21, %v14874_v9  ;;  %vm15067_vm1 = vcmp.eq.s32.totalorder %v14889_v21, %v14876_v55 }
 0x38a   : > { %6487 = vmatprep.mubr.msk.f32.mxu0 %vm15063_vm4, %v14872_v31  ;;  %vm15068_vm4 = vcmp.eq.s32.totalorder %v14889_v21, %v14878_v34 }
 0x38c   : > { %6296 = vmatmul.mubr.msk.f32.gmra.mrb[2].mxu1 %vm15064_vm6, %v14872_v31  ;;  %vm15069_vm6 = vcmp.eq.s32.totalorder %v14889_v21, %v14881_v58 }
 0x38d   : > { %6488 = vmatmul.mubr.msk.f32.gmra.mrb[2].mxu0 %vm15065_vm3, %v14872_v31  ;;  %6297 = vmatprep.mubr.msk.f32.mxu1 %vm15066_vm10, %v14872_v31  ;;  %vm15070_vm3 = vcmp.eq.s32.totalorder %v14896_v29, %v14874_v9  ;;  %vm15071_vm10 = vcmp.eq.s32.totalorder %v14896_v29, %v14876_v55 }
 0x38e   : > { %6489 = vmatprep.mubr.msk.f32.mxu0 %vm15067_vm1, %v14872_v31  ;;  %vm15072_vm1 = vcmp.eq.s32.totalorder %v14896_v29, %v14878_v34 }
 0x390   : > { %6298 = vmatmul.mubr.msk.f32.gmra.mrb[4].mxu1 %vm15068_vm4, %v14872_v31  ;;  %vm15073_vm4 = vcmp.eq.s32.totalorder %v14896_v29, %v14881_v58 }
 0x391   : > { %6490 = vmatmul.mubr.msk.f32.gmra.mrb[4].mxu0 %vm15069_vm6, %v14872_v31  ;;  %6299 = vmatprep.mubr.msk.f32.mxu1 %vm15070_vm3, %v14872_v31  ;;  %vm15074_vm6 = vcmp.eq.s32.totalorder %v14903_v16, %v14874_v9  ;;  %vm15075_vm3 = vcmp.eq.s32.totalorder %v14903_v16, %v14876_v55 }
 0x392   : > { %6491 = vmatprep.mubr.msk.f32.mxu0 %vm15071_vm10, %v14872_v31  ;;  %vm15076_vm10 = vcmp.eq.s32.totalorder %v14903_v16, %v14878_v34 }
 0x394   : > { %6300 = vmatmul.mubr.msk.f32.gmra.mrb[6].mxu1 %vm15072_vm1, %v14872_v31  ;;  %vm15077_vm1 = vcmp.eq.s32.totalorder %v14903_v16, %v14881_v58 }
 0x395   : > { %6492 = vmatmul.mubr.msk.f32.gmra.mrb[6].mxu0 %vm15073_vm4, %v14872_v31  ;;  %6301 = vmatprep.mubr.msk.f32.mxu1 %vm15074_vm6, %v14872_v31  ;;  %vm15078_vm4 = vcmp.eq.s32.totalorder %v14910_v10, %v14874_v9  ;;  %vm15079_vm6 = vcmp.eq.s32.totalorder %v14910_v10, %v14876_v55 }
 0x396   : > { %6493 = vmatprep.mubr.msk.f32.mxu0 %vm15075_vm3, %v14872_v31  ;;  %vm15080_vm3 = vcmp.eq.s32.totalorder %v14910_v10, %v14878_v34 }
 0x398   : > { %6302 = vmatmul.mubr.msk.f32.gmra.mrb[8].mxu1 %vm15076_vm10, %v14872_v31  ;;  %vm15081_vm10 = vcmp.eq.s32.totalorder %v14910_v10, %v14881_v58 }
 0x399   : > { %6494 = vmatmul.mubr.msk.f32.gmra.mrb[8].mxu0 %vm15077_vm1, %v14872_v31  ;;  %6303 = vmatprep.mubr.msk.f32.mxu1 %vm15078_vm4, %v14872_v31  ;;  %vm15082_vm1 = vcmp.eq.s32.totalorder %v14917_v56, %v14874_v9  ;;  %vm15083_vm4 = vcmp.eq.s32.totalorder %v14917_v56, %v14876_v55 }
 0x39a   : > { %6495 = vmatprep.mubr.msk.f32.mxu0 %vm15079_vm6, %v14872_v31  ;;  %vm15084_vm6 = vcmp.eq.s32.totalorder %v14917_v56, %v14878_v34 }
 0x39c   : > { %6304 = vmatmul.mubr.msk.f32.gmra.mrb[10].mxu1 %vm15080_vm3, %v14872_v31  ;;  %vm15085_vm3 = vcmp.eq.s32.totalorder %v14917_v56, %v14881_v58 }
 0x39d   : > { %6496 = vmatmul.mubr.msk.f32.gmra.mrb[10].mxu0 %vm15081_vm10, %v14872_v31  ;;  %6305 = vmatprep.mubr.msk.f32.mxu1 %vm15082_vm1, %v14872_v31  ;;  %vm15086_vm10 = vcmp.eq.s32.totalorder %v14924_v28, %v14874_v9  ;;  %vm15087_vm1 = vcmp.eq.s32.totalorder %v14924_v28, %v14876_v55 }
 0x39e   : > { %6497 = vmatprep.mubr.msk.f32.mxu0 %vm15083_vm4, %v14872_v31  ;;  %vm15088_vm4 = vcmp.eq.s32.totalorder %v14924_v28, %v14878_v34 }
 0x3a0   : > { %6306 = vmatmul.mubr.msk.f32.gmra.mrb[12].mxu1 %vm15084_vm6, %v14872_v31  ;;  %vm15089_vm6 = vcmp.eq.s32.totalorder %v14924_v28, %v14881_v58 }
 0x3a1   : > { %6498 = vmatmul.mubr.msk.f32.gmra.mrb[12].mxu0 %vm15085_vm3, %v14872_v31  ;;  %6307 = vmatprep.mubr.msk.f32.mxu1 %vm15086_vm10, %v14872_v31  ;;  %vm15090_vm3 = vcmp.eq.s32.totalorder %v14931_v25, %v14874_v9  ;;  %vm15091_vm10 = vcmp.eq.s32.totalorder %v14931_v25, %v14876_v55 }
 0x3a2   : > { %6499 = vmatprep.mubr.msk.f32.mxu0 %vm15087_vm1, %v14872_v31  ;;  %vm15092_vm1 = vcmp.eq.s32.totalorder %v14931_v25, %v14878_v34 }
 0x3a4   : > { %6308 = vmatmul.mubr.msk.f32.gmra.mrb[14].mxu1 %vm15088_vm4, %v14872_v31  ;;  %vm15093_vm4 = vcmp.eq.s32.totalorder %v14931_v25, %v14881_v58 }
 0x3a5   : > { %6500 = vmatmul.mubr.msk.f32.gmra.mrb[14].mxu0 %vm15089_vm6, %v14872_v31  ;;  %6309 = vmatprep.mubr.msk.f32.mxu1 %vm15090_vm3, %v14872_v31  ;;  %vm15094_vm6 = vcmp.eq.s32.totalorder %v14938_v40, %v14874_v9  ;;  %vm15095_vm3 = vcmp.eq.s32.totalorder %v14938_v40, %v14876_v55 }
 0x3a6   : > { %6501 = vmatprep.mubr.msk.f32.mxu0 %vm15091_vm10, %v14872_v31  ;;  %vm15096_vm10 = vcmp.eq.s32.totalorder %v14938_v40, %v14878_v34 }
 0x3a8   : > { %6310 = vmatmul.mubr.msk.f32.gmra.mrb[16].mxu1 %vm15092_vm1, %v14872_v31  ;;  %vm15097_vm1 = vcmp.eq.s32.totalorder %v14938_v40, %v14881_v58 }
 0x3a9   : > { %6502 = vmatmul.mubr.msk.f32.gmra.mrb[16].mxu0 %vm15093_vm4, %v14872_v31  ;;  %6311 = vmatprep.mubr.msk.f32.mxu1 %vm15094_vm6, %v14872_v31  ;;  %vm15098_vm4 = vcmp.eq.s32.totalorder %v14945_v13, %v14874_v9  ;;  %vm15099_vm6 = vcmp.eq.s32.totalorder %v14945_v13, %v14876_v55 }
 0x3aa   : > { %6503 = vmatprep.mubr.msk.f32.mxu0 %vm15095_vm3, %v14872_v31  ;;  %vm15100_vm3 = vcmp.eq.s32.totalorder %v14945_v13, %v14878_v34 }
 0x3ac   : > { %6312 = vmatmul.mubr.msk.f32.gmra.mrb[18].mxu1 %vm15096_vm10, %v14872_v31  ;;  %vm15101_vm10 = vcmp.eq.s32.totalorder %v14945_v13, %v14881_v58 }
 0x3ad   : > { %6504 = vmatmul.mubr.msk.f32.gmra.mrb[18].mxu0 %vm15097_vm1, %v14872_v31  ;;  %6313 = vmatprep.mubr.msk.f32.mxu1 %vm15098_vm4, %v14872_v31  ;;  %vm15102_vm1 = vcmp.eq.s32.totalorder %v14952_v3, %v14874_v9  ;;  %vm15103_vm4 = vcmp.eq.s32.totalorder %v14952_v3, %v14876_v55 }
 0x3ae   : > { %6505 = vmatprep.mubr.msk.f32.mxu0 %vm15099_vm6, %v14872_v31  ;;  %vm15104_vm6 = vcmp.eq.s32.totalorder %v14952_v3, %v14878_v34 }
 0x3b0   : > { %6314 = vmatmul.mubr.msk.f32.gmra.mrb[20].mxu1 %vm15100_vm3, %v14872_v31  ;;  %vm15105_vm3 = vcmp.eq.s32.totalorder %v14952_v3, %v14881_v58 }
 0x3b1   : > { %6506 = vmatmul.mubr.msk.f32.gmra.mrb[20].mxu0 %vm15101_vm10, %v14872_v31  ;;  %6315 = vmatprep.mubr.msk.f32.mxu1 %vm15102_vm1, %v14872_v31  ;;  %vm15106_vm10 = vcmp.eq.s32.totalorder %v14959_v6, %v14874_v9  ;;  %vm15107_vm1 = vcmp.eq.s32.totalorder %v14959_v6, %v14876_v55 }
 0x3b2   : > { %6507 = vmatprep.mubr.msk.f32.mxu0 %vm15103_vm4, %v14872_v31  ;;  %vm15108_vm4 = vcmp.eq.s32.totalorder %v14959_v6, %v14878_v34 }
 0x3b4   : > { %6316 = vmatmul.mubr.msk.f32.gmra.mrb[22].mxu1 %vm15104_vm6, %v14872_v31  ;;  %vm15109_vm6 = vcmp.eq.s32.totalorder %v14959_v6, %v14881_v58 }
 0x3b5   : > { %6508 = vmatmul.mubr.msk.f32.gmra.mrb[22].mxu0 %vm15105_vm3, %v14872_v31  ;;  %6317 = vmatprep.mubr.msk.f32.mxu1 %vm15106_vm10, %v14872_v31  ;;  %vm15110_vm3 = vcmp.eq.s32.totalorder %v14966_v43, %v14876_v55  ;;  %vm15111_vm10 = vcmp.eq.s32.totalorder %v14970_v37, %v14874_v9 }
 0x3b6   : > { %6509 = vmatprep.mubr.msk.f32.mxu0 %vm15107_vm1, %v14872_v31  ;;  %vm15113_vm1 = vcmp.eq.s32.totalorder %v14970_v37, %v14878_v34 }
 0x3b8   : > { %6318 = vmatmul.mubr.msk.f32.gmra.mrb[24].mxu1 %vm15108_vm4, %v14872_v31  ;;  %vm15116_vm4 = vcmp.eq.s32.totalorder %v14977_v12, %v14876_v55 }
 0x3b9   : > { %6510 = vmatmul.mubr.msk.f32.gmra.mrb[24].mxu0 %vm15109_vm6, %v14872_v31  ;;  %6319 = vmatprep.mubr.msk.f32.mxu1 %vm331_vm12, %v14872_v31  ;;  %vm15112_vm12 = vcmp.eq.s32.totalorder %v14970_v37, %v14876_v55  ;;  %vm15117_vm6 = vcmp.eq.s32.totalorder %v14977_v12, %v14878_v34 }
 0x3ba   : > { %6511 = vmatprep.mubr.msk.f32.mxu0 %vm15110_vm3, %v14872_v31  ;;  %vm15118_vm3 = vcmp.eq.s32.totalorder %v14983_v35, %v14874_v9 }
 0x3bc   : > { %6320 = vmatmul.mubr.msk.f32.gmra.mrb[26].mxu1 %vm330_vm14, %v14872_v31  ;;  %vm15114_vm14 = vcmp.eq.s32.totalorder %v14970_v37, %v14881_v58 }
 0x3bd   : > { %6512 = vmatmul.mubr.msk.f32.gmra.mrb[26].mxu0 %vm332_vm8, %v14872_v31  ;;  %6321 = vmatprep.mubr.msk.f32.mxu1 %vm15111_vm10, %v14872_v31  ;;  %vm15115_vm8 = vcmp.eq.s32.totalorder %v14977_v12, %v14874_v9  ;;  %vm15119_vm10 = vcmp.eq.s32.totalorder %v14983_v35, %v14876_v55 }
 0x3be   : > { %6513 = vmatprep.mubr.msk.f32.mxu0 %vm15112_vm12, %v14872_v31  ;;  %vm15120_vm12 = vcmp.eq.s32.totalorder %v14983_v35, %v14878_v34 }
 0x3c0   : > { %6322 = vmatmul.mubr.msk.f32.gmra.mrb[28].mxu1 %vm15113_vm1, %v14872_v31  ;;  %vm15121_vm1 = vcmp.eq.s32.totalorder %v14983_v35, %v14881_v58 }
 0x3c1   : > { %6514 = vmatmul.mubr.msk.f32.gmra.mrb[28].mxu0 %vm15114_vm14, %v14872_v31  ;;  %6323 = vmatprep.mubr.msk.f32.mxu1 %vm15115_vm8, %v14872_v31  ;;  %vm15123_vm14 = vcmp.eq.s32.totalorder %v14990_v54, %v14876_v55  ;;  %vm15124_vm8 = vcmp.eq.s32.totalorder %v14990_v54, %v14878_v34 }
 0x3c2   : > { %6515 = vmatprep.mubr.msk.f32.mxu0 %vm15116_vm4, %v14872_v31  ;;  %vm15125_vm4 = vcmp.eq.s32.totalorder %v14990_v54, %v14881_v58 }
 0x3c4   : > { %6324 = vmatmul.mubr.msk.f32.gmra.mrb[30].mxu1 %vm15117_vm6, %v14872_v31  ;;  %vm15126_vm6 = vcmp.eq.s32.totalorder %v14995_v41, %v14874_v9 }
 0x3c5   : > { %6516 = vmatmul.mubr.msk.f32.gmra.mrb[30].mxu0 %vm340_vm7, %v14872_v31  ;;  %6325 = vmatprep.mubr.msk.f32.mxu1 %vm15118_vm3, %v14872_v31  ;;  %vm15122_vm7 = vcmp.eq.s32.totalorder %v14990_v54, %v14874_v9  ;;  %vm15127_vm3 = vcmp.eq.s32.totalorder %v14995_v41, %v14876_v55 }
 0x3c6   : > { %6517 = vmatprep.mubr.msk.f32.mxu0 %vm15119_vm10, %v14872_v31  ;;  %vm15128_vm10 = vcmp.eq.s32.totalorder %v14995_v41, %v14878_v34 }
 0x3c8   : > { %6326 = vmatmul.mubr.msk.f32.gmra.mrb[32].mxu1 %vm15120_vm12, %v14872_v31  ;;  %vm15129_vm12 = vcmp.eq.s32.totalorder %v14995_v41, %v14881_v58 }
 0x3c9   : > { %6518 = vmatmul.mubr.msk.f32.gmra.mrb[32].mxu0 %vm15121_vm1, %v14872_v31  ;;  %6327 = vmatprep.mubr.msk.f32.mxu1 %vm15122_vm7, %v14872_v31  ;;  %vm15130_vm1 = vcmp.eq.s32.totalorder %v15000_v53, %v14874_v9  ;;  %vm15131_vm7 = vcmp.eq.s32.totalorder %v15000_v53, %v14876_v55 }
 0x3ca   : > { %6519 = vmatprep.mubr.msk.f32.mxu0 %vm15123_vm14, %v14872_v31  ;;  %vm15132_vm14 = vcmp.eq.s32.totalorder %v15000_v53, %v14878_v34 }
 0x3cc   : > { %6328 = vmatmul.mubr.msk.f32.gmra.mrb[34].mxu1 %vm15124_vm8, %v14872_v31  ;;  %vm15133_vm8 = vcmp.eq.s32.totalorder %v15000_v53, %v14881_v58 }
 0x3cd   : > { %6520 = vmatmul.mubr.msk.f32.gmra.mrb[34].mxu0 %vm15125_vm4, %v14872_v31  ;;  %6329 = vmatprep.mubr.msk.f32.mxu1 %vm15126_vm6, %v14872_v31  ;;  %vm15134_vm4 = vcmp.eq.s32.totalorder %v15005_v24, %v14874_v9  ;;  %vm15135_vm6 = vcmp.eq.s32.totalorder %v15005_v24, %v14876_v55 }
 0x3ce   : > { %6521 = vmatprep.mubr.msk.f32.mxu0 %vm15127_vm3, %v14872_v31  ;;  %vm15136_vm3 = vcmp.eq.s32.totalorder %v15005_v24, %v14878_v34 }
 0x3d0   : > { %6330 = vmatmul.mubr.msk.f32.gmra.mrb[36].mxu1 %vm15128_vm10, %v14872_v31  ;;  %vm15137_vm10 = vcmp.eq.s32.totalorder %v15005_v24, %v14881_v58 }
 0x3d1   : > { %6522 = vmatmul.mubr.msk.f32.gmra.mrb[36].mxu0 %vm15129_vm12, %v14872_v31  ;;  %6331 = vmatprep.mubr.msk.f32.mxu1 %vm15130_vm1, %v14872_v31  ;;  %vm15138_vm12 = vcmp.eq.s32.totalorder %v15010_v47, %v14874_v9  ;;  %vm15139_vm1 = vcmp.eq.s32.totalorder %v15010_v47, %v14876_v55 }
 0x3d2   : > { %6523 = vmatprep.mubr.msk.f32.mxu0 %vm15131_vm7, %v14872_v31  ;;  %vm15140_vm7 = vcmp.eq.s32.totalorder %v15010_v47, %v14878_v34 }
 0x3d4   : > { %6332 = vmatmul.mubr.msk.f32.gmra.mrb[38].mxu1 %vm15132_vm14, %v14872_v31  ;;  %vm15141_vm14 = vcmp.eq.s32.totalorder %v15010_v47, %v14881_v58 }
 0x3d5   : > { %6524 = vmatmul.mubr.msk.f32.gmra.mrb[38].mxu0 %vm15133_vm8, %v14872_v31  ;;  %6333 = vmatprep.mubr.msk.f32.mxu1 %vm15134_vm4, %v14872_v31  ;;  %vm15142_vm8 = vcmp.eq.s32.totalorder %v15015_v11, %v14874_v9  ;;  %vm15143_vm4 = vcmp.eq.s32.totalorder %v15015_v11, %v14876_v55 }
 0x3d6   : > { %6525 = vmatprep.mubr.msk.f32.mxu0 %vm15135_vm6, %v14872_v31  ;;  %vm15144_vm6 = vcmp.eq.s32.totalorder %v15015_v11, %v14878_v34 }
 0x3d8   : > { %6334 = vmatmul.mubr.msk.f32.gmra.mrb[40].mxu1 %vm15136_vm3, %v14872_v31  ;;  %vm15145_vm3 = vcmp.eq.s32.totalorder %v15015_v11, %v14881_v58 }
 0x3d9   : > { %6526 = vmatmul.mubr.msk.f32.gmra.mrb[40].mxu0 %vm15137_vm10, %v14872_v31  ;;  %6335 = vmatprep.mubr.msk.f32.mxu1 %vm15138_vm12, %v14872_v31  ;;  %vm15146_vm10 = vcmp.eq.s32.totalorder %v15020_v33, %v14874_v9  ;;  %vm15147_vm12 = vcmp.eq.s32.totalorder %v15020_v33, %v14876_v55 }
 0x3da   : > { %6527 = vmatprep.mubr.msk.f32.mxu0 %vm15139_vm1, %v14872_v31  ;;  %vm15148_vm1 = vcmp.eq.s32.totalorder %v15020_v33, %v14878_v34 }
 0x3dc   : > { %6336 = vmatmul.mubr.msk.f32.gmra.mrb[42].mxu1 %vm15140_vm7, %v14872_v31  ;;  %vm15149_vm7 = vcmp.eq.s32.totalorder %v15020_v33, %v14881_v58 }
 0x3dd   : > { %6528 = vmatmul.mubr.msk.f32.gmra.mrb[42].mxu0 %vm15141_vm14, %v14872_v31  ;;  %6337 = vmatprep.mubr.msk.f32.mxu1 %vm15142_vm8, %v14872_v31  ;;  %vm15150_vm14 = vcmp.eq.s32.totalorder %v15025_v8, %v14874_v9  ;;  %vm15151_vm8 = vcmp.eq.s32.totalorder %v15025_v8, %v14876_v55 }
 0x3de   : > { %6529 = vmatprep.mubr.msk.f32.mxu0 %vm15143_vm4, %v14872_v31  ;;  %vm15152_vm4 = vcmp.eq.s32.totalorder %v15025_v8, %v14878_v34 }
 0x3e0   : > { %6338 = vmatmul.mubr.msk.f32.gmra.mrb[44].mxu1 %vm15144_vm6, %v14872_v31  ;;  %vm15153_vm6 = vcmp.eq.s32.totalorder %v15025_v8, %v14881_v58 }
 0x3e1   : > { %6530 = vmatmul.mubr.msk.f32.gmra.mrb[44].mxu0 %vm15145_vm3, %v14872_v31  ;;  %6339 = vmatprep.mubr.msk.f32.mxu1 %vm15146_vm10, %v14872_v31  ;;  %vm15154_vm3 = vcmp.eq.s32.totalorder %v15030_v49, %v14874_v9  ;;  %vm15155_vm10 = vcmp.eq.s32.totalorder %v15030_v49, %v14876_v55 }
 0x3e2   : > { %6531 = vmatprep.mubr.msk.f32.mxu0 %vm15147_vm12, %v14872_v31  ;;  %vm15156_vm12 = vcmp.eq.s32.totalorder %v15030_v49, %v14878_v34 }
 0x3e4   : > { %6340 = vmatmul.mubr.msk.f32.gmra.mrb[46].mxu1 %vm15148_vm1, %v14872_v31  ;;  %vm15157_vm1 = vcmp.eq.s32.totalorder %v15030_v49, %v14881_v58 }
 0x3e5   : > { %6532 = vmatmul.mubr.msk.f32.gmra.mrb[46].mxu0 %vm15149_vm7, %v14872_v31  ;;  %6341 = vmatprep.mubr.msk.f32.mxu1 %vm15150_vm14, %v14872_v31  ;;  %vm15158_vm7 = vcmp.eq.s32.totalorder %v15035_v32, %v14874_v9  ;;  %vm15159_vm14 = vcmp.eq.s32.totalorder %v15035_v32, %v14876_v55 }
 0x3e6   : > { %6533 = vmatprep.mubr.msk.f32.mxu0 %vm15151_vm8, %v14872_v31  ;;  %vm15160_vm8 = vcmp.eq.s32.totalorder %v15035_v32, %v14878_v34 }
 0x3e8   : > { %6342 = vmatmul.mubr.msk.f32.gmra.mrb[48].mxu1 %vm15152_vm4, %v14872_v31  ;;  %vm15161_vm4 = vcmp.eq.s32.totalorder %v15035_v32, %v14881_v58 }
 0x3e9   : > { %6534 = vmatmul.mubr.msk.f32.gmra.mrb[48].mxu0 %vm15153_vm6, %v14872_v31  ;;  %6343 = vmatprep.mubr.msk.f32.mxu1 %vm15154_vm3, %v14872_v31  ;;  %vm15162_vm6 = vcmp.eq.s32.totalorder %v15040_v57, %v14874_v9  ;;  %vm15163_vm3 = vcmp.eq.s32.totalorder %v15040_v57, %v14876_v55 }
 0x3ea   : > { %6535 = vmatprep.mubr.msk.f32.mxu0 %vm15155_vm10, %v14872_v31  ;;  %vm15164_vm10 = vcmp.eq.s32.totalorder %v15040_v57, %v14881_v58 }
 0x3ec   : > { %6344 = vmatmul.mubr.msk.f32.gmra.mrb[50].mxu1 %vm15156_vm12, %v14872_v31  ;;  %vm15172_vm12 = vcmp.eq.s32.totalorder %v15053_v38, %v14876_v55 }
 0x3ed   : > { %6536 = vmatmul.mubr.msk.f32.gmra.mrb[50].mxu0 %vm15157_vm1, %v14872_v31  ;;  %6345 = vmatprep.mubr.msk.f32.mxu1 %vm15158_vm7, %v14872_v31  ;;  %vm15173_vm1 = vcmp.eq.s32.totalorder %v15053_v38, %v14878_v34  ;;  %vm15174_vm7 = vcmp.eq.s32.totalorder %v15053_v38, %v14881_v58 }
 0x3ee   : > { %6537 = vmatprep.mubr.msk.f32.mxu0 %vm15159_vm14, %v14872_v31 }
 0x3f0   : > { %6346 = vmatmul.mubr.msk.f32.gmra.mrb[52].mxu1 %vm15160_vm8, %v14872_v31 }
 0x3f1   : > { %6538 = vmatmul.mubr.msk.f32.gmra.mrb[52].mxu0 %vm15161_vm4, %v14872_v31  ;;  %6347 = vmatprep.mubr.msk.f32.mxu1 %vm15162_vm6, %v14872_v31 }
 0x3f2   : > { %6539 = vmatprep.mubr.msk.f32.mxu0 %vm15163_vm3, %v14872_v31 }
 0x3f4   : > { %6348 = vmatmul.mubr.msk.f32.gmra.mrb[54].mxu1 %vm386_vm9, %v14872_v31  ;;  %vm15167_vm9 = vcmp.eq.s32.totalorder %v15048_v27, %v14874_v9 }
 0x3f5   : > { %6540 = vmatmul.mubr.msk.f32.gmra.mrb[54].mxu0 %vm15164_vm10, %v14872_v31  ;;  %6349 = vmatprep.mubr.msk.f32.mxu1 %vm391_vm5, %v14872_v31  ;;  %vm15165_vm5 = vcmp.eq.s32.totalorder %v15045_v59, %v14878_v34 }
 0x3f6   : > { %6541 = vmatprep.mubr.msk.f32.mxu0 %vm393_vm13, %v14872_v31  ;;  %vm15170_vm13 = vcmp.eq.s32.totalorder %v15048_v27, %v14881_v58 }
 0x3f8   : > { %6350 = vmatmul.mubr.msk.f32.gmra.mrb[56].mxu1 %vm390_vm0, %v14872_v31  ;;  %vm15166_vm0 = vcmp.eq.s32.totalorder %v15045_v59, %v14881_v58 }
 0x3f9   : > { %6542 = vmatmul.mubr.msk.f32.gmra.mrb[56].mxu0 %vm392_vm15, %v14872_v31  ;;  %6351 = vmatprep.mubr.msk.f32.mxu1 %vm395_vm2, %v14872_v31  ;;  %vm15168_vm2 = vcmp.eq.s32.totalorder %v15048_v27, %v14876_v55  ;;  %vm15171_vm15 = vcmp.eq.s32.totalorder %v15053_v38, %v14874_v9 }
 0x3fa   : > { %6543 = vmatprep.mubr.msk.f32.mxu0 %vm397_vm11, %v14872_v31  ;;  %vm15169_vm11 = vcmp.eq.s32.totalorder %v15048_v27, %v14878_v34 }
 0x3fc   : > { %6352 = vmatmul.mubr.msk.f32.gmra.mrb[58].mxu1 %vm15165_vm5, %v14872_v31 }
 0x3fd   : > { %6544 = vmatmul.mubr.msk.f32.gmra.mrb[58].mxu0 %vm15166_vm0, %v14872_v31  ;;  %6353 = vmatprep.mubr.msk.f32.mxu1 %vm15167_vm9, %v14872_v31 }
 0x3fe   : > { %6545 = vmatprep.mubr.msk.f32.mxu0 %vm15168_vm2, %v14872_v31 }
 0x400   : > { %6354 = vmatmul.mubr.msk.f32.gmra.mrb[60].mxu1 %vm15169_vm11, %v14872_v31 }
 0x401   : > { %6546 = vmatmul.mubr.msk.f32.gmra.mrb[60].mxu0 %vm15170_vm13, %v14872_v31  ;;  %6355 = vmatprep.mubr.msk.f32.mxu1 %vm15171_vm15, %v14872_v31 }
 0x402   : > { %6547 = vmatprep.mubr.msk.f32.mxu0 %vm15172_vm12, %v14872_v31 }
 0x404   : > { %6356 = vmatmul.mubr.msk.f32.gmra.mrb[62].mxu1 %vm15173_vm1, %v14872_v31 }
 0x405   : > { %6548 = vmatmul.mubr.msk.f32.gmra.mrb[62].mxu0 %vm15174_vm7, %v14872_v31 }
 0x45b   : > { %v3103_v26 = vpop.f32.mrb[0].mxu1 }
 0x45c   : > { %v5701_v9 = vpop.f32.mrb[0].mxu0  ;;  %v3105_v60 = vpop.f32.mrb[1].mxu1 }
 0x45d   : > { %v7131_v21 = vadd.f32 %v5701_v9, %v3103_v26  ;;  %v5703_v29 = vpop.f32.mrb[1].mxu0 }
 0x45f   : > { %5922 = vst [vmem:[%s12958_s29] sm:$0xff] %v7131_v21  ;;  %v3110_v55 = vpop.f32.mrb[2].mxu1 }
 0x460   : > { %v5708_v34 = vpop.f32.mrb[2].mxu0  ;;  %v3112_v45 = vpop.f32.mrb[3].mxu1 }
 0x461   : > { %v7132_v58 = vadd.f32 %v5708_v34, %v3110_v55  ;;  %v5710_v31 = vpop.f32.mrb[3].mxu0 }
 0x463   : > { %5923 = vst [vmem:[%s12958_s29 + $0x8] sm:$0xff] %v7132_v58  ;;  %v3117_v16 = vpop.f32.mrb[4].mxu1 }
 0x464   : > { %v5715_v17 = vpop.f32.mrb[4].mxu0  ;;  %v3119_v20 = vpop.f32.mrb[5].mxu1 }
 0x465   : > { %v7133_v10 = vadd.f32 %v5715_v17, %v3117_v16  ;;  %v5717_v63 = vpop.f32.mrb[5].mxu0 }
 0x467   : > { %5924 = vst [vmem:[%s12958_s29 + $0x10] sm:$0xff] %v7133_v10  ;;  %v3124_v14 = vpop.f32.mrb[6].mxu1 }
 0x468   : > { %v5722_v56 = vpop.f32.mrb[6].mxu0  ;;  %v3126_v18 = vpop.f32.mrb[7].mxu1 }
 0x469   : > { %v7134_v23 = vadd.f32 %v5722_v56, %v3124_v14  ;;  %v5724_v28 = vpop.f32.mrb[7].mxu0 }
 0x46b   : > { %5925 = vst [vmem:[%s12958_s29 + $0x18] sm:$0xff] %v7134_v23  ;;  %v3131_v48 = vpop.f32.mrb[8].mxu1 }
 0x46c   : > { %v5729_v1 = vpop.f32.mrb[8].mxu0  ;;  %v3133_v25 = vpop.f32.mrb[9].mxu1 }
 0x46d   : > { %v7135_v39 = vadd.f32 %v5729_v1, %v3131_v48  ;;  %v5731_v36 = vpop.f32.mrb[9].mxu0 }
 0x46f   : > { %5926 = vst [vmem:[%s12958_s29 + $0x20] sm:$0xff] %v7135_v39  ;;  %v3138_v40 = vpop.f32.mrb[10].mxu1 }
 0x470   : > { %v5736_v22 = vpop.f32.mrb[10].mxu0  ;;  %v3140_v44 = vpop.f32.mrb[11].mxu1 }
 0x471   : > { %v7136_v13 = vadd.f32 %v5736_v22, %v3138_v40  ;;  %v5738_v4 = vpop.f32.mrb[11].mxu0 }
 0x473   : > { %5927 = vst [vmem:[%s12958_s29 + $0x28] sm:$0xff] %v7136_v13  ;;  %v3145_v2 = vpop.f32.mrb[12].mxu1 }
 0x474   : > { %v5743_v3 = vpop.f32.mrb[12].mxu0  ;;  %v3147_v30 = vpop.f32.mrb[13].mxu1 }
 0x475   : > { %v7137_v42 = vadd.f32 %v5743_v3, %v3145_v2  ;;  %v5745_v6 = vpop.f32.mrb[13].mxu0 }
 0x477   : > { %5928 = vst [vmem:[%s12958_s29 + $0x30] sm:$0xff] %v7137_v42  ;;  %v3152_v19 = vpop.f32.mrb[14].mxu1 }
 0x478   : > { %v5750_v51 = vpop.f32.mrb[14].mxu0  ;;  %v3154_v43 = vpop.f32.mrb[15].mxu1 }
 0x479   : > { %v7138_v5 = vadd.f32 %v5750_v51, %v3152_v19  ;;  %v5752_v62 = vpop.f32.mrb[15].mxu0 }
 0x47b   : > { %5929 = vst [vmem:[%s12958_s29 + $0x38] sm:$0xff] %v7138_v5  ;;  %v3159_v37 = vpop.f32.mrb[16].mxu1 }
 0x47c   : > { %v5757_v0 = vpop.f32.mrb[16].mxu0  ;;  %v3161_v52 = vpop.f32.mrb[17].mxu1 }
 0x47d   : > { %v7139_v12 = vadd.f32 %v5757_v0, %v3159_v37  ;;  %v5759_v61 = vpop.f32.mrb[17].mxu0 }
 0x47f   : > { %5930 = vst [vmem:[%s12958_s29 + $0x40] sm:$0xff] %v7139_v12  ;;  %v3166_v7 = vpop.f32.mrb[18].mxu1 }
 0x480   : > { %v5764_v35 = vpop.f32.mrb[18].mxu0  ;;  %v3168_v50 = vpop.f32.mrb[19].mxu1 }
 0x481   : > { %v7140_v15 = vadd.f32 %v5764_v35, %v3166_v7  ;;  %v5766_v54 = vpop.f32.mrb[19].mxu0 }
 0x483   : > { %5931 = vst [vmem:[%s12958_s29 + $0x48] sm:$0xff] %v7140_v15  ;;  %v3173_v41 = vpop.f32.mrb[20].mxu1 }
 0x484   : > { %v5771_v53 = vpop.f32.mrb[20].mxu0  ;;  %v3175_v24 = vpop.f32.mrb[21].mxu1 }
 0x485   : > { %v7141_v47 = vadd.f32 %v5771_v53, %v3173_v41  ;;  %v5773_v11 = vpop.f32.mrb[21].mxu0 }
 0x487   : > { %5932 = vst [vmem:[%s12958_s29 + $0x50] sm:$0xff] %v7141_v47  ;;  %v3180_v33 = vpop.f32.mrb[22].mxu1 }
 0x488   : > { %v5778_v8 = vpop.f32.mrb[22].mxu0  ;;  %v3182_v49 = vpop.f32.mrb[23].mxu1 }
 0x489   : > { %v7142_v32 = vadd.f32 %v5778_v8, %v3180_v33  ;;  %v5780_v57 = vpop.f32.mrb[23].mxu0 }
 0x48b   : > { %5933 = vst [vmem:[%s12958_s29 + $0x58] sm:$0xff] %v7142_v32  ;;  %v3187_v46 = vpop.f32.mrb[24].mxu1 }
 0x48c   : > { %v5785_v59 = vpop.f32.mrb[24].mxu0  ;;  %v3189_v27 = vpop.f32.mrb[25].mxu1 }
 0x48d   : > { %v7143_v38 = vadd.f32 %v5785_v59, %v3187_v46  ;;  %v5787_v26 = vpop.f32.mrb[25].mxu0 }
 0x48f   : > { %5934 = vst [vmem:[%s12958_s29 + $0x60] sm:$0xff] %v7143_v38  ;;  %v3194_v9 = vpop.f32.mrb[26].mxu1 }
 0x490   : > { %v5792_v60 = vpop.f32.mrb[26].mxu0  ;;  %v3196_v21 = vpop.f32.mrb[27].mxu1 }
 0x491   : > { %v7144_v29 = vadd.f32 %v5792_v60, %v3194_v9  ;;  %v5794_v55 = vpop.f32.mrb[27].mxu0 }
 0x493   : > { %5935 = vst [vmem:[%s12958_s29 + $0x68] sm:$0xff] %v7144_v29  ;;  %v3201_v34 = vpop.f32.mrb[28].mxu1 }
 0x494   : > { %v5799_v45 = vpop.f32.mrb[28].mxu0  ;;  %v3203_v58 = vpop.f32.mrb[29].mxu1 }
 0x495   : > { %v7145_v31 = vadd.f32 %v5799_v45, %v3201_v34  ;;  %v5801_v16 = vpop.f32.mrb[29].mxu0 }
 0x497   : > { %5936 = vst [vmem:[%s12958_s29 + $0x70] sm:$0xff] %v7145_v31  ;;  %v3208_v17 = vpop.f32.mrb[30].mxu1 }
 0x498   : > { %v5806_v20 = vpop.f32.mrb[30].mxu0  ;;  %v3210_v10 = vpop.f32.mrb[31].mxu1 }
 0x499   : > { %v7146_v63 = vadd.f32 %v5806_v20, %v3208_v17  ;;  %v5808_v14 = vpop.f32.mrb[31].mxu0 }
 0x49b   : > { %5937 = vst [vmem:[%s12958_s29 + $0x78] sm:$0xff] %v7146_v63  ;;  %v3215_v56 = vpop.f32.mrb[32].mxu1 }
 0x49c   : > { %v5813_v18 = vpop.f32.mrb[32].mxu0  ;;  %v3217_v23 = vpop.f32.mrb[33].mxu1 }
 0x49d   : > { %v7147_v28 = vadd.f32 %v5813_v18, %v3215_v56  ;;  %v5815_v48 = vpop.f32.mrb[33].mxu0 }
 0x49f   : > { %5938 = vst [vmem:[%s12958_s29 + $0x80] sm:$0xff] %v7147_v28  ;;  %v3222_v1 = vpop.f32.mrb[34].mxu1 }
 0x4a0   : > { %v5820_v25 = vpop.f32.mrb[34].mxu0  ;;  %v3224_v39 = vpop.f32.mrb[35].mxu1 }
 0x4a1   : > { %v7148_v36 = vadd.f32 %v5820_v25, %v3222_v1  ;;  %v5822_v40 = vpop.f32.mrb[35].mxu0 }
 0x4a3   : > { %5939 = vst [vmem:[%s12958_s29 + $0x88] sm:$0xff] %v7148_v36  ;;  %v3229_v22 = vpop.f32.mrb[36].mxu1 }
 0x4a4   : > { %v5827_v44 = vpop.f32.mrb[36].mxu0  ;;  %v3231_v13 = vpop.f32.mrb[37].mxu1 }
 0x4a5   : > { %v7149_v4 = vadd.f32 %v5827_v44, %v3229_v22  ;;  %v5829_v2 = vpop.f32.mrb[37].mxu0 }
 0x4a7   : > { %5940 = vst [vmem:[%s12958_s29 + $0x90] sm:$0xff] %v7149_v4  ;;  %v3236_v3 = vpop.f32.mrb[38].mxu1 }
 0x4a8   : > { %v5834_v30 = vpop.f32.mrb[38].mxu0  ;;  %v3238_v42 = vpop.f32.mrb[39].mxu1 }
 0x4a9   : > { %v7150_v6 = vadd.f32 %v5834_v30, %v3236_v3  ;;  %v5836_v19 = vpop.f32.mrb[39].mxu0 }
 0x4ab   : > { %5941 = vst [vmem:[%s12958_s29 + $0x98] sm:$0xff] %v7150_v6  ;;  %v3243_v51 = vpop.f32.mrb[40].mxu1 }
 0x4ac   : > { %v5841_v43 = vpop.f32.mrb[40].mxu0  ;;  %v3245_v5 = vpop.f32.mrb[41].mxu1 }
 0x4ad   : > { %v7151_v62 = vadd.f32 %v5841_v43, %v3243_v51  ;;  %v5843_v37 = vpop.f32.mrb[41].mxu0 }
 0x4af   : > { %5942 = vst [vmem:[%s12958_s29 + $0xa0] sm:$0xff] %v7151_v62  ;;  %v3250_v0 = vpop.f32.mrb[42].mxu1 }
 0x4b0   : > { %v5848_v52 = vpop.f32.mrb[42].mxu0  ;;  %v3252_v12 = vpop.f32.mrb[43].mxu1 }
 0x4b1   : > { %v7152_v61 = vadd.f32 %v5848_v52, %v3250_v0  ;;  %v5850_v7 = vpop.f32.mrb[43].mxu0 }
 0x4b3   : > { %5943 = vst [vmem:[%s12958_s29 + $0xa8] sm:$0xff] %v7152_v61  ;;  %v3257_v35 = vpop.f32.mrb[44].mxu1 }
 0x4b4   : > { %v5855_v50 = vpop.f32.mrb[44].mxu0  ;;  %v3259_v15 = vpop.f32.mrb[45].mxu1 }
 0x4b5   : > { %v7153_v54 = vadd.f32 %v5855_v50, %v3257_v35  ;;  %v5857_v41 = vpop.f32.mrb[45].mxu0 }
 0x4b7   : > { %5944 = vst [vmem:[%s12958_s29 + $0xb0] sm:$0xff] %v7153_v54  ;;  %v3264_v53 = vpop.f32.mrb[46].mxu1 }
 0x4b8   : > { %v5862_v24 = vpop.f32.mrb[46].mxu0  ;;  %v3266_v47 = vpop.f32.mrb[47].mxu1 }
 0x4b9   : > { %v7154_v11 = vadd.f32 %v5862_v24, %v3264_v53  ;;  %v5864_v33 = vpop.f32.mrb[47].mxu0 }
 0x4bb   : > { %5945 = vst [vmem:[%s12958_s29 + $0xb8] sm:$0xff] %v7154_v11  ;;  %v3271_v8 = vpop.f32.mrb[48].mxu1 }
 0x4bc   : > { %v5869_v49 = vpop.f32.mrb[48].mxu0  ;;  %v3273_v32 = vpop.f32.mrb[49].mxu1 }
 0x4bd   : > { %v7155_v57 = vadd.f32 %v5869_v49, %v3271_v8  ;;  %v5871_v46 = vpop.f32.mrb[49].mxu0 }
 0x4bf   : > { %5946 = vst [vmem:[%s12958_s29 + $0xc0] sm:$0xff] %v7155_v57  ;;  %v3278_v59 = vpop.f32.mrb[50].mxu1 }
 0x4c0   : > { %v5876_v27 = vpop.f32.mrb[50].mxu0  ;;  %v3280_v38 = vpop.f32.mrb[51].mxu1 }
 0x4c1   : > { %v7156_v26 = vadd.f32 %v5876_v27, %v3278_v59  ;;  %v5878_v9 = vpop.f32.mrb[51].mxu0 }
 0x4c3   : > { %5947 = vst [vmem:[%s12958_s29 + $0xc8] sm:$0xff] %v7156_v26  ;;  %v3285_v60 = vpop.f32.mrb[52].mxu1 }
 0x4c4   : > { %v5883_v21 = vpop.f32.mrb[52].mxu0  ;;  %v3287_v29 = vpop.f32.mrb[53].mxu1 }
 0x4c5   : > { %v7157_v55 = vadd.f32 %v5883_v21, %v3285_v60  ;;  %v5885_v34 = vpop.f32.mrb[53].mxu0 }
 0x4c7   : > { %5948 = vst [vmem:[%s12958_s29 + $0xd0] sm:$0xff] %v7157_v55  ;;  %v3292_v45 = vpop.f32.mrb[54].mxu1 }
 0x4c8   : > { %v5890_v58 = vpop.f32.mrb[54].mxu0  ;;  %v3294_v31 = vpop.f32.mrb[55].mxu1 }
 0x4c9   : > { %v7158_v16 = vadd.f32 %v5890_v58, %v3292_v45  ;;  %v5892_v17 = vpop.f32.mrb[55].mxu0 }
 0x4cb   : > { %5949 = vst [vmem:[%s12958_s29 + $0xd8] sm:$0xff] %v7158_v16  ;;  %v3299_v20 = vpop.f32.mrb[56].mxu1 }
 0x4cc   : > { %v5897_v10 = vpop.f32.mrb[56].mxu0  ;;  %v3301_v63 = vpop.f32.mrb[57].mxu1 }
 0x4cd   : > { %v7159_v14 = vadd.f32 %v5897_v10, %v3299_v20  ;;  %v5899_v56 = vpop.f32.mrb[57].mxu0 }
 0x4cf   : > { %5950 = vst [vmem:[%s12958_s29 + $0xe0] sm:$0xff] %v7159_v14  ;;  %v3306_v18 = vpop.f32.mrb[58].mxu1 }
 0x4d0   : > { %v5904_v23 = vpop.f32.mrb[58].mxu0  ;;  %v3308_v28 = vpop.f32.mrb[59].mxu1 }
 0x4d1   : > { %v7160_v48 = vadd.f32 %v5904_v23, %v3306_v18  ;;  %v5906_v1 = vpop.f32.mrb[59].mxu0 }
 0x4d3   : > { %5951 = vst [vmem:[%s12958_s29 + $0xe8] sm:$0xff] %v7160_v48  ;;  %v3313_v25 = vpop.f32.mrb[60].mxu1 }
 0x4d4   : > { %v5911_v39 = vpop.f32.mrb[60].mxu0  ;;  %v3315_v36 = vpop.f32.mrb[61].mxu1 }
 0x4d5   : > { %v7161_v40 = vadd.f32 %v5911_v39, %v3313_v25  ;;  %v5913_v22 = vpop.f32.mrb[61].mxu0 }
 0x4d7   : > { %5952 = vst [vmem:[%s12958_s29 + $0xf0] sm:$0xff] %v7161_v40  ;;  %v3320_v44 = vpop.f32.mrb[62].mxu1 }
 0x4d8   : > { %v5918_v13 = vpop.f32.mrb[62].mxu0  ;;  %v3322_v4 = vpop.f32.mrb[63].mxu1 }
 0x4d9   : > { %v7162_v2 = vadd.f32 %v5918_v13, %v3320_v44  ;;  %v5920_v3 = vpop.f32.mrb[63].mxu0 }
 0x4db   : > { %5953 = vst [vmem:[%s12958_s29 + $0xf8] sm:$0xff] %v7162_v2 }
 0x4dc   : > { %7863 = shalt.err (!%p7860_p3)
}
 0x4dd   : > { %s7864_s17 = scalar_lea.hbm %s12996_s21, 4096  ;;  %s7868_s24 = scalar_lea.hbm %s13046_s2, 12288 }
 0x4de   : > { %p7865_p4 = scmp.ne.s32.totalorder %s12996_s21, %s7864_s17  ;;  %p7869_p9 = scmp.lt.u32.totalorder %s12996_s21, %s13046_s2 }
 0x4df   : > { %p7870_p10 = scmp.lt.u32.totalorder %s7868_s24, %s7864_s17  ;;  %p7872_p12 = scmp.lt.u32.totalorder %s7864_s17, %s12996_s21 }
 0x4e0   : > { %p7866_p7 = pnand %p7865_p4, %p7974_p5 }
 0x4e1   : > { %p7871_p11 = por %p7870_p10, %p7869_p9 }
 0x4e2   : > { %p7867_p8 = pneg %p7866_p7 }
 0x4e3   : > { %p7873_p13 = por %p7872_p12, %p7871_p11 }
 0x4e5   : > { %p7874_p0 = pnand %p7873_p13, %p7867_p8 }
 0x4e7   : > { %7877 = shalt.err (!%p7874_p0)
}
 0x4e8   : > { %s7919_s27 = smov 128   ;;  %s7920_s6 = smov 8  }
 0x4e9   : > { %7803 = dma.vmem_to_hbm [thread:$0]  (%p7974_p5), %s12998_s3, 4096, %s12996_s21, %s13003_s13, %s7919_s27, %s7919_s27, %s7920_s6  }
 0x4ea PF: > { %p7809_p1 = scmp.ge.s32.totalorder %s7912_s12, 2  ;;  %s5983_s28 = sand.u32 1, %s7900_s9  }
 0x4eb   : > { %s5984_s29 = scalar_lea.sflag [#allocation3], %s5983_s28 }
 0x4ec   : > { %p7806_p2 = pnand %p7809_p1, %p7978_p6 }
 0x4ee   : > { %7895 = dma.done.wait (!%p7806_p2), %s5984_s29, 4096  }
 0x4ef   : > { %7897 = vsyncadd (!%p7806_p2), %s5984_s29, 4294963200  ;;  %p12_p3 = scmp.ge.s32.totalorder %s7961_s15, 5   ;;  %s15175_s9 = smov %s7904_s10 }
 0x4f0   : > { %s15176_s10 = smov %s7908_s11  ;;  %s15177_s11 = smov %s7972_s18 }
 0x4f1   : > { %s15178_s12 = smov %s7961_s15  ;;  %14 = sbr.rel (!%p12_p3) target bundleno = 3 (0x3), region = 63 }
 0x4f8   :  { %5989 = vsyncpa [#allocation3], 1 }
 0x4f9   :  { %5991 = vsyncpa [#allocation3 + $0x1], 1 }

</bundles_post_ra>
